<compile_context>
chip_gen: v7x
topology: tpu7x:2x2x1
jax: 0.10.0
libtpu: 0.0.40
codegen_flags: <defaults>
</compile_context>

<pallas_src>
import functools

import jax
import jax.numpy as jnp
from jax import lax
from jax.experimental import pallas as pl
from jax.experimental.pallas import tpu as pltpu

BN_EPS = 1e-5
PADW = 8      # left/right column halo width (sublane-aligned stores)
LANE = 128    # lane-dense channel padding target


# ----------------------------------------------------------------------------
# Kernel 1: fused Conv3x3(pad=1) + folded-BN bias + ReLU + MaxPool2x2
#   grid = (batch,), one image per (parallel) grid step.
#   x_ref : (1, H+2, W+2*PADW, Cin) bf16   halo-padded input
#   w_ref : (9, Cin, Cout)          bf16   BN scale folded, channels padded
#   b_ref : (1, Cout)               f32    folded BN+conv bias
#   o_ref : padded (1, H/2+2, W/2+2*PADW, Cout) or compact (1, H/2, W/2, Cout)
#   scr   : VMEM ((R/2)*W, Cout) f32  tiny per-chunk scratch for the W-pool
# ----------------------------------------------------------------------------
def _conv_bn_relu_pool_kernel(x_ref, w_ref, b_ref, o_ref, scr_ref,
                              *, H, W, Cin, Cout, R, padded_out):
    H2, W2 = H // 2, W // 2
    R2 = R // 2
    nchunks = H // R
    bias = b_ref[...]                                     # (1, Cout) f32, hoisted

    if padded_out:
        zrow = jnp.zeros((W2 + 2 * PADW, Cout), o_ref.dtype)
        o_ref[0, 0, :, :] = zrow                          # top halo row
        o_ref[0, H2 + 1, :, :] = zrow                     # bottom halo row
        zcol = jnp.zeros((R2, PADW, Cout), o_ref.dtype)

    @pl.loop(0, nchunks)
    def _chunk(i):
        h0 = i * R                                        # conv-row block start
        # 9-tap conv accumulation held in vregs (no VMEM RMW on an accumulator).
        acc = None
        for t in range(9):
            dy, dx = divmod(t, 3)
            xt = x_ref[0, pl.ds(h0 + dy, R), pl.ds(PADW - 1 + dx, W), :]
            d = jnp.dot(xt.reshape(R * W, Cin), w_ref[t],
                        preferred_element_type=jnp.float32)
            acc = d if acc is None else acc + d

        # Fused epilogue: bias + ReLU + 2x2 max pool in one pass over the chunk.
        a = jnp.maximum(acc + bias, 0.0).reshape(R, W, Cout)
        for r in range(R2):                               # H-pool (values)
            scr_ref[pl.ds(r * W, W), :] = jnp.maximum(a[2 * r], a[2 * r + 1])
        n = R2 * W2                                       # W-pool (strided reads)
        pooled = jnp.maximum(scr_ref[pl.ds(0, n, stride=2), :],
                             scr_ref[pl.ds(1, n, stride=2), :])
        pooled = pooled.reshape(R2, W2, Cout).astype(o_ref.dtype)

        if padded_out:
            ro = 1 + i * R2
            o_ref[0, pl.ds(ro, R2), pl.ds(PADW, W2), :] = pooled
            o_ref[0, pl.ds(ro, R2), pl.ds(0, PADW), :] = zcol
            o_ref[0, pl.ds(ro, R2), pl.ds(PADW + W2, PADW), :] = zcol
        else:
            o_ref[0, pl.ds(i * R2, R2), :, :] = pooled


def conv_bn_relu_pool(xpad, w9, bias, *, padded_out):
    """xpad: [B, H+2, W+2*PADW, Cin] bf16 (halo-padded), w9: [9, Cin, Cout] bf16,
       bias: [1, Cout] f32."""
    B, Hp, WPp, Cin = xpad.shape
    H, W = Hp - 2, WPp - 2 * PADW
    Cout = w9.shape[2]
    H2, W2 = H // 2, W // 2
    R = max(2, 128 // W)                  # conv rows per chunk (R*W == 128)
    assert W % 8 == 0 and H % R == 0 and R % 2 == 0

    if padded_out:
        out_dims = (B, H2 + 2, W2 + 2 * PADW, Cout)
        out_block = (1, H2 + 2, W2 + 2 * PADW, Cout)
    else:
        out_dims = (B, H2, W2, Cout)
        out_block = (1, H2, W2, Cout)

    kernel = functools.partial(_conv_bn_relu_pool_kernel, H=H, W=W, Cin=Cin,
                               Cout=Cout, R=R, padded_out=padded_out)
    return pl.pallas_call(
        kernel,
        out_shape=jax.ShapeDtypeStruct(out_dims, jnp.bfloat16),
        grid_spec=pltpu.PrefetchScalarGridSpec(
            num_scalar_prefetch=0,
            grid=(B,),
            in_specs=[
                pl.BlockSpec((1, Hp, WPp, Cin), lambda b: (b, 0, 0, 0)),
                pl.BlockSpec((9, Cin, Cout), lambda b: (0, 0, 0)),
                pl.BlockSpec((1, Cout), lambda b: (0, 0)),
            ],
            out_specs=pl.BlockSpec(out_block, lambda b: (b, 0, 0, 0)),
            scratch_shapes=[pltpu.VMEM(((R // 2) * W, Cout), jnp.float32)],
        ),
        compiler_params=pltpu.CompilerParams(
            dimension_semantics=("parallel",)),
    )(xpad, w9, bias)


# ----------------------------------------------------------------------------
# Kernel 2: fused FC1 + ReLU + FC2 (+ both biases), single K-reduction grid.
# ----------------------------------------------------------------------------
def _fc_fused_kernel(feat_ref, w1_ref, b1_ref, w2_ref, b2_ref, o_ref, acc_ref):
    k = pl.program_id(0)

    @pl.when(k == 0)
    def _init():
        acc_ref[...] = jnp.zeros_like(acc_ref)

    acc_ref[...] += jnp.dot(feat_ref[...], w1_ref[...],
                            preferred_element_type=jnp.float32)

    @pl.when(k == pl.num_programs(0) - 1)
    def _finalize():
        h = jnp.maximum(acc_ref[...] + b1_ref[...], 0.0)          # (B, 256) f32
        o_ref[...] = (jnp.dot(h.astype(w2_ref.dtype), w2_ref[...],
                              preferred_element_type=jnp.float32)
                      + b2_ref[...])


def fc1_relu_fc2(feat, w1, b1, w2, b2, *, tk=2048):
    """feat: [B, K] bf16, w1: [K, N1] bf16, b1: [1, N1] f32,
       w2: [N1, NCP] bf16, b2: [1, NCP] f32  ->  [B, NCP] f32 (NCP lane-padded)."""
    B, K = feat.shape
    N1 = w1.shape[1]
    NCP = w2.shape[1]
    assert K % tk == 0 and w2.shape[0] == N1
    return pl.pallas_call(
        _fc_fused_kernel,
        out_shape=jax.ShapeDtypeStruct((B, NCP), jnp.float32),
        grid_spec=pltpu.PrefetchScalarGridSpec(
            num_scalar_prefetch=0,
            grid=(K // tk,),
            in_specs=[
                pl.BlockSpec((B, tk), lambda k: (0, k)),
                pl.BlockSpec((tk, N1), lambda k: (k, 0)),
                pl.BlockSpec((1, N1), lambda k: (0, 0)),
                pl.BlockSpec((N1, NCP), lambda k: (0, 0)),
                pl.BlockSpec((1, NCP), lambda k: (0, 0)),
            ],
            out_specs=pl.BlockSpec((B, NCP), lambda k: (0, 0)),
            scratch_shapes=[pltpu.VMEM((B, N1), jnp.float32)],
        ),
        compiler_params=pltpu.CompilerParams(
            dimension_semantics=("arbitrary",)),
    )(feat, w1, b1, w2, b2)


# ----------------------------------------------------------------------------
# Parameters (deterministic, in-script) and one-time parameter preparation
# ----------------------------------------------------------------------------
def init_params(key, num_classes=100):
    ks = jax.random.split(key, 7)

    def conv_block_params(k, cin, cout):
        k0, k1, k2, k3, k4, k5 = jax.random.split(k, 6)
        return dict(
            w=jax.random.normal(k0, (3, 3, cin, cout), jnp.float32) * 0.05,
            b=jax.random.normal(k1, (cout,), jnp.float32) * 0.05,
            gamma=1.0 + 0.1 * jax.random.normal(k2, (cout,), jnp.float32),
            beta=0.1 * jax.random.normal(k3, (cout,), jnp.float32),
            mean=0.1 * jax.random.normal(k4, (cout,), jnp.float32),
            var=jax.random.uniform(k5, (cout,), jnp.float32, 0.5, 1.5),
        )

    return dict(
        block1=conv_block_params(ks[0], 3, 32),
        block2=conv_block_params(ks[1], 32, 64),
        block3=conv_block_params(ks[2], 64, 128),
        fc1_w=jax.random.normal(ks[3], (128 * 8 * 8, 256), jnp.float32) * 0.05,
        fc1_b=jax.random.normal(ks[4], (256,), jnp.float32) * 0.05,
        fc2_w=jax.random.normal(ks[5], (256, num_classes), jnp.float32) * 0.05,
        fc2_b=jax.random.normal(ks[6], (num_classes,), jnp.float32) * 0.05,
    )


def prepare_params(p, num_classes=100):
    """One-time preprocessing: fold BN into the conv weights, zero-pad channels
    to 128 lanes, cast matmul operands to bf16, pre-permute fc1 rows from the
    PyTorch NCHW flatten order to NHWC order, pad fc2 columns to 128."""
    def fold_conv_block(b, cin_pad, cout_pad):
        scale = b["gamma"] / jnp.sqrt(b["var"] + BN_EPS)              # (Cout,)
        cin, cout = b["w"].shape[2], b["w"].shape[3]
        w = jnp.pad(b["w"] * scale,
                    ((0, 0), (0, 0), (0, cin_pad - cin), (0, cout_pad - cout)))
        bias = jnp.pad(b["beta"] + (b["b"] - b["mean"]) * scale,
                       (0, cout_pad - cout))
        return (w.reshape(9, cin_pad, cout_pad).astype(jnp.bfloat16),
                bias.reshape(1, cout_pad).astype(jnp.float32))

    blocks = (
        fold_conv_block(p["block1"], 3, LANE),       # Cout 32 -> 128
        fold_conv_block(p["block2"], LANE, LANE),    # Cin 32->128, Cout 64->128
        fold_conv_block(p["block3"], LANE, LANE),    # Cin 64->128, Cout 128
    )
    # PyTorch flatten index c*64 + h*8 + w  ->  NHWC flatten h*1024 + w*128 + c
    fc1_w = (p["fc1_w"].reshape(128, 8, 8, 256)
             .transpose(1, 2, 0, 3).reshape(128 * 8 * 8, 256)).astype(jnp.bfloat16)
    fc2_w = jnp.pad(p["fc2_w"],
                    ((0, 0), (0, LANE - num_classes))).astype(jnp.bfloat16)
    fc2_b = jnp.pad(p["fc2_b"],
                    (0, LANE - num_classes)).reshape(1, LANE).astype(jnp.float32)
    return dict(
        blocks=blocks,
        fc1_w=fc1_w,
        fc1_b=p["fc1_b"].reshape(1, 256).astype(jnp.float32),
        fc2_w=fc2_w,
        fc2_b=fc2_b,
    )


# ----------------------------------------------------------------------------
# Forward pass (Pallas) and pure-JAX reference
# ----------------------------------------------------------------------------
@functools.partial(jax.jit, static_argnames=("num_classes",))
def improved_cnn_forward(x_nchw, fp, num_classes=100):
    # NCHW -> NHWC; single halo pad of the tiny input. All later halos are
    # written by the conv kernels themselves (no per-block jnp.pad round trips).
    x = jnp.transpose(x_nchw, (0, 2, 3, 1)).astype(jnp.bfloat16)
    x = jnp.pad(x, ((0, 0), (1, 1), (PADW, PADW), (0, 0)))
    (w1c, b1c), (w2c, b2c), (w3c, b3c) = fp["blocks"]
    x = conv_bn_relu_pool(x, w1c, b1c, padded_out=True)    # (B, 34, 48, 128)
    x = conv_bn_relu_pool(x, w2c, b2c, padded_out=True)    # (B, 18, 32, 128)
    x = conv_bn_relu_pool(x, w3c, b3c, padded_out=False)   # (B, 8, 8, 128)
    # Dropout(0.3): identity in eval mode.
    B = x.shape[0]
    feat = x.reshape(B, -1)      # NHWC flatten; fc1_w rows pre-permuted to match
    logits = fc1_relu_fc2(feat, fp["fc1_w"], fp["fc1_b"],
                          fp["fc2_w"], fp["fc2_b"])
    return logits[:, :num_classes]


@jax.jit
def reference_forward(x_nchw, p):
    x = jnp.transpose(x_nchw, (0, 2, 3, 1)).astype(jnp.float32)
    for name in ("block1", "block2", "block3"):
        b = p[name]
        y = lax.conv_general_dilated(
            x, b["w"], (1, 1), "SAME",
            dimension_numbers=("NHWC", "HWIO", "NHWC"),
            precision=lax.Precision.HIGHEST) + b["b"]
        y = b["gamma"] * (y - b["mean"]) / jnp.sqrt(b["var"] + BN_EPS) + b["beta"]
        y = jnp.maximum(y, 0.0)
        y = lax.reduce_window(y, -jnp.inf, lax.max,
                              (1, 2, 2, 1), (1, 2, 2, 1), "VALID")
        x = y
    B = x.shape[0]
    feat = jnp.transpose(x, (0, 3, 1, 2)).reshape(B, -1)   # PyTorch NCHW flatten
    h = jnp.maximum(
        jnp.dot(feat, p["fc1_w"], precision=lax.Precision.HIGHEST) + p["fc1_b"],
        0.0)
    return jnp.dot(h, p["fc2_w"], precision=lax.Precision.HIGHEST) + p["fc2_b"]


if __name__ == "__main__":
    key = jax.random.PRNGKey(0)
    kx, kp = jax.random.split(key)
    # Spatial size must be 64x64 so 3 maxpools give 8x8 (Linear expects 128*8*8).
    x = jax.random.normal(kx, (2, 3, 64, 64), jnp.float32)   # NCHW, like PyTorch
    params = init_params(kp, num_classes=100)
    fparams = prepare_params(params, num_classes=100)        # one-time prep

    out = jax.block_until_ready(improved_cnn_forward(x, fparams, num_classes=100))
    ref = jax.block_until_ready(reference_forward(x, params))

    assert out.shape == (2, 100), out.shape
    assert bool(jnp.all(jnp.isfinite(out)))
    max_err = float(jnp.max(jnp.abs(out.astype(jnp.float32) - ref)))
    # bf16 matmul operands vs f32-HIGHEST reference.
    assert max_err < 2e-1, f"mismatch vs reference: {max_err}"
    print("KERNEL_OK")
</pallas_src>

<mosaic_0001>
module attributes {stable_mosaic.version = 11 : i64} {
  func.func @_conv_bn_relu_pool_kernel(%arg0: i32, %arg1: memref<1x66x80x3xbf16, #tpu.memory_space<vmem>>, %arg2: memref<9x3x128xbf16, #tpu.memory_space<vmem>>, %arg3: memref<1x128xf32, #tpu.memory_space<vmem>>, %arg4: memref<1x34x48x128xbf16, #tpu.memory_space<vmem>>, %arg5: memref<64x128xf32, #tpu.memory_space<vmem>>) attributes {dimension_semantics = [#tpu.dimension_semantics<parallel>], iteration_bounds = array<i64: 2>, scalar_prefetch = 0 : i64, scratch_operands = 1 : i64, tpu.core_type = #tpu.core_type<tc>, window_params = [{transform_indices = @transform_0, window_bounds = array<i64: 1, 66, 80, 3>}, {pipeline_mode = #tpu.pipeline_mode<synchronous>, transform_indices = @transform_1, window_bounds = array<i64: 9, 3, 128>}, {pipeline_mode = #tpu.pipeline_mode<synchronous>, transform_indices = @transform_2, window_bounds = array<i64: 1, 128>}, {transform_indices = @transform_3, window_bounds = array<i64: 1, 34, 48, 128>}]} {
    %c0 = arith.constant 0 : index
    %c0_0 = arith.constant 0 : index
    %0 = vector.load %arg3[%c0, %c0_0] : memref<1x128xf32, #tpu.memory_space<vmem>>, vector<1x128xf32>
    %cst = arith.constant 0.000000e+00 : bf16
    %1 = vector.broadcast %cst : bf16 to vector<48x128xbf16>
    %c0_1 = arith.constant 0 : index
    %c0_2 = arith.constant 0 : index
    %c0_3 = arith.constant 0 : index
    %c0_4 = arith.constant 0 : index
    %2 = vector.load %arg4[%c0_1, %c0_2, %c0_3, %c0_4] : memref<1x34x48x128xbf16, #tpu.memory_space<vmem>>, vector<1x1x48x128xbf16>
    %3 = vector.shape_cast %2 : vector<1x1x48x128xbf16> to vector<48x128xbf16>
    %4 = vector.shape_cast %1 : vector<48x128xbf16> to vector<1x1x48x128xbf16>
    tpu.vector_store %arg4[%c0_1, %c0_2, %c0_3, %c0_4], %4 {strides = array<i32>} : memref<1x34x48x128xbf16, #tpu.memory_space<vmem>>, vector<1x1x48x128xbf16>,
    %c0_5 = arith.constant 0 : index
    %c33 = arith.constant 33 : index
    %c0_6 = arith.constant 0 : index
    %c0_7 = arith.constant 0 : index
    %5 = vector.load %arg4[%c0_5, %c33, %c0_6, %c0_7] : memref<1x34x48x128xbf16, #tpu.memory_space<vmem>>, vector<1x1x48x128xbf16>
    %6 = vector.shape_cast %5 : vector<1x1x48x128xbf16> to vector<48x128xbf16>
    %7 = vector.shape_cast %1 : vector<48x128xbf16> to vector<1x1x48x128xbf16>
    tpu.vector_store %arg4[%c0_5, %c33, %c0_6, %c0_7], %7 {strides = array<i32>} : memref<1x34x48x128xbf16, #tpu.memory_space<vmem>>, vector<1x1x48x128xbf16>,
    %cst_8 = arith.constant 0.000000e+00 : bf16
    %8 = vector.broadcast %cst_8 : bf16 to vector<1x8x128xbf16>
    %c0_i32 = arith.constant 0 : i32
    %c32_i32 = arith.constant 32 : i32
    %9 = arith.addi %c0_i32, %c32_i32 : i32
    %c1_i32 = arith.constant 1 : i32
    scf.for %arg6 = %c0_i32 to %9 step %c1_i32  : i32 {
      %c1_i32_10 = arith.constant 1 : i32
      %10 = arith.muli %arg6, %c1_i32_10 : i32
      %c0_i32_11 = arith.constant 0 : i32
      %11 = arith.addi %c0_i32_11, %10 : i32
      %c2_i32 = arith.constant 2 : i32
      %12 = arith.muli %11, %c2_i32 : i32
      %c0_i32_12 = arith.constant 0 : i32
      %13 = arith.addi %12, %c0_i32_12 : i32
      %c0_13 = arith.constant 0 : index
      %14 = arith.index_cast %13 : i32 to index
      %c7 = arith.constant 7 : index
      %c0_14 = arith.constant 0 : index
      %15 = vector.load %arg1[%c0_13, %14, %c7, %c0_14] : memref<1x66x80x3xbf16, #tpu.memory_space<vmem>>, vector<1x2x64x3xbf16>
      %16 = vector.shape_cast %15 : vector<1x2x64x3xbf16> to vector<2x64x3xbf16>
      %17 = vector.shape_cast %16 : vector<2x64x3xbf16> to vector<128x3xbf16>
      %c0_15 = arith.constant 0 : index
      %c0_16 = arith.constant 0 : index
      %c0_17 = arith.constant 0 : index
      %18 = vector.load %arg2[%c0_15, %c0_16, %c0_17] : memref<9x3x128xbf16, #tpu.memory_space<vmem>>, vector<1x3x128xbf16>
      %19 = vector.shape_cast %18 : vector<1x3x128xbf16> to vector<3x128xbf16>
      %cst_18 = arith.constant dense<0.000000e+00> : vector<128x128xf32>
      %20 = tpu.matmul %17, %19, %cst_18 {dimension_numbers = #tpu.dot_dimension_numbers<[1], [0], [0], [1], [0, 0, 1, 1], [], []>} : vector<128x3xbf16>, vector<3x128xbf16>, vector<128x128xf32> -> vector<128x128xf32>
      %c0_i32_19 = arith.constant 0 : i32
      %21 = arith.addi %12, %c0_i32_19 : i32
      %c0_20 = arith.constant 0 : index
      %22 = arith.index_cast %21 : i32 to index
      %c8 = arith.constant 8 : index
      %c0_21 = arith.constant 0 : index
      %23 = vector.load %arg1[%c0_20, %22, %c8, %c0_21] : memref<1x66x80x3xbf16, #tpu.memory_space<vmem>>, vector<1x2x64x3xbf16>
      %24 = vector.shape_cast %23 : vector<1x2x64x3xbf16> to vector<2x64x3xbf16>
      %25 = vector.shape_cast %24 : vector<2x64x3xbf16> to vector<128x3xbf16>
      %c1 = arith.constant 1 : index
      %c0_22 = arith.constant 0 : index
      %c0_23 = arith.constant 0 : index
      %26 = vector.load %arg2[%c1, %c0_22, %c0_23] : memref<9x3x128xbf16, #tpu.memory_space<vmem>>, vector<1x3x128xbf16>
      %27 = vector.shape_cast %26 : vector<1x3x128xbf16> to vector<3x128xbf16>
      %cst_24 = arith.constant dense<0.000000e+00> : vector<128x128xf32>
      %28 = tpu.matmul %25, %27, %cst_24 {dimension_numbers = #tpu.dot_dimension_numbers<[1], [0], [0], [1], [0, 0, 1, 1], [], []>} : vector<128x3xbf16>, vector<3x128xbf16>, vector<128x128xf32> -> vector<128x128xf32>
      %29 = arith.addf %20, %28 : vector<128x128xf32>
      %c0_i32_25 = arith.constant 0 : i32
      %30 = arith.addi %12, %c0_i32_25 : i32
      %c0_26 = arith.constant 0 : index
      %31 = arith.index_cast %30 : i32 to index
      %c9 = arith.constant 9 : index
      %c0_27 = arith.constant 0 : index
      %32 = vector.load %arg1[%c0_26, %31, %c9, %c0_27] : memref<1x66x80x3xbf16, #tpu.memory_space<vmem>>, vector<1x2x64x3xbf16>
      %33 = vector.shape_cast %32 : vector<1x2x64x3xbf16> to vector<2x64x3xbf16>
      %34 = vector.shape_cast %33 : vector<2x64x3xbf16> to vector<128x3xbf16>
      %c2 = arith.constant 2 : index
      %c0_28 = arith.constant 0 : index
      %c0_29 = arith.constant 0 : index
      %35 = vector.load %arg2[%c2, %c0_28, %c0_29] : memref<9x3x128xbf16, #tpu.memory_space<vmem>>, vector<1x3x128xbf16>
      %36 = vector.shape_cast %35 : vector<1x3x128xbf16> to vector<3x128xbf16>
      %cst_30 = arith.constant dense<0.000000e+00> : vector<128x128xf32>
      %37 = tpu.matmul %34, %36, %cst_30 {dimension_numbers = #tpu.dot_dimension_numbers<[1], [0], [0], [1], [0, 0, 1, 1], [], []>} : vector<128x3xbf16>, vector<3x128xbf16>, vector<128x128xf32> -> vector<128x128xf32>
      %38 = arith.addf %29, %37 : vector<128x128xf32>
      %c1_i32_31 = arith.constant 1 : i32
      %39 = arith.addi %12, %c1_i32_31 : i32
      %c0_32 = arith.constant 0 : index
      %40 = arith.index_cast %39 : i32 to index
      %c7_33 = arith.constant 7 : index
      %c0_34 = arith.constant 0 : index
      %41 = vector.load %arg1[%c0_32, %40, %c7_33, %c0_34] : memref<1x66x80x3xbf16, #tpu.memory_space<vmem>>, vector<1x2x64x3xbf16>
      %42 = vector.shape_cast %41 : vector<1x2x64x3xbf16> to vector<2x64x3xbf16>
      %43 = vector.shape_cast %42 : vector<2x64x3xbf16> to vector<128x3xbf16>
      %c3 = arith.constant 3 : index
      %c0_35 = arith.constant 0 : index
      %c0_36 = arith.constant 0 : index
      %44 = vector.load %arg2[%c3, %c0_35, %c0_36] : memref<9x3x128xbf16, #tpu.memory_space<vmem>>, vector<1x3x128xbf16>
      %45 = vector.shape_cast %44 : vector<1x3x128xbf16> to vector<3x128xbf16>
      %cst_37 = arith.constant dense<0.000000e+00> : vector<128x128xf32>
      %46 = tpu.matmul %43, %45, %cst_37 {dimension_numbers = #tpu.dot_dimension_numbers<[1], [0], [0], [1], [0, 0, 1, 1], [], []>} : vector<128x3xbf16>, vector<3x128xbf16>, vector<128x128xf32> -> vector<128x128xf32>
      %47 = arith.addf %38, %46 : vector<128x128xf32>
      %c1_i32_38 = arith.constant 1 : i32
      %48 = arith.addi %12, %c1_i32_38 : i32
      %c0_39 = arith.constant 0 : index
      %49 = arith.index_cast %48 : i32 to index
      %c8_40 = arith.constant 8 : index
      %c0_41 = arith.constant 0 : index
      %50 = vector.load %arg1[%c0_39, %49, %c8_40, %c0_41] : memref<1x66x80x3xbf16, #tpu.memory_space<vmem>>, vector<1x2x64x3xbf16>
      %51 = vector.shape_cast %50 : vector<1x2x64x3xbf16> to vector<2x64x3xbf16>
      %52 = vector.shape_cast %51 : vector<2x64x3xbf16> to vector<128x3xbf16>
      %c4 = arith.constant 4 : index
      %c0_42 = arith.constant 0 : index
      %c0_43 = arith.constant 0 : index
      %53 = vector.load %arg2[%c4, %c0_42, %c0_43] : memref<9x3x128xbf16, #tpu.memory_space<vmem>>, vector<1x3x128xbf16>
      %54 = vector.shape_cast %53 : vector<1x3x128xbf16> to vector<3x128xbf16>
      %cst_44 = arith.constant dense<0.000000e+00> : vector<128x128xf32>
      %55 = tpu.matmul %52, %54, %cst_44 {dimension_numbers = #tpu.dot_dimension_numbers<[1], [0], [0], [1], [0, 0, 1, 1], [], []>} : vector<128x3xbf16>, vector<3x128xbf16>, vector<128x128xf32> -> vector<128x128xf32>
      %56 = arith.addf %47, %55 : vector<128x128xf32>
      %c1_i32_45 = arith.constant 1 : i32
      %57 = arith.addi %12, %c1_i32_45 : i32
      %c0_46 = arith.constant 0 : index
      %58 = arith.index_cast %57 : i32 to index
      %c9_47 = arith.constant 9 : index
      %c0_48 = arith.constant 0 : index
      %59 = vector.load %arg1[%c0_46, %58, %c9_47, %c0_48] : memref<1x66x80x3xbf16, #tpu.memory_space<vmem>>, vector<1x2x64x3xbf16>
      %60 = vector.shape_cast %59 : vector<1x2x64x3xbf16> to vector<2x64x3xbf16>
      %61 = vector.shape_cast %60 : vector<2x64x3xbf16> to vector<128x3xbf16>
      %c5 = arith.constant 5 : index
      %c0_49 = arith.constant 0 : index
      %c0_50 = arith.constant 0 : index
      %62 = vector.load %arg2[%c5, %c0_49, %c0_50] : memref<9x3x128xbf16, #tpu.memory_space<vmem>>, vector<1x3x128xbf16>
      %63 = vector.shape_cast %62 : vector<1x3x128xbf16> to vector<3x128xbf16>
      %cst_51 = arith.constant dense<0.000000e+00> : vector<128x128xf32>
      %64 = tpu.matmul %61, %63, %cst_51 {dimension_numbers = #tpu.dot_dimension_numbers<[1], [0], [0], [1], [0, 0, 1, 1], [], []>} : vector<128x3xbf16>, vector<3x128xbf16>, vector<128x128xf32> -> vector<128x128xf32>
      %65 = arith.addf %56, %64 : vector<128x128xf32>
      %c2_i32_52 = arith.constant 2 : i32
      %66 = arith.addi %12, %c2_i32_52 : i32
      %c0_53 = arith.constant 0 : index
      %67 = arith.index_cast %66 : i32 to index
      %c7_54 = arith.constant 7 : index
      %c0_55 = arith.constant 0 : index
      %68 = vector.load %arg1[%c0_53, %67, %c7_54, %c0_55] : memref<1x66x80x3xbf16, #tpu.memory_space<vmem>>, vector<1x2x64x3xbf16>
      %69 = vector.shape_cast %68 : vector<1x2x64x3xbf16> to vector<2x64x3xbf16>
      %70 = vector.shape_cast %69 : vector<2x64x3xbf16> to vector<128x3xbf16>
      %c6 = arith.constant 6 : index
      %c0_56 = arith.constant 0 : index
      %c0_57 = arith.constant 0 : index
      %71 = vector.load %arg2[%c6, %c0_56, %c0_57] : memref<9x3x128xbf16, #tpu.memory_space<vmem>>, vector<1x3x128xbf16>
      %72 = vector.shape_cast %71 : vector<1x3x128xbf16> to vector<3x128xbf16>
      %cst_58 = arith.constant dense<0.000000e+00> : vector<128x128xf32>
      %73 = tpu.matmul %70, %72, %cst_58 {dimension_numbers = #tpu.dot_dimension_numbers<[1], [0], [0], [1], [0, 0, 1, 1], [], []>} : vector<128x3xbf16>, vector<3x128xbf16>, vector<128x128xf32> -> vector<128x128xf32>
      %74 = arith.addf %65, %73 : vector<128x128xf32>
      %c2_i32_59 = arith.constant 2 : i32
      %75 = arith.addi %12, %c2_i32_59 : i32
      %c0_60 = arith.constant 0 : index
      %76 = arith.index_cast %75 : i32 to index
      %c8_61 = arith.constant 8 : index
      %c0_62 = arith.constant 0 : index
      %77 = vector.load %arg1[%c0_60, %76, %c8_61, %c0_62] : memref<1x66x80x3xbf16, #tpu.memory_space<vmem>>, vector<1x2x64x3xbf16>
      %78 = vector.shape_cast %77 : vector<1x2x64x3xbf16> to vector<2x64x3xbf16>
      %79 = vector.shape_cast %78 : vector<2x64x3xbf16> to vector<128x3xbf16>
      %c7_63 = arith.constant 7 : index
      %c0_64 = arith.constant 0 : index
      %c0_65 = arith.constant 0 : index
      %80 = vector.load %arg2[%c7_63, %c0_64, %c0_65] : memref<9x3x128xbf16, #tpu.memory_space<vmem>>, vector<1x3x128xbf16>
      %81 = vector.shape_cast %80 : vector<1x3x128xbf16> to vector<3x128xbf16>
      %cst_66 = arith.constant dense<0.000000e+00> : vector<128x128xf32>
      %82 = tpu.matmul %79, %81, %cst_66 {dimension_numbers = #tpu.dot_dimension_numbers<[1], [0], [0], [1], [0, 0, 1, 1], [], []>} : vector<128x3xbf16>, vector<3x128xbf16>, vector<128x128xf32> -> vector<128x128xf32>
      %83 = arith.addf %74, %82 : vector<128x128xf32>
      %c2_i32_67 = arith.constant 2 : i32
      %84 = arith.addi %12, %c2_i32_67 : i32
      %c0_68 = arith.constant 0 : index
      %85 = arith.index_cast %84 : i32 to index
      %c9_69 = arith.constant 9 : index
      %c0_70 = arith.constant 0 : index
      %86 = vector.load %arg1[%c0_68, %85, %c9_69, %c0_70] : memref<1x66x80x3xbf16, #tpu.memory_space<vmem>>, vector<1x2x64x3xbf16>
      %87 = vector.shape_cast %86 : vector<1x2x64x3xbf16> to vector<2x64x3xbf16>
      %88 = vector.shape_cast %87 : vector<2x64x3xbf16> to vector<128x3xbf16>
      %c8_71 = arith.constant 8 : index
      %c0_72 = arith.constant 0 : index
      %c0_73 = arith.constant 0 : index
      %89 = vector.load %arg2[%c8_71, %c0_72, %c0_73] : memref<9x3x128xbf16, #tpu.memory_space<vmem>>, vector<1x3x128xbf16>
      %90 = vector.shape_cast %89 : vector<1x3x128xbf16> to vector<3x128xbf16>
      %cst_74 = arith.constant dense<0.000000e+00> : vector<128x128xf32>
      %91 = tpu.matmul %88, %90, %cst_74 {dimension_numbers = #tpu.dot_dimension_numbers<[1], [0], [0], [1], [0, 0, 1, 1], [], []>} : vector<128x3xbf16>, vector<3x128xbf16>, vector<128x128xf32> -> vector<128x128xf32>
      %92 = arith.addf %83, %91 : vector<128x128xf32>
      %93 = vector.broadcast %0 : vector<1x128xf32> to vector<128x128xf32>
      %94 = arith.addf %92, %93 : vector<128x128xf32>
      %cst_75 = arith.constant 0.000000e+00 : f32
      %95 = vector.broadcast %cst_75 : f32 to vector<128x128xf32>
      %96 = arith.maximumf %94, %95 : vector<128x128xf32>
      %97 = vector.shape_cast %96 : vector<128x128xf32> to vector<2x64x128xf32>
      %98 = vector.extract_strided_slice %97 {offsets = [0, 0, 0], sizes = [1, 64, 128], strides = [1, 1, 1]} : vector<2x64x128xf32> to vector<1x64x128xf32>
      %99 = vector.shape_cast %98 : vector<1x64x128xf32> to vector<64x128xf32>
      %100 = vector.extract_strided_slice %97 {offsets = [1, 0, 0], sizes = [1, 64, 128], strides = [1, 1, 1]} : vector<2x64x128xf32> to vector<1x64x128xf32>
      %101 = vector.shape_cast %100 : vector<1x64x128xf32> to vector<64x128xf32>
      %102 = arith.maximumf %99, %101 : vector<64x128xf32>
      %c0_76 = arith.constant 0 : index
      %c0_77 = arith.constant 0 : index
      %103 = vector.load %arg5[%c0_76, %c0_77] : memref<64x128xf32, #tpu.memory_space<vmem>>, vector<64x128xf32>
      tpu.vector_store %arg5[%c0_76, %c0_77], %102 {strides = array<i32>} : memref<64x128xf32, #tpu.memory_space<vmem>>, vector<64x128xf32>,
      %c0_78 = arith.constant 0 : index
      %c0_79 = arith.constant 0 : index
      %104 = tpu.strided_load %arg5[%c0_78, %c0_79] {strides = array<i32: 2, 1>} : memref<64x128xf32, #tpu.memory_space<vmem>>, vector<32x128xf32>
      %c1_80 = arith.constant 1 : index
      %c0_81 = arith.constant 0 : index
      %105 = tpu.strided_load %arg5[%c1_80, %c0_81] {strides = array<i32: 2, 1>} : memref<64x128xf32, #tpu.memory_space<vmem>>, vector<32x128xf32>
      %106 = arith.maximumf %104, %105 : vector<32x128xf32>
      %107 = vector.shape_cast %106 : vector<32x128xf32> to vector<1x32x128xf32>
      %108 = arith.truncf %107 : vector<1x32x128xf32> to vector<1x32x128xbf16>
      %c1_i32_82 = arith.constant 1 : i32
      %109 = arith.muli %11, %c1_i32_82 : i32
      %c1_i32_83 = arith.constant 1 : i32
      %110 = arith.addi %c1_i32_83, %109 : i32
      %c0_84 = arith.constant 0 : index
      %111 = arith.index_cast %110 : i32 to index
      %c8_85 = arith.constant 8 : index
      %c0_86 = arith.constant 0 : index
      %112 = vector.load %arg4[%c0_84, %111, %c8_85, %c0_86] : memref<1x34x48x128xbf16, #tpu.memory_space<vmem>>, vector<1x1x32x128xbf16>
      %113 = vector.shape_cast %112 : vector<1x1x32x128xbf16> to vector<1x32x128xbf16>
      %114 = vector.shape_cast %108 : vector<1x32x128xbf16> to vector<1x1x32x128xbf16>
      tpu.vector_store %arg4[%c0_84, %111, %c8_85, %c0_86], %114 {strides = array<i32>} : memref<1x34x48x128xbf16, #tpu.memory_space<vmem>>, vector<1x1x32x128xbf16>,
      %c0_87 = arith.constant 0 : index
      %115 = arith.index_cast %110 : i32 to index
      %c0_88 = arith.constant 0 : index
      %c0_89 = arith.constant 0 : index
      %116 = vector.load %arg4[%c0_87, %115, %c0_88, %c0_89] : memref<1x34x48x128xbf16, #tpu.memory_space<vmem>>, vector<1x1x8x128xbf16>
      %117 = vector.shape_cast %116 : vector<1x1x8x128xbf16> to vector<1x8x128xbf16>
      %118 = vector.shape_cast %8 : vector<1x8x128xbf16> to vector<1x1x8x128xbf16>
      tpu.vector_store %arg4[%c0_87, %115, %c0_88, %c0_89], %118 {strides = array<i32>} : memref<1x34x48x128xbf16, #tpu.memory_space<vmem>>, vector<1x1x8x128xbf16>,
      %c0_90 = arith.constant 0 : index
      %119 = arith.index_cast %110 : i32 to index
      %c40 = arith.constant 40 : index
      %c0_91 = arith.constant 0 : index
      %120 = vector.load %arg4[%c0_90, %119, %c40, %c0_91] : memref<1x34x48x128xbf16, #tpu.memory_space<vmem>>, vector<1x1x8x128xbf16>
      %121 = vector.shape_cast %120 : vector<1x1x8x128xbf16> to vector<1x8x128xbf16>
      %122 = vector.shape_cast %8 : vector<1x8x128xbf16> to vector<1x1x8x128xbf16>
      tpu.vector_store %arg4[%c0_90, %119, %c40, %c0_91], %122 {strides = array<i32>} : memref<1x34x48x128xbf16, #tpu.memory_space<vmem>>, vector<1x1x8x128xbf16>,
    }
    %c32_i32_9 = arith.constant 32 : i32
    return
  }
  func.func @transform_0(%arg0: i32) -> (i32, i32, i32, i32) {
    %c0_i32 = arith.constant 0 : i32
    %c0_i32_0 = arith.constant 0 : i32
    %c0_i32_1 = arith.constant 0 : i32
    %c0_i32_2 = arith.constant 0 : i32
    return %arg0, %c0_i32, %c0_i32_0, %c0_i32_1 : i32, i32, i32, i32
  }
  func.func @transform_1(%arg0: i32) -> (i32, i32, i32) {
    %c0_i32 = arith.constant 0 : i32
    %c0_i32_0 = arith.constant 0 : i32
    %c0_i32_1 = arith.constant 0 : i32
    %c0_i32_2 = arith.constant 0 : i32
    return %c0_i32, %c0_i32_0, %c0_i32_1 : i32, i32, i32
  }
  func.func @transform_2(%arg0: i32) -> (i32, i32) {
    %c0_i32 = arith.constant 0 : i32
    %c0_i32_0 = arith.constant 0 : i32
    %c0_i32_1 = arith.constant 0 : i32
    return %c0_i32, %c0_i32_0 : i32, i32
  }
  func.func @transform_3(%arg0: i32) -> (i32, i32, i32, i32) {
    %c0_i32 = arith.constant 0 : i32
    %c0_i32_0 = arith.constant 0 : i32
    %c0_i32_1 = arith.constant 0 : i32
    %c0_i32_2 = arith.constant 0 : i32
    return %arg0, %c0_i32, %c0_i32_0, %c0_i32_1 : i32, i32, i32, i32
  }
}

module attributes {stable_mosaic.version = 11 : i64} {
  func.func @_conv_bn_relu_pool_kernel(%arg0: i32, %arg1: memref<1x34x48x128xbf16, #tpu.memory_space<vmem>>, %arg2: memref<9x128x128xbf16, #tpu.memory_space<vmem>>, %arg3: memref<1x128xf32, #tpu.memory_space<vmem>>, %arg4: memref<1x18x32x128xbf16, #tpu.memory_space<vmem>>, %arg5: memref<64x128xf32, #tpu.memory_space<vmem>>) attributes {dimension_semantics = [#tpu.dimension_semantics<parallel>], iteration_bounds = array<i64: 2>, scalar_prefetch = 0 : i64, scratch_operands = 1 : i64, tpu.core_type = #tpu.core_type<tc>, window_params = [{transform_indices = @transform_0, window_bounds = array<i64: 1, 34, 48, 128>}, {pipeline_mode = #tpu.pipeline_mode<synchronous>, transform_indices = @transform_1, window_bounds = array<i64: 9, 128, 128>}, {pipeline_mode = #tpu.pipeline_mode<synchronous>, transform_indices = @transform_2, window_bounds = array<i64: 1, 128>}, {transform_indices = @transform_3, window_bounds = array<i64: 1, 18, 32, 128>}]} {
    %c0 = arith.constant 0 : index
    %c0_0 = arith.constant 0 : index
    %0 = vector.load %arg3[%c0, %c0_0] : memref<1x128xf32, #tpu.memory_space<vmem>>, vector<1x128xf32>
    %cst = arith.constant 0.000000e+00 : bf16
    %1 = vector.broadcast %cst : bf16 to vector<32x128xbf16>
    %c0_1 = arith.constant 0 : index
    %c0_2 = arith.constant 0 : index
    %c0_3 = arith.constant 0 : index
    %c0_4 = arith.constant 0 : index
    %2 = vector.load %arg4[%c0_1, %c0_2, %c0_3, %c0_4] : memref<1x18x32x128xbf16, #tpu.memory_space<vmem>>, vector<1x1x32x128xbf16>
    %3 = vector.shape_cast %2 : vector<1x1x32x128xbf16> to vector<32x128xbf16>
    %4 = vector.shape_cast %1 : vector<32x128xbf16> to vector<1x1x32x128xbf16>
    tpu.vector_store %arg4[%c0_1, %c0_2, %c0_3, %c0_4], %4 {strides = array<i32>} : memref<1x18x32x128xbf16, #tpu.memory_space<vmem>>, vector<1x1x32x128xbf16>,
    %c0_5 = arith.constant 0 : index
    %c17 = arith.constant 17 : index
    %c0_6 = arith.constant 0 : index
    %c0_7 = arith.constant 0 : index
    %5 = vector.load %arg4[%c0_5, %c17, %c0_6, %c0_7] : memref<1x18x32x128xbf16, #tpu.memory_space<vmem>>, vector<1x1x32x128xbf16>
    %6 = vector.shape_cast %5 : vector<1x1x32x128xbf16> to vector<32x128xbf16>
    %7 = vector.shape_cast %1 : vector<32x128xbf16> to vector<1x1x32x128xbf16>
    tpu.vector_store %arg4[%c0_5, %c17, %c0_6, %c0_7], %7 {strides = array<i32>} : memref<1x18x32x128xbf16, #tpu.memory_space<vmem>>, vector<1x1x32x128xbf16>,
    %cst_8 = arith.constant 0.000000e+00 : bf16
    %8 = vector.broadcast %cst_8 : bf16 to vector<2x8x128xbf16>
    %c0_i32 = arith.constant 0 : i32
    %c8_i32 = arith.constant 8 : i32
    %9 = arith.addi %c0_i32, %c8_i32 : i32
    %c1_i32 = arith.constant 1 : i32
    scf.for %arg6 = %c0_i32 to %9 step %c1_i32  : i32 {
      %c1_i32_10 = arith.constant 1 : i32
      %10 = arith.muli %arg6, %c1_i32_10 : i32
      %c0_i32_11 = arith.constant 0 : i32
      %11 = arith.addi %c0_i32_11, %10 : i32
      %c4_i32 = arith.constant 4 : i32
      %12 = arith.muli %11, %c4_i32 : i32
      %c0_i32_12 = arith.constant 0 : i32
      %13 = arith.addi %12, %c0_i32_12 : i32
      %c0_13 = arith.constant 0 : index
      %14 = arith.index_cast %13 : i32 to index
      %c7 = arith.constant 7 : index
      %c0_14 = arith.constant 0 : index
      %15 = vector.load %arg1[%c0_13, %14, %c7, %c0_14] : memref<1x34x48x128xbf16, #tpu.memory_space<vmem>>, vector<1x4x32x128xbf16>
      %16 = vector.shape_cast %15 : vector<1x4x32x128xbf16> to vector<4x32x128xbf16>
      %17 = vector.shape_cast %16 : vector<4x32x128xbf16> to vector<128x128xbf16>
      %c0_15 = arith.constant 0 : index
      %c0_16 = arith.constant 0 : index
      %c0_17 = arith.constant 0 : index
      %18 = vector.load %arg2[%c0_15, %c0_16, %c0_17] : memref<9x128x128xbf16, #tpu.memory_space<vmem>>, vector<1x128x128xbf16>
      %19 = vector.shape_cast %18 : vector<1x128x128xbf16> to vector<128x128xbf16>
      %cst_18 = arith.constant dense<0.000000e+00> : vector<128x128xf32>
      %20 = tpu.matmul %17, %19, %cst_18 {dimension_numbers = #tpu.dot_dimension_numbers<[1], [0], [0], [1], [0, 0, 1, 1], [], []>} : vector<128x128xbf16>, vector<128x128xbf16>, vector<128x128xf32> -> vector<128x128xf32>
      %c0_i32_19 = arith.constant 0 : i32
      %21 = arith.addi %12, %c0_i32_19 : i32
      %c0_20 = arith.constant 0 : index
      %22 = arith.index_cast %21 : i32 to index
      %c8 = arith.constant 8 : index
      %c0_21 = arith.constant 0 : index
      %23 = vector.load %arg1[%c0_20, %22, %c8, %c0_21] : memref<1x34x48x128xbf16, #tpu.memory_space<vmem>>, vector<1x4x32x128xbf16>
      %24 = vector.shape_cast %23 : vector<1x4x32x128xbf16> to vector<4x32x128xbf16>
      %25 = vector.shape_cast %24 : vector<4x32x128xbf16> to vector<128x128xbf16>
      %c1 = arith.constant 1 : index
      %c0_22 = arith.constant 0 : index
      %c0_23 = arith.constant 0 : index
      %26 = vector.load %arg2[%c1, %c0_22, %c0_23] : memref<9x128x128xbf16, #tpu.memory_space<vmem>>, vector<1x128x128xbf16>
      %27 = vector.shape_cast %26 : vector<1x128x128xbf16> to vector<128x128xbf16>
      %cst_24 = arith.constant dense<0.000000e+00> : vector<128x128xf32>
      %28 = tpu.matmul %25, %27, %cst_24 {dimension_numbers = #tpu.dot_dimension_numbers<[1], [0], [0], [1], [0, 0, 1, 1], [], []>} : vector<128x128xbf16>, vector<128x128xbf16>, vector<128x128xf32> -> vector<128x128xf32>
      %29 = arith.addf %20, %28 : vector<128x128xf32>
      %c0_i32_25 = arith.constant 0 : i32
      %30 = arith.addi %12, %c0_i32_25 : i32
      %c0_26 = arith.constant 0 : index
      %31 = arith.index_cast %30 : i32 to index
      %c9 = arith.constant 9 : index
      %c0_27 = arith.constant 0 : index
      %32 = vector.load %arg1[%c0_26, %31, %c9, %c0_27] : memref<1x34x48x128xbf16, #tpu.memory_space<vmem>>, vector<1x4x32x128xbf16>
      %33 = vector.shape_cast %32 : vector<1x4x32x128xbf16> to vector<4x32x128xbf16>
      %34 = vector.shape_cast %33 : vector<4x32x128xbf16> to vector<128x128xbf16>
      %c2 = arith.constant 2 : index
      %c0_28 = arith.constant 0 : index
      %c0_29 = arith.constant 0 : index
      %35 = vector.load %arg2[%c2, %c0_28, %c0_29] : memref<9x128x128xbf16, #tpu.memory_space<vmem>>, vector<1x128x128xbf16>
      %36 = vector.shape_cast %35 : vector<1x128x128xbf16> to vector<128x128xbf16>
      %cst_30 = arith.constant dense<0.000000e+00> : vector<128x128xf32>
      %37 = tpu.matmul %34, %36, %cst_30 {dimension_numbers = #tpu.dot_dimension_numbers<[1], [0], [0], [1], [0, 0, 1, 1], [], []>} : vector<128x128xbf16>, vector<128x128xbf16>, vector<128x128xf32> -> vector<128x128xf32>
      %38 = arith.addf %29, %37 : vector<128x128xf32>
      %c1_i32_31 = arith.constant 1 : i32
      %39 = arith.addi %12, %c1_i32_31 : i32
      %c0_32 = arith.constant 0 : index
      %40 = arith.index_cast %39 : i32 to index
      %c7_33 = arith.constant 7 : index
      %c0_34 = arith.constant 0 : index
      %41 = vector.load %arg1[%c0_32, %40, %c7_33, %c0_34] : memref<1x34x48x128xbf16, #tpu.memory_space<vmem>>, vector<1x4x32x128xbf16>
      %42 = vector.shape_cast %41 : vector<1x4x32x128xbf16> to vector<4x32x128xbf16>
      %43 = vector.shape_cast %42 : vector<4x32x128xbf16> to vector<128x128xbf16>
      %c3 = arith.constant 3 : index
      %c0_35 = arith.constant 0 : index
      %c0_36 = arith.constant 0 : index
      %44 = vector.load %arg2[%c3, %c0_35, %c0_36] : memref<9x128x128xbf16, #tpu.memory_space<vmem>>, vector<1x128x128xbf16>
      %45 = vector.shape_cast %44 : vector<1x128x128xbf16> to vector<128x128xbf16>
      %cst_37 = arith.constant dense<0.000000e+00> : vector<128x128xf32>
      %46 = tpu.matmul %43, %45, %cst_37 {dimension_numbers = #tpu.dot_dimension_numbers<[1], [0], [0], [1], [0, 0, 1, 1], [], []>} : vector<128x128xbf16>, vector<128x128xbf16>, vector<128x128xf32> -> vector<128x128xf32>
      %47 = arith.addf %38, %46 : vector<128x128xf32>
      %c1_i32_38 = arith.constant 1 : i32
      %48 = arith.addi %12, %c1_i32_38 : i32
      %c0_39 = arith.constant 0 : index
      %49 = arith.index_cast %48 : i32 to index
      %c8_40 = arith.constant 8 : index
      %c0_41 = arith.constant 0 : index
      %50 = vector.load %arg1[%c0_39, %49, %c8_40, %c0_41] : memref<1x34x48x128xbf16, #tpu.memory_space<vmem>>, vector<1x4x32x128xbf16>
      %51 = vector.shape_cast %50 : vector<1x4x32x128xbf16> to vector<4x32x128xbf16>
      %52 = vector.shape_cast %51 : vector<4x32x128xbf16> to vector<128x128xbf16>
      %c4 = arith.constant 4 : index
      %c0_42 = arith.constant 0 : index
      %c0_43 = arith.constant 0 : index
      %53 = vector.load %arg2[%c4, %c0_42, %c0_43] : memref<9x128x128xbf16, #tpu.memory_space<vmem>>, vector<1x128x128xbf16>
      %54 = vector.shape_cast %53 : vector<1x128x128xbf16> to vector<128x128xbf16>
      %cst_44 = arith.constant dense<0.000000e+00> : vector<128x128xf32>
      %55 = tpu.matmul %52, %54, %cst_44 {dimension_numbers = #tpu.dot_dimension_numbers<[1], [0], [0], [1], [0, 0, 1, 1], [], []>} : vector<128x128xbf16>, vector<128x128xbf16>, vector<128x128xf32> -> vector<128x128xf32>
      %56 = arith.addf %47, %55 : vector<128x128xf32>
      %c1_i32_45 = arith.constant 1 : i32
      %57 = arith.addi %12, %c1_i32_45 : i32
      %c0_46 = arith.constant 0 : index
      %58 = arith.index_cast %57 : i32 to index
      %c9_47 = arith.constant 9 : index
      %c0_48 = arith.constant 0 : index
      %59 = vector.load %arg1[%c0_46, %58, %c9_47, %c0_48] : memref<1x34x48x128xbf16, #tpu.memory_space<vmem>>, vector<1x4x32x128xbf16>
      %60 = vector.shape_cast %59 : vector<1x4x32x128xbf16> to vector<4x32x128xbf16>
      %61 = vector.shape_cast %60 : vector<4x32x128xbf16> to vector<128x128xbf16>
      %c5 = arith.constant 5 : index
      %c0_49 = arith.constant 0 : index
      %c0_50 = arith.constant 0 : index
      %62 = vector.load %arg2[%c5, %c0_49, %c0_50] : memref<9x128x128xbf16, #tpu.memory_space<vmem>>, vector<1x128x128xbf16>
      %63 = vector.shape_cast %62 : vector<1x128x128xbf16> to vector<128x128xbf16>
      %cst_51 = arith.constant dense<0.000000e+00> : vector<128x128xf32>
      %64 = tpu.matmul %61, %63, %cst_51 {dimension_numbers = #tpu.dot_dimension_numbers<[1], [0], [0], [1], [0, 0, 1, 1], [], []>} : vector<128x128xbf16>, vector<128x128xbf16>, vector<128x128xf32> -> vector<128x128xf32>
      %65 = arith.addf %56, %64 : vector<128x128xf32>
      %c2_i32 = arith.constant 2 : i32
      %66 = arith.addi %12, %c2_i32 : i32
      %c0_52 = arith.constant 0 : index
      %67 = arith.index_cast %66 : i32 to index
      %c7_53 = arith.constant 7 : index
      %c0_54 = arith.constant 0 : index
      %68 = vector.load %arg1[%c0_52, %67, %c7_53, %c0_54] : memref<1x34x48x128xbf16, #tpu.memory_space<vmem>>, vector<1x4x32x128xbf16>
      %69 = vector.shape_cast %68 : vector<1x4x32x128xbf16> to vector<4x32x128xbf16>
      %70 = vector.shape_cast %69 : vector<4x32x128xbf16> to vector<128x128xbf16>
      %c6 = arith.constant 6 : index
      %c0_55 = arith.constant 0 : index
      %c0_56 = arith.constant 0 : index
      %71 = vector.load %arg2[%c6, %c0_55, %c0_56] : memref<9x128x128xbf16, #tpu.memory_space<vmem>>, vector<1x128x128xbf16>
      %72 = vector.shape_cast %71 : vector<1x128x128xbf16> to vector<128x128xbf16>
      %cst_57 = arith.constant dense<0.000000e+00> : vector<128x128xf32>
      %73 = tpu.matmul %70, %72, %cst_57 {dimension_numbers = #tpu.dot_dimension_numbers<[1], [0], [0], [1], [0, 0, 1, 1], [], []>} : vector<128x128xbf16>, vector<128x128xbf16>, vector<128x128xf32> -> vector<128x128xf32>
      %74 = arith.addf %65, %73 : vector<128x128xf32>
      %c2_i32_58 = arith.constant 2 : i32
      %75 = arith.addi %12, %c2_i32_58 : i32
      %c0_59 = arith.constant 0 : index
      %76 = arith.index_cast %75 : i32 to index
      %c8_60 = arith.constant 8 : index
      %c0_61 = arith.constant 0 : index
      %77 = vector.load %arg1[%c0_59, %76, %c8_60, %c0_61] : memref<1x34x48x128xbf16, #tpu.memory_space<vmem>>, vector<1x4x32x128xbf16>
      %78 = vector.shape_cast %77 : vector<1x4x32x128xbf16> to vector<4x32x128xbf16>
      %79 = vector.shape_cast %78 : vector<4x32x128xbf16> to vector<128x128xbf16>
      %c7_62 = arith.constant 7 : index
      %c0_63 = arith.constant 0 : index
      %c0_64 = arith.constant 0 : index
      %80 = vector.load %arg2[%c7_62, %c0_63, %c0_64] : memref<9x128x128xbf16, #tpu.memory_space<vmem>>, vector<1x128x128xbf16>
      %81 = vector.shape_cast %80 : vector<1x128x128xbf16> to vector<128x128xbf16>
      %cst_65 = arith.constant dense<0.000000e+00> : vector<128x128xf32>
      %82 = tpu.matmul %79, %81, %cst_65 {dimension_numbers = #tpu.dot_dimension_numbers<[1], [0], [0], [1], [0, 0, 1, 1], [], []>} : vector<128x128xbf16>, vector<128x128xbf16>, vector<128x128xf32> -> vector<128x128xf32>
      %83 = arith.addf %74, %82 : vector<128x128xf32>
      %c2_i32_66 = arith.constant 2 : i32
      %84 = arith.addi %12, %c2_i32_66 : i32
      %c0_67 = arith.constant 0 : index
      %85 = arith.index_cast %84 : i32 to index
      %c9_68 = arith.constant 9 : index
      %c0_69 = arith.constant 0 : index
      %86 = vector.load %arg1[%c0_67, %85, %c9_68, %c0_69] : memref<1x34x48x128xbf16, #tpu.memory_space<vmem>>, vector<1x4x32x128xbf16>
      %87 = vector.shape_cast %86 : vector<1x4x32x128xbf16> to vector<4x32x128xbf16>
      %88 = vector.shape_cast %87 : vector<4x32x128xbf16> to vector<128x128xbf16>
      %c8_70 = arith.constant 8 : index
      %c0_71 = arith.constant 0 : index
      %c0_72 = arith.constant 0 : index
      %89 = vector.load %arg2[%c8_70, %c0_71, %c0_72] : memref<9x128x128xbf16, #tpu.memory_space<vmem>>, vector<1x128x128xbf16>
      %90 = vector.shape_cast %89 : vector<1x128x128xbf16> to vector<128x128xbf16>
      %cst_73 = arith.constant dense<0.000000e+00> : vector<128x128xf32>
      %91 = tpu.matmul %88, %90, %cst_73 {dimension_numbers = #tpu.dot_dimension_numbers<[1], [0], [0], [1], [0, 0, 1, 1], [], []>} : vector<128x128xbf16>, vector<128x128xbf16>, vector<128x128xf32> -> vector<128x128xf32>
      %92 = arith.addf %83, %91 : vector<128x128xf32>
      %93 = vector.broadcast %0 : vector<1x128xf32> to vector<128x128xf32>
      %94 = arith.addf %92, %93 : vector<128x128xf32>
      %cst_74 = arith.constant 0.000000e+00 : f32
      %95 = vector.broadcast %cst_74 : f32 to vector<128x128xf32>
      %96 = arith.maximumf %94, %95 : vector<128x128xf32>
      %97 = vector.shape_cast %96 : vector<128x128xf32> to vector<4x32x128xf32>
      %98 = vector.extract_strided_slice %97 {offsets = [0, 0, 0], sizes = [1, 32, 128], strides = [1, 1, 1]} : vector<4x32x128xf32> to vector<1x32x128xf32>
      %99 = vector.shape_cast %98 : vector<1x32x128xf32> to vector<32x128xf32>
      %100 = vector.extract_strided_slice %97 {offsets = [1, 0, 0], sizes = [1, 32, 128], strides = [1, 1, 1]} : vector<4x32x128xf32> to vector<1x32x128xf32>
      %101 = vector.shape_cast %100 : vector<1x32x128xf32> to vector<32x128xf32>
      %102 = arith.maximumf %99, %101 : vector<32x128xf32>
      %c0_75 = arith.constant 0 : index
      %c0_76 = arith.constant 0 : index
      %103 = vector.load %arg5[%c0_75, %c0_76] : memref<64x128xf32, #tpu.memory_space<vmem>>, vector<32x128xf32>
      tpu.vector_store %arg5[%c0_75, %c0_76], %102 {strides = array<i32>} : memref<64x128xf32, #tpu.memory_space<vmem>>, vector<32x128xf32>,
      %104 = vector.extract_strided_slice %97 {offsets = [2, 0, 0], sizes = [1, 32, 128], strides = [1, 1, 1]} : vector<4x32x128xf32> to vector<1x32x128xf32>
      %105 = vector.shape_cast %104 : vector<1x32x128xf32> to vector<32x128xf32>
      %106 = vector.extract_strided_slice %97 {offsets = [3, 0, 0], sizes = [1, 32, 128], strides = [1, 1, 1]} : vector<4x32x128xf32> to vector<1x32x128xf32>
      %107 = vector.shape_cast %106 : vector<1x32x128xf32> to vector<32x128xf32>
      %108 = arith.maximumf %105, %107 : vector<32x128xf32>
      %c32 = arith.constant 32 : index
      %c0_77 = arith.constant 0 : index
      %109 = vector.load %arg5[%c32, %c0_77] : memref<64x128xf32, #tpu.memory_space<vmem>>, vector<32x128xf32>
      tpu.vector_store %arg5[%c32, %c0_77], %108 {strides = array<i32>} : memref<64x128xf32, #tpu.memory_space<vmem>>, vector<32x128xf32>,
      %c0_78 = arith.constant 0 : index
      %c0_79 = arith.constant 0 : index
      %110 = tpu.strided_load %arg5[%c0_78, %c0_79] {strides = array<i32: 2, 1>} : memref<64x128xf32, #tpu.memory_space<vmem>>, vector<32x128xf32>
      %c1_80 = arith.constant 1 : index
      %c0_81 = arith.constant 0 : index
      %111 = tpu.strided_load %arg5[%c1_80, %c0_81] {strides = array<i32: 2, 1>} : memref<64x128xf32, #tpu.memory_space<vmem>>, vector<32x128xf32>
      %112 = arith.maximumf %110, %111 : vector<32x128xf32>
      %113 = vector.shape_cast %112 : vector<32x128xf32> to vector<2x16x128xf32>
      %114 = arith.truncf %113 : vector<2x16x128xf32> to vector<2x16x128xbf16>
      %c2_i32_82 = arith.constant 2 : i32
      %115 = arith.muli %11, %c2_i32_82 : i32
      %c1_i32_83 = arith.constant 1 : i32
      %116 = arith.addi %c1_i32_83, %115 : i32
      %c0_84 = arith.constant 0 : index
      %117 = arith.index_cast %116 : i32 to index
      %c8_85 = arith.constant 8 : index
      %c0_86 = arith.constant 0 : index
      %118 = vector.load %arg4[%c0_84, %117, %c8_85, %c0_86] : memref<1x18x32x128xbf16, #tpu.memory_space<vmem>>, vector<1x2x16x128xbf16>
      %119 = vector.shape_cast %118 : vector<1x2x16x128xbf16> to vector<2x16x128xbf16>
      %120 = vector.shape_cast %114 : vector<2x16x128xbf16> to vector<1x2x16x128xbf16>
      tpu.vector_store %arg4[%c0_84, %117, %c8_85, %c0_86], %120 {strides = array<i32>} : memref<1x18x32x128xbf16, #tpu.memory_space<vmem>>, vector<1x2x16x128xbf16>,
      %c0_87 = arith.constant 0 : index
      %121 = arith.index_cast %116 : i32 to index
      %c0_88 = arith.constant 0 : index
      %c0_89 = arith.constant 0 : index
      %122 = vector.load %arg4[%c0_87, %121, %c0_88, %c0_89] : memref<1x18x32x128xbf16, #tpu.memory_space<vmem>>, vector<1x2x8x128xbf16>
      %123 = vector.shape_cast %122 : vector<1x2x8x128xbf16> to vector<2x8x128xbf16>
      %124 = vector.shape_cast %8 : vector<2x8x128xbf16> to vector<1x2x8x128xbf16>
      tpu.vector_store %arg4[%c0_87, %121, %c0_88, %c0_89], %124 {strides = array<i32>} : memref<1x18x32x128xbf16, #tpu.memory_space<vmem>>, vector<1x2x8x128xbf16>,
      %c0_90 = arith.constant 0 : index
      %125 = arith.index_cast %116 : i32 to index
      %c24 = arith.constant 24 : index
      %c0_91 = arith.constant 0 : index
      %126 = vector.load %arg4[%c0_90, %125, %c24, %c0_91] : memref<1x18x32x128xbf16, #tpu.memory_space<vmem>>, vector<1x2x8x128xbf16>
      %127 = vector.shape_cast %126 : vector<1x2x8x128xbf16> to vector<2x8x128xbf16>
      %128 = vector.shape_cast %8 : vector<2x8x128xbf16> to vector<1x2x8x128xbf16>
      tpu.vector_store %arg4[%c0_90, %125, %c24, %c0_91], %128 {strides = array<i32>} : memref<1x18x32x128xbf16, #tpu.memory_space<vmem>>, vector<1x2x8x128xbf16>,
    }
    %c8_i32_9 = arith.constant 8 : i32
    return
  }
  func.func @transform_0(%arg0: i32) -> (i32, i32, i32, i32) {
    %c0_i32 = arith.constant 0 : i32
    %c0_i32_0 = arith.constant 0 : i32
    %c0_i32_1 = arith.constant 0 : i32
    %c0_i32_2 = arith.constant 0 : i32
    return %arg0, %c0_i32, %c0_i32_0, %c0_i32_1 : i32, i32, i32, i32
  }
  func.func @transform_1(%arg0: i32) -> (i32, i32, i32) {
    %c0_i32 = arith.constant 0 : i32
    %c0_i32_0 = arith.constant 0 : i32
    %c0_i32_1 = arith.constant 0 : i32
    %c0_i32_2 = arith.constant 0 : i32
    return %c0_i32, %c0_i32_0, %c0_i32_1 : i32, i32, i32
  }
  func.func @transform_2(%arg0: i32) -> (i32, i32) {
    %c0_i32 = arith.constant 0 : i32
    %c0_i32_0 = arith.constant 0 : i32
    %c0_i32_1 = arith.constant 0 : i32
    return %c0_i32, %c0_i32_0 : i32, i32
  }
  func.func @transform_3(%arg0: i32) -> (i32, i32, i32, i32) {
    %c0_i32 = arith.constant 0 : i32
    %c0_i32_0 = arith.constant 0 : i32
    %c0_i32_1 = arith.constant 0 : i32
    %c0_i32_2 = arith.constant 0 : i32
    return %arg0, %c0_i32, %c0_i32_0, %c0_i32_1 : i32, i32, i32, i32
  }
}

module attributes {stable_mosaic.version = 11 : i64} {
  func.func @_fc_fused_kernel(%arg0: i32, %arg1: memref<2x2048xbf16, #tpu.memory_space<vmem>>, %arg2: memref<2048x256xbf16, #tpu.memory_space<vmem>>, %arg3: memref<1x256xf32, #tpu.memory_space<vmem>>, %arg4: memref<256x128xbf16, #tpu.memory_space<vmem>>, %arg5: memref<1x128xf32, #tpu.memory_space<vmem>>, %arg6: memref<2x128xf32, #tpu.memory_space<vmem>>, %arg7: memref<2x256xf32, #tpu.memory_space<vmem>>) attributes {dimension_semantics = [#tpu.dimension_semantics<arbitrary>], iteration_bounds = array<i64: 4>, scalar_prefetch = 0 : i64, scratch_operands = 1 : i64, tpu.core_type = #tpu.core_type<tc>, window_params = [{transform_indices = @transform_0, window_bounds = array<i64: 2, 2048>}, {transform_indices = @transform_1, window_bounds = array<i64: 2048, 256>}, {pipeline_mode = #tpu.pipeline_mode<synchronous>, transform_indices = @transform_2, window_bounds = array<i64: 1, 256>}, {pipeline_mode = #tpu.pipeline_mode<synchronous>, transform_indices = @transform_3, window_bounds = array<i64: 256, 128>}, {pipeline_mode = #tpu.pipeline_mode<synchronous>, transform_indices = @transform_4, window_bounds = array<i64: 1, 128>}, {pipeline_mode = #tpu.pipeline_mode<synchronous>, transform_indices = @transform_5, window_bounds = array<i64: 2, 128>}]} {
    %c0_i32 = arith.constant 0 : i32
    %0 = arith.cmpi eq, %arg0, %c0_i32 : i32
    %1 = arith.extui %0 : i1 to i32
    %c0_i32_0 = arith.constant 0 : i32
    %2 = arith.cmpi ne, %1, %c0_i32_0 : i32
    scf.if %2 {
      %cst_9 = arith.constant 0.000000e+00 : f32
      %12 = vector.broadcast %cst_9 : f32 to vector<2x256xf32>
      %c0_10 = arith.constant 0 : index
      %c0_11 = arith.constant 0 : index
      %13 = vector.load %arg7[%c0_10, %c0_11] : memref<2x256xf32, #tpu.memory_space<vmem>>, vector<2x256xf32>
      tpu.vector_store %arg7[%c0_10, %c0_11], %12 {strides = array<i32>} : memref<2x256xf32, #tpu.memory_space<vmem>>, vector<2x256xf32>,
    } else {
    }
    %c0 = arith.constant 0 : index
    %c0_1 = arith.constant 0 : index
    %3 = vector.load %arg7[%c0, %c0_1] : memref<2x256xf32, #tpu.memory_space<vmem>>, vector<2x256xf32>
    %c0_2 = arith.constant 0 : index
    %c0_3 = arith.constant 0 : index
    %4 = vector.load %arg1[%c0_2, %c0_3] : memref<2x2048xbf16, #tpu.memory_space<vmem>>, vector<2x2048xbf16>
    %c0_4 = arith.constant 0 : index
    %c0_5 = arith.constant 0 : index
    %5 = vector.load %arg2[%c0_4, %c0_5] : memref<2048x256xbf16, #tpu.memory_space<vmem>>, vector<2048x256xbf16>
    %cst = arith.constant dense<0.000000e+00> : vector<2x256xf32>
    %6 = tpu.matmul %4, %5, %cst {dimension_numbers = #tpu.dot_dimension_numbers<[1], [0], [0], [1], [0, 0, 1, 1], [], []>} : vector<2x2048xbf16>, vector<2048x256xbf16>, vector<2x256xf32> -> vector<2x256xf32>
    %7 = arith.addf %3, %6 : vector<2x256xf32>
    %c0_6 = arith.constant 0 : index
    %c0_7 = arith.constant 0 : index
    %8 = vector.load %arg7[%c0_6, %c0_7] : memref<2x256xf32, #tpu.memory_space<vmem>>, vector<2x256xf32>
    tpu.vector_store %arg7[%c0_6, %c0_7], %7 {strides = array<i32>} : memref<2x256xf32, #tpu.memory_space<vmem>>, vector<2x256xf32>,
    %c3_i32 = arith.constant 3 : i32
    %9 = arith.cmpi eq, %arg0, %c3_i32 : i32
    %10 = arith.extui %9 : i1 to i32
    %c0_i32_8 = arith.constant 0 : i32
    %11 = arith.cmpi ne, %10, %c0_i32_8 : i32
    scf.if %11 {
      %c0_9 = arith.constant 0 : index
      %c0_10 = arith.constant 0 : index
      %12 = vector.load %arg7[%c0_9, %c0_10] : memref<2x256xf32, #tpu.memory_space<vmem>>, vector<2x256xf32>
      %c0_11 = arith.constant 0 : index
      %c0_12 = arith.constant 0 : index
      %13 = vector.load %arg3[%c0_11, %c0_12] : memref<1x256xf32, #tpu.memory_space<vmem>>, vector<1x256xf32>
      %14 = vector.broadcast %13 : vector<1x256xf32> to vector<2x256xf32>
      %15 = arith.addf %12, %14 : vector<2x256xf32>
      %cst_13 = arith.constant 0.000000e+00 : f32
      %16 = vector.broadcast %cst_13 : f32 to vector<2x256xf32>
      %17 = arith.maximumf %15, %16 : vector<2x256xf32>
      %18 = arith.truncf %17 : vector<2x256xf32> to vector<2x256xbf16>
      %c0_14 = arith.constant 0 : index
      %c0_15 = arith.constant 0 : index
      %19 = vector.load %arg4[%c0_14, %c0_15] : memref<256x128xbf16, #tpu.memory_space<vmem>>, vector<256x128xbf16>
      %cst_16 = arith.constant dense<0.000000e+00> : vector<2x128xf32>
      %20 = tpu.matmul %18, %19, %cst_16 {dimension_numbers = #tpu.dot_dimension_numbers<[1], [0], [0], [1], [0, 0, 1, 1], [], []>} : vector<2x256xbf16>, vector<256x128xbf16>, vector<2x128xf32> -> vector<2x128xf32>
      %c0_17 = arith.constant 0 : index
      %c0_18 = arith.constant 0 : index
      %21 = vector.load %arg5[%c0_17, %c0_18] : memref<1x128xf32, #tpu.memory_space<vmem>>, vector<1x128xf32>
      %22 = vector.broadcast %21 : vector<1x128xf32> to vector<2x128xf32>
      %23 = arith.addf %20, %22 : vector<2x128xf32>
      %c0_19 = arith.constant 0 : index
      %c0_20 = arith.constant 0 : index
      %24 = vector.load %arg6[%c0_19, %c0_20] : memref<2x128xf32, #tpu.memory_space<vmem>>, vector<2x128xf32>
      tpu.vector_store %arg6[%c0_19, %c0_20], %23 {strides = array<i32>} : memref<2x128xf32, #tpu.memory_space<vmem>>, vector<2x128xf32>,
    } else {
    }
    return
  }
  func.func @transform_0(%arg0: i32) -> (i32, i32) {
    %c0_i32 = arith.constant 0 : i32
    %c0_i32_0 = arith.constant 0 : i32
    return %c0_i32, %arg0 : i32, i32
  }
  func.func @transform_1(%arg0: i32) -> (i32, i32) {
    %c0_i32 = arith.constant 0 : i32
    %c0_i32_0 = arith.constant 0 : i32
    return %arg0, %c0_i32 : i32, i32
  }
  func.func @transform_2(%arg0: i32) -> (i32, i32) {
    %c0_i32 = arith.constant 0 : i32
    %c0_i32_0 = arith.constant 0 : i32
    %c0_i32_1 = arith.constant 0 : i32
    return %c0_i32, %c0_i32_0 : i32, i32
  }
  func.func @transform_3(%arg0: i32) -> (i32, i32) {
    %c0_i32 = arith.constant 0 : i32
    %c0_i32_0 = arith.constant 0 : i32
    %c0_i32_1 = arith.constant 0 : i32
    return %c0_i32, %c0_i32_0 : i32, i32
  }
  func.func @transform_4(%arg0: i32) -> (i32, i32) {
    %c0_i32 = arith.constant 0 : i32
    %c0_i32_0 = arith.constant 0 : i32
    %c0_i32_1 = arith.constant 0 : i32
    return %c0_i32, %c0_i32_0 : i32, i32
  }
  func.func @transform_5(%arg0: i32) -> (i32, i32) {
    %c0_i32 = arith.constant 0 : i32
    %c0_i32_0 = arith.constant 0 : i32
    %c0_i32_1 = arith.constant 0 : i32
    return %c0_i32, %c0_i32_0 : i32, i32
  }
}

module attributes {stable_mosaic.version = 11 : i64} {
  func.func @_conv_bn_relu_pool_kernel(%arg0: i32, %arg1: memref<1x18x32x128xbf16, #tpu.memory_space<vmem>>, %arg2: memref<9x128x128xbf16, #tpu.memory_space<vmem>>, %arg3: memref<1x128xf32, #tpu.memory_space<vmem>>, %arg4: memref<1x8x8x128xbf16, #tpu.memory_space<vmem>>, %arg5: memref<64x128xf32, #tpu.memory_space<vmem>>) attributes {dimension_semantics = [#tpu.dimension_semantics<parallel>], iteration_bounds = array<i64: 2>, scalar_prefetch = 0 : i64, scratch_operands = 1 : i64, tpu.core_type = #tpu.core_type<tc>, window_params = [{transform_indices = @transform_0, window_bounds = array<i64: 1, 18, 32, 128>}, {pipeline_mode = #tpu.pipeline_mode<synchronous>, transform_indices = @transform_1, window_bounds = array<i64: 9, 128, 128>}, {pipeline_mode = #tpu.pipeline_mode<synchronous>, transform_indices = @transform_2, window_bounds = array<i64: 1, 128>}, {transform_indices = @transform_3, window_bounds = array<i64: 1, 8, 8, 128>}]} {
    %c0 = arith.constant 0 : index
    %c0_0 = arith.constant 0 : index
    %0 = vector.load %arg3[%c0, %c0_0] : memref<1x128xf32, #tpu.memory_space<vmem>>, vector<1x128xf32>
    %c0_i32 = arith.constant 0 : i32
    %c2_i32 = arith.constant 2 : i32
    %1 = arith.addi %c0_i32, %c2_i32 : i32
    %c1_i32 = arith.constant 1 : i32
    scf.for %arg6 = %c0_i32 to %1 step %c1_i32  : i32 {
      %c1_i32_2 = arith.constant 1 : i32
      %2 = arith.muli %arg6, %c1_i32_2 : i32
      %c0_i32_3 = arith.constant 0 : i32
      %3 = arith.addi %c0_i32_3, %2 : i32
      %c8_i32 = arith.constant 8 : i32
      %4 = arith.muli %3, %c8_i32 : i32
      %c0_i32_4 = arith.constant 0 : i32
      %5 = arith.addi %4, %c0_i32_4 : i32
      %c0_5 = arith.constant 0 : index
      %6 = arith.index_cast %5 : i32 to index
      %c7 = arith.constant 7 : index
      %c0_6 = arith.constant 0 : index
      %7 = vector.load %arg1[%c0_5, %6, %c7, %c0_6] : memref<1x18x32x128xbf16, #tpu.memory_space<vmem>>, vector<1x8x16x128xbf16>
      %8 = vector.shape_cast %7 : vector<1x8x16x128xbf16> to vector<8x16x128xbf16>
      %9 = vector.shape_cast %8 : vector<8x16x128xbf16> to vector<128x128xbf16>
      %c0_7 = arith.constant 0 : index
      %c0_8 = arith.constant 0 : index
      %c0_9 = arith.constant 0 : index
      %10 = vector.load %arg2[%c0_7, %c0_8, %c0_9] : memref<9x128x128xbf16, #tpu.memory_space<vmem>>, vector<1x128x128xbf16>
      %11 = vector.shape_cast %10 : vector<1x128x128xbf16> to vector<128x128xbf16>
      %cst = arith.constant dense<0.000000e+00> : vector<128x128xf32>
      %12 = tpu.matmul %9, %11, %cst {dimension_numbers = #tpu.dot_dimension_numbers<[1], [0], [0], [1], [0, 0, 1, 1], [], []>} : vector<128x128xbf16>, vector<128x128xbf16>, vector<128x128xf32> -> vector<128x128xf32>
      %c0_i32_10 = arith.constant 0 : i32
      %13 = arith.addi %4, %c0_i32_10 : i32
      %c0_11 = arith.constant 0 : index
      %14 = arith.index_cast %13 : i32 to index
      %c8 = arith.constant 8 : index
      %c0_12 = arith.constant 0 : index
      %15 = vector.load %arg1[%c0_11, %14, %c8, %c0_12] : memref<1x18x32x128xbf16, #tpu.memory_space<vmem>>, vector<1x8x16x128xbf16>
      %16 = vector.shape_cast %15 : vector<1x8x16x128xbf16> to vector<8x16x128xbf16>
      %17 = vector.shape_cast %16 : vector<8x16x128xbf16> to vector<128x128xbf16>
      %c1 = arith.constant 1 : index
      %c0_13 = arith.constant 0 : index
      %c0_14 = arith.constant 0 : index
      %18 = vector.load %arg2[%c1, %c0_13, %c0_14] : memref<9x128x128xbf16, #tpu.memory_space<vmem>>, vector<1x128x128xbf16>
      %19 = vector.shape_cast %18 : vector<1x128x128xbf16> to vector<128x128xbf16>
      %cst_15 = arith.constant dense<0.000000e+00> : vector<128x128xf32>
      %20 = tpu.matmul %17, %19, %cst_15 {dimension_numbers = #tpu.dot_dimension_numbers<[1], [0], [0], [1], [0, 0, 1, 1], [], []>} : vector<128x128xbf16>, vector<128x128xbf16>, vector<128x128xf32> -> vector<128x128xf32>
      %21 = arith.addf %12, %20 : vector<128x128xf32>
      %c0_i32_16 = arith.constant 0 : i32
      %22 = arith.addi %4, %c0_i32_16 : i32
      %c0_17 = arith.constant 0 : index
      %23 = arith.index_cast %22 : i32 to index
      %c9 = arith.constant 9 : index
      %c0_18 = arith.constant 0 : index
      %24 = vector.load %arg1[%c0_17, %23, %c9, %c0_18] : memref<1x18x32x128xbf16, #tpu.memory_space<vmem>>, vector<1x8x16x128xbf16>
      %25 = vector.shape_cast %24 : vector<1x8x16x128xbf16> to vector<8x16x128xbf16>
      %26 = vector.shape_cast %25 : vector<8x16x128xbf16> to vector<128x128xbf16>
      %c2 = arith.constant 2 : index
      %c0_19 = arith.constant 0 : index
      %c0_20 = arith.constant 0 : index
      %27 = vector.load %arg2[%c2, %c0_19, %c0_20] : memref<9x128x128xbf16, #tpu.memory_space<vmem>>, vector<1x128x128xbf16>
      %28 = vector.shape_cast %27 : vector<1x128x128xbf16> to vector<128x128xbf16>
      %cst_21 = arith.constant dense<0.000000e+00> : vector<128x128xf32>
      %29 = tpu.matmul %26, %28, %cst_21 {dimension_numbers = #tpu.dot_dimension_numbers<[1], [0], [0], [1], [0, 0, 1, 1], [], []>} : vector<128x128xbf16>, vector<128x128xbf16>, vector<128x128xf32> -> vector<128x128xf32>
      %30 = arith.addf %21, %29 : vector<128x128xf32>
      %c1_i32_22 = arith.constant 1 : i32
      %31 = arith.addi %4, %c1_i32_22 : i32
      %c0_23 = arith.constant 0 : index
      %32 = arith.index_cast %31 : i32 to index
      %c7_24 = arith.constant 7 : index
      %c0_25 = arith.constant 0 : index
      %33 = vector.load %arg1[%c0_23, %32, %c7_24, %c0_25] : memref<1x18x32x128xbf16, #tpu.memory_space<vmem>>, vector<1x8x16x128xbf16>
      %34 = vector.shape_cast %33 : vector<1x8x16x128xbf16> to vector<8x16x128xbf16>
      %35 = vector.shape_cast %34 : vector<8x16x128xbf16> to vector<128x128xbf16>
      %c3 = arith.constant 3 : index
      %c0_26 = arith.constant 0 : index
      %c0_27 = arith.constant 0 : index
      %36 = vector.load %arg2[%c3, %c0_26, %c0_27] : memref<9x128x128xbf16, #tpu.memory_space<vmem>>, vector<1x128x128xbf16>
      %37 = vector.shape_cast %36 : vector<1x128x128xbf16> to vector<128x128xbf16>
      %cst_28 = arith.constant dense<0.000000e+00> : vector<128x128xf32>
      %38 = tpu.matmul %35, %37, %cst_28 {dimension_numbers = #tpu.dot_dimension_numbers<[1], [0], [0], [1], [0, 0, 1, 1], [], []>} : vector<128x128xbf16>, vector<128x128xbf16>, vector<128x128xf32> -> vector<128x128xf32>
      %39 = arith.addf %30, %38 : vector<128x128xf32>
      %c1_i32_29 = arith.constant 1 : i32
      %40 = arith.addi %4, %c1_i32_29 : i32
      %c0_30 = arith.constant 0 : index
      %41 = arith.index_cast %40 : i32 to index
      %c8_31 = arith.constant 8 : index
      %c0_32 = arith.constant 0 : index
      %42 = vector.load %arg1[%c0_30, %41, %c8_31, %c0_32] : memref<1x18x32x128xbf16, #tpu.memory_space<vmem>>, vector<1x8x16x128xbf16>
      %43 = vector.shape_cast %42 : vector<1x8x16x128xbf16> to vector<8x16x128xbf16>
      %44 = vector.shape_cast %43 : vector<8x16x128xbf16> to vector<128x128xbf16>
      %c4 = arith.constant 4 : index
      %c0_33 = arith.constant 0 : index
      %c0_34 = arith.constant 0 : index
      %45 = vector.load %arg2[%c4, %c0_33, %c0_34] : memref<9x128x128xbf16, #tpu.memory_space<vmem>>, vector<1x128x128xbf16>
      %46 = vector.shape_cast %45 : vector<1x128x128xbf16> to vector<128x128xbf16>
      %cst_35 = arith.constant dense<0.000000e+00> : vector<128x128xf32>
      %47 = tpu.matmul %44, %46, %cst_35 {dimension_numbers = #tpu.dot_dimension_numbers<[1], [0], [0], [1], [0, 0, 1, 1], [], []>} : vector<128x128xbf16>, vector<128x128xbf16>, vector<128x128xf32> -> vector<128x128xf32>
      %48 = arith.addf %39, %47 : vector<128x128xf32>
      %c1_i32_36 = arith.constant 1 : i32
      %49 = arith.addi %4, %c1_i32_36 : i32
      %c0_37 = arith.constant 0 : index
      %50 = arith.index_cast %49 : i32 to index
      %c9_38 = arith.constant 9 : index
      %c0_39 = arith.constant 0 : index
      %51 = vector.load %arg1[%c0_37, %50, %c9_38, %c0_39] : memref<1x18x32x128xbf16, #tpu.memory_space<vmem>>, vector<1x8x16x128xbf16>
      %52 = vector.shape_cast %51 : vector<1x8x16x128xbf16> to vector<8x16x128xbf16>
      %53 = vector.shape_cast %52 : vector<8x16x128xbf16> to vector<128x128xbf16>
      %c5 = arith.constant 5 : index
      %c0_40 = arith.constant 0 : index
      %c0_41 = arith.constant 0 : index
      %54 = vector.load %arg2[%c5, %c0_40, %c0_41] : memref<9x128x128xbf16, #tpu.memory_space<vmem>>, vector<1x128x128xbf16>
      %55 = vector.shape_cast %54 : vector<1x128x128xbf16> to vector<128x128xbf16>
      %cst_42 = arith.constant dense<0.000000e+00> : vector<128x128xf32>
      %56 = tpu.matmul %53, %55, %cst_42 {dimension_numbers = #tpu.dot_dimension_numbers<[1], [0], [0], [1], [0, 0, 1, 1], [], []>} : vector<128x128xbf16>, vector<128x128xbf16>, vector<128x128xf32> -> vector<128x128xf32>
      %57 = arith.addf %48, %56 : vector<128x128xf32>
      %c2_i32_43 = arith.constant 2 : i32
      %58 = arith.addi %4, %c2_i32_43 : i32
      %c0_44 = arith.constant 0 : index
      %59 = arith.index_cast %58 : i32 to index
      %c7_45 = arith.constant 7 : index
      %c0_46 = arith.constant 0 : index
      %60 = vector.load %arg1[%c0_44, %59, %c7_45, %c0_46] : memref<1x18x32x128xbf16, #tpu.memory_space<vmem>>, vector<1x8x16x128xbf16>
      %61 = vector.shape_cast %60 : vector<1x8x16x128xbf16> to vector<8x16x128xbf16>
      %62 = vector.shape_cast %61 : vector<8x16x128xbf16> to vector<128x128xbf16>
      %c6 = arith.constant 6 : index
      %c0_47 = arith.constant 0 : index
      %c0_48 = arith.constant 0 : index
      %63 = vector.load %arg2[%c6, %c0_47, %c0_48] : memref<9x128x128xbf16, #tpu.memory_space<vmem>>, vector<1x128x128xbf16>
      %64 = vector.shape_cast %63 : vector<1x128x128xbf16> to vector<128x128xbf16>
      %cst_49 = arith.constant dense<0.000000e+00> : vector<128x128xf32>
      %65 = tpu.matmul %62, %64, %cst_49 {dimension_numbers = #tpu.dot_dimension_numbers<[1], [0], [0], [1], [0, 0, 1, 1], [], []>} : vector<128x128xbf16>, vector<128x128xbf16>, vector<128x128xf32> -> vector<128x128xf32>
      %66 = arith.addf %57, %65 : vector<128x128xf32>
      %c2_i32_50 = arith.constant 2 : i32
      %67 = arith.addi %4, %c2_i32_50 : i32
      %c0_51 = arith.constant 0 : index
      %68 = arith.index_cast %67 : i32 to index
      %c8_52 = arith.constant 8 : index
      %c0_53 = arith.constant 0 : index
      %69 = vector.load %arg1[%c0_51, %68, %c8_52, %c0_53] : memref<1x18x32x128xbf16, #tpu.memory_space<vmem>>, vector<1x8x16x128xbf16>
      %70 = vector.shape_cast %69 : vector<1x8x16x128xbf16> to vector<8x16x128xbf16>
      %71 = vector.shape_cast %70 : vector<8x16x128xbf16> to vector<128x128xbf16>
      %c7_54 = arith.constant 7 : index
      %c0_55 = arith.constant 0 : index
      %c0_56 = arith.constant 0 : index
      %72 = vector.load %arg2[%c7_54, %c0_55, %c0_56] : memref<9x128x128xbf16, #tpu.memory_space<vmem>>, vector<1x128x128xbf16>
      %73 = vector.shape_cast %72 : vector<1x128x128xbf16> to vector<128x128xbf16>
      %cst_57 = arith.constant dense<0.000000e+00> : vector<128x128xf32>
      %74 = tpu.matmul %71, %73, %cst_57 {dimension_numbers = #tpu.dot_dimension_numbers<[1], [0], [0], [1], [0, 0, 1, 1], [], []>} : vector<128x128xbf16>, vector<128x128xbf16>, vector<128x128xf32> -> vector<128x128xf32>
      %75 = arith.addf %66, %74 : vector<128x128xf32>
      %c2_i32_58 = arith.constant 2 : i32
      %76 = arith.addi %4, %c2_i32_58 : i32
      %c0_59 = arith.constant 0 : index
      %77 = arith.index_cast %76 : i32 to index
      %c9_60 = arith.constant 9 : index
      %c0_61 = arith.constant 0 : index
      %78 = vector.load %arg1[%c0_59, %77, %c9_60, %c0_61] : memref<1x18x32x128xbf16, #tpu.memory_space<vmem>>, vector<1x8x16x128xbf16>
      %79 = vector.shape_cast %78 : vector<1x8x16x128xbf16> to vector<8x16x128xbf16>
      %80 = vector.shape_cast %79 : vector<8x16x128xbf16> to vector<128x128xbf16>
      %c8_62 = arith.constant 8 : index
      %c0_63 = arith.constant 0 : index
      %c0_64 = arith.constant 0 : index
      %81 = vector.load %arg2[%c8_62, %c0_63, %c0_64] : memref<9x128x128xbf16, #tpu.memory_space<vmem>>, vector<1x128x128xbf16>
      %82 = vector.shape_cast %81 : vector<1x128x128xbf16> to vector<128x128xbf16>
      %cst_65 = arith.constant dense<0.000000e+00> : vector<128x128xf32>
      %83 = tpu.matmul %80, %82, %cst_65 {dimension_numbers = #tpu.dot_dimension_numbers<[1], [0], [0], [1], [0, 0, 1, 1], [], []>} : vector<128x128xbf16>, vector<128x128xbf16>, vector<128x128xf32> -> vector<128x128xf32>
      %84 = arith.addf %75, %83 : vector<128x128xf32>
      %85 = vector.broadcast %0 : vector<1x128xf32> to vector<128x128xf32>
      %86 = arith.addf %84, %85 : vector<128x128xf32>
      %cst_66 = arith.constant 0.000000e+00 : f32
      %87 = vector.broadcast %cst_66 : f32 to vector<128x128xf32>
      %88 = arith.maximumf %86, %87 : vector<128x128xf32>
      %89 = vector.shape_cast %88 : vector<128x128xf32> to vector<8x16x128xf32>
      %90 = vector.extract_strided_slice %89 {offsets = [0, 0, 0], sizes = [1, 16, 128], strides = [1, 1, 1]} : vector<8x16x128xf32> to vector<1x16x128xf32>
      %91 = vector.shape_cast %90 : vector<1x16x128xf32> to vector<16x128xf32>
      %92 = vector.extract_strided_slice %89 {offsets = [1, 0, 0], sizes = [1, 16, 128], strides = [1, 1, 1]} : vector<8x16x128xf32> to vector<1x16x128xf32>
      %93 = vector.shape_cast %92 : vector<1x16x128xf32> to vector<16x128xf32>
      %94 = arith.maximumf %91, %93 : vector<16x128xf32>
      %c0_67 = arith.constant 0 : index
      %c0_68 = arith.constant 0 : index
      %95 = vector.load %arg5[%c0_67, %c0_68] : memref<64x128xf32, #tpu.memory_space<vmem>>, vector<16x128xf32>
      tpu.vector_store %arg5[%c0_67, %c0_68], %94 {strides = array<i32>} : memref<64x128xf32, #tpu.memory_space<vmem>>, vector<16x128xf32>,
      %96 = vector.extract_strided_slice %89 {offsets = [2, 0, 0], sizes = [1, 16, 128], strides = [1, 1, 1]} : vector<8x16x128xf32> to vector<1x16x128xf32>
      %97 = vector.shape_cast %96 : vector<1x16x128xf32> to vector<16x128xf32>
      %98 = vector.extract_strided_slice %89 {offsets = [3, 0, 0], sizes = [1, 16, 128], strides = [1, 1, 1]} : vector<8x16x128xf32> to vector<1x16x128xf32>
      %99 = vector.shape_cast %98 : vector<1x16x128xf32> to vector<16x128xf32>
      %100 = arith.maximumf %97, %99 : vector<16x128xf32>
      %c16 = arith.constant 16 : index
      %c0_69 = arith.constant 0 : index
      %101 = vector.load %arg5[%c16, %c0_69] : memref<64x128xf32, #tpu.memory_space<vmem>>, vector<16x128xf32>
      tpu.vector_store %arg5[%c16, %c0_69], %100 {strides = array<i32>} : memref<64x128xf32, #tpu.memory_space<vmem>>, vector<16x128xf32>,
      %102 = vector.extract_strided_slice %89 {offsets = [4, 0, 0], sizes = [1, 16, 128], strides = [1, 1, 1]} : vector<8x16x128xf32> to vector<1x16x128xf32>
      %103 = vector.shape_cast %102 : vector<1x16x128xf32> to vector<16x128xf32>
      %104 = vector.extract_strided_slice %89 {offsets = [5, 0, 0], sizes = [1, 16, 128], strides = [1, 1, 1]} : vector<8x16x128xf32> to vector<1x16x128xf32>
      %105 = vector.shape_cast %104 : vector<1x16x128xf32> to vector<16x128xf32>
      %106 = arith.maximumf %103, %105 : vector<16x128xf32>
      %c32 = arith.constant 32 : index
      %c0_70 = arith.constant 0 : index
      %107 = vector.load %arg5[%c32, %c0_70] : memref<64x128xf32, #tpu.memory_space<vmem>>, vector<16x128xf32>
      tpu.vector_store %arg5[%c32, %c0_70], %106 {strides = array<i32>} : memref<64x128xf32, #tpu.memory_space<vmem>>, vector<16x128xf32>,
      %108 = vector.extract_strided_slice %89 {offsets = [6, 0, 0], sizes = [1, 16, 128], strides = [1, 1, 1]} : vector<8x16x128xf32> to vector<1x16x128xf32>
      %109 = vector.shape_cast %108 : vector<1x16x128xf32> to vector<16x128xf32>
      %110 = vector.extract_strided_slice %89 {offsets = [7, 0, 0], sizes = [1, 16, 128], strides = [1, 1, 1]} : vector<8x16x128xf32> to vector<1x16x128xf32>
      %111 = vector.shape_cast %110 : vector<1x16x128xf32> to vector<16x128xf32>
      %112 = arith.maximumf %109, %111 : vector<16x128xf32>
      %c48 = arith.constant 48 : index
      %c0_71 = arith.constant 0 : index
      %113 = vector.load %arg5[%c48, %c0_71] : memref<64x128xf32, #tpu.memory_space<vmem>>, vector<16x128xf32>
      tpu.vector_store %arg5[%c48, %c0_71], %112 {strides = array<i32>} : memref<64x128xf32, #tpu.memory_space<vmem>>, vector<16x128xf32>,
      %c0_72 = arith.constant 0 : index
      %c0_73 = arith.constant 0 : index
      %114 = tpu.strided_load %arg5[%c0_72, %c0_73] {strides = array<i32: 2, 1>} : memref<64x128xf32, #tpu.memory_space<vmem>>, vector<32x128xf32>
      %c1_74 = arith.constant 1 : index
      %c0_75 = arith.constant 0 : index
      %115 = tpu.strided_load %arg5[%c1_74, %c0_75] {strides = array<i32: 2, 1>} : memref<64x128xf32, #tpu.memory_space<vmem>>, vector<32x128xf32>
      %116 = arith.maximumf %114, %115 : vector<32x128xf32>
      %117 = vector.shape_cast %116 : vector<32x128xf32> to vector<4x8x128xf32>
      %118 = arith.truncf %117 : vector<4x8x128xf32> to vector<4x8x128xbf16>
      %c4_i32 = arith.constant 4 : i32
      %119 = arith.muli %3, %c4_i32 : i32
      %c0_76 = arith.constant 0 : index
      %120 = arith.index_cast %119 : i32 to index
      %c0_77 = arith.constant 0 : index
      %c0_78 = arith.constant 0 : index
      %121 = vector.load %arg4[%c0_76, %120, %c0_77, %c0_78] : memref<1x8x8x128xbf16, #tpu.memory_space<vmem>>, vector<1x4x8x128xbf16>
      %122 = vector.shape_cast %121 : vector<1x4x8x128xbf16> to vector<4x8x128xbf16>
      %123 = vector.shape_cast %118 : vector<4x8x128xbf16> to vector<1x4x8x128xbf16>
      tpu.vector_store %arg4[%c0_76, %120, %c0_77, %c0_78], %123 {strides = array<i32>} : memref<1x8x8x128xbf16, #tpu.memory_space<vmem>>, vector<1x4x8x128xbf16>,
    }
    %c2_i32_1 = arith.constant 2 : i32
    return
  }
  func.func @transform_0(%arg0: i32) -> (i32, i32, i32, i32) {
    %c0_i32 = arith.constant 0 : i32
    %c0_i32_0 = arith.constant 0 : i32
    %c0_i32_1 = arith.constant 0 : i32
    %c0_i32_2 = arith.constant 0 : i32
    return %arg0, %c0_i32, %c0_i32_0, %c0_i32_1 : i32, i32, i32, i32
  }
  func.func @transform_1(%arg0: i32) -> (i32, i32, i32) {
    %c0_i32 = arith.constant 0 : i32
    %c0_i32_0 = arith.constant 0 : i32
    %c0_i32_1 = arith.constant 0 : i32
    %c0_i32_2 = arith.constant 0 : i32
    return %c0_i32, %c0_i32_0, %c0_i32_1 : i32, i32, i32
  }
  func.func @transform_2(%arg0: i32) -> (i32, i32) {
    %c0_i32 = arith.constant 0 : i32
    %c0_i32_0 = arith.constant 0 : i32
    %c0_i32_1 = arith.constant 0 : i32
    return %c0_i32, %c0_i32_0 : i32, i32
  }
  func.func @transform_3(%arg0: i32) -> (i32, i32, i32, i32) {
    %c0_i32 = arith.constant 0 : i32
    %c0_i32_0 = arith.constant 0 : i32
    %c0_i32_1 = arith.constant 0 : i32
    %c0_i32_2 = arith.constant 0 : i32
    return %arg0, %c0_i32, %c0_i32_0, %c0_i32_1 : i32, i32, i32, i32
  }
}

</mosaic_0001>

<bundles_post_ra>
// kernel: improved_cnn_forward.4
= control target key start
LH: loop header
LB: loop body
LE: loop exit
PB: predicated region body
PF: predicated region fallthrough
CT: control target
= control target key end

     0   :  { %s3695_s12 = smov 0   ;;  %s4603_s0 = inlined_call_operand.vmem [shape: bf16[2,66,80,3], index: 0, kind: input, shape index: {}]   ;;  %s4604_s1 = inlined_call_operand.vmem [shape: bf16[9,3,128], index: 1, kind: input, shape index: {}]   ;;  %s4605_s2 = inlined_call_operand.vmem [shape: f32[1,128], index: 2, kind: input, shape index: {}]   ;;  %s4606_s3 = inlined_call_operand.vmem [shape: bf16[2,34,48,128], index: 3, kind: output, shape index: {}]  }
   0x1 LB: > { %s2964_s13 = sadd.s32 4294967295, %s3666_s12   ;;  %p2968_p0 = scmp.ge.s32.totalorder %s3666_s12, 1  ;;  %s3666_s12 = sphi %s3695_s12, %s13_s12  }
   0x2   : > { %p137_p1 = scmp.lt.s32.totalorder %s3666_s12, 3 }
   0x4   : > { %p138_p2 = pnand %p2968_p0, %p137_p1 }
   0x5   : > { %p161_p3 = scmp.lt.s32.totalorder (!%p138_p2), %s2964_s13, 1  ;;  %v3706_v0 = vld [vmem:[%s4605_s2] ss:$0 sm:$0xff] (!%p138_p2)  ;;  %v3672_v1 = vmov (!%p138_p2), 0   ;;  %s3730_s24 = smov (!%p138_p2), 0  }
   0x6   : > { %141 = sbr.rel (%p138_p2) target bundleno = 452 (0x1c4), region = 32  ;;  %4617 = vst [vmem:[#allocation3_spill] sm:$0xff] (!%p138_p2), %v3706_v0 }
   0xd   : > { %s4670_s13 = smov (!%p161_p3, %s2964_s13), 1 }
   0xe   : > { %s3611_s16 = smul.u32 2640, %s4670_s13 }
   0xf   : > { %s3612_s17 = smul.u32 816, %s4670_s13 }
  0x10   : > { %s3711_s20 = scalar_lea.vmem %s4603_s0, %s3611_s16 }
  0x11   : > { %s3716_s23 = scalar_lea.vmem %s4606_s3, %s3612_s17 }
  0x12   : > { %173 = vst [vmem:[%s3716_s23] sm:$0xf] %v3672_v1  ;;  %174 = vst [vmem:[%s3716_s23 + $0x4] sm:$0xf] %v3672_v1 }
  0x13   : > { %175 = vst [vmem:[%s3716_s23 + $0x8] sm:$0xf] %v3672_v1  ;;  %176 = vst [vmem:[%s3716_s23 + $0xc] sm:$0xf] %v3672_v1 }
  0x14   : > { %177 = vst [vmem:[%s3716_s23 + $0x10] sm:$0xf] %v3672_v1  ;;  %178 = vst [vmem:[%s3716_s23 + $0x14] sm:$0xf] %v3672_v1 }
  0x15   : > { %2971 = vst [vmem:[%s3716_s23 + $0x318] sm:$0xf] %v3672_v1  ;;  %2972 = vst [vmem:[%s3716_s23 + $0x31c] sm:$0xf] %v3672_v1 }
  0x16   : > { %2973 = vst [vmem:[%s3716_s23 + $0x320] sm:$0xf] %v3672_v1  ;;  %2974 = vst [vmem:[%s3716_s23 + $0x324] sm:$0xf] %v3672_v1 }
  0x17   : > { %2975 = vst [vmem:[%s3716_s23 + $0x328] sm:$0xf] %v3672_v1  ;;  %2976 = vst [vmem:[%s3716_s23 + $0x32c] sm:$0xf] %v3672_v1 }
  0x18 LB: >> { %v2982_v2 = vld [vmem:[%s4604_s1 + $0x2] sm:$0x3]  ;;  %vm437_vm0 = vcmask 1040384   ;;  %vm438_vm1 = vcmask 1041408   ;;  %v3673_v3 = vmov 65535   ;;  %s3227_s4 = smul.u32 80, %s3670_s24  ;;  %s3670_s24 = sphi %s3730_s24, %s191_s24  }
  0x19   : >> { %v439_v4 = vsel %vm437_vm0, 4294967295, %v3673_v3  ;;  %v3071_v5 = vld [vmem:[%s4604_s1 + $0x8] sm:$0x3]  ;;  %v369_v6 = vld [vmem:[%s4604_s1] sm:$0x3]  ;;  %vm412_vm2 = vcmask 23552  }
  0x1a   : >> { %v3744_v7 = vsel %vm438_vm1, %v439_v4, 0  ;;  %v3106_v8 = vld [vmem:[%s4604_s1 + $0xa] sm:$0x3]  ;;  %v3145_v13 = vld [vmem:[%s4604_s1 + $0xc] sm:$0x3]  ;;  %s3770_s14 = scalar_lea.vmem %s3711_s20, %s3227_s4  ;;  %s2932_s19 = smul.u32 24, %s3670_s24 }
  0x1b   : >> { %v442_v9 = vand.u32 %v2982_v2, %v3744_v7  ;;  %v3752_v10 = vand.u32 %v3071_v5, %v3744_v7  ;;  %v3755_v11 = vand.u32 %v3744_v7, %v369_v6  ;;  %v3758_v12 = vand.u32 %v3106_v8, %v3744_v7  ;;  %v3015_v14 = vld [vmem:[%s4604_s1 + $0x4] sm:$0x3]  ;;  %v3162_v15 = vld [vmem:[%s4604_s1 + $0xe] sm:$0x3]  ;;  %v198_v17 = vld [vmem:[%s3770_s14 + $0x8] sm:$0xf] }
  0x1c   : >> { %v197_v16 = vld [vmem:[%s3770_s14 + $0x4] sm:$0xf]  ;;  %v3035_v18 = vld [vmem:[%s3770_s14 + $0x2c] sm:$0xf]  ;;  %v3777_v19 = vand.u32 %v3145_v13, %v3744_v7  ;;  %v3780_v20 = vand.u32 %v3015_v14, %v3744_v7  ;;  %v3783_v21 = vand.u32 %v3162_v15, %v3744_v7  ;;  %v232_v24 = vshrl.u32 %v198_v17, 16  ;;  %s4574_s21 = scalar_lea.vmem %s3716_s23, %s2932_s19  ;;  %s191_s24 = sadd.s32 1, %s3670_s24  }
  0x1d   : >> { %3319 = vmatprep.subr.bf16.mxu1 %v442_v9  ;;  %3391 = vmatprep.subr.bf16.mxu0 %v3752_v10  ;;  %v223_v22 = vshrl.u32 %v197_v16, 16  ;;  %v226_v23 = vshll.u32 %v197_v16, 16  ;;  %v235_v25 = vshll.u32 %v198_v17, 16  ;;  %v3036_v26 = vld [vmem:[%s3770_s14 + $0x30] sm:$0xf]  ;;  %v2983_v27 = vcombine.low %v197_v16, %v198_v17  ;;  %p188_p4 = scmp.ge.s32.totalorder %s191_s24, 32  }
  0x1e   : >> { %3320 = vmatpush3.bf16.msra.mxu1 %v442_v9  ;;  %3392 = vmatpush3.bf16.msra.mxu0 %v3752_v10  ;;  %v1072_v28 = vshrl.u32 %v3035_v18, 16  ;;  %v1075_v29 = vshll.u32 %v3035_v18, 16  ;;  %v1081_v30 = vshrl.u32 %v3036_v26, 16  ;;  %v3791_v32 = vrot.slane %v232_v24, 7  ;;  %v199_v35 = vld [vmem:[%s3770_s14 + $0xc] sm:$0xf] }
  0x1f   : >> { %3337 = vmatprep.subr.bf16.mxu1 %v3755_v11  ;;  %3409 = vmatprep.subr.bf16.mxu0 %v3758_v12  ;;  %v3789_v31 = vrot.slane %v223_v22, 7  ;;  %v1084_v33 = vshll.u32 %v3036_v26, 16  ;;  %v3072_v34 = vcombine.low %v3035_v18, %v3036_v26  ;;  %v200_v38 = vld [vmem:[%s3770_s14 + $0x10] sm:$0xf]  ;;  %v241_v39 = vshrl.u32 %v199_v35, 16 }
  0x20   : >> { %3321 = vmatprep.mubr.msk.bf16.mxu1 %vm412_vm2, %v2983_v27  ;;  %v3795_v36 = vrot.slane %v1072_v28, 7  ;;  %v3797_v37 = vrot.slane %v1081_v30, 7  ;;  %v244_v40 = vshll.u32 %v199_v35, 16  ;;  %v3805_v43 = vor.u32 %v235_v25, %v3791_v32  ;;  %v3037_v49 = vld [vmem:[%s3770_s14 + $0x34] sm:$0xf] }
  0x21   : >> { %v3801_v41 = vor.u32 %v226_v23, %v3789_v31  ;;  %3393 = vmatprep.mubr.msk.bf16.mxu0 %vm412_vm2, %v3072_v34  ;;  %v3038_v50 = vld [vmem:[%s3770_s14 + $0x38] sm:$0xf]  ;;  %v3819_v51 = vrot.slane %v241_v39, 7  ;;  %v250_v52 = vshrl.u32 %v200_v38, 16  ;;  %v253_v53 = vshll.u32 %v200_v38, 16 }
  0x22   : >> { %v3810_v45 = vor.u32 %v1075_v29, %v3795_v36  ;;  %v3814_v47 = vor.u32 %v1084_v33, %v3797_v37  ;;  %v2984_v54 = vcombine.low %v199_v35, %v200_v38  ;;  %v3822_v55 = vld [vmem:[%s3770_s14 + $0x14] sm:$0xf]  ;;  %v1090_v56 = vshrl.u32 %v3037_v49, 16  ;;  %v3825_v60 = vld [vmem:[%s3770_s14 + $0x18] sm:$0xf] }
  0x23   : >> { %v1093_v57 = vshll.u32 %v3037_v49, 16  ;;  %v1099_v58 = vshrl.u32 %v3038_v50, 16  ;;  %v1102_v59 = vshll.u32 %v3038_v50, 16  ;;  %v3828_v61 = vor.u32 %v244_v40, %v3819_v51  ;;  %v3842_v6 = vld [vmem:[%s3770_s14 + $0x3c] sm:$0xf] }
  0x24   : >> { %4618 = vst [vmem:[#allocation4_spill] sm:$0xff] %v3810_v45  ;;  %v3831_v63 = vrot.slane %v250_v52, 7  ;;  %3322 = vmatmul.mubr.msk.bf16.vlgmr.msra.gmra.mrb[0].mxu1 %vm412_vm2, %v2984_v54  ;;  %v3073_v1 = vcombine.low %v3037_v49, %v3038_v50  ;;  %v3834_v2 = vrot.slane %v1090_v56, 7  ;;  %v259_v4 = vshrl.u32 %v3822_v55, 16  ;;  %4621 = vst [vmem:[#allocation7_spill] sm:$0xff] %v3842_v6 }
  0x25   : >> { %v3836_v3 = vrot.slane %v1099_v58, 7  ;;  %3338 = vmatpush3.bf16.msra.mxu1 %v3755_v11  ;;  %v268_v9 = vshrl.u32 %v3825_v60, 16  ;;  %v2985_v11 = vcombine.low %v3822_v55, %v3825_v60  ;;  %v3853_v14 = vld [vmem:[%s3770_s14 + $0x40] sm:$0xf]  ;;  %v3856_v15 = vld [vmem:[%s3770_s14 + $0x1c] sm:$0xf] }
  0x26   : >> { %4619 = vst [vmem:[#allocation5_spill] sm:$0xff] %v3834_v2  ;;  %v3845_v8 = vor.u32 %v253_v53, %v3831_v63  ;;  %3394 = vmatmul.mubr.msk.bf16.vlgmr.msra.gmra.mrb[0].mxu0 %vm412_vm2, %v3073_v1  ;;  %4622 = vst [vmem:[#allocation8_spill] sm:$0xff] %v3853_v14  ;;  %3355 = vmatprep.subr.bf16.mxu1 %v3780_v20  ;;  %v3860_v16 = vor.u32 %v1093_v57, %v3834_v2  ;;  %v3867_v22 = vrot.slane %v259_v4, 7  ;;  %v3870_v23 = vld [vmem:[%s3770_s14 + $0x20] sm:$0xf] }
  0x27   : >> { %4620 = vst [vmem:[#allocation6_spill] sm:$0xff] %v3836_v3  ;;  %v3864_v18 = vor.u32 %v1102_v59, %v3836_v3  ;;  %3410 = vmatpush3.bf16.msra.mxu0 %v3758_v12  ;;  %v3873_v24 = vld [vmem:[%s3770_s14 + $0x44] sm:$0xf]  ;;  %v3875_v25 = vrot.slane %v268_v9, 7  ;;  %3325 = vmatprep.mubr.msk.bf16.mxu1 %vm412_vm2, %v2985_v11  ;;  %v1108_v26 = vshrl.u32 %v3842_v6, 16  ;;  %v1117_v28 = vshrl.u32 %v3853_v14, 16 }
  0x28   : >> { %4624 = vst [vmem:[#allocation10_spill] sm:$0xff] %v3873_v24  ;;  %v3882_v29 = vld [vmem:[%s3770_s14 + $0x48] sm:$0xf]  ;;  %3427 = vmatprep.subr.bf16.mxu0 %v3777_v19  ;;  %v3074_v30 = vcombine.low %v3842_v6, %v3853_v14  ;;  %v277_v33 = vshrl.u32 %v3856_v15, 16  ;;  %v3891_v35 = vld [vmem:[%s3770_s14 + $0x2c] sm:$0xf]  ;;  %v2986_v53 = vcombine.low %v3856_v15, %v3870_v23 }
  0x29   : >> { %4623 = vst [vmem:[#allocation9_spill] sm:$0xff] %v3864_v18  ;;  %4625 = vst [vmem:[#allocation11_spill] sm:$0xff] %v3882_v29  ;;  %vm707_vm3 = vsmask.f32 3328  ;;  %vm708_vm4 = vsmask.f32 7440  ;;  %v3075_v4 = vcombine.low %v3873_v24, %v3882_v29 }
  0x2a   : >> { %v3893_v38 = vrot.slane %v1108_v26, 7  ;;  %v3895_v39 = vrot.slane %v1117_v28, 7  ;;  %v286_v40 = vshrl.u32 %v3870_v23, 16  ;;  %v3900_v50 = vld [vmem:[%s3770_s14 + $0x30] sm:$0xf]  ;;  %3397 = vmatprep.mubr.msk.bf16.mxu0 %vm412_vm2, %v3074_v30  ;;  %v3903_v52 = vrot.slane %v277_v33, 7  ;;  %vm3953_vm7 = vmor %vm707_vm3, %vm708_vm4 }
  0x2b   : >> { %v1126_v54 = vshrl.u32 %v3873_v24, 16  ;;  %v3088_v57 = vld [vmem:[%s3770_s14 + $0x2c] sm:$0xf]  ;;  %v1135_v59 = vshrl.u32 %v3882_v29, 16  ;;  %v3089_v9 = vld [vmem:[%s3770_s14 + $0x30] sm:$0xf]  ;;  %v2987_v56 = vcombine.low %v3891_v35, %v3900_v50 }
  0x2c   : >> { %4626 = vst [vmem:[#allocation12_spill] sm:$0xff] %v3893_v38  ;;  %4627 = vst [vmem:[#allocation13_spill] sm:$0xff] %v3895_v39  ;;  %v3910_v58 = vrot.slane %v286_v40, 7  ;;  %3326 = vmatmul.mubr.msk.bf16.gmra.mrb[4].mxu1 %vm412_vm2, %v2986_v53  ;;  %v299_v26 = vshrl.u32 %v3891_v35, 16  ;;  %v308_v30 = vshrl.u32 %v3900_v50, 16  ;;  %v1585_v53 = vshrl.u32 %v3088_v57, 16 }
  0x2d   : >> { %v3918_v11 = vrot.slane %v1126_v54, 7  ;;  %v3090_v33 = vld [vmem:[%s3770_s14 + $0x34] sm:$0xf]  ;;  %v3924_v40 = vrot.slane %v1135_v59, 7  ;;  %v1588_v27 = vshll.u32 %v3088_v57, 16  ;;  %v1594_v17 = vshll.u32 %v3089_v9, 16  ;;  %3329 = vmatprep.mubr.msk.bf16.mxu1 %vm412_vm2, %v2987_v56 }
  0x2e   : >> { %3398 = vmatmul.mubr.msk.bf16.gmra.mrb[4].mxu0 %vm412_vm2, %v3075_v4  ;;  %v3930_v54 = vrot.slane %v299_v26, 7  ;;  %v3932_v12 = vrot.slane %v308_v30, 7  ;;  %v3935_v48 = vld [vmem:[%s3770_s14 + $0x34] sm:$0xf]  ;;  %v1587_v59 = vrot.slane %v1585_v53, 4  ;;  %v1598_v4 = vshrl.u32 %v3089_v9, 16 }
  0x2f   : >> { %4628 = vst [vmem:[#allocation14_spill] sm:$0xff] %v3918_v11  ;;  %4629 = vst [vmem:[#allocation15_spill] sm:$0xff] %v3924_v40  ;;  %v1604_v46 = vshll.u32 %v3090_v33, 16  ;;  %v1608_v1 = vshrl.u32 %v3090_v33, 16  ;;  %v3939_v28 = vld [vmem:[%s3770_s14 + $0x38] sm:$0xf] }
  0x30   : >> { %v1590_v49 = vrot.slane %v1588_v27, 5  ;;  %v1596_v34 = vrot.slane %v1594_v17, 5  ;;  %v317_v26 = vshrl.u32 %v3935_v48, 16  ;;  %v3091_v13 = vld [vmem:[%s3770_s14 + $0x38] sm:$0xf]  ;;  %v1600_v57 = vrot.slane %v1598_v4, 4 }
  0x31   : >> { %v1606_v5 = vrot.slane %v1604_v46, 5  ;;  %v1610_v62 = vrot.slane %v1608_v1, 4  ;;  %v326_v44 = vshrl.u32 %v3939_v28, 16  ;;  %v3092_v56 = vld [vmem:[%s3770_s14 + $0x3c] sm:$0xf]  ;;  %v2988_v17 = vcombine.low %v3935_v48, %v3939_v28 }
  0x32   : >> { %v1591_v53 = vor.u32 %v1590_v49, %v1587_v59  ;;  %v3946_v9 = vrot.slane %v317_v26, 7  ;;  %vm214_vm5 = vsmask.f32 256  ;;  %vm215_vm6 = vsmask.f32 4368 }
  0x33   : >> { %v1601_v46 = vor.u32 %v1600_v57, %v1596_v34  ;;  %v1611_v1 = vor.u32 %v1610_v62, %v1606_v5  ;;  %v3957_v49 = vrot.slane %v326_v44, 7  ;;  %v1614_v59 = vshll.u32 %v3091_v13, 16  ;;  %v3960_v4 = vld [vmem:[%s3770_s14 + $0x3c] sm:$0xf]  ;;  %v3964_v42 = vld [vmem:[%s3770_s14 + $0x40] sm:$0xf]  ;;  %vm4007_vm8 = vmor %vm214_vm5, %vm215_vm6 }
  0x34   : >> { %v1592_v26 = vrot.slane %v1591_v53, 4  ;;  %3330 = vmatmul.mubr.msk.bf16.gmra.mrb[8].mxu1 %vm412_vm2, %v2988_v17  ;;  %v1618_v33 = vshrl.u32 %v3091_v13, 16  ;;  %v1624_v30 = vshll.u32 %v3092_v56, 16  ;;  %v335_v0 = vshrl.u32 %v3960_v4, 16  ;;  %v3093_v44 = vld [vmem:[%s3770_s14 + $0x40] sm:$0xf] }
  0x35   : >> { %v1602_v29 = vrot.slane %v1601_v46, 4  ;;  %v1612_v40 = vrot.slane %v1611_v1, 4  ;;  %v1616_v24 = vrot.slane %v1614_v59, 5  ;;  %v3094_v13 = vld [vmem:[%s3770_s14 + $0x44] sm:$0xf]  ;;  %v344_v1 = vshrl.u32 %v3964_v42, 16 }
  0x36   : >> { %v1597_v57 = vsel %vm3953_vm7, %v1592_v26, %v1596_v34  ;;  %v1620_v11 = vrot.slane %v1618_v33, 4  ;;  %v1626_v53 = vrot.slane %v1624_v30, 5  ;;  %v3971_v14 = vrot.slane %v335_v0, 7  ;;  %v3095_v6 = vld [vmem:[%s3770_s14 + $0x48] sm:$0xf] }
  0x37   : >> { %v1607_v17 = vsel %vm3953_vm7, %v1602_v29, %v1606_v5  ;;  %v1617_v46 = vsel %vm3953_vm7, %v1612_v40, %v1616_v24  ;;  %v2989_v34 = vcombine.low %v3960_v4, %v3964_v42  ;;  %v1628_v30 = vshrl.u32 %v3092_v56, 16  ;;  %v3985_v29 = vld [vmem:[%s3770_s14 + $0x44] sm:$0xf] }
  0x38   : >> { %v3107_v62 = vcombine.low %v1597_v57, %v1607_v17  ;;  %v1621_v39 = vor.u32 %v1620_v11, %v1616_v24  ;;  %v3982_v0 = vrot.slane %v344_v1, 7  ;;  %v1634_v33 = vshll.u32 %v3093_v44, 16  ;;  %v3990_v57 = vld [vmem:[%s3770_s14 + $0x48] sm:$0xf] }
  0x39   : >> { %v1638_v26 = vshrl.u32 %v3093_v44, 16  ;;  %v1644_v5 = vshll.u32 %v3094_v13, 16  ;;  %3333 = vmatprep.mubr.msk.bf16.mxu1 %vm412_vm2, %v2989_v34  ;;  %v1630_v24 = vrot.slane %v1628_v30, 4  ;;  %v1648_v11 = vshrl.u32 %v3094_v13, 16  ;;  %v3096_v30 = vld [vmem:[%s3770_s14 + $0x4c] sm:$0x1] }
  0x3a   : >> { %3411 = vmatprep.mubr.msk.bf16.mxu0 %vm412_vm2, %v3107_v62  ;;  %v1622_v40 = vrot.slane %v1621_v39, 4  ;;  %v353_v56 = vshrl.u32 %v3985_v29, 16  ;;  %v1636_v17 = vrot.slane %v1634_v33, 5  ;;  %v362_v34 = vshrl.u32 %v3990_v57, 16  ;;  %v196_v13 = vld [vmem:[%s3770_s14] sm:$0x8] }
  0x3b   : >> { %v1640_v1 = vrot.slane %v1638_v26, 4  ;;  %v1646_v59 = vrot.slane %v1644_v5, 5  ;;  %v1631_v38 = vor.u32 %v1630_v24, %v1626_v53  ;;  %v2990_v26 = vcombine.low %v3985_v29, %v3990_v57  ;;  %v3097_v44 = vld [vmem:[%s3770_s14 + $0x54] sm:$0xf] }
  0x3c   : >> { %v1627_v62 = vsel %vm3953_vm7, %v1622_v40, %v1626_v53  ;;  %v3997_v39 = vrot.slane %v353_v56, 7  ;;  %v4011_v40 = vrot.slane %v362_v34, 7  ;;  %v1650_v24 = vrot.slane %v1648_v11, 4 }
  0x3d   : >> { %v3108_v3 = vcombine.low %v1617_v46, %v1627_v62  ;;  %v1641_v45 = vor.u32 %v1640_v1, %v1636_v17  ;;  %v1632_v53 = vrot.slane %v1631_v38, 4  ;;  %v1654_v56 = vshll.u32 %v3095_v6, 16  ;;  %3334 = vmatmul.mubr.msk.bf16.gmra.mrb[12].mxu1 %vm412_vm2, %v2990_v26 }
  0x3e   : >> { %v1658_v1 = vshrl.u32 %v3095_v6, 16  ;;  %v1664_v62 = vshll.u32 %v3096_v30, 16  ;;  %v218_v33 = vshrl.u32 %v196_v13, 16  ;;  %v1651_v2 = vor.u32 %v1650_v24, %v1646_v59 }
  0x3f   : >> { %3412 = vmatmul.mubr.msk.bf16.vlgmr.msra.gmra.mrb[0].mxu0 %vm412_vm2, %v3108_v3  ;;  %v1642_v46 = vrot.slane %v1641_v45, 4  ;;  %v1637_v38 = vsel %vm3953_vm7, %v1632_v53, %v1636_v17  ;;  %v1656_v34 = vrot.slane %v1654_v56, 5  ;;  %v4634_v11 = vrot.slane %v3789_v31, 4  ;;  %v3098_v3 = vld [vmem:[%s3770_s14 + $0x58] sm:$0xf] }
  0x40   : >> { %3428 = vmatpush3.bf16.msra.mxu0 %v3777_v19  ;;  %v1660_v30 = vrot.slane %v1658_v1, 4  ;;  %v1666_v13 = vrot.slane %v1664_v62, 5  ;;  %v2980_v26 = vrot.slane %v218_v33, 11  ;;  %v1652_v18 = vrot.slane %v1651_v2, 4  ;;  %v3099_v17 = vld [vmem:[%s3770_s14 + $0x5c] sm:$0xf] }
  0x41   : >> { %v238_v45 = vsel %vm4007_vm8, %v4634_v11, %v3805_v43  ;;  %v1647_v6 = vsel %vm3953_vm7, %v1642_v46, %v1646_v59  ;;  %3445 = vmatprep.subr.bf16.mxu0 %v3783_v21  ;;  %v1669_v53 = vshrl.u32 %v3097_v44, 16  ;;  %v1672_v24 = vshll.u32 %v3097_v44, 16 }
  0x42   : >> { %v3109_v19 = vcombine.low %v1637_v38, %v1647_v6  ;;  %v1661_v56 = vor.u32 %v1660_v30, %v1656_v34  ;;  %v229_v31 = vsel %vm4007_vm8, %v2980_v26, %v3801_v41  ;;  %v1678_v43 = vshll.u32 %v3098_v3, 16  ;;  %v3100_v6 = vld [vmem:[%s3770_s14 + $0x60] sm:$0xf] }
  0x43   : >> { %v1682_v11 = vshrl.u32 %v3098_v3, 16  ;;  %v1657_v59 = vsel %vm3953_vm7, %v1652_v18, %v1656_v34  ;;  %v2999_v33 = vcombine.low %v229_v31, %v238_v45  ;;  %v1671_v46 = vrot.slane %v1669_v53, 4  ;;  %v3101_v45 = vld [vmem:[%s3770_s14 + $0x64] sm:$0xf] }
  0x44   : >> { %3415 = vmatprep.mubr.msk.bf16.mxu0 %vm412_vm2, %v3109_v19  ;;  %v1674_v2 = vrot.slane %v1672_v24, 5  ;;  %v1662_v1 = vrot.slane %v1661_v56, 4  ;;  %v1680_v62 = vrot.slane %v1678_v43, 5  ;;  %v1688_v44 = vshll.u32 %v3099_v17, 16 }
  0x45   : >> { %v1684_v38 = vrot.slane %v1682_v11, 4  ;;  %3339 = vmatprep.mubr.msk.bf16.mxu1 %vm412_vm2, %v2999_v33  ;;  %v1692_v41 = vshrl.u32 %v3099_v17, 16  ;;  %v4635_v3 = vrot.slane %v3791_v32, 4  ;;  %v4636_v18 = vrot.slane %v3819_v51, 4 }
  0x46   : >> { %v1675_v30 = vor.u32 %v1674_v2, %v1671_v46  ;;  %v1667_v19 = vsel %vm3953_vm7, %v1662_v1, %v1666_v13  ;;  %v1690_v24 = vrot.slane %v1688_v44, 5  ;;  %v1698_v43 = vshll.u32 %v3100_v6, 16  ;;  %v3102_v2 = vld [vmem:[%s3770_s14 + $0x68] sm:$0xf] }
  0x47   : >> { %v247_v26 = vsel %vm4007_vm8, %v4635_v3, %v3828_v61  ;;  %v256_v34 = vsel %vm4007_vm8, %v4636_v18, %v3845_v8  ;;  %v1685_v53 = vor.u32 %v1684_v38, %v1680_v62  ;;  %v3110_v17 = vcombine.low %v1657_v59, %v1667_v19 }
  0x48   : >> { %v3000_v56 = vcombine.low %v247_v26, %v256_v34  ;;  %v1676_v31 = vrot.slane %v1675_v30, 4  ;;  %v1694_v32 = vrot.slane %v1692_v41, 4  ;;  %v1702_v51 = vshrl.u32 %v3100_v6, 16  ;;  %v3103_v41 = vld [vmem:[%s3770_s14 + $0x6c] sm:$0xf] }
  0x49   : >> { %v1686_v11 = vrot.slane %v1685_v53, 4  ;;  %v1708_v61 = vshll.u32 %v3101_v45, 16  ;;  %v1712_v33 = vshrl.u32 %v3101_v45, 16  ;;  %3416 = vmatmul.mubr.msk.bf16.gmra.mrb[4].mxu0 %vm412_vm2, %v3110_v17  ;;  %v1700_v46 = vrot.slane %v1698_v43, 5 }
  0x4a   : >> { %3340 = vmatmul.mubr.msk.bf16.vlgmr.msra.gmra.mrb[0].mxu1 %vm412_vm2, %v3000_v56  ;;  %v1681_v8 = vsel %vm3953_vm7, %v1676_v31, %v1680_v62  ;;  %v1695_v13 = vor.u32 %v1694_v32, %v1690_v24  ;;  %v257_v59 = vrot.slane %v3831_v63, 4  ;;  %v1704_v38 = vrot.slane %v1702_v51, 4 }
  0x4b   : >> { %3356 = vmatpush3.bf16.msra.mxu1 %v3780_v20  ;;  %v1691_v1 = vsel %vm3953_vm7, %v1686_v11, %v1690_v24  ;;  %v1710_v44 = vrot.slane %v1708_v61, 5  ;;  %v4637_v6 = vshll.u32 %v3822_v55, 16  ;;  %v266_v62 = vrot.slane %v3867_v22, 4  ;;  %v3104_v61 = vld [vmem:[%s3770_s14 + $0x70] sm:$0xf] }
  0x4c   : >> { %v3111_v3 = vcombine.low %v1681_v8, %v1691_v1  ;;  %v1696_v26 = vrot.slane %v1695_v13, 4  ;;  %v4638_v20 = vshll.u32 %v3825_v60, 16  ;;  %v1705_v63 = vor.u32 %v1704_v38, %v1700_v46 }
  0x4d   : >> { %v264_v30 = vor.u32 %v4637_v6, %v3867_v22  ;;  %v1714_v45 = vrot.slane %v1712_v33, 4  ;;  %v1718_v19 = vshll.u32 %v3102_v2, 16  ;;  %v1722_v22 = vshrl.u32 %v3102_v2, 16  ;;  %v3105_v2 = vld [vmem:[%s3770_s14 + $0x74] sm:$0x1] }
  0x4e   : >> { %v273_v18 = vor.u32 %v4638_v20, %v3875_v25  ;;  %3419 = vmatprep.mubr.msk.bf16.mxu0 %vm412_vm2, %v3111_v3  ;;  %v1701_v55 = vsel %vm3953_vm7, %v1696_v26, %v1700_v46  ;;  %v1728_v24 = vshll.u32 %v3103_v41, 16  ;;  %v1706_v60 = vrot.slane %v1705_v63, 4  ;;  %v3125_v20 = vld [vmem:[%s3770_s14 + $0x50] sm:$0x8] }
  0x4f   : >> { %v265_v34 = vsel %vm4007_vm8, %v257_v59, %v264_v30  ;;  %v1715_v17 = vor.u32 %v1714_v45, %v1710_v44  ;;  %v1720_v31 = vrot.slane %v1718_v19, 5  ;;  %v1724_v32 = vrot.slane %v1722_v22, 4  ;;  %v4097_v19 = vld [vmem:[%s3770_s14 + $0x54] sm:$0xf] }
  0x50   : >> { %v274_v53 = vsel %vm4007_vm8, %v266_v62, %v273_v18  ;;  %v1730_v43 = vrot.slane %v1728_v24, 5  ;;  %v1732_v11 = vshrl.u32 %v3103_v41, 16  ;;  %v275_v51 = vrot.slane %v3875_v25, 4 }
  0x51   : >> { %v3001_v56 = vcombine.low %v265_v34, %v274_v53  ;;  %v1711_v33 = vsel %vm3953_vm7, %v1706_v60, %v1710_v44  ;;  %v1716_v8 = vrot.slane %v1715_v17, 4  ;;  %v4639_v13 = vshll.u32 %v3856_v15, 16  ;;  %v205_v44 = vld [vmem:[%s3770_s14 + $0x28] sm:$0x8] }
  0x52   : >> { %v284_v59 = vrot.slane %v3903_v52, 4  ;;  %v3112_v1 = vcombine.low %v1701_v55, %v1711_v33  ;;  %v1725_v38 = vor.u32 %v1724_v32, %v1720_v31  ;;  %v4640_v25 = vshll.u32 %v3870_v23, 16 }
  0x53   : >> { %3343 = vmatprep.mubr.msk.bf16.mxu1 %vm412_vm2, %v3001_v56  ;;  %v282_v46 = vor.u32 %v4639_v13, %v3903_v52  ;;  %v1734_v30 = vrot.slane %v1732_v11, 4  ;;  %v1721_v41 = vsel %vm3953_vm7, %v1716_v8, %v1720_v31  ;;  %v1738_v3 = vshll.u32 %v3104_v61, 16  ;;  %v4105_v56 = vld [vmem:[%s3770_s14 + $0x58] sm:$0xf] }
  0x54   : >> { %v291_v6 = vor.u32 %v4640_v25, %v3910_v58  ;;  %v1742_v26 = vshrl.u32 %v3104_v61, 16  ;;  %3420 = vmatmul.mubr.msk.bf16.gmra.mrb[8].mxu0 %vm412_vm2, %v3112_v1  ;;  %v1726_v52 = vrot.slane %v1725_v38, 4  ;;  %v1748_v58 = vshll.u32 %v3105_v2, 16 }
  0x55   : >> { %v283_v15 = vsel %vm4007_vm8, %v275_v51, %v282_v46  ;;  %v1735_v23 = vor.u32 %v1734_v30, %v1730_v43  ;;  %v1740_v63 = vrot.slane %v1738_v3, 5  ;;  %v294_v45 = vshrl.u32 %v205_v44, 16  ;;  %v4127_v44 = vld [vmem:[%s3770_s14 + $0x5c] sm:$0xf] }
  0x56   : >> { %v292_v62 = vsel %vm4007_vm8, %v284_v59, %v291_v6  ;;  %v1744_v34 = vrot.slane %v1742_v26, 4  ;;  %v1731_v55 = vsel %vm3953_vm7, %v1726_v52, %v1730_v43  ;;  %v1750_v22 = vrot.slane %v1748_v58, 5 }
  0x57   : >> { %v3002_v18 = vcombine.low %v283_v15, %v292_v62  ;;  %v1736_v53 = vrot.slane %v1735_v23, 4  ;;  %v4641_v24 = vshll.u32 %v3891_v35, 16  ;;  %v3113_v17 = vcombine.low %v1721_v41, %v1731_v55  ;;  %v4133_v62 = vld [vmem:[%s3770_s14 + $0x60] sm:$0xf] }
  0x58   : >> { %v1745_v31 = vor.u32 %v1744_v34, %v1740_v63  ;;  %v2981_v32 = vrot.slane %v294_v45, 11  ;;  %v306_v11 = vrot.slane %v3930_v54, 4  ;;  %v4642_v43 = vshll.u32 %v3900_v50, 16 }
  0x59   : >> { %v304_v60 = vor.u32 %v4641_v24, %v3930_v54  ;;  %3344 = vmatmul.mubr.msk.bf16.gmra.mrb[4].mxu1 %vm412_vm2, %v3002_v18  ;;  %v1741_v51 = vsel %vm3953_vm7, %v1736_v53, %v1740_v63  ;;  %v1941_v33 = vshrl.u32 %v3125_v20, 16  ;;  %v1946_v35 = vshrl.u32 %v4097_v19, 16  ;;  %3423 = vmatprep.mubr.msk.bf16.mxu0 %vm412_vm2, %v3113_v17 }
  0x5a   : >> { %v313_v61 = vor.u32 %v4642_v43, %v3932_v12  ;;  %v1746_v8 = vrot.slane %v1745_v31, 4  ;;  %v1949_v54 = vshll.u32 %v4097_v19, 16  ;;  %v1955_v46 = vshrl.u32 %v4105_v56, 16 }
  0x5b   : >> { %v305_v13 = vsel %vm4007_vm8, %v2981_v32, %v304_v60  ;;  %v3143_v50 = vrot.slane %v1941_v33, 11  ;;  %v1948_v2 = vrot.slane %v1946_v35, 7  ;;  %v1958_v1 = vshll.u32 %v4105_v56, 16  ;;  %v4165_v35 = vld [vmem:[%s3770_s14 + $0x68] sm:$0xf] }
  0x5c   : >> { %v314_v59 = vsel %vm4007_vm8, %v306_v11, %v313_v61  ;;  %v1751_v38 = vsel %vm3953_vm7, %v1746_v8, %v1750_v22  ;;  %v1957_v6 = vrot.slane %v1955_v46, 7  ;;  %v315_v30 = vrot.slane %v3932_v12, 4  ;;  %v4154_v22 = vld [vmem:[%s3770_s14 + $0x64] sm:$0xf] }
  0x5d   : >> { %v3003_v25 = vcombine.low %v305_v13, %v314_v59  ;;  %v3114_v41 = vcombine.low %v1741_v51, %v1751_v38  ;;  %v1951_v15 = vor.u32 %v1949_v54, %v1948_v2  ;;  %v1953_v3 = vrot.slane %v1948_v2, 4  ;;  %v4179_v38 = vld [vmem:[%s3770_s14 + $0x6c] sm:$0xf] }
  0x5e   : >> { %v4643_v26 = vshll.u32 %v3935_v48, 16  ;;  %v1960_v23 = vor.u32 %v1958_v1, %v1957_v6  ;;  %v1962_v58 = vrot.slane %v1957_v6, 4  ;;  %v324_v20 = vrot.slane %v3946_v9, 4 }
  0x5f   : >> { %3347 = vmatprep.mubr.msk.bf16.mxu1 %vm412_vm2, %v3003_v25  ;;  %v4644_v12 = vshll.u32 %v3939_v28, 16  ;;  %3424 = vmatmul.mubr.msk.bf16.gmra.mrb[12].mxu0 %vm412_vm2, %v3114_v41  ;;  %v1952_v63 = vsel %vm4007_vm8, %v3143_v50, %v1951_v15  ;;  %v1964_v34 = vshrl.u32 %v4127_v44, 16  ;;  %v1967_v45 = vshll.u32 %v4127_v44, 16 }
  0x60   : >> { %v322_v52 = vor.u32 %v4643_v26, %v3946_v9  ;;  %v1961_v9 = vsel %vm4007_vm8, %v1953_v3, %v1960_v23  ;;  %v1973_v55 = vshrl.u32 %v4133_v62, 16  ;;  %v1976_v53 = vshll.u32 %v4133_v62, 16 }
  0x61   : >> { %v331_v18 = vor.u32 %v4644_v12, %v3957_v49  ;;  %v3146_v24 = vcombine.low %v1952_v63, %v1961_v9  ;;  %v1966_v17 = vrot.slane %v1964_v34, 7  ;;  %v333_v31 = vrot.slane %v3957_v49, 4  ;;  %v689_v63 = vld [vmem:[%s3770_s14 + $0x4] sm:$0xf] }
  0x62   : >> { %v323_v48 = vsel %vm4007_vm8, %v315_v30, %v322_v52  ;;  %v1975_v32 = vrot.slane %v1973_v55, 7  ;;  %v4645_v11 = vshll.u32 %v3960_v4, 16  ;;  %v342_v43 = vrot.slane %v3971_v14, 4  ;;  %v690_v55 = vld [vmem:[%s3770_s14 + $0x8] sm:$0xf] }
  0x63   : >> { %v332_v28 = vsel %vm4007_vm8, %v324_v20, %v331_v18  ;;  %v4646_v61 = vshll.u32 %v3964_v42, 16  ;;  %3429 = vmatprep.mubr.msk.bf16.mxu0 %vm412_vm2, %v3146_v24  ;;  %v1969_v8 = vor.u32 %v1967_v45, %v1966_v17  ;;  %v1971_v49 = vrot.slane %v1966_v17, 4 }
  0x64   : >> { %v3004_v60 = vcombine.low %v323_v48, %v332_v28  ;;  %v340_v51 = vor.u32 %v4645_v11, %v3971_v14  ;;  %v1982_v13 = vshrl.u32 %v4154_v22, 16  ;;  %v1985_v4 = vshll.u32 %v4154_v22, 16 }
  0x65   : >> { %v349_v33 = vor.u32 %v4646_v61, %v3982_v0  ;;  %v1978_v54 = vor.u32 %v1976_v53, %v1975_v32  ;;  %v1980_v46 = vrot.slane %v1975_v32, 4  ;;  %v1970_v59 = vsel %vm4007_vm8, %v1962_v58, %v1969_v8  ;;  %v4190_v58 = vld [vmem:[%s3770_s14 + $0x70] sm:$0xf] }
  0x66   : >> { %3348 = vmatmul.mubr.msk.bf16.gmra.mrb[8].mxu1 %vm412_vm2, %v3004_v60  ;;  %v341_v14 = vsel %vm4007_vm8, %v333_v31, %v340_v51  ;;  %v1984_v2 = vrot.slane %v1982_v13, 7  ;;  %v1991_v1 = vshrl.u32 %v4165_v35, 16  ;;  %v1994_v6 = vshll.u32 %v4165_v35, 16  ;;  %v691_v60 = vld [vmem:[%s3770_s14 + $0xc] sm:$0xf] }
  0x67   : >> { %v350_v42 = vsel %vm4007_vm8, %v342_v43, %v349_v33  ;;  %v1979_v25 = vsel %vm4007_vm8, %v1971_v49, %v1978_v54  ;;  %v351_v30 = vrot.slane %v3982_v0, 4  ;;  %v4647_v41 = vshll.u32 %v3985_v29, 16  ;;  %v3134_v43 = vld [vmem:[%s3770_s14 + $0x78] sm:$0x8]  ;;  %v4216_v13 = vld [vmem:[%s3770_s14 + $0x7c] sm:$0xf] }
  0x68   : >> { %v3005_v50 = vcombine.low %v341_v14, %v350_v42  ;;  %v3147_v3 = vcombine.low %v1970_v59, %v1979_v25  ;;  %v1987_v26 = vor.u32 %v1985_v4, %v1984_v2  ;;  %v1989_v52 = vrot.slane %v1984_v2, 4  ;;  %v4222_v2 = vld [vmem:[%s3770_s14 + $0x80] sm:$0xf] }
  0x69   : >> { %v358_v15 = vor.u32 %v4647_v41, %v3997_v39  ;;  %v1993_v23 = vrot.slane %v1991_v1, 7  ;;  %v360_v12 = vrot.slane %v3997_v39, 4  ;;  %v4648_v0 = vshll.u32 %v3990_v57, 16 }
  0x6a   : >> { %3351 = vmatprep.mubr.msk.bf16.mxu1 %vm412_vm2, %v3005_v50  ;;  %v2000_v29 = vshrl.u32 %v4179_v38, 16  ;;  %3430 = vmatmul.mubr.msk.bf16.vlgmr.msra.gmra.mrb[0].mxu0 %vm412_vm2, %v3147_v3  ;;  %v1988_v48 = vsel %vm4007_vm8, %v1980_v46, %v1987_v26  ;;  %v2003_v9 = vshll.u32 %v4179_v38, 16  ;;  %v2012_v28 = vshll.u32 %v4190_v58, 16 }
  0x6b   : >> { %v359_v20 = vsel %vm4007_vm8, %v351_v30, %v358_v15  ;;  %v367_v18 = vor.u32 %v4648_v0, %v4011_v40  ;;  %v1996_v34 = vor.u32 %v1994_v6, %v1993_v23  ;;  %v1998_v45 = vrot.slane %v1993_v23, 4  ;;  %3446 = vmatpush3.bf16.msra.mxu0 %v3783_v21  ;;  %v692_v15 = vld [vmem:[%s3770_s14 + $0x10] sm:$0xf] }
  0x6c   : >> { %v2002_v39 = vrot.slane %v2000_v29, 7  ;;  %v2009_v40 = vshrl.u32 %v4190_v58, 16  ;;  %v711_v17 = vshrl.u32 %v689_v63, 16  ;;  %v714_v31 = vshll.u32 %v689_v63, 16  ;;  %v693_v29 = vld [vmem:[%s3770_s14 + $0x14] sm:$0xf] }
  0x6d   : >> { %v368_v57 = vsel %vm4007_vm8, %v360_v12, %v367_v18  ;;  %v1997_v53 = vsel %vm4007_vm8, %v1989_v52, %v1996_v34  ;;  %v720_v8 = vshll.u32 %v690_v55, 16  ;;  %v724_v49 = vshrl.u32 %v690_v55, 16  ;;  %v4239_v55 = vld [vmem:[%s3770_s14 + $0x84] sm:$0xf] }
  0x6e   : >> { %v3006_v24 = vcombine.low %v359_v20, %v368_v57  ;;  %v3148_v32 = vcombine.low %v1988_v48, %v1997_v53  ;;  %v2005_v11 = vor.u32 %v2003_v9, %v2002_v39  ;;  %v2007_v21 = vrot.slane %v2002_v39, 4  ;;  %v3054_v9 = vld [vmem:[%s4604_s1 + $0x6] sm:$0x3] }
  0x6f   : >> { %v2011_v51 = vrot.slane %v2009_v40, 7  ;;  %v713_v61 = vrot.slane %v711_v17, 4  ;;  %v716_v33 = vrot.slane %v714_v31, 5  ;;  %v730_v14 = vshll.u32 %v691_v60, 16  ;;  %v4244_v31 = vld [vmem:[%s3770_s14 + $0x88] sm:$0xf] }
  0x70   : >> { %3352 = vmatmul.mubr.msk.bf16.gmra.mrb[12].mxu1 %vm412_vm2, %v3006_v24  ;;  %3433 = vmatprep.mubr.msk.bf16.mxu0 %vm412_vm2, %v3148_v32  ;;  %v2006_v4 = vsel %vm4007_vm8, %v1998_v45, %v2005_v11  ;;  %v734_v42 = vshrl.u32 %v691_v60, 16  ;;  %v722_v59 = vrot.slane %v720_v8, 5  ;;  %v726_v50 = vrot.slane %v724_v49, 4  ;;  %v694_v49 = vld [vmem:[%s3770_s14 + $0x18] sm:$0xf] }
  0x71   : >> { %v2014_v54 = vor.u32 %v2012_v28, %v2011_v51  ;;  %v717_v46 = vor.u32 %v716_v33, %v713_v61  ;;  %v2017_v1 = vshrl.u32 %v3134_v43, 16  ;;  %v732_v6 = vrot.slane %v730_v14, 5 }
  0x72   : >> { %v736_v30 = vrot.slane %v734_v42, 4  ;;  %v2022_v41 = vshrl.u32 %v4216_v13, 16  ;;  %v727_v52 = vor.u32 %v726_v50, %v722_v59  ;;  %v2025_v0 = vshll.u32 %v4216_v13, 16 }
  0x73   : >> { %v2015_v25 = vsel %vm4007_vm8, %v2007_v21, %v2014_v54  ;;  %v718_v26 = vrot.slane %v717_v46, 4  ;;  %v3144_v23 = vrot.slane %v2017_v1, 11  ;;  %v2031_v18 = vshrl.u32 %v4222_v2, 16  ;;  %v695_v46 = vld [vmem:[%s3770_s14 + $0x1c] sm:$0xf] }
  0x74   : >> { %v3149_v3 = vcombine.low %v2006_v4, %v2015_v25  ;;  %v737_v20 = vor.u32 %v736_v30, %v732_v6  ;;  %v2024_v12 = vrot.slane %v2022_v41, 7  ;;  %v728_v48 = vrot.slane %v727_v52, 4 }
  0x75   : >> { %v723_v63 = vsel %vm3953_vm7, %v718_v26, %v722_v59  ;;  %v2034_v34 = vshll.u32 %v4222_v2, 16  ;;  %v740_v45 = vshll.u32 %v692_v15, 16  ;;  %v2033_v28 = vrot.slane %v2031_v18, 7 }
  0x76   : >> { %3434 = vmatmul.mubr.msk.bf16.gmra.mrb[4].mxu0 %vm412_vm2, %v3149_v3  ;;  %v738_v57 = vrot.slane %v737_v20, 4  ;;  %v2027_v39 = vor.u32 %v2025_v0, %v2024_v12  ;;  %v2029_v40 = vrot.slane %v2024_v12, 4  ;;  %v733_v53 = vsel %vm3953_vm7, %v728_v48, %v732_v6 }
  0x77   : >> { %v742_v24 = vrot.slane %v740_v45, 5  ;;  %v744_v60 = vshrl.u32 %v692_v15, 16  ;;  %v750_v17 = vshll.u32 %v693_v29, 16  ;;  %v3016_v32 = vcombine.low %v723_v63, %v733_v53  ;;  %v4262_v63 = vld [vmem:[%s3770_s14 + $0x8c] sm:$0xf] }
  0x78   : >> { %v2028_v11 = vsel %vm4007_vm8, %v3144_v23, %v2027_v39  ;;  %v2036_v21 = vor.u32 %v2034_v34, %v2033_v28  ;;  %v1269_v51 = vand.u32 %v3054_v9, %v3744_v7  ;;  %v2038_v8 = vrot.slane %v2033_v28, 4  ;;  %v4267_v9 = vld [vmem:[%s3770_s14 + $0x90] sm:$0xf]  ;;  %v696_v53 = vld [vmem:[%s3770_s14 + $0x20] sm:$0xf] }
  0x79   : >> { %v743_v43 = vsel %vm3953_vm7, %v738_v57, %v742_v24  ;;  %v746_v61 = vrot.slane %v744_v60, 4  ;;  %v752_v33 = vrot.slane %v750_v17, 5  ;;  %3357 = vmatprep.mubr.msk.bf16.mxu1 %vm412_vm2, %v3016_v32  ;;  %v2040_v54 = vshrl.u32 %v4239_v55, 16 }
  0x7a   : >> { %v2037_v4 = vsel %vm4007_vm8, %v2029_v40, %v2036_v21  ;;  %3373 = vmatprep.subr.bf16.mxu1 %v1269_v51  ;;  %v2043_v14 = vshll.u32 %v4239_v55, 16  ;;  %v2049_v42 = vshrl.u32 %v4244_v31, 16  ;;  %v2052_v1 = vshll.u32 %v4244_v31, 16 }
  0x7b   : >> { %v3150_v59 = vcombine.low %v2028_v11, %v2037_v4  ;;  %v747_v50 = vor.u32 %v746_v61, %v742_v24  ;;  %v754_v25 = vshrl.u32 %v693_v29, 16  ;;  %v2042_v6 = vrot.slane %v2040_v54, 7  ;;  %v697_v11 = vld [vmem:[%s3770_s14 + $0x24] sm:$0x1] }
  0x7c   : >> { %v2051_v30 = vrot.slane %v2049_v42, 7  ;;  %v760_v41 = vshll.u32 %v694_v49, 16  ;;  %v764_v15 = vshrl.u32 %v694_v49, 16  ;;  %v770_v52 = vshll.u32 %v695_v46, 16 }
  0x7d   : >> { %3437 = vmatprep.mubr.msk.bf16.mxu0 %vm412_vm2, %v3150_v59  ;;  %v748_v3 = vrot.slane %v747_v50, 4  ;;  %v756_v26 = vrot.slane %v754_v25, 4  ;;  %v774_v23 = vshrl.u32 %v695_v46, 16  ;;  %v2045_v20 = vor.u32 %v2043_v14, %v2042_v6  ;;  %v4284_v50 = vld [vmem:[%s3770_s14 + $0x94] sm:$0xf] }
  0x7e   : >> { %v2047_v12 = vrot.slane %v2042_v6, 4  ;;  %v2054_v0 = vor.u32 %v2052_v1, %v2051_v30  ;;  %v762_v18 = vrot.slane %v760_v41, 5  ;;  %v766_v34 = vrot.slane %v764_v15, 4 }
  0x7f   : >> { %v753_v29 = vsel %vm3953_vm7, %v748_v3, %v752_v33  ;;  %v757_v48 = vor.u32 %v756_v26, %v752_v33  ;;  %v772_v45 = vrot.slane %v770_v52, 5  ;;  %v2046_v39 = vsel %vm4007_vm8, %v2038_v8, %v2045_v20  ;;  %v4290_v26 = vld [vmem:[%s3770_s14 + $0x98] sm:$0xf]  ;;  %v698_v52 = vld [vmem:[%s3770_s14 + $0x2c] sm:$0xf] }
  0x80   : >> { %v3017_v57 = vcombine.low %v743_v43, %v753_v29  ;;  %v2055_v40 = vsel %vm4007_vm8, %v2047_v12, %v2054_v0  ;;  %v2056_v28 = vrot.slane %v2051_v30, 4  ;;  %v767_v17 = vor.u32 %v766_v34, %v762_v18 }
  0x81   : >> { %v3151_v24 = vcombine.low %v2046_v39, %v2055_v40  ;;  %v758_v60 = vrot.slane %v757_v48, 4  ;;  %v2058_v32 = vshrl.u32 %v4262_v63, 16  ;;  %v2061_v21 = vshll.u32 %v4262_v63, 16 }
  0x82   : >> { %3358 = vmatmul.mubr.msk.bf16.vlgmr.msra.gmra.mrb[0].mxu1 %vm412_vm2, %v3017_v57  ;;  %v2067_v43 = vshrl.u32 %v4267_v9, 16  ;;  %v2070_v61 = vshll.u32 %v4267_v9, 16  ;;  %v776_v33 = vrot.slane %v774_v23, 4  ;;  %v768_v49 = vrot.slane %v767_v17, 4 }
  0x83   : >> { %3438 = vmatmul.mubr.msk.bf16.gmra.mrb[8].mxu0 %vm412_vm2, %v3151_v24  ;;  %3374 = vmatpush3.bf16.msra.mxu1 %v1269_v51  ;;  %v763_v8 = vsel %vm3953_vm7, %v758_v60, %v762_v18  ;;  %v2060_v4 = vrot.slane %v2058_v32, 7  ;;  %v780_v54 = vshll.u32 %v696_v53, 16  ;;  %v784_v46 = vshrl.u32 %v696_v53, 16  ;;  %v699_v18 = vld [vmem:[%s3770_s14 + $0x30] sm:$0xf] }
  0x84   : >> { %v2069_v14 = vrot.slane %v2067_v43, 7  ;;  %v777_v42 = vor.u32 %v776_v33, %v772_v45  ;;  %v790_v59 = vshll.u32 %v697_v11, 16  ;;  %3481 = vmatprep.subr.bf16.mxu1 %v3752_v10  ;;  %v773_v51 = vsel %vm3953_vm7, %v768_v49, %v772_v45  ;;  %v700_v43 = vld [vmem:[%s3770_s14 + $0x34] sm:$0xf] }
  0x85   : >> { %v2063_v1 = vor.u32 %v2061_v21, %v2060_v4  ;;  %v2065_v25 = vrot.slane %v2060_v4, 4  ;;  %v782_v6 = vrot.slane %v780_v54, 5  ;;  %v3018_v30 = vcombine.low %v763_v8, %v773_v51  ;;  %v701_v54 = vld [vmem:[%s3770_s14 + $0x38] sm:$0xf] }
  0x86   : >> { %v2072_v41 = vor.u32 %v2070_v61, %v2069_v14  ;;  %v778_v15 = vrot.slane %v777_v42, 4  ;;  %v786_v3 = vrot.slane %v784_v46, 4  ;;  %v792_v20 = vrot.slane %v790_v59, 5 }
  0x87   : >> { %v2064_v23 = vsel %vm4007_vm8, %v2056_v28, %v2063_v1  ;;  %v2074_v12 = vrot.slane %v2069_v14, 4  ;;  %v2076_v0 = vshrl.u32 %v4284_v50, 16  ;;  %3361 = vmatprep.mubr.msk.bf16.mxu1 %vm412_vm2, %v3018_v30  ;;  %v2079_v45 = vshll.u32 %v4284_v50, 16  ;;  %v702_v30 = vld [vmem:[%s3770_s14 + $0x3c] sm:$0xf] }
  0x88   : >> { %v2073_v29 = vsel %vm4007_vm8, %v2065_v25, %v2072_v41  ;;  %v783_v48 = vsel %vm3953_vm7, %v778_v15, %v782_v6  ;;  %v787_v34 = vor.u32 %v786_v3, %v782_v6  ;;  %v2085_v40 = vshrl.u32 %v4290_v26, 16 }
  0x89   : >> { %v3152_v57 = vcombine.low %v2064_v23, %v2073_v29  ;;  %v2078_v39 = vrot.slane %v2076_v0, 7  ;;  %v2088_v28 = vshll.u32 %v4290_v26, 16  ;;  %v795_v24 = vshrl.u32 %v698_v52, 16 }
  0x8a   : >> { %v788_v53 = vrot.slane %v787_v34, 4  ;;  %v798_v60 = vshll.u32 %v698_v52, 16  ;;  %v804_v17 = vshll.u32 %v699_v18, 16  ;;  %v2087_v21 = vrot.slane %v2085_v40, 7  ;;  %v703_v34 = vld [vmem:[%s3770_s14 + $0x40] sm:$0xf] }
  0x8b   : >> { %3441 = vmatprep.mubr.msk.bf16.mxu0 %vm412_vm2, %v3152_v57  ;;  %v2081_v32 = vor.u32 %v2079_v45, %v2078_v39  ;;  %v2083_v11 = vrot.slane %v2078_v39, 4  ;;  %v808_v61 = vshrl.u32 %v699_v18, 16  ;;  %v797_v8 = vrot.slane %v795_v24, 4  ;;  %v3197_v18 = vld [vmem:[%s4604_s1 + $0x10] sm:$0x3] }
  0x8c   : >> { %v793_v33 = vsel %vm3953_vm7, %v788_v53, %v792_v20  ;;  %v800_v49 = vrot.slane %v798_v60, 5  ;;  %v806_v4 = vrot.slane %v804_v17, 5  ;;  %v2090_v46 = vor.u32 %v2088_v28, %v2087_v21  ;;  %v704_v28 = vld [vmem:[%s3770_s14 + $0x44] sm:$0xf] }
  0x8d   : >> { %v3019_v14 = vcombine.low %v783_v48, %v793_v33  ;;  %v2082_v42 = vsel %vm4007_vm8, %v2074_v12, %v2081_v32  ;;  %v810_v59 = vrot.slane %v808_v61, 4  ;;  %v814_v1 = vshll.u32 %v700_v43, 16 }
  0x8e   : >> { %v801_v51 = vor.u32 %v800_v49, %v797_v8  ;;  %v818_v25 = vshrl.u32 %v700_v43, 16  ;;  %v3163_v6 = vcombine.low %v4097_v19, %v4105_v56  ;;  %v2091_v41 = vsel %vm4007_vm8, %v2083_v11, %v2090_v46  ;;  %v705_v8 = vld [vmem:[%s3770_s14 + $0x48] sm:$0xf] }
  0x8f   : >> { %3362 = vmatmul.mubr.msk.bf16.gmra.mrb[4].mxu1 %vm412_vm2, %v3019_v14  ;;  %v811_v15 = vor.u32 %v810_v59, %v806_v4  ;;  %v824_v3 = vshll.u32 %v701_v54, 16  ;;  %v828_v52 = vshrl.u32 %v701_v54, 16  ;;  %v3153_v23 = vcombine.low %v2082_v42, %v2091_v41  ;;  %v706_v14 = vld [vmem:[%s3770_s14 + $0x4c] sm:$0x1] }
  0x90   : >> { %v802_v20 = vrot.slane %v801_v51, 4  ;;  %v816_v12 = vrot.slane %v814_v1, 5  ;;  %v820_v0 = vrot.slane %v818_v25, 4  ;;  %v834_v48 = vshll.u32 %v702_v30, 16  ;;  %v3034_v1 = vld [vmem:[%s3770_s14 + $0x28] sm:$0x8] }
  0x91   : >> { %v812_v19 = vrot.slane %v811_v15, 4  ;;  %v826_v56 = vrot.slane %v824_v3, 5  ;;  %v830_v29 = vrot.slane %v828_v52, 4  ;;  %3442 = vmatmul.mubr.msk.bf16.gmra.mrb[12].mxu0 %vm412_vm2, %v3153_v23  ;;  %v838_v39 = vshrl.u32 %v702_v30, 16 }
  0x92   : >> { %v807_v45 = vsel %vm3953_vm7, %v802_v20, %v806_v4  ;;  %v821_v57 = vor.u32 %v820_v0, %v816_v12  ;;  %v3164_v40 = vcombine.low %v4127_v44, %v4133_v62  ;;  %3447 = vmatprep.mubr.msk.bf16.mxu0 %vm412_vm2, %v3163_v6  ;;  %v836_v60 = vrot.slane %v834_v48, 5 }
  0x93   : >> { %v817_v53 = vsel %vm3953_vm7, %v812_v19, %v816_v12  ;;  %v831_v24 = vor.u32 %v830_v29, %v826_v56  ;;  %v2677_v17 = vand.u32 %v3197_v18, %v3744_v7  ;;  %v840_v21 = vrot.slane %v838_v39, 4  ;;  %v4652_v39 = vld [vmem:[#allocation5_spill] sm:$0xff] }
  0x94   : >> { %v3020_v32 = vcombine.low %v807_v45, %v817_v53  ;;  %v822_v11 = vrot.slane %v821_v57, 4  ;;  %v844_v43 = vshll.u32 %v703_v34, 16  ;;  %v848_v44 = vshrl.u32 %v703_v34, 16 }
  0x95   : >> { %v832_v61 = vrot.slane %v831_v24, 4  ;;  %3463 = vmatprep.subr.bf16.mxu0 %v2677_v17  ;;  %v854_v62 = vshll.u32 %v704_v28, 16  ;;  %v858_v33 = vshrl.u32 %v704_v28, 16  ;;  %v841_v4 = vor.u32 %v840_v21, %v836_v60  ;;  %v4657_v21 = vld [vmem:[#allocation7_spill] sm:$0xff] }
  0x96   : >> { %3365 = vmatprep.mubr.msk.bf16.mxu1 %vm412_vm2, %v3020_v32  ;;  %v827_v49 = vsel %vm3953_vm7, %v822_v11, %v826_v56  ;;  %v846_v54 = vrot.slane %v844_v43, 5  ;;  %v3165_v7 = vcombine.low %v4154_v22, %v4165_v35  ;;  %v850_v46 = vrot.slane %v848_v44, 4  ;;  %v4656_v11 = vld [vmem:[#allocation12_spill] sm:$0xff] }
  0x97   : >> { %v837_v42 = vsel %vm3953_vm7, %v832_v61, %v836_v60  ;;  %v856_v59 = vrot.slane %v854_v62, 5  ;;  %v860_v51 = vrot.slane %v858_v33, 4  ;;  %v842_v6 = vrot.slane %v841_v4, 4  ;;  %v3043_v62 = vld [vmem:[%s3770_s14 + $0x50] sm:$0x8] }
  0x98   : >> { %v3021_v25 = vcombine.low %v827_v49, %v837_v42  ;;  %v864_v30 = vshll.u32 %v705_v8, 16  ;;  %v868_v41 = vshrl.u32 %v705_v8, 16  ;;  %v851_v15 = vor.u32 %v850_v46, %v846_v54  ;;  %v4659_v8 = vld [vmem:[#allocation13_spill] sm:$0xff]  ;;  %v4660_v49 = vld [vmem:[#allocation8_spill] sm:$0xff] }
  0x99   : >> { %v861_v3 = vor.u32 %v860_v51, %v856_v59  ;;  %v874_v52 = vshll.u32 %v706_v14, 16  ;;  %v3166_v23 = vcombine.low %v4179_v38, %v4190_v58  ;;  %3448 = vmatmul.mubr.msk.bf16.vlgmr.msra.gmra.mrb[0].mxu0 %vm412_vm2, %v3164_v40  ;;  %v847_v22 = vsel %vm3953_vm7, %v842_v6, %v846_v54  ;;  %v4397_v42 = vld [vmem:[%s3770_s14 + $0x54] sm:$0xf]  ;;  %v4662_v51 = vld [vmem:[#allocation14_spill] sm:$0xff] }
  0x9a   : >> { %3366 = vmatmul.mubr.msk.bf16.gmra.mrb[8].mxu1 %vm412_vm2, %v3021_v25  ;;  %v866_v35 = vrot.slane %v864_v30, 5  ;;  %v870_v20 = vrot.slane %v868_v41, 4  ;;  %v1067_v12 = vshrl.u32 %v3034_v1, 16  ;;  %3464 = vmatpush3.bf16.msra.mxu0 %v2677_v17  ;;  %v852_v0 = vrot.slane %v851_v15, 4  ;;  %v4655_v17 = vld [vmem:[#allocation6_spill] sm:$0xff]  ;;  %v4666_v15 = vld [vmem:[#allocation11_spill] sm:$0xff] }
  0x9b   : >> { %3451 = vmatprep.mubr.msk.bf16.mxu0 %vm412_vm2, %v3165_v7  ;;  %v862_v18 = vrot.slane %v861_v3, 4  ;;  %v876_v19 = vrot.slane %v874_v52, 5  ;;  %v4649_v56 = vrot.slane %v3795_v36, 4  ;;  %v3167_v48 = vcombine.low %v4216_v13, %v4222_v2  ;;  %v4654_v2 = vld [vmem:[#allocation4_spill] sm:$0xff]  ;;  %v4663_v1 = vld [vmem:[#allocation10_spill] sm:$0xff] }
  0x9c   : >> { %v871_v58 = vor.u32 %v870_v20, %v866_v35  ;;  %v3052_v29 = vrot.slane %v1067_v12, 11  ;;  %v4650_v34 = vrot.slane %v3797_v37, 4  ;;  %v857_v57 = vsel %vm3953_vm7, %v852_v0, %v856_v59  ;;  %v4406_v41 = vld [vmem:[%s3770_s14 + $0x58] sm:$0xf]  ;;  %v3179_v20 = vld [vmem:[%s3770_s14 + $0x54] sm:$0xf] }
  0x9d   : >> { %v1087_v38 = vsel %vm4007_vm8, %v4649_v56, %v3814_v47  ;;  %v867_v36 = vsel %vm3953_vm7, %v862_v18, %v866_v35  ;;  %v4651_v47 = vld [vmem:[#allocation9_spill] sm:$0xff]  ;;  %v4653_v40 = vrot.slane %v4652_v39, 4  ;;  %v3168_v37 = vcombine.low %v4239_v55, %v4244_v31  ;;  %v3181_v56 = vld [vmem:[%s3770_s14 + $0x5c] sm:$0xf] }
  0x9e   : >> { %v4361_v45 = vsel %vm4007_vm8, %v4650_v34, %v3860_v16  ;;  %v3022_v13 = vcombine.low %v847_v22, %v857_v57  ;;  %v872_v16 = vrot.slane %v871_v58, 4  ;;  %v1078_v53 = vsel %vm4007_vm8, %v3052_v29, %v4654_v2 }
  0x9f   : >> { %v4372_v28 = vsel %vm4007_vm8, %v4653_v40, %v4651_v47  ;;  %v3055_v60 = vcombine.low %v1078_v53, %v1087_v38  ;;  %v1106_v32 = vrot.slane %v4655_v17, 4  ;;  %v4658_v43 = vshll.u32 %v4657_v21, 16 }
  0xa0   : >> { %v3056_v24 = vcombine.low %v4361_v45, %v4372_v28  ;;  %v1115_v44 = vrot.slane %v4656_v11, 4  ;;  %3369 = vmatprep.mubr.msk.bf16.mxu1 %vm412_vm2, %v3022_v13  ;;  %v877_v33 = vsel %vm3953_vm7, %v872_v16, %v876_v19  ;;  %v4661_v4 = vshll.u32 %v4660_v49, 16  ;;  %v3180_v19 = vld [vmem:[%s3770_s14 + $0x58] sm:$0xf] }
  0xa1   : >> { %v1113_v61 = vor.u32 %v4658_v43, %v4656_v11  ;;  %v3169_v7 = vcombine.low %v4262_v63, %v4267_v9  ;;  %v1124_v14 = vrot.slane %v4659_v8, 4  ;;  %v3023_v46 = vcombine.low %v867_v36, %v877_v33  ;;  %3452 = vmatmul.mubr.msk.bf16.gmra.mrb[4].mxu0 %vm412_vm2, %v3166_v23  ;;  %v4665_v9 = vld [vmem:[#allocation15_spill] sm:$0xff] }
  0xa2   : >> { %v1122_v54 = vor.u32 %v4661_v4, %v4659_v8  ;;  %v4664_v25 = vshll.u32 %v4663_v1, 16  ;;  %v1133_v30 = vrot.slane %v4662_v51, 4  ;;  %v4667_v3 = vshll.u32 %v4666_v15, 16  ;;  %3455 = vmatprep.mubr.msk.bf16.mxu0 %vm412_vm2, %v3167_v48  ;;  %v3182_v4 = vld [vmem:[%s3770_s14 + $0x60] sm:$0xf] }
  0xa3   : >> { %v1114_v59 = vsel %vm4007_vm8, %v1106_v32, %v1113_v61  ;;  %v3170_v22 = vcombine.low %v4284_v50, %v4290_v26  ;;  %v1143_v35 = vshrl.u32 %v3043_v62, 16  ;;  %3370 = vmatmul.mubr.msk.bf16.gmra.mrb[12].mxu1 %vm412_vm2, %v3023_v46  ;;  %v1148_v0 = vshrl.u32 %v4397_v42, 16  ;;  %v4437_v32 = vld [vmem:[%s3770_s14 + $0x5c] sm:$0xf] }
  0xa4   : >> { %v1131_v6 = vor.u32 %v4664_v25, %v4662_v51  ;;  %v1123_v63 = vsel %vm4007_vm8, %v1115_v44, %v1122_v54  ;;  %v1140_v52 = vor.u32 %v4667_v3, %v4665_v9  ;;  %v1151_v18 = vshll.u32 %v4397_v42, 16  ;;  %3375 = vmatprep.mubr.msk.bf16.mxu1 %vm412_vm2, %v3055_v60  ;;  %v4440_v44 = vld [vmem:[%s3770_s14 + $0x60] sm:$0xf]  ;;  %v4466_v9 = vld [vmem:[%s3770_s14 + $0x64] sm:$0xf] }
  0xa5   : >> { %v3057_v12 = vcombine.low %v1114_v59, %v1123_v63  ;;  %v3053_v58 = vrot.slane %v1143_v35, 11  ;;  %v1157_v29 = vshrl.u32 %v4406_v41, 16  ;;  %v1160_v48 = vshll.u32 %v4406_v41, 16 }
  0xa6   : >> { %v4421_v23 = vsel %vm4007_vm8, %v1124_v14, %v1131_v6  ;;  %v4430_v38 = vsel %vm4007_vm8, %v1133_v30, %v1140_v52  ;;  %v1150_v57 = vrot.slane %v1148_v0, 7  ;;  %v2459_v36 = vshrl.u32 %v3179_v20, 16  ;;  %v3183_v30 = vld [vmem:[%s3770_s14 + $0x64] sm:$0xf] }
  0xa7   : >> { %v3058_v34 = vcombine.low %v4421_v23, %v4430_v38  ;;  %v2462_v47 = vshll.u32 %v3179_v20, 16  ;;  %v1159_v39 = vrot.slane %v1157_v29, 7  ;;  %v2468_v40 = vshll.u32 %v3180_v19, 16 }
  0xa8   : >> { %v2472_v13 = vshrl.u32 %v3180_v19, 16  ;;  %v2478_v16 = vshll.u32 %v3181_v56, 16  ;;  %v1153_v2 = vor.u32 %v1151_v18, %v1150_v57  ;;  %v1155_v53 = vrot.slane %v1150_v57, 4  ;;  %v4471_v18 = vld [vmem:[%s3770_s14 + $0x68] sm:$0xf] }
  0xa9   : >> { %v2461_v60 = vrot.slane %v2459_v36, 4  ;;  %v2464_v17 = vrot.slane %v2462_v47, 5  ;;  %v1162_v11 = vor.u32 %v1160_v48, %v1159_v39  ;;  %v2470_v21 = vrot.slane %v2468_v40, 5  ;;  %3456 = vmatmul.mubr.msk.bf16.gmra.mrb[8].mxu0 %vm412_vm2, %v3168_v37  ;;  %v3184_v48 = vld [vmem:[%s3770_s14 + $0x68] sm:$0xf] }
  0xaa   : >> { %v2474_v43 = vrot.slane %v2472_v13, 4  ;;  %v2480_v61 = vrot.slane %v2478_v16, 5  ;;  %v1154_v62 = vsel %vm4007_vm8, %v3053_v58, %v1153_v2  ;;  %v2482_v8 = vshrl.u32 %v3181_v56, 16  ;;  %3459 = vmatprep.mubr.msk.bf16.mxu0 %vm412_vm2, %v3169_v7 }
  0xab   : >> { %v2465_v33 = vor.u32 %v2464_v17, %v2461_v60  ;;  %v1164_v49 = vrot.slane %v1159_v39, 4  ;;  %v1163_v54 = vsel %vm4007_vm8, %v1155_v53, %v1162_v11  ;;  %v1166_v46 = vshrl.u32 %v4437_v32, 16  ;;  %3376 = vmatmul.mubr.msk.bf16.vlgmr.msra.gmra.mrb[0].mxu1 %vm412_vm2, %v3056_v24  ;;  %v3185_v53 = vld [vmem:[%s3770_s14 + $0x6c] sm:$0xf] }
  0xac   : >> { %v2475_v14 = vor.u32 %v2474_v43, %v2470_v21  ;;  %v1169_v59 = vshll.u32 %v4437_v32, 16  ;;  %v3059_v55 = vcombine.low %v1154_v62, %v1163_v54  ;;  %v2484_v37 = vrot.slane %v2482_v8, 4  ;;  %3482 = vmatpush3.bf16.msra.mxu1 %v3752_v10  ;;  %3379 = vmatprep.mubr.msk.bf16.mxu1 %vm412_vm2, %v3057_v12  ;;  %v4498_v62 = vld [vmem:[%s3770_s14 + $0x6c] sm:$0xf]  ;;  %v4503_v54 = vld [vmem:[%s3770_s14 + $0x70] sm:$0xf] }
  0xad   : >> { %v2466_v31 = vrot.slane %v2465_v33, 4  ;;  %v1175_v51 = vshrl.u32 %v4440_v44, 16  ;;  %v1168_v25 = vrot.slane %v1166_v46, 7  ;;  %v1178_v6 = vshll.u32 %v4440_v44, 16 }
  0xae   : >> { %v2476_v1 = vrot.slane %v2475_v14, 4  ;;  %v2488_v45 = vshll.u32 %v3182_v4, 16  ;;  %v2485_v24 = vor.u32 %v2484_v37, %v2480_v61  ;;  %v2492_v63 = vshrl.u32 %v3182_v4, 16 }
  0xaf   : >> { %v2471_v28 = vsel %vm3953_vm7, %v2466_v31, %v2470_v21  ;;  %v1177_v7 = vrot.slane %v1175_v51, 7  ;;  %v1171_v15 = vor.u32 %v1169_v59, %v1168_v25  ;;  %v1173_v3 = vrot.slane %v1168_v25, 4  ;;  %v3186_v31 = vld [vmem:[%s3770_s14 + $0x70] sm:$0xf] }
  0xb0   : >> { %v2481_v10 = vsel %vm3953_vm7, %v2476_v1, %v2480_v61  ;;  %v2490_v52 = vrot.slane %v2488_v45, 5  ;;  %v2486_v35 = vrot.slane %v2485_v24, 4  ;;  %v2494_v0 = vrot.slane %v2492_v63, 4 }
  0xb1   : >> { %v3198_v20 = vcombine.low %v2471_v28, %v2481_v10  ;;  %v1180_v12 = vor.u32 %v1178_v6, %v1177_v7  ;;  %v1172_v19 = vsel %vm4007_vm8, %v1164_v49, %v1171_v15  ;;  %v2498_v56 = vshll.u32 %v3183_v30, 16  ;;  %3460 = vmatmul.mubr.msk.bf16.gmra.mrb[12].mxu0 %vm412_vm2, %v3170_v22  ;;  %v3187_v6 = vld [vmem:[%s3770_s14 + $0x74] sm:$0x1] }
  0xb2   : >> { %v1182_v58 = vrot.slane %v1177_v7, 4  ;;  %v1184_v29 = vshrl.u32 %v4466_v9, 16  ;;  %v2491_v36 = vsel %vm3953_vm7, %v2486_v35, %v2490_v52  ;;  %v2495_v47 = vor.u32 %v2494_v0, %v2490_v52 }
  0xb3   : >> { %v1181_v57 = vsel %vm4007_vm8, %v1173_v3, %v1180_v12  ;;  %v1187_v39 = vshll.u32 %v4466_v9, 16  ;;  %v2500_v13 = vrot.slane %v2498_v56, 5  ;;  %v1193_v2 = vshrl.u32 %v4471_v18, 16  ;;  %3380 = vmatmul.mubr.msk.bf16.gmra.mrb[4].mxu1 %vm412_vm2, %v3058_v34  ;;  %3465 = vmatprep.mubr.msk.bf16.mxu0 %vm412_vm2, %v3198_v20 }
  0xb4   : >> { %v3060_v40 = vcombine.low %v1172_v19, %v1181_v57  ;;  %v1186_v16 = vrot.slane %v1184_v29, 7  ;;  %v2496_v60 = vrot.slane %v2495_v47, 4  ;;  %v1196_v17 = vshll.u32 %v4471_v18, 16  ;;  %3383 = vmatprep.mubr.msk.bf16.mxu1 %vm412_vm2, %v3059_v55  ;;  %v3189_v47 = vld [vmem:[%s3770_s14 + $0x80] sm:$0xf] }
  0xb5   : >> { %v2502_v50 = vshrl.u32 %v3183_v30, 16  ;;  %v2508_v26 = vshll.u32 %v3184_v48, 16  ;;  %v1195_v21 = vrot.slane %v1193_v2, 7  ;;  %v2512_v43 = vshrl.u32 %v3184_v48, 16  ;;  %v3190_v2 = vld [vmem:[%s3770_s14 + $0x84] sm:$0xf] }
  0xb6   : >> { %v1189_v22 = vor.u32 %v1187_v39, %v1186_v16  ;;  %v1191_v11 = vrot.slane %v1186_v16, 4  ;;  %v2501_v23 = vsel %vm3953_vm7, %v2496_v60, %v2500_v13  ;;  %v2518_v61 = vshll.u32 %v3185_v53, 16 }
  0xb7   : >> { %v2504_v38 = vrot.slane %v2502_v50, 4  ;;  %v2510_v34 = vrot.slane %v2508_v26, 5  ;;  %v3199_v33 = vcombine.low %v2491_v36, %v2501_v23  ;;  %v1198_v49 = vor.u32 %v1196_v17, %v1195_v21 }
  0xb8   : >> { %v1190_v8 = vsel %vm4007_vm8, %v1182_v58, %v1189_v22  ;;  %v2514_v4 = vrot.slane %v2512_v43, 4  ;;  %v2520_v46 = vrot.slane %v2518_v61, 5  ;;  %v2522_v59 = vshrl.u32 %v3185_v53, 16  ;;  %v3188_v58 = vld [vmem:[%s3770_s14 + $0x7c] sm:$0xf] }
  0xb9   : >> { %v2505_v14 = vor.u32 %v2504_v38, %v2500_v13  ;;  %v1200_v55 = vrot.slane %v1195_v21, 4  ;;  %v1199_v37 = vsel %vm4007_vm8, %v1191_v11, %v1198_v49  ;;  %v1202_v1 = vshrl.u32 %v4498_v62, 16  ;;  %3466 = vmatmul.mubr.msk.bf16.vlgmr.msra.gmra.mrb[0].mxu0 %vm412_vm2, %v3199_v33  ;;  %v3191_v43 = vld [vmem:[%s3770_s14 + $0x88] sm:$0xf] }
  0xba   : >> { %v2515_v51 = vor.u32 %v2514_v4, %v2510_v34  ;;  %v1205_v25 = vshll.u32 %v4498_v62, 16  ;;  %v3061_v45 = vcombine.low %v1190_v8, %v1199_v37  ;;  %v1211_v24 = vshrl.u32 %v4503_v54, 16  ;;  %v3192_v8 = vld [vmem:[%s3770_s14 + $0x8c] sm:$0xf] }
  0xbb   : >> { %v2506_v28 = vrot.slane %v2505_v14, 4  ;;  %v1214_v7 = vshll.u32 %v4503_v54, 16  ;;  %v1204_v63 = vrot.slane %v1202_v1, 7  ;;  %v2524_v10 = vrot.slane %v2522_v59, 4  ;;  %3384 = vmatmul.mubr.msk.bf16.gmra.mrb[8].mxu1 %vm412_vm2, %v3060_v40 }
  0xbc   : >> { %v2516_v30 = vrot.slane %v2515_v51, 4  ;;  %v2528_v15 = vshll.u32 %v3186_v31, 16  ;;  %v1213_v52 = vrot.slane %v1211_v24, 7  ;;  %v2532_v35 = vshrl.u32 %v3186_v31, 16  ;;  %3387 = vmatprep.mubr.msk.bf16.mxu1 %vm412_vm2, %v3061_v45  ;;  %v3193_v51 = vld [vmem:[%s3770_s14 + $0x90] sm:$0xf] }
  0xbd   : >> { %v2511_v3 = vsel %vm3953_vm7, %v2506_v28, %v2510_v34  ;;  %v2538_v20 = vshll.u32 %v3187_v6, 16  ;;  %v1207_v0 = vor.u32 %v1205_v25, %v1204_v63  ;;  %v1209_v19 = vrot.slane %v1204_v63, 4 }
  0xbe   : >> { %v2521_v12 = vsel %vm3953_vm7, %v2516_v30, %v2520_v46  ;;  %v2525_v56 = vor.u32 %v2524_v10, %v2520_v46  ;;  %v1216_v48 = vor.u32 %v1214_v7, %v1213_v52  ;;  %v2530_v57 = vrot.slane %v2528_v15, 5  ;;  %v3194_v7 = vld [vmem:[%s3770_s14 + $0x94] sm:$0xf] }
  0xbf   : >> { %v3200_v29 = vcombine.low %v2511_v3, %v2521_v12  ;;  %v2534_v36 = vrot.slane %v2532_v35, 4  ;;  %v1208_v39 = vsel %vm4007_vm8, %v1200_v55, %v1207_v0  ;;  %v2540_v13 = vrot.slane %v2538_v20, 5  ;;  %v3195_v12 = vld [vmem:[%s3770_s14 + $0x98] sm:$0xf] }
  0xc0   : >> { %v2526_v40 = vrot.slane %v2525_v56, 4  ;;  %v3076_v16 = vcombine.low %v4397_v42, %v4406_v41  ;;  %v1217_v53 = vsel %vm4007_vm8, %v1209_v19, %v1216_v48  ;;  %v2543_v17 = vshrl.u32 %v3188_v58, 16 }
  0xc1   : >> { %3469 = vmatprep.mubr.msk.bf16.mxu0 %vm412_vm2, %v3200_v29  ;;  %v2535_v60 = vor.u32 %v2534_v36, %v2530_v57  ;;  %v2546_v50 = vshll.u32 %v3188_v58, 16  ;;  %v3062_v26 = vcombine.low %v1208_v39, %v1217_v53  ;;  %v2552_v11 = vshll.u32 %v3189_v47, 16 }
  0xc2   : >> { %v2531_v22 = vsel %vm3953_vm7, %v2526_v40, %v2530_v57  ;;  %v2556_v21 = vshrl.u32 %v3189_v47, 16  ;;  %v2545_v38 = vrot.slane %v2543_v17, 4  ;;  %v2562_v41 = vshll.u32 %v3190_v2, 16  ;;  %v3196_v57 = vld [vmem:[%s3770_s14 + $0x9c] sm:$0x1] }
  0xc3   : >> { %v2536_v23 = vrot.slane %v2535_v60, 4  ;;  %v2548_v42 = vrot.slane %v2546_v50, 5  ;;  %v2554_v34 = vrot.slane %v2552_v11, 5  ;;  %v2566_v5 = vshrl.u32 %v3190_v2, 16  ;;  %3388 = vmatmul.mubr.msk.bf16.gmra.mrb[12].mxu1 %vm412_vm2, %v3062_v26 }
  0xc4   : >> { %v2558_v61 = vrot.slane %v2556_v21, 4  ;;  %v3077_v33 = vcombine.low %v4437_v32, %v4440_v44  ;;  %v2564_v14 = vrot.slane %v2562_v41, 5  ;;  %v2572_v46 = vshll.u32 %v3191_v43, 16  ;;  %3401 = vmatprep.mubr.msk.bf16.mxu1 %vm412_vm2, %v3076_v16 }
  0xc5   : >> { %v2541_v49 = vsel %vm3953_vm7, %v2536_v23, %v2540_v13  ;;  %v2549_v4 = vor.u32 %v2548_v42, %v2545_v38  ;;  %v2568_v31 = vrot.slane %v2566_v5, 4  ;;  %v2576_v37 = vshrl.u32 %v3191_v43, 16 }
  0xc6   : >> { %v3201_v59 = vcombine.low %v2531_v22, %v2541_v49  ;;  %v2559_v55 = vor.u32 %v2558_v61, %v2554_v34  ;;  %v2574_v25 = vrot.slane %v2572_v46, 5  ;;  %v2582_v32 = vshll.u32 %v3192_v8, 16 }
  0xc7   : >> { %v2550_v1 = vrot.slane %v2549_v4, 4  ;;  %v2586_v44 = vshrl.u32 %v3192_v8, 16  ;;  %v2569_v45 = vor.u32 %v2568_v31, %v2564_v14  ;;  %v2578_v28 = vrot.slane %v2576_v37, 4 }
  0xc8   : >> { %3470 = vmatmul.mubr.msk.bf16.gmra.mrb[4].mxu0 %vm412_vm2, %v3201_v59  ;;  %v2560_v6 = vrot.slane %v2559_v55, 4  ;;  %v3078_v24 = vcombine.low %v4466_v9, %v4471_v18  ;;  %v2584_v63 = vrot.slane %v2582_v32, 5  ;;  %v2592_v15 = vshll.u32 %v3193_v51, 16 }
  0xc9   : >> { %v2555_v30 = vsel %vm3953_vm7, %v2550_v1, %v2554_v34  ;;  %v2588_v10 = vrot.slane %v2586_v44, 4  ;;  %v2570_v52 = vrot.slane %v2569_v45, 4  ;;  %v2579_v35 = vor.u32 %v2578_v28, %v2574_v25 }
  0xca   : >> { %v2565_v3 = vsel %vm3953_vm7, %v2560_v6, %v2564_v14  ;;  %v2596_v20 = vshrl.u32 %v3193_v51, 16  ;;  %v2594_v56 = vrot.slane %v2592_v15, 5  ;;  %v2602_v58 = vshll.u32 %v3194_v7, 16 }
  0xcb   : >> { %v3202_v0 = vcombine.low %v2555_v30, %v2565_v3  ;;  %v2589_v19 = vor.u32 %v2588_v10, %v2584_v63  ;;  %v2575_v9 = vsel %vm3953_vm7, %v2570_v52, %v2574_v25  ;;  %v2580_v18 = vrot.slane %v2579_v35, 4  ;;  %3402 = vmatmul.mubr.msk.bf16.vlgmr.msra.gmra.mrb[8].mxu1 %vm412_vm2, %v3077_v33 }
  0xcc   : >> { %v2598_v29 = vrot.slane %v2596_v20, 4  ;;  %v2606_v48 = vshrl.u32 %v3194_v7, 16  ;;  %v2604_v47 = vrot.slane %v2602_v58, 5  ;;  %v2612_v39 = vshll.u32 %v3195_v12, 16  ;;  %3405 = vmatprep.mubr.msk.bf16.mxu1 %vm412_vm2, %v3078_v24 }
  0xcd   : >> { %3473 = vmatprep.mubr.msk.bf16.mxu0 %vm412_vm2, %v3202_v0  ;;  %v2590_v36 = vrot.slane %v2589_v19, 4  ;;  %v2585_v40 = vsel %vm3953_vm7, %v2580_v18, %v2584_v63  ;;  %v2616_v2 = vshrl.u32 %v3195_v12, 16  ;;  %v2622_v17 = vshll.u32 %v3196_v57, 16  ;;  %v4668_v12 = vld [vmem:[#allocation3_spill] sm:$0xff] }
  0xce   : >> { %v2599_v13 = vor.u32 %v2598_v29, %v2594_v56  ;;  %v2608_v16 = vrot.slane %v2606_v48, 4  ;;  %v3203_v53 = vcombine.low %v2575_v9, %v2585_v40  ;;  %v2614_v60 = vrot.slane %v2612_v39, 5 }
  0xcf   : >> { %v2595_v50 = vsel %vm3953_vm7, %v2590_v36, %v2594_v56  ;;  %v2618_v11 = vrot.slane %v2616_v2, 4  ;;  %v3079_v21 = vcombine.low %v4498_v62, %v4503_v54  ;;  %v2624_v42 = vrot.slane %v2622_v17, 5 }
  0xd0   : >> { %v2600_v26 = vrot.slane %v2599_v13, 4  ;;  %v2609_v22 = vor.u32 %v2608_v16, %v2604_v47  ;;  %3474 = vmatmul.mubr.msk.bf16.gmra.mrb[8].mxu0 %vm412_vm2, %v3203_v53  ;;  %v3674_v62 = vmov 0  }
  0xd1   : >> { %v2619_v38 = vor.u32 %v2618_v11, %v2614_v60  ;;  %3223 = vst [vmem:[%s4574_s21 + $0x18] sm:$0xf] %v3674_v62  ;;  %3224 = vst [vmem:[%s4574_s21 + $0x2c] sm:$0xf] %v3674_v62 }
  0xd2   : >> { %v2605_v43 = vsel %vm3953_vm7, %v2600_v26, %v2604_v47  ;;  %v2610_v23 = vrot.slane %v2609_v22, 4 }
  0xd3   : >> { %v3204_v41 = vcombine.low %v2595_v50, %v2605_v43  ;;  %v2620_v61 = vrot.slane %v2619_v38, 4  ;;  %3406 = vmatmul.mubr.msk.bf16.gmra.mrb[12].mxu1 %vm412_vm2, %v3079_v21 }
  0xd4   : >> { %v2615_v34 = vsel %vm3953_vm7, %v2610_v23, %v2614_v60 }
  0xd5   : >> { %3477 = vmatprep.mubr.msk.bf16.mxu0 %vm412_vm2, %v3204_v41  ;;  %v2625_v5 = vsel %vm3953_vm7, %v2620_v61, %v2624_v42 }
  0xd6   : >> { %v3205_v33 = vcombine.low %v2615_v34, %v2625_v5 }
  0xd8   : >> { %3478 = vmatmul.mubr.msk.bf16.gmra.mrb[12].mxu0 %vm412_vm2, %v3205_v33 }
 0x17e   : >> { %v3377_v54 = vpop.f32.mrb[0].mxu1 }
 0x17f   : >> { %v1305_v8 = vpop.f32.mrb[1].mxu1 }
 0x180   : >> { %v3378_v49 = vpop.f32.mrb[2].mxu1 }
 0x181   : >> { %v1308_v4 = vpop.f32.mrb[3].mxu1 }
 0x186   : >> { %v3381_v14 = vpop.f32.mrb[4].mxu1 }
 0x187   : >> { %v1321_v46 = vpop.f32.mrb[5].mxu1 }
 0x188   : >> { %v3382_v59 = vpop.f32.mrb[6].mxu1 }
 0x189   : >> { %v1324_v27 = vpop.f32.mrb[7].mxu1 }
 0x18c   : >> { %v3467_v55 = vpop.f32.mrb[0].mxu0 }
 0x18d   : >> { %v3483_v31 = vadd.f32 %v3467_v55, %v3377_v54  ;;  %v2713_v37 = vpop.f32.mrb[1].mxu0 }
 0x18e   : >> { %v3484_v51 = vadd.f32 %v2713_v37, %v1305_v8  ;;  %v3468_v1 = vpop.f32.mrb[2].mxu0 }
 0x18f   : >> { %v3485_v25 = vadd.f32 %v3468_v1, %v3378_v49  ;;  %v2716_v32 = vpop.f32.mrb[3].mxu0  ;;  %v2800_v0 = vadd.f32 %v3483_v31, %v4668_v12 }
 0x190   : >> { %v3486_v44 = vadd.f32 %v2716_v32, %v1308_v4  ;;  %v2798_v58 = vadd.f32 %v3484_v51, %v4668_v12 }
 0x191   : >> { %v2801_v29 = vadd.f32 %v3485_v25, %v4668_v12  ;;  %v2816_v16 = vmax.f32 %v2800_v0, 0.0 }
 0x192   : >> { %v2799_v47 = vadd.f32 %v3486_v44, %v4668_v12  ;;  %v2814_v17 = vmax.f32 %v2798_v58, 0.0 }
 0x193   : >> { %v2817_v11 = vmax.f32 %v2801_v29, 0.0 }
 0x194   : >> { %v2815_v38 = vmax.f32 %v2799_v47, 0.0 }
 0x19b   : >> { %v3471_v6 = vpop.f32.mrb[4].mxu0 }
 0x19c   : >> { %v3487_v45 = vadd.f32 %v3471_v6, %v3381_v14  ;;  %v2729_v28 = vpop.f32.mrb[5].mxu0 }
 0x19d   : >> { %v3488_v24 = vadd.f32 %v2729_v28, %v1321_v46  ;;  %v3472_v7 = vpop.f32.mrb[6].mxu0 }
 0x19e   : >> { %v3489_v30 = vadd.f32 %v3472_v7, %v3382_v59  ;;  %v2732_v63 = vpop.f32.mrb[7].mxu0  ;;  %v3403_v15 = vpop.f32.mrb[8].mxu1  ;;  %v2804_v61 = vadd.f32 %v3487_v45, %v4668_v12 }
 0x19f   : >> { %v3490_v10 = vadd.f32 %v2732_v63, %v1324_v27  ;;  %v1519_v3 = vpop.f32.mrb[9].mxu1  ;;  %v2802_v54 = vadd.f32 %v3488_v24, %v4668_v12 }
 0x1a0   : >> { %v3404_v52 = vpop.f32.mrb[10].mxu1  ;;  %v2805_v14 = vadd.f32 %v3489_v30, %v4668_v12  ;;  %v2820_v51 = vmax.f32 %v2804_v61, 0.0 }
 0x1a1   : >> { %v1522_v35 = vpop.f32.mrb[11].mxu1  ;;  %v2803_v55 = vadd.f32 %v3490_v10, %v4668_v12  ;;  %v2818_v32 = vmax.f32 %v2802_v54, 0.0 }
 0x1a2   : >> { %v2821_v45 = vmax.f32 %v2805_v14, 0.0 }
 0x1a3   : >> { %v3475_v20 = vpop.f32.mrb[8].mxu0  ;;  %v2819_v7 = vmax.f32 %v2803_v55, 0.0 }
 0x1a4   : >> { %v3491_v19 = vadd.f32 %v3475_v20, %v3403_v15  ;;  %v2745_v56 = vpop.f32.mrb[9].mxu0 }
 0x1a5   : >> { %v3492_v9 = vadd.f32 %v2745_v56, %v1519_v3  ;;  %v3476_v18 = vpop.f32.mrb[10].mxu0 }
 0x1a6   : >> { %v2808_v48 = vadd.f32 %v3491_v19, %v4668_v12  ;;  %v3493_v57 = vadd.f32 %v3476_v18, %v3404_v52  ;;  %v2748_v36 = vpop.f32.mrb[11].mxu0  ;;  %v3407_v13 = vpop.f32.mrb[12].mxu1 }
 0x1a7   : >> { %v2806_v39 = vadd.f32 %v3492_v9, %v4668_v12  ;;  %v3494_v40 = vadd.f32 %v2748_v36, %v1522_v35  ;;  %v1535_v60 = vpop.f32.mrb[13].mxu1 }
 0x1a8   : >> { %v2824_v2 = vmax.f32 %v2808_v48, 0.0  ;;  %v2809_v53 = vadd.f32 %v3493_v57, %v4668_v12  ;;  %v3408_v22 = vpop.f32.mrb[14].mxu1 }
 0x1a9   : >> { %v2822_v50 = vmax.f32 %v2806_v39, 0.0  ;;  %v2807_v26 = vadd.f32 %v3494_v40, %v4668_v12  ;;  %v1538_v23 = vpop.f32.mrb[15].mxu1 }
 0x1aa   : >> { %v2832_v21 = vmax.f32 %v2816_v16, %v2824_v2  ;;  %v2825_v43 = vmax.f32 %v2809_v53, 0.0 }
 0x1ab   : >> { %v2830_v42 = vmax.f32 %v2814_v17, %v2822_v50  ;;  %v2823_v41 = vmax.f32 %v2807_v26, 0.0  ;;  %v3479_v34 = vpop.f32.mrb[12].mxu0 }
 0x1ac   : >> { %2840 = vst [vmem:[#allocation2 + $0x10] sm:$0xff] %v2832_v21  ;;  %v2833_v5 = vmax.f32 %v2817_v11, %v2825_v43  ;;  %v3495_v33 = vadd.f32 %v3479_v34, %v3407_v13  ;;  %v2761_v62 = vpop.f32.mrb[13].mxu0 }
 0x1ad   : >> { %2838 = vst [vmem:[#allocation2] sm:$0xff] %v2830_v42  ;;  %v2831_v8 = vmax.f32 %v2815_v38, %v2823_v41  ;;  %v3496_v49 = vadd.f32 %v2761_v62, %v1535_v60  ;;  %v3480_v4 = vpop.f32.mrb[14].mxu0 }
 0x1ae   : >> { %2841 = vst [vmem:[#allocation2 + $0x18] sm:$0xff] %v2833_v5  ;;  %v2812_v46 = vadd.f32 %v3495_v33, %v4668_v12  ;;  %v3497_v59 = vadd.f32 %v3480_v4, %v3408_v22  ;;  %v2764_v27 = vpop.f32.mrb[15].mxu0 }
 0x1af   : >> { %2839 = vst [vmem:[#allocation2 + $0x8] sm:$0xff] %v2831_v8  ;;  %v2810_v31 = vadd.f32 %v3496_v49, %v4668_v12  ;;  %v3498_v37 = vadd.f32 %v2764_v27, %v1538_v23 }
 0x1b0   : >> { %v2828_v1 = vmax.f32 %v2812_v46, 0.0  ;;  %v2813_v25 = vadd.f32 %v3497_v59, %v4668_v12 }
 0x1b1   : >> { %v2826_v44 = vmax.f32 %v2810_v31, 0.0  ;;  %v2811_v6 = vadd.f32 %v3498_v37, %v4668_v12 }
 0x1b2   : >> { %v2836_v28 = vmax.f32 %v2820_v51, %v2828_v1  ;;  %v2829_v24 = vmax.f32 %v2813_v25, 0.0 }
 0x1b3   : >> { %v2834_v30 = vmax.f32 %v2818_v32, %v2826_v44  ;;  %v2827_v63 = vmax.f32 %v2811_v6, 0.0 }
 0x1b4   : >> { %2844 = vst [vmem:[#allocation2 + $0x30] sm:$0xff] %v2836_v28  ;;  %v2837_v10 = vmax.f32 %v2821_v45, %v2829_v24 }
 0x1b5   : >> { %2842 = vst [vmem:[#allocation2 + $0x20] sm:$0xff] %v2834_v30  ;;  %v2835_v15 = vmax.f32 %v2819_v7, %v2827_v63  ;;  %v2848_v0 = vld [vmem:[#allocation2 + $0x10] ss:$2 sm:$0xff]  ;;  %v2856_v19 = vld [vmem:[#allocation2 + $0x11] ss:$2 sm:$0xff] }
 0x1b6   : >> { %v2846_v3 = vld [vmem:[#allocation2] ss:$2 sm:$0xff]  ;;  %v2854_v52 = vld [vmem:[#allocation2 + $0x1] ss:$2 sm:$0xff]  ;;  %2845 = vst [vmem:[#allocation2 + $0x38] sm:$0xff] %v2837_v10  ;;  %v2862_v48 = vmax.f32 %v2848_v0, %v2856_v19 }
 0x1b7   : >> { %v2861_v35 = vmax.f32 %v2846_v3, %v2854_v52  ;;  %2843 = vst [vmem:[#allocation2 + $0x28] sm:$0xff] %v2835_v15 }
 0x1b9   : >> { %v3228_v20 = vpack.c.bf16 %v2861_v35, %v2861_v35 }
 0x1bb   : >> { %3219 = vst [vmem:[%s4574_s21 + $0x1c] sm:$0xf] %v3228_v20 }
 0x1bd   : >> { %v2852_v56 = vld [vmem:[#allocation2 + $0x30] ss:$2 sm:$0xff]  ;;  %v2860_v58 = vld [vmem:[#allocation2 + $0x31] ss:$2 sm:$0xff]  ;;  %190 = sbr.rel (!%p188_p4) target bundleno = 24 (0x18), region = 89 }
 0x1be   : >> { %v2864_v9 = vmax.f32 %v2852_v56, %v2860_v58  ;;  %v2850_v18 = vld [vmem:[#allocation2 + $0x20] ss:$2 sm:$0xff]  ;;  %v2858_v29 = vld [vmem:[#allocation2 + $0x21] ss:$2 sm:$0xff] }
 0x1bf   : >> { %v2863_v57 = vmax.f32 %v2850_v18, %v2858_v29 }
 0x1c0   : >> { %v3231_v36 = vpack.c.bf16 %v2864_v9, %v2864_v9 }
 0x1c1   : >> { %v3235_v47 = vpack.c.bf16 %v2863_v57, %v2862_v48 }
 0x1c2   : >> { %3222 = vst [vmem:[%s4574_s21 + $0x28] sm:$0xf] %v3231_v36 }
 0x1c3   : >> { %3237 = vst [vmem:[%s4574_s21 + $0x20] sm:$0xff] %v3235_v47  }
 0x1c4 PF: > { %s13_s12 = sadd.s32 1, %s3666_s12  }
 0x1c5   : > { %p10_p5 = scmp.ge.s32.totalorder %s13_s12, 4  }
 0x1c7   :  { %12 = sbr.rel (!%p10_p5) target bundleno = 1 (0x1), region = 100 }

// kernel: improved_cnn_forward.5
= control target key start
LH: loop header
LB: loop body
LE: loop exit
PB: predicated region body
PF: predicated region fallthrough
CT: control target
= control target key end

     0   :  { %s4550_s12 = smov 0   ;;  %s5777_s0 = inlined_call_operand.vmem [shape: bf16[2,34,48,128], index: 0, kind: input, shape index: {}]   ;;  %s5778_s1 = inlined_call_operand.vmem [shape: bf16[9,128,128], index: 1, kind: input, shape index: {}]   ;;  %s5779_s2 = inlined_call_operand.vmem [shape: f32[1,128], index: 2, kind: input, shape index: {}]   ;;  %s5780_s3 = inlined_call_operand.vmem [shape: bf16[2,18,32,128], index: 3, kind: output, shape index: {}]  }
   0x1 LB: > { %s3415_s13 = sadd.s32 4294967295, %s4522_s12   ;;  %p3419_p0 = scmp.ge.s32.totalorder %s4522_s12, 1  ;;  %s4522_s12 = sphi %s4550_s12, %s13_s12  }
   0x2   : > { %p137_p1 = scmp.lt.s32.totalorder %s4522_s12, 3 }
   0x4   : > { %p138_p2 = pnand %p3419_p0, %p137_p1 }
   0x5   : > { %p161_p3 = scmp.lt.s32.totalorder (!%p138_p2), %s3415_s13, 1  ;;  %v4561_v0 = vld [vmem:[%s5779_s2] ss:$0 sm:$0xff] (!%p138_p2)  ;;  %v4528_v1 = vmov (!%p138_p2), 0   ;;  %s4581_s24 = smov (!%p138_p2), 0  }
   0x6   : > { %141 = sbr.rel (%p138_p2) target bundleno = 474 (0x1da), region = 32  ;;  %5794 = vst [vmem:[#allocation3_spill] sm:$0xff] (!%p138_p2), %v4561_v0 }
   0xd   : > { %s5859_s13 = smov (!%p161_p3, %s3415_s13), 1 }
   0xe   : > { %s4396_s16 = smul.u32 816, %s5859_s13 }
   0xf   : > { %s4397_s17 = smul.u32 288, %s5859_s13 }
  0x10   : > { %s4566_s20 = scalar_lea.vmem %s5777_s0, %s4396_s16 }
  0x11   : > { %s4571_s23 = scalar_lea.vmem %s5780_s3, %s4397_s17 }
  0x12   : > { %173 = vst [vmem:[%s4571_s23] sm:$0xf] %v4528_v1  ;;  %174 = vst [vmem:[%s4571_s23 + $0x4] sm:$0xf] %v4528_v1 }
  0x13   : > { %175 = vst [vmem:[%s4571_s23 + $0x8] sm:$0xf] %v4528_v1  ;;  %176 = vst [vmem:[%s4571_s23 + $0xc] sm:$0xf] %v4528_v1 }
  0x14   : > { %3422 = vst [vmem:[%s4571_s23 + $0x110] sm:$0xf] %v4528_v1  ;;  %3423 = vst [vmem:[%s4571_s23 + $0x114] sm:$0xf] %v4528_v1 }
  0x15   : > { %3424 = vst [vmem:[%s4571_s23 + $0x118] sm:$0xf] %v4528_v1  ;;  %3425 = vst [vmem:[%s4571_s23 + $0x11c] sm:$0xf] %v4528_v1 }
  0x16 LB: >> { %v4416_v2 = vld [vmem:[%s5778_s1 + $0x40] sm:$0xff]   ;;  %v4418_v4 = vld [vmem:[%s5778_s1 + $0x48] sm:$0xff]   ;;  %v4420_v6 = vld [vmem:[%s5778_s1 + $0x50] sm:$0xff]   ;;  %s3814_s15 = smul.u32 96, %s4526_s24  ;;  %vm212_vm0 = vsmask.f32 256  ;;  %s4526_s24 = sphi %s4581_s24, %s187_s24  }
  0x17   : >> { %v4417_v3 = vld [vmem:[%s5778_s1 + $0x100] sm:$0xff]   ;;  %3964 = vmatprep.subr.bf16.mxu1 %v4416_v2  ;;  %v4419_v5 = vld [vmem:[%s5778_s1 + $0x108] sm:$0xff]   ;;  %v4421_v7 = vld [vmem:[%s5778_s1 + $0x110] sm:$0xff]   ;;  %vm213_vm1 = vsmask.f32 4368 }
  0x18   : >> { %4092 = vmatprep.subr.bf16.mxu0 %v4417_v3  ;;  %3965 = vmatpush3.bf16.msra.mxu1 %v4416_v2  ;;  %v4422_v8 = vld [vmem:[%s5778_s1 + $0x58] sm:$0xff]   ;;  %v4424_v10 = vld [vmem:[%s5778_s1 + $0x60] sm:$0xff]   ;;  %s4618_s21 = scalar_lea.vmem %s4566_s20, %s3814_s15  ;;  %v4426_v12 = vld [vmem:[%s5778_s1 + $0x68] sm:$0xff]   ;;  %vm798_vm2 = vsmask.f32 3328 }
  0x19   : >> { %4093 = vmatpush3.bf16.msra.mxu0 %v4417_v3  ;;  %3966 = vmatprep.subr.bf16.mxu1 %v4418_v4  ;;  %v4423_v9 = vld [vmem:[%s5778_s1 + $0x118] sm:$0xff]   ;;  %v4425_v11 = vld [vmem:[%s5778_s1 + $0x120] sm:$0xff]   ;;  %v4627_v14 = vld [vmem:[%s4618_s21 + $0x8] sm:$0xf]  ;;  %vm799_vm4 = vsmask.f32 7440 }
  0x1a   : >> { %4094 = vmatprep.subr.bf16.mxu0 %v4419_v5  ;;  %v4624_v13 = vld [vmem:[%s4618_s21 + $0x4] sm:$0xf]  ;;  %v4630_v15 = vld [vmem:[%s4618_s21 + $0x1c] sm:$0xf]  ;;  %v4427_v16 = vld [vmem:[%s5778_s1 + $0x128] sm:$0xff]   ;;  %v230_v18 = vshrl.u32 %v4627_v14, 16 }
  0x1b   : >> { %v221_v17 = vshrl.u32 %v4624_v13, 16  ;;  %v4638_v19 = vld [vmem:[%s4618_s21 + $0x20] sm:$0xf]  ;;  %v3449_v20 = vcombine.low %v4624_v13, %v4627_v14  ;;  %v1217_v21 = vshrl.u32 %v4630_v15, 16  ;;  %v4647_v24 = vld [vmem:[%s4618_s21 + $0xc] sm:$0xf]  ;;  %vm5039_vm3 = vmor %vm212_vm0, %vm213_vm1 }
  0x1c   : >> { %3967 = vmatpush3.bf16.msra.mxu1 %v4418_v4  ;;  %v1226_v22 = vshrl.u32 %v4638_v19, 16  ;;  %v3587_v23 = vcombine.low %v4630_v15, %v4638_v19  ;;  %v4428_v25 = vld [vmem:[%s5778_s1 + $0x70] sm:$0xff]   ;;  %v224_v27 = vshll.u32 %v4624_v13, 16  ;;  %v239_v28 = vshrl.u32 %v4647_v24, 16  ;;  %v4430_v33 = vld [vmem:[%s5778_s1 + $0x78] sm:$0xff]   ;;  %v4435_v49 = vld [vmem:[%s5778_s1] sm:$0xff]  }
  0x1d   : >> { %4095 = vmatpush3.bf16.msra.mxu0 %v4419_v5  ;;  %3968 = vmatprep.subr.bf16.mxu1 %v4420_v6  ;;  %v4429_v26 = vld [vmem:[%s5778_s1 + $0x130] sm:$0xff]   ;;  %v4657_v29 = vrot.slane %v221_v17, 7  ;;  %v4659_v30 = vrot.slane %v230_v18, 7  ;;  %v233_v31 = vshll.u32 %v4627_v14, 16  ;;  %v1220_v32 = vshll.u32 %v4630_v15, 16  ;;  %v4431_v37 = vld [vmem:[%s5778_s1 + $0x138] sm:$0xff]   ;;  %vm5088_vm5 = vmor %vm798_vm2, %vm799_vm4 }
  0x1e   : >> { %4096 = vmatprep.subr.bf16.mxu0 %v4421_v7  ;;  %3980 = vmatprep.mubr.bf16.mxu1 %v3449_v20  ;;  %v4666_v34 = vrot.slane %v1217_v21, 7  ;;  %v4668_v35 = vrot.slane %v1226_v22, 7  ;;  %v4671_v36 = vld [vmem:[%s4618_s21 + $0x10] sm:$0xf]  ;;  %v4677_v38 = vld [vmem:[%s4618_s21 + $0x24] sm:$0xf] }
  0x1f   : >> { %4108 = vmatprep.mubr.bf16.mxu0 %v3587_v23  ;;  %v4680_v39 = vld [vmem:[%s4618_s21 + $0x28] sm:$0xf]  ;;  %v4682_v40 = vrot.slane %v239_v28, 7  ;;  %v248_v41 = vshrl.u32 %v4671_v36, 16  ;;  %v1235_v42 = vshrl.u32 %v4677_v38, 16  ;;  %v1229_v44 = vshll.u32 %v4638_v19, 16 }
  0x20   : >> { %3969 = vmatpush3.bf16.msra.mxu1 %v4420_v6  ;;  %v1244_v43 = vshrl.u32 %v4680_v39, 16  ;;  %v242_v45 = vshll.u32 %v4647_v24, 16  ;;  %v251_v52 = vshll.u32 %v4671_v36, 16  ;;  %v1238_v53 = vshll.u32 %v4677_v38, 16  ;;  %v4437_v55 = vld [vmem:[%s5778_s1 + $0x140] sm:$0xff]   ;;  %v4439_v22 = vld [vmem:[%s5778_s1 + $0x148] sm:$0xff]  }
  0x21   : >> { %4097 = vmatpush3.bf16.msra.mxu0 %v4421_v7  ;;  %3970 = vmatprep.subr.bf16.mxu1 %v4422_v8  ;;  %v4695_v50 = vrot.slane %v1235_v42, 7  ;;  %v1247_v54 = vshll.u32 %v4680_v39, 16  ;;  %v4705_v56 = vld [vmem:[%s4618_s21 + $0x1c] sm:$0xf]  ;;  %v4708_v58 = vrot.slane %v248_v41, 7  ;;  %v3450_v3 = vcombine.low %v4647_v24, %v4671_v36 }
  0x22   : >> { %4098 = vmatprep.subr.bf16.mxu0 %v4423_v9  ;;  %v4710_v59 = vrot.slane %v1244_v43, 7  ;;  %v4713_v60 = vld [vmem:[%s4618_s21 + $0x20] sm:$0xf]  ;;  %v261_v61 = vshrl.u32 %v4705_v56, 16  ;;  %v4719_v1 = vld [vmem:[%s4618_s21 + $0x34] sm:$0xf]  ;;  %v3588_v4 = vcombine.low %v4677_v38, %v4680_v39  ;;  %v4796_v13 = vor.u32 %v1229_v44, %v4668_v35 }
  0x23   : >> { %5795 = vst [vmem:[#allocation4_spill] sm:$0xff] %v4695_v50  ;;  %v270_v63 = vshrl.u32 %v4713_v60, 16  ;;  %v4722_v2 = vld [vmem:[%s4618_s21 + $0x38] sm:$0xf]  ;;  %v1257_v5 = vshrl.u32 %v4719_v1, 16 }
  0x24   : >> { %3971 = vmatpush3.bf16.msra.mxu1 %v4422_v8  ;;  %v1266_v6 = vshrl.u32 %v4722_v2, 16  ;;  %v4731_v7 = vld [vmem:[%s4618_s21 + $0x24] sm:$0xf]  ;;  %v4438_v8 = vld [vmem:[%s5778_s1 + $0x8] sm:$0xff]   ;;  %v4765_v41 = vld [vmem:[%s4618_s21 + $0x3c] sm:$0xf]  ;;  %v4889_v36 = vor.u32 %v1247_v54, %v4710_v59 }
  0x25   : >> { %4099 = vmatpush3.bf16.msra.mxu0 %v4423_v9  ;;  %3972 = vmatprep.subr.bf16.mxu1 %v4424_v10  ;;  %v264_v9 = vshll.u32 %v4705_v56, 16  ;;  %v4743_v17 = vrot.slane %v270_v63, 7  ;;  %v4748_v21 = vld [vmem:[%s4618_s21 + $0x28] sm:$0xf]  ;;  %v4753_v23 = vrot.slane %v1257_v5, 7  ;;  %v4445_v63 = vld [vmem:[%s5778_s1 + $0x150] sm:$0xff]  }
  0x26   : >> { %4100 = vmatprep.subr.bf16.mxu0 %v4425_v11  ;;  %v288_v28 = vshrl.u32 %v4748_v21, 16  ;;  %v4768_v42 = vld [vmem:[%s4618_s21 + $0x40] sm:$0xf]  ;;  %v3452_v14 = vcombine.low %v4731_v7, %v4748_v21  ;;  %v4446_v19 = vld [vmem:[%s5778_s1 + $0x18] sm:$0xff]   ;;  %v4826_v51 = vld [vmem:[%s4618_s21 + $0x50] sm:$0xf] }
  0x27   : >> { %v1284_v5 = vshrl.u32 %v4768_v42, 16  ;;  %v4447_v62 = vld [vmem:[%s5778_s1 + $0x158] sm:$0xff]   ;;  %5797 = vst [vmem:[#allocation6_spill] sm:$0xff] %v4826_v51  ;;  %v1306_v47 = vshrl.u32 %v4826_v51, 16  ;;  %v4846_v15 = vld [vmem:[%s4618_s21 + $0x40] sm:$0xf] }
  0x28   : >> { %3973 = vmatpush3.bf16.msra.mxu1 %v4424_v10  ;;  %v4835_v46 = vld [vmem:[%s4618_s21 + $0x3c] sm:$0xf]  ;;  %v4874_v10 = vor.u32 %v251_v52, %v4708_v58  ;;  %5800 = vst [vmem:[#allocation9_spill] sm:$0xff] %v4889_v36  ;;  %v4454_v54 = vld [vmem:[%s5778_s1 + $0x28] sm:$0xff]   ;;  %v5801_v59 = vshll.u32 %v4713_v60, 16  ;;  %v5803_v39 = vshll.u32 %v4748_v21, 16 }
  0x29   : >> { %4101 = vmatpush3.bf16.msra.mxu0 %v4425_v11  ;;  %3974 = vmatprep.subr.bf16.mxu1 %v4426_v12  ;;  %v3451_v11 = vcombine.low %v4705_v56, %v4713_v60  ;;  %v4829_v57 = vrot.slane %v1284_v5, 7  ;;  %v319_v20 = vshrl.u32 %v4835_v46, 16  ;;  %v4455_v21 = vld [vmem:[%s5778_s1 + $0x168] sm:$0xff]  }
  0x2a   : >> { %4102 = vmatprep.subr.bf16.mxu0 %v4427_v16  ;;  %v4981_v36 = vld [vmem:[%s4618_s21 + $0x6c] sm:$0xf] }
  0x2b   : >> { %v4891_v38 = vrot.slane %v319_v20, 7  ;;  %v4908_v20 = vor.u32 %v5801_v59, %v4743_v17  ;;  %5811 = vst [vmem:[#allocation16_spill] sm:$0xff] %v4981_v36 }
  0x2c   : >> { %3975 = vmatpush3.bf16.msra.mxu1 %v4426_v12  ;;  %v279_v12 = vshrl.u32 %v4731_v7, 16 }
  0x2d   : >> { %4103 = vmatpush3.bf16.msra.mxu0 %v4427_v16  ;;  %3976 = vmatprep.subr.bf16.mxu1 %v4428_v25  ;;  %v4741_v16 = vrot.slane %v261_v61, 7  ;;  %v1275_v61 = vshrl.u32 %v4765_v41, 16 }
  0x2e   : >> { %4104 = vmatprep.subr.bf16.mxu0 %v4429_v26  ;;  %v4770_v43 = vrot.slane %v279_v12, 7 }
  0x2f   : >> { %v4817_v12 = vrot.slane %v1275_v61, 7 }
  0x30   : >> { %3977 = vmatpush3.bf16.msra.mxu1 %v4428_v25  ;;  %v4755_v25 = vrot.slane %v1266_v6, 7  ;;  %v4791_v6 = vor.u32 %v1220_v32, %v4666_v34 }
  0x31   : >> { %4105 = vmatpush3.bf16.msra.mxu0 %v4429_v26  ;;  %3978 = vmatprep.subr.bf16.mxu1 %v4430_v33  ;;  %v4453_v26 = vld [vmem:[%s5778_s1 + $0x160] sm:$0xff]  }
  0x32   : >> { %4106 = vmatprep.subr.bf16.mxu0 %v4431_v37  ;;  %5796 = vst [vmem:[#allocation5_spill] sm:$0xff] %v4791_v6 }
  0x34   : >> { %3979 = vmatpush3.bf16.msra.mxu1 %v4430_v33  ;;  %v3589_v33 = vcombine.low %v4719_v1, %v4722_v2 }
  0x35   : >> { %4107 = vmatpush3.bf16.msra.mxu0 %v4431_v37  ;;  %3996 = vmatprep.subr.bf16.mxu1 %v4435_v49  ;;  %v4443_v37 = vld [vmem:[%s5778_s1 + $0x10] sm:$0xff]  }
  0x36   : >> { %4124 = vmatprep.subr.bf16.mxu0 %v4437_v55 }
  0x37   : >> { %3981 = vmatmul.mubr.bf16.vlgmr.msra.gmra.mrb[0].mxu1 %v3450_v3  ;;  %v4779_v3 = vor.u32 %v224_v27, %v4657_v29  ;;  %v4801_v27 = vld [vmem:[%s4618_s21 + $0x34] sm:$0xf] }
  0x38   : >> { %4109 = vmatmul.mubr.bf16.vlgmr.msra.gmra.mrb[0].mxu0 %v3588_v4  ;;  %3997 = vmatpush3.bf16.msra.mxu1 %v4435_v49  ;;  %v4784_v4 = vor.u32 %v233_v31, %v4659_v30  ;;  %v4804_v31 = vld [vmem:[%s4618_s21 + $0x38] sm:$0xf]  ;;  %v301_v32 = vshrl.u32 %v4801_v27, 16  ;;  %v4861_v49 = vrot.slane %v1306_v47, 7  ;;  %v4879_v47 = vor.u32 %v1238_v53, %v4695_v50 }
  0x39   : >> { %4125 = vmatpush3.bf16.msra.mxu0 %v4437_v55  ;;  %3998 = vmatprep.subr.bf16.mxu1 %v4438_v8  ;;  %v4806_v55 = vrot.slane %v288_v28, 7  ;;  %v310_v44 = vshrl.u32 %v4804_v31, 16  ;;  %v3590_v28 = vcombine.low %v4765_v41, %v4768_v42  ;;  %v4897_v53 = vor.u32 %v264_v9, %v4741_v16  ;;  %v4913_v9 = vld [vmem:[%s4618_s21 + $0x4c] sm:$0xf] }
  0x3a   : >> { %4126 = vmatprep.subr.bf16.mxu0 %v4439_v22  ;;  %3984 = vmatprep.mubr.bf16.mxu1 %v3451_v11  ;;  %v4815_v11 = vld [vmem:[%s4618_s21 + $0x4c] sm:$0xf]  ;;  %v4849_v18 = vrot.slane %v301_v32, 7  ;;  %v5808_v6 = vshll.u32 %v4804_v31, 16 }
  0x3b   : >> { %4112 = vmatprep.mubr.bf16.mxu0 %v3589_v33  ;;  %v1297_v48 = vshrl.u32 %v4815_v11, 16  ;;  %v4840_v33 = vor.u32 %v242_v45, %v4682_v40  ;;  %v4851_v61 = vrot.slane %v310_v44, 7  ;;  %v3591_v24 = vcombine.low %v4815_v11, %v4826_v51  ;;  %v4866_v44 = vld [vmem:[%s4618_s21 + $0x54] sm:$0xf]  ;;  %v4984_v51 = vld [vmem:[%s4618_s21 + $0x70] sm:$0xf] }
  0x3c   : >> { %3999 = vmatpush3.bf16.msra.mxu1 %v4438_v8  ;;  %v304_v8 = vshll.u32 %v4801_v27, 16  ;;  %v328_v45 = vshrl.u32 %v4846_v15, 16  ;;  %5798 = vst [vmem:[#allocation7_spill] sm:$0xff] %v4866_v44  ;;  %v4926_v60 = vor.u32 %v5803_v39, %v4806_v55  ;;  %5812 = vst [vmem:[#allocation17_spill] sm:$0xff] %v4984_v51 }
  0x3d   : >> { %4127 = vmatpush3.bf16.msra.mxu0 %v4439_v22  ;;  %4000 = vmatprep.subr.bf16.mxu1 %v4443_v37  ;;  %v3453_v22 = vcombine.low %v4801_v27, %v4804_v31  ;;  %v4451_v27 = vld [vmem:[%s5778_s1 + $0x20] sm:$0xff]   ;;  %v4859_v5 = vrot.slane %v1297_v48, 7  ;;  %v5814_v31 = vshll.u32 %v4846_v15, 16 }
  0x3e   : >> { %4128 = vmatprep.subr.bf16.mxu0 %v4445_v63  ;;  %v330_v58 = vrot.slane %v328_v45, 7  ;;  %v4937_v48 = vld [vmem:[%s4618_s21 + $0x64] sm:$0xf] }
  0x3f   : >> { %3985 = vmatmul.mubr.bf16.gmra.mrb[4].mxu1 %v3452_v14  ;;  %5805 = vst [vmem:[#allocation11_spill] sm:$0xff] %v4937_v48  ;;  %v4461_v14 = vld [vmem:[%s5778_s1 + $0x170] sm:$0xff]  }
  0x40   : >> { %4113 = vmatmul.mubr.bf16.gmra.mrb[4].mxu0 %v3590_v28  ;;  %4001 = vmatpush3.bf16.msra.mxu1 %v4443_v37  ;;  %v4883_v37 = vld [vmem:[%s4618_s21 + $0x58] sm:$0xf]  ;;  %v1315_v28 = vshrl.u32 %v4866_v44, 16 }
  0x41   : >> { %4129 = vmatpush3.bf16.msra.mxu0 %v4445_v63  ;;  %4002 = vmatprep.subr.bf16.mxu1 %v4446_v19  ;;  %5799 = vst [vmem:[#allocation8_spill] sm:$0xff] %v4883_v37  ;;  %v1324_v52 = vshrl.u32 %v4883_v37, 16  ;;  %v3454_v63 = vcombine.low %v4835_v46, %v4846_v15  ;;  %v3592_v56 = vcombine.low %v4866_v44, %v4883_v37  ;;  %v210_v37 = vld [vmem:[%s4618_s21 + $0x54] sm:$0xf] }
  0x42   : >> { %4130 = vmatprep.subr.bf16.mxu0 %v4447_v62  ;;  %3988 = vmatprep.mubr.bf16.mxu1 %v3453_v22  ;;  %v4916_v22 = vld [vmem:[%s4618_s21 + $0x50] sm:$0xf]  ;;  %v4931_v59 = vrot.slane %v1315_v28, 7  ;;  %v1337_v28 = vshrl.u32 %v4937_v48, 16  ;;  %v4971_v44 = vor.u32 %v5808_v6, %v4851_v61  ;;  %v3594_v15 = vcombine.low %v4981_v36, %v4984_v51 }
  0x43   : >> { %4116 = vmatprep.mubr.bf16.mxu0 %v3591_v24  ;;  %v5802_v24 = vshll.u32 %v4731_v7, 16  ;;  %v341_v7 = vshrl.u32 %v4913_v9, 16  ;;  %v4939_v32 = vrot.slane %v1324_v52, 7  ;;  %v3455_v55 = vcombine.low %v4913_v9, %v4916_v22 }
  0x44   : >> { %4003 = vmatpush3.bf16.msra.mxu1 %v4446_v19  ;;  %v4929_v19 = vor.u32 %v304_v8, %v4849_v18  ;;  %5804 = vst [vmem:[#allocation10_spill] sm:$0xff] %v4931_v59  ;;  %v4948_v8 = vld [vmem:[%s4618_s21 + $0x68] sm:$0xf]  ;;  %v353_v52 = vshll.u32 %v4916_v22, 16 }
  0x45   : >> { %v4921_v45 = vor.u32 %v5802_v24, %v4770_v43  ;;  %4131 = vmatpush3.bf16.msra.mxu0 %v4447_v62  ;;  %4004 = vmatprep.subr.bf16.mxu1 %v4451_v27  ;;  %v350_v24 = vshrl.u32 %v4916_v22, 16  ;;  %5806 = vst [vmem:[#allocation12_spill] sm:$0xff] %v4939_v32  ;;  %v344_v62 = vshll.u32 %v4913_v9, 16  ;;  %5807 = vst [vmem:[#allocation13_spill] sm:$0xff] %v4948_v8  ;;  %v4951_v39 = vrot.slane %v341_v7, 7  ;;  %v4459_v32 = vld [vmem:[%s5778_s1 + $0x30] sm:$0xff]  }
  0x46   : >> { %4132 = vmatprep.subr.bf16.mxu0 %v4453_v26  ;;  %v1346_v0 = vshrl.u32 %v4948_v8, 16  ;;  %v211_v7 = vld [vmem:[%s4618_s21 + $0x58] sm:$0xf]  ;;  %v359_v22 = vshrl.u32 %v210_v37, 16 }
  0x47   : >> { %3989 = vmatmul.mubr.bf16.gmra.mrb[8].mxu1 %v3454_v63  ;;  %v4960_v9 = vrot.slane %v350_v24, 7  ;;  %v3593_v63 = vcombine.low %v4937_v48, %v4948_v8  ;;  %v362_v24 = vshll.u32 %v210_v37, 16  ;;  %v368_v48 = vshrl.u32 %v211_v7, 16  ;;  %v4462_v8 = vld [vmem:[%s5778_s1 + $0x38] sm:$0xff]  }
  0x48   : >> { %4117 = vmatmul.mubr.bf16.gmra.mrb[8].mxu0 %v3592_v56  ;;  %4005 = vmatpush3.bf16.msra.mxu1 %v4451_v27  ;;  %v4973_v27 = vrot.slane %v1337_v28, 7  ;;  %v4976_v59 = vrot.slane %v1346_v0, 7  ;;  %v4978_v50 = vrot.slane %v359_v22, 7  ;;  %v4993_v28 = vor.u32 %v5814_v31, %v330_v58 }
  0x49   : >> { %4133 = vmatpush3.bf16.msra.mxu0 %v4453_v26  ;;  %4006 = vmatprep.subr.bf16.mxu1 %v4454_v54  ;;  %v5813_v26 = vshll.u32 %v4835_v46, 16  ;;  %v371_v56 = vshll.u32 %v211_v7, 16  ;;  %v1355_v0 = vshrl.u32 %v4981_v36, 16  ;;  %v1364_v22 = vshrl.u32 %v4984_v51, 16  ;;  %v3606_v36 = vld [vmem:[%s4618_s21 + $0x28] sm:$0xf] }
  0x4a   : >> { %5809 = vst [vmem:[#allocation14_spill] sm:$0xff] %v4973_v27  ;;  %4134 = vmatprep.subr.bf16.mxu0 %v4455_v21  ;;  %3992 = vmatprep.mubr.bf16.mxu1 %v3455_v55  ;;  %5810 = vst [vmem:[#allocation15_spill] sm:$0xff] %v4976_v59  ;;  %v3456_v55 = vcombine.low %v210_v37, %v211_v7  ;;  %v370_v46 = vrot.slane %v368_v48, 7  ;;  %v4463_v37 = vld [vmem:[%s5778_s1 + $0x178] sm:$0xff]   ;;  %v5815_v58 = vshll.u32 %v4719_v1, 16 }
  0x4b   : >> { %v4989_v6 = vor.u32 %v5813_v26, %v4891_v38  ;;  %4120 = vmatprep.mubr.bf16.mxu0 %v3593_v63  ;;  %v5011_v7 = vrot.slane %v1355_v0, 7  ;;  %v5018_v31 = vor.u32 %v353_v52, %v4960_v9  ;;  %v192_v26 = vld [vmem:[%s4618_s21] sm:$0x8]  ;;  %v5022_v1 = vor.u32 %v362_v24, %v4978_v50  ;;  %v3607_v27 = vld [vmem:[%s4618_s21 + $0x2c] sm:$0x1] }
  0x4c   : >> { %4007 = vmatpush3.bf16.msra.mxu1 %v4454_v54  ;;  %v5009_v63 = vor.u32 %v5815_v58, %v4753_v23  ;;  %v5015_v54 = vor.u32 %v344_v62, %v4951_v39  ;;  %v5818_v62 = vshll.u32 %v4765_v41, 16  ;;  %v5034_v52 = vrot.slane %v1364_v22, 7  ;;  %v4464_v24 = vld [vmem:[%s5778_s1 + $0x80] sm:$0xff]   ;;  %v3603_v41 = vld [vmem:[%s4618_s21 + $0x1c] sm:$0xf] }
  0x4d   : >> { %4135 = vmatpush3.bf16.msra.mxu0 %v4455_v21  ;;  %4008 = vmatprep.subr.bf16.mxu1 %v4459_v32  ;;  %5816 = vst [vmem:[#allocation18_spill] sm:$0xff] %v5011_v7  ;;  %v5817_v21 = vshll.u32 %v4722_v2, 16  ;;  %v216_v48 = vshrl.u32 %v192_v26, 16  ;;  %v5822_v22 = vshll.u32 %v4768_v42, 16  ;;  %v1831_v42 = vshll.u32 %v3603_v41, 16 }
  0x4e   : >> { %4136 = vmatprep.subr.bf16.mxu0 %v4461_v14  ;;  %v5032_v58 = vor.u32 %v5818_v62, %v4817_v12  ;;  %5819 = vst [vmem:[#allocation19_spill] sm:$0xff] %v5034_v52  ;;  %v5823_v62 = vshll.u32 %v4815_v11, 16  ;;  %v1828_v52 = vshrl.u32 %v3603_v41, 16  ;;  %v5826_v41 = vrot.slane %v4659_v30, 4 }
  0x4f   : >> { %v5027_v0 = vor.u32 %v5817_v21, %v4755_v25  ;;  %3993 = vmatmul.mubr.bf16.gmra.mrb[12].mxu1 %v3456_v55  ;;  %v3604_v21 = vld [vmem:[%s4618_s21 + $0x20] sm:$0xf]  ;;  %v5045_v55 = vor.u32 %v371_v56, %v370_v46  ;;  %v5050_v26 = vor.u32 %v5822_v22, %v4829_v57  ;;  %v3605_v46 = vld [vmem:[%s4618_s21 + $0x24] sm:$0xf]  ;;  %v5827_v30 = vrot.slane %v4682_v40, 4 }
  0x50   : >> { %4121 = vmatmul.mubr.bf16.gmra.mrb[12].mxu0 %v3594_v15  ;;  %4009 = vmatpush3.bf16.msra.mxu1 %v4459_v32  ;;  %v5055_v51 = vor.u32 %v5823_v62, %v4859_v5  ;;  %v3429_v32 = vrot.slane %v216_v48, 11  ;;  %v5825_v15 = vrot.slane %v4657_v29, 4  ;;  %v5066_v57 = vld [vmem:[%s5778_s1 + $0x180] sm:$0xff]   ;;  %v1837_v11 = vshll.u32 %v3604_v21, 16 }
  0x51   : >> { %4137 = vmatpush3.bf16.msra.mxu0 %v4461_v14  ;;  %4010 = vmatprep.subr.bf16.mxu1 %v4462_v8  ;;  %v1841_v14 = vshrl.u32 %v3604_v21, 16  ;;  %v1847_v22 = vshll.u32 %v3605_v46, 16  ;;  %v1851_v48 = vshrl.u32 %v3605_v46, 16  ;;  %v1830_v62 = vrot.slane %v1828_v52, 4  ;;  %v4466_v46 = vld [vmem:[%s5778_s1 + $0x88] sm:$0xff]  }
  0x52   : >> { %5824 = vst [vmem:[#allocation20_spill] sm:$0xff] %v5055_v51  ;;  %v236_v56 = vsel %vm5039_vm3, %v5825_v15, %v4784_v4  ;;  %4138 = vmatprep.subr.bf16.mxu0 %v4463_v37  ;;  %v227_v29 = vsel %vm5039_vm3, %v3429_v32, %v4779_v3  ;;  %v1833_v4 = vrot.slane %v1831_v42, 5  ;;  %v245_v15 = vsel %vm5039_vm3, %v5826_v41, %v4840_v33 }
  0x53   : >> { %v3465_v7 = vcombine.low %v227_v29, %v236_v56  ;;  %v1839_v59 = vrot.slane %v1837_v11, 5  ;;  %v1843_v51 = vrot.slane %v1841_v14, 4  ;;  %v1849_v21 = vrot.slane %v1847_v22, 5 }
  0x54   : >> { %4011 = vmatpush3.bf16.msra.mxu1 %v4462_v8  ;;  %v1834_v3 = vor.u32 %v1833_v4, %v1830_v62  ;;  %v1853_v52 = vrot.slane %v1851_v48, 4  ;;  %v254_v33 = vsel %vm5039_vm3, %v5827_v30, %v4874_v10  ;;  %v1857_v8 = vshll.u32 %v3606_v36, 16 }
  0x55   : >> { %4139 = vmatpush3.bf16.msra.mxu0 %v4463_v37  ;;  %4028 = vmatprep.subr.bf16.mxu1 %v4464_v24  ;;  %v1844_v56 = vor.u32 %v1843_v51, %v1839_v59  ;;  %v3466_v37 = vcombine.low %v245_v15, %v254_v33  ;;  %v1861_v42 = vshrl.u32 %v3606_v36, 16  ;;  %v1867_v11 = vshll.u32 %v3607_v27, 16  ;;  %v197_v27 = vld [vmem:[%s4618_s21 + $0x18] sm:$0x8] }
  0x56   : >> { %4012 = vmatprep.mubr.bf16.mxu1 %v3465_v7  ;;  %4156 = vmatprep.subr.bf16.mxu0 %v5066_v57  ;;  %v1835_v40 = vrot.slane %v1834_v3, 4  ;;  %v1854_v10 = vor.u32 %v1853_v52, %v1849_v21  ;;  %v1859_v14 = vrot.slane %v1857_v8, 5  ;;  %v5830_v7 = vrot.slane %v4666_v34, 4  ;;  %v3608_v34 = vld [vmem:[%s4618_s21 + $0x34] sm:$0xf] }
  0x57   : >> { %v1845_v48 = vrot.slane %v1844_v56, 4  ;;  %4013 = vmatmul.mubr.bf16.vlgmr.msra.gmra.mrb[0].mxu1 %v3466_v37  ;;  %v1863_v51 = vrot.slane %v1861_v42, 4  ;;  %v1869_v36 = vrot.slane %v1867_v11, 5  ;;  %v268_v29 = vrot.slane %v4741_v16, 4  ;;  %v3609_v15 = vld [vmem:[%s4618_s21 + $0x38] sm:$0xf] }
  0x58   : >> { %v5098_v22 = vsel %vm5039_vm3, %v5830_v7, %v4796_v13  ;;  %v1840_v62 = vsel %vm5088_vm5, %v1835_v40, %v1839_v59  ;;  %v1855_v4 = vrot.slane %v1854_v10, 4  ;;  %4029 = vmatpush3.bf16.msra.mxu1 %v4464_v24  ;;  %v256_v41 = vshrl.u32 %v197_v27, 16  ;;  %v3610_v24 = vld [vmem:[%s4618_s21 + $0x3c] sm:$0xf]  ;;  %v3612_v10 = vld [vmem:[%s4618_s21 + $0x44] sm:$0x1] }
  0x59   : >> { %v5831_v13 = vrot.slane %v4668_v35, 4  ;;  %v1850_v52 = vsel %vm5088_vm5, %v1845_v48, %v1849_v21  ;;  %v1864_v16 = vor.u32 %v1863_v51, %v1859_v14  ;;  %4030 = vmatprep.subr.bf16.mxu1 %v4466_v46  ;;  %v276_v59 = vsel %vm5039_vm3, %v268_v29, %v4908_v20  ;;  %v4468_v35 = vld [vmem:[%s5778_s1 + $0x90] sm:$0xff]   ;;  %v3611_v21 = vld [vmem:[%s4618_s21 + $0x40] sm:$0xf]  ;;  %v4467_v20 = vld [vmem:[%s5778_s1 + $0x188] sm:$0xff]  }
  0x5a   : >> { %v1872_v30 = vshrl.u32 %v3608_v34, 16  ;;  %v3639_v33 = vcombine.low %v1840_v62, %v1850_v52  ;;  %v3430_v8 = vrot.slane %v256_v41, 11  ;;  %v1875_v56 = vshll.u32 %v3608_v34, 16  ;;  %v4470_v27 = vld [vmem:[%s5778_s1 + $0x98] sm:$0xff]  }
  0x5b   : >> { %v5111_v3 = vsel %vm5039_vm3, %v5831_v13, %v4879_v47  ;;  %v1860_v47 = vsel %vm5088_vm5, %v1855_v4, %v1859_v14  ;;  %v1865_v37 = vrot.slane %v1864_v16, 4  ;;  %v1881_v11 = vshll.u32 %v3609_v15, 16 }
  0x5c   : >> { %v1874_v42 = vrot.slane %v1872_v30, 4  ;;  %v1885_v40 = vshrl.u32 %v3609_v15, 16  ;;  %4140 = vmatprep.mubr.bf16.mxu0 %v3639_v33  ;;  %4031 = vmatpush3.bf16.msra.mxu1 %v4466_v46  ;;  %v267_v7 = vsel %vm5039_vm3, %v3430_v8, %v4897_v53  ;;  %v1877_v48 = vrot.slane %v1875_v56, 5 }
  0x5d   : >> { %v1891_v14 = vshll.u32 %v3610_v24, 16  ;;  %v1895_v51 = vshrl.u32 %v3610_v24, 16  ;;  %v1870_v29 = vsel %vm5088_vm5, %v1865_v37, %v1869_v36  ;;  %v3467_v62 = vcombine.low %v267_v7, %v276_v59  ;;  %4032 = vmatprep.subr.bf16.mxu1 %v4468_v35  ;;  %v4469_v37 = vld [vmem:[%s5778_s1 + $0x190] sm:$0xff]  }
  0x5e   : >> { %v1883_v4 = vrot.slane %v1881_v11, 5  ;;  %v1887_v41 = vrot.slane %v1885_v40, 4  ;;  %v3640_v46 = vcombine.low %v1860_v47, %v1870_v29  ;;  %v1878_v34 = vor.u32 %v1877_v48, %v1874_v42  ;;  %v202_v47 = vld [vmem:[%s4618_s21 + $0x30] sm:$0x8]  ;;  %v4472_v48 = vld [vmem:[%s5778_s1 + $0xa0] sm:$0xff]   ;;  %v4471_v29 = vld [vmem:[%s5778_s1 + $0x198] sm:$0xff]  }
  0x5f   : >> { %v1893_v15 = vrot.slane %v1891_v14, 5  ;;  %v277_v53 = vrot.slane %v4743_v17, 4  ;;  %4016 = vmatprep.mubr.bf16.mxu1 %v3467_v62  ;;  %v286_v52 = vrot.slane %v4770_v43, 4  ;;  %v1897_v16 = vrot.slane %v1895_v51, 4  ;;  %v3614_v11 = vld [vmem:[%s4618_s21 + $0x50] sm:$0xf] }
  0x60   : >> { %v1888_v13 = vor.u32 %v1887_v41, %v1883_v4  ;;  %v1901_v24 = vshll.u32 %v3611_v21, 16  ;;  %4141 = vmatmul.mubr.bf16.vlgmr.msra.gmra.mrb[0].mxu0 %v3640_v46  ;;  %v1879_v30 = vrot.slane %v1878_v34, 4  ;;  %v1905_v59 = vshrl.u32 %v3611_v21, 16  ;;  %4033 = vmatpush3.bf16.msra.mxu1 %v4468_v35  ;;  %v3615_v62 = vld [vmem:[%s4618_s21 + $0x54] sm:$0xf] }
  0x61   : >> { %v285_v36 = vsel %vm5039_vm3, %v277_v53, %v4921_v45  ;;  %v1911_v33 = vshll.u32 %v3612_v10, 16  ;;  %4157 = vmatpush3.bf16.msra.mxu0 %v5066_v57  ;;  %v294_v43 = vsel %vm5039_vm3, %v286_v52, %v4926_v60  ;;  %v1898_v8 = vor.u32 %v1897_v16, %v1893_v15  ;;  %4034 = vmatprep.subr.bf16.mxu1 %v4470_v27  ;;  %v3613_v45 = vld [vmem:[%s4618_s21 + $0x4c] sm:$0xf]  ;;  %v3616_v53 = vld [vmem:[%s4618_s21 + $0x58] sm:$0xf] }
  0x62   : >> { %v1889_v17 = vrot.slane %v1888_v13, 4  ;;  %v1903_v56 = vrot.slane %v1901_v24, 5  ;;  %4158 = vmatprep.subr.bf16.mxu0 %v4467_v20  ;;  %v1884_v35 = vsel %vm5088_vm5, %v1879_v30, %v1883_v4  ;;  %v3468_v21 = vcombine.low %v285_v36, %v294_v43  ;;  %v3617_v30 = vld [vmem:[%s4618_s21 + $0x5c] sm:$0x1] }
  0x63   : >> { %v1907_v57 = vrot.slane %v1905_v59, 4  ;;  %v1913_v42 = vrot.slane %v1911_v33, 5  ;;  %v1899_v40 = vrot.slane %v1898_v8, 4  ;;  %v296_v10 = vshrl.u32 %v202_v47, 16 }
  0x64   : >> { %v1894_v60 = vsel %vm5088_vm5, %v1889_v17, %v1893_v15  ;;  %v308_v7 = vrot.slane %v4849_v18, 4  ;;  %4017 = vmatmul.mubr.bf16.gmra.mrb[4].mxu1 %v3468_v21  ;;  %v1916_v4 = vshrl.u32 %v3613_v45, 16  ;;  %v1919_v41 = vshll.u32 %v3613_v45, 16 }
  0x65   : >> { %v3641_v14 = vcombine.low %v1884_v35, %v1894_v60  ;;  %v1908_v51 = vor.u32 %v1907_v57, %v1903_v56  ;;  %4159 = vmatpush3.bf16.msra.mxu0 %v4467_v20  ;;  %v1904_v46 = vsel %vm5088_vm5, %v1899_v40, %v1903_v56  ;;  %4035 = vmatpush3.bf16.msra.mxu1 %v4470_v27  ;;  %v3431_v18 = vrot.slane %v296_v10, 11  ;;  %v207_v60 = vld [vmem:[%s4618_s21 + $0x48] sm:$0x8]  ;;  %v3618_v10 = vld [vmem:[%s4618_s21 + $0x64] sm:$0xf] }
  0x66   : >> { %v316_v34 = vsel %vm5039_vm3, %v308_v7, %v4971_v44  ;;  %v1925_v15 = vshll.u32 %v3614_v11, 16  ;;  %4160 = vmatprep.subr.bf16.mxu0 %v4469_v37  ;;  %v1918_v52 = vrot.slane %v1916_v4, 4  ;;  %v1921_v16 = vrot.slane %v1919_v41, 5  ;;  %4036 = vmatprep.subr.bf16.mxu1 %v4472_v48  ;;  %v4474_v44 = vld [vmem:[%s5778_s1 + $0xa8] sm:$0xff]   ;;  %v4476_v7 = vld [vmem:[%s5778_s1 + $0xb0] sm:$0xff]  }
  0x67   : >> { %4144 = vmatprep.mubr.bf16.mxu0 %v3641_v14  ;;  %v1909_v13 = vrot.slane %v1908_v51, 4  ;;  %v1929_v24 = vshrl.u32 %v3614_v11, 16  ;;  %v307_v20 = vsel %vm5039_vm3, %v3431_v18, %v4929_v19  ;;  %v1935_v27 = vshll.u32 %v3615_v62, 16  ;;  %v3619_v18 = vld [vmem:[%s4618_s21 + $0x68] sm:$0xf] }
  0x68   : >> { %v1927_v36 = vrot.slane %v1925_v15, 5  ;;  %v1939_v59 = vshrl.u32 %v3615_v62, 16  ;;  %v3469_v47 = vcombine.low %v307_v20, %v316_v34  ;;  %v1922_v17 = vor.u32 %v1921_v16, %v1918_v52 }
  0x69   : >> { %v1914_v33 = vsel %vm5088_vm5, %v1909_v13, %v1913_v42  ;;  %v1931_v43 = vrot.slane %v1929_v24, 4  ;;  %4161 = vmatpush3.bf16.msra.mxu0 %v4469_v37  ;;  %v1937_v56 = vrot.slane %v1935_v27, 5  ;;  %v317_v19 = vrot.slane %v4851_v61, 4  ;;  %4037 = vmatpush3.bf16.msra.mxu1 %v4472_v48  ;;  %v4473_v42 = vld [vmem:[%s5778_s1 + $0x1a0] sm:$0xff]   ;;  %v3620_v13 = vld [vmem:[%s4618_s21 + $0x6c] sm:$0xf] }
  0x6a   : >> { %v3642_v8 = vcombine.low %v1904_v46, %v1914_v33  ;;  %v326_v45 = vrot.slane %v4891_v38, 4  ;;  %4162 = vmatprep.subr.bf16.mxu0 %v4471_v29  ;;  %4020 = vmatprep.mubr.bf16.mxu1 %v3469_v47  ;;  %v1923_v35 = vrot.slane %v1922_v17, 4  ;;  %v1941_v57 = vrot.slane %v1939_v59, 4 }
  0x6b   : >> { %v1932_v21 = vor.u32 %v1931_v43, %v1927_v36  ;;  %v1945_v11 = vshll.u32 %v3616_v53, 16  ;;  %v325_v61 = vsel %vm5039_vm3, %v317_v19, %v4989_v6  ;;  %v1949_v37 = vshrl.u32 %v3616_v53, 16  ;;  %4038 = vmatprep.subr.bf16.mxu1 %v4474_v44 }
  0x6c   : >> { %4145 = vmatmul.mubr.bf16.gmra.mrb[4].mxu0 %v3642_v8  ;;  %v334_v38 = vsel %vm5039_vm3, %v326_v45, %v4993_v28  ;;  %v1955_v40 = vshll.u32 %v3617_v30, 16  ;;  %v1928_v48 = vsel %vm5088_vm5, %v1923_v35, %v1927_v36  ;;  %v1942_v6 = vor.u32 %v1941_v57, %v1937_v56  ;;  %v4475_v28 = vld [vmem:[%s5778_s1 + $0x1a8] sm:$0xff]  }
  0x6d   : >> { %v1933_v14 = vrot.slane %v1932_v21, 4  ;;  %v3470_v51 = vcombine.low %v325_v61, %v334_v38  ;;  %4163 = vmatpush3.bf16.msra.mxu0 %v4471_v29  ;;  %v1947_v62 = vrot.slane %v1945_v11, 5  ;;  %v1951_v4 = vrot.slane %v1949_v37, 4  ;;  %4039 = vmatpush3.bf16.msra.mxu1 %v4474_v44  ;;  %v4478_v29 = vld [vmem:[%s5778_s1 + $0xb8] sm:$0xff]   ;;  %v3621_v44 = vld [vmem:[%s4618_s21 + $0x70] sm:$0xf] }
  0x6e   : >> { %v1957_v41 = vrot.slane %v1955_v40, 5  ;;  %v336_v46 = vshrl.u32 %v207_v60, 16  ;;  %v1943_v15 = vrot.slane %v1942_v6, 4  ;;  %4164 = vmatprep.subr.bf16.mxu0 %v4473_v42  ;;  %v348_v53 = vrot.slane %v4951_v39, 4  ;;  %4040 = vmatprep.subr.bf16.mxu1 %v4476_v7  ;;  %v3622_v11 = vld [vmem:[%s4618_s21 + $0x74] sm:$0x1] }
  0x6f   : >> { %v1938_v34 = vsel %vm5088_vm5, %v1933_v14, %v1937_v56  ;;  %4021 = vmatmul.mubr.bf16.gmra.mrb[8].mxu1 %v3470_v51  ;;  %v1960_v52 = vshrl.u32 %v3618_v10, 16  ;;  %v1952_v24 = vor.u32 %v1951_v4, %v1947_v62  ;;  %v1963_v20 = vshll.u32 %v3618_v10, 16  ;;  %v5228_v37 = vld [vmem:[%s5778_s1 + $0xc0] sm:$0xff]   ;;  %v780_v4 = vld [vmem:[%s4618_s21 + $0xc] sm:$0xf] }
  0x70   : >> { %v3643_v16 = vcombine.low %v1928_v48, %v1938_v34  ;;  %v3432_v30 = vrot.slane %v336_v46, 11  ;;  %v1948_v36 = vsel %vm5088_vm5, %v1943_v15, %v1947_v62  ;;  %v356_v27 = vsel %vm5039_vm3, %v348_v53, %v5018_v31  ;;  %v4477_v31 = vld [vmem:[%s5778_s1 + $0x1b0] sm:$0xff]   ;;  %v778_v48 = vld [vmem:[%s4618_s21 + $0x4] sm:$0xf]  ;;  %v779_v62 = vld [vmem:[%s4618_s21 + $0x8] sm:$0xf] }
  0x71   : >> { %v1962_v59 = vrot.slane %v1960_v52, 4  ;;  %v1969_v39 = vshll.u32 %v3619_v18, 16  ;;  %v1953_v33 = vrot.slane %v1952_v24, 4  ;;  %4165 = vmatpush3.bf16.msra.mxu0 %v4473_v42  ;;  %v1965_v17 = vrot.slane %v1963_v20, 5  ;;  %4041 = vmatpush3.bf16.msra.mxu1 %v4476_v7  ;;  %v3657_v34 = vld [vmem:[%s4618_s21 + $0x30] sm:$0x8] }
  0x72   : >> { %4148 = vmatprep.mubr.bf16.mxu0 %v3643_v16  ;;  %v347_v47 = vsel %vm5039_vm3, %v3432_v30, %v5015_v54  ;;  %v1973_v43 = vshrl.u32 %v3619_v18, 16  ;;  %4166 = vmatprep.subr.bf16.mxu0 %v4475_v28  ;;  %v1979_v19 = vshll.u32 %v3620_v13, 16  ;;  %v1983_v45 = vshrl.u32 %v3620_v13, 16  ;;  %v5249_v20 = vld [vmem:[%s4618_s21 + $0x34] sm:$0xf] }
  0x73   : >> { %v3471_v8 = vcombine.low %v347_v47, %v356_v27  ;;  %v1971_v56 = vrot.slane %v1969_v39, 5  ;;  %v1958_v35 = vsel %vm5088_vm5, %v1953_v33, %v1957_v41  ;;  %v1966_v21 = vor.u32 %v1965_v17, %v1962_v59  ;;  %4042 = vmatprep.subr.bf16.mxu1 %v4478_v29  ;;  %v5254_v39 = vld [vmem:[%s4618_s21 + $0x38] sm:$0xf] }
  0x74   : >> { %v1975_v57 = vrot.slane %v1973_v43, 4  ;;  %v357_v54 = vrot.slane %v4960_v9, 4  ;;  %v3644_v42 = vcombine.low %v1948_v36, %v1958_v35  ;;  %v1981_v60 = vrot.slane %v1979_v19, 5 }
  0x75   : >> { %4024 = vmatprep.mubr.bf16.mxu1 %v3471_v8  ;;  %v366_v61 = vrot.slane %v4978_v50, 4  ;;  %v1985_v38 = vrot.slane %v1983_v45, 4  ;;  %4167 = vmatpush3.bf16.msra.mxu0 %v4475_v28  ;;  %v1967_v40 = vrot.slane %v1966_v21, 4  ;;  %v1989_v7 = vshll.u32 %v3621_v44, 16  ;;  %v4479_v50 = vld [vmem:[%s5778_s1 + $0x1b8] sm:$0xff]  }
  0x76   : >> { %v1976_v10 = vor.u32 %v1975_v57, %v1971_v56  ;;  %v365_v9 = vsel %vm5039_vm3, %v357_v54, %v5022_v1  ;;  %4149 = vmatmul.mubr.bf16.gmra.mrb[8].mxu0 %v3644_v42  ;;  %v1993_v6 = vshrl.u32 %v3621_v44, 16  ;;  %v1999_v28 = vshll.u32 %v3622_v11, 16  ;;  %4168 = vmatprep.subr.bf16.mxu0 %v4477_v31  ;;  %v5259_v44 = vld [vmem:[%s5778_s1 + $0x1c0] sm:$0xff]  }
  0x77   : >> { %v374_v14 = vsel %vm5039_vm3, %v366_v61, %v5045_v55  ;;  %v1986_v51 = vor.u32 %v1985_v38, %v1981_v60  ;;  %v1972_v1 = vsel %vm5088_vm5, %v1967_v40, %v1971_v56  ;;  %v1991_v18 = vrot.slane %v1989_v7, 5  ;;  %4043 = vmatpush3.bf16.msra.mxu1 %v4478_v29 }
  0x78   : >> { %v1977_v41 = vrot.slane %v1976_v10, 4  ;;  %v3472_v46 = vcombine.low %v365_v9, %v374_v14  ;;  %v1995_v53 = vrot.slane %v1993_v6, 4  ;;  %v2001_v13 = vrot.slane %v1999_v28, 5  ;;  %4060 = vmatprep.subr.bf16.mxu1 %v5228_v37 }
  0x79   : >> { %v1987_v15 = vrot.slane %v1986_v51, 4  ;;  %v802_v55 = vshrl.u32 %v778_v48, 16  ;;  %4169 = vmatpush3.bf16.msra.mxu0 %v4477_v31  ;;  %v805_v16 = vshll.u32 %v778_v48, 16  ;;  %v811_v24 = vshll.u32 %v779_v62, 16  ;;  %v781_v31 = vld [vmem:[%s4618_s21 + $0x10] sm:$0xf] }
  0x7a   : >> { %v1982_v52 = vsel %vm5088_vm5, %v1977_v41, %v1981_v60  ;;  %4025 = vmatmul.mubr.bf16.gmra.mrb[12].mxu1 %v3472_v46  ;;  %v815_v30 = vshrl.u32 %v779_v62, 16  ;;  %v1996_v27 = vor.u32 %v1995_v53, %v1991_v18  ;;  %4170 = vmatprep.subr.bf16.mxu0 %v4479_v50  ;;  %v821_v43 = vshll.u32 %v780_v4, 16  ;;  %v782_v51 = vld [vmem:[%s4618_s21 + $0x14] sm:$0x1]  ;;  %v5278_v41 = vld [vmem:[%s4618_s21 + $0x40] sm:$0xf] }
  0x7b   : >> { %v3645_v36 = vcombine.low %v1972_v1, %v1982_v52  ;;  %v1992_v29 = vsel %vm5088_vm5, %v1987_v15, %v1991_v18  ;;  %v804_v59 = vrot.slane %v802_v55, 4  ;;  %v807_v33 = vrot.slane %v805_v16, 5  ;;  %v5275_v1 = vld [vmem:[%s4618_s21 + $0x3c] sm:$0xf] }
  0x7c   : >> { %v813_v47 = vrot.slane %v811_v24, 5  ;;  %v817_v17 = vrot.slane %v815_v30, 4  ;;  %v1997_v8 = vrot.slane %v1996_v27, 4  ;;  %v825_v56 = vshrl.u32 %v780_v4, 16  ;;  %v783_v53 = vld [vmem:[%s4618_s21 + $0x1c] sm:$0xf] }
  0x7d   : >> { %4152 = vmatprep.mubr.bf16.mxu0 %v3645_v36  ;;  %v2238_v19 = vshrl.u32 %v3657_v34, 16  ;;  %v2243_v45 = vshrl.u32 %v5249_v20, 16  ;;  %4171 = vmatpush3.bf16.msra.mxu0 %v4479_v50  ;;  %v808_v35 = vor.u32 %v807_v33, %v804_v59  ;;  %v823_v57 = vrot.slane %v821_v43, 5  ;;  %v784_v24 = vld [vmem:[%s4618_s21 + $0x20] sm:$0xf] }
  0x7e   : >> { %v818_v21 = vor.u32 %v817_v17, %v813_v47  ;;  %v2246_v54 = vshll.u32 %v5249_v20, 16  ;;  %v2002_v11 = vsel %vm5088_vm5, %v1997_v8, %v2001_v13  ;;  %v827_v42 = vrot.slane %v825_v56, 4  ;;  %4188 = vmatprep.subr.bf16.mxu0 %v5259_v44 }
  0x7f   : >> { %v3677_v60 = vrot.slane %v2238_v19, 11  ;;  %v2245_v61 = vrot.slane %v2243_v45, 7  ;;  %v3646_v38 = vcombine.low %v1992_v29, %v2002_v11  ;;  %v809_v40 = vrot.slane %v808_v35, 4  ;;  %v785_v45 = vld [vmem:[%s4618_s21 + $0x24] sm:$0xf] }
  0x80   : >> { %v819_v10 = vrot.slane %v818_v21, 4  ;;  %v2252_v9 = vshrl.u32 %v5254_v39, 16  ;;  %v828_v7 = vor.u32 %v827_v42, %v823_v57  ;;  %v2255_v14 = vshll.u32 %v5254_v39, 16  ;;  %v5295_v11 = vld [vmem:[%s4618_s21 + $0x4c] sm:$0xf] }
  0x81   : >> { %v2248_v50 = vor.u32 %v2246_v54, %v2245_v61  ;;  %v2250_v48 = vrot.slane %v2245_v61, 4  ;;  %4153 = vmatmul.mubr.bf16.gmra.mrb[12].mxu0 %v3646_v38  ;;  %v814_v6 = vsel %vm5088_vm5, %v809_v40, %v813_v47  ;;  %v831_v4 = vshll.u32 %v781_v31, 16  ;;  %v3662_v54 = vld [vmem:[%s4618_s21 + $0x48] sm:$0x8] }
  0x82   : >> { %v824_v28 = vsel %vm5088_vm5, %v819_v10, %v823_v57  ;;  %v2254_v62 = vrot.slane %v2252_v9, 7  ;;  %v829_v46 = vrot.slane %v828_v7, 4  ;;  %v835_v15 = vshrl.u32 %v781_v31, 16 }
  0x83   : >> { %v3497_v18 = vcombine.low %v814_v6, %v824_v28  ;;  %v2249_v34 = vsel %vm5039_vm3, %v3677_v60, %v2248_v50  ;;  %v833_v52 = vrot.slane %v831_v4, 5  ;;  %v841_v16 = vshll.u32 %v782_v51, 16  ;;  %v5304_v6 = vld [vmem:[%s4618_s21 + $0x50] sm:$0xf]  ;;  %v4482_v4 = vld [vmem:[%s5778_s1 + $0xc8] sm:$0xff]  }
  0x84   : >> { %v2257_v13 = vor.u32 %v2255_v14, %v2254_v62  ;;  %v2259_v55 = vrot.slane %v2254_v62, 4  ;;  %v837_v30 = vrot.slane %v835_v15, 4  ;;  %v2261_v36 = vshrl.u32 %v5275_v1, 16 }
  0x85   : >> { %4044 = vmatprep.mubr.bf16.mxu1 %v3497_v18  ;;  %v2264_v29 = vshll.u32 %v5275_v1, 16  ;;  %v2270_v27 = vshrl.u32 %v5278_v41, 16  ;;  %v834_v33 = vsel %vm5088_vm5, %v829_v46, %v833_v52  ;;  %v843_v47 = vrot.slane %v841_v16, 5  ;;  %v4483_v46 = vld [vmem:[%s5778_s1 + $0x1c8] sm:$0xff]  }
  0x86   : >> { %v2258_v59 = vsel %vm5039_vm3, %v2250_v48, %v2257_v13  ;;  %v2273_v17 = vshll.u32 %v5278_v41, 16  ;;  %v838_v8 = vor.u32 %v837_v30, %v833_v52  ;;  %v2263_v56 = vrot.slane %v2261_v36, 7  ;;  %v786_v52 = vld [vmem:[%s4618_s21 + $0x28] sm:$0xf] }
  0x87   : >> { %v3697_v43 = vcombine.low %v2249_v34, %v2258_v59  ;;  %v2272_v19 = vrot.slane %v2270_v27, 7  ;;  %v846_v31 = vshrl.u32 %v783_v53, 16  ;;  %v849_v35 = vshll.u32 %v783_v53, 16  ;;  %v4484_v27 = vld [vmem:[%s5778_s1 + $0xd0] sm:$0xff]  }
  0x88   : >> { %v855_v21 = vshll.u32 %v784_v24, 16  ;;  %v859_v57 = vshrl.u32 %v784_v24, 16  ;;  %v839_v42 = vrot.slane %v838_v8, 4  ;;  %v2266_v60 = vor.u32 %v2264_v29, %v2263_v56  ;;  %v787_v29 = vld [vmem:[%s4618_s21 + $0x2c] sm:$0x1] }
  0x89   : >> { %4172 = vmatprep.mubr.bf16.mxu0 %v3697_v43  ;;  %v2268_v61 = vrot.slane %v2263_v56, 4  ;;  %v2275_v38 = vor.u32 %v2273_v17, %v2272_v19  ;;  %v848_v40 = vrot.slane %v846_v31, 4  ;;  %v851_v10 = vrot.slane %v849_v35, 5  ;;  %v5324_v43 = vld [vmem:[%s4618_s21 + $0x54] sm:$0xf] }
  0x8a   : >> { %v857_v9 = vrot.slane %v855_v21, 5  ;;  %v861_v7 = vrot.slane %v859_v57, 4  ;;  %v844_v50 = vsel %vm5088_vm5, %v839_v42, %v843_v47  ;;  %v2267_v48 = vsel %vm5039_vm3, %v2259_v55, %v2266_v60  ;;  %v4485_v57 = vld [vmem:[%s5778_s1 + $0x1d0] sm:$0xff]  }
  0x8b   : >> { %v2276_v14 = vsel %vm5039_vm3, %v2268_v61, %v2275_v38  ;;  %v865_v51 = vshll.u32 %v785_v45, 16  ;;  %v3498_v28 = vcombine.low %v834_v33, %v844_v50  ;;  %v852_v18 = vor.u32 %v851_v10, %v848_v40  ;;  %v789_v40 = vld [vmem:[%s4618_s21 + $0x38] sm:$0xf] }
  0x8c   : >> { %v3698_v62 = vcombine.low %v2267_v48, %v2276_v14  ;;  %v862_v34 = vor.u32 %v861_v7, %v857_v9  ;;  %v869_v53 = vshrl.u32 %v785_v45, 16  ;;  %v2278_v13 = vshrl.u32 %v3662_v54, 16  ;;  %v788_v54 = vld [vmem:[%s4618_s21 + $0x34] sm:$0xf]  ;;  %v4486_v48 = vld [vmem:[%s5778_s1 + $0xd8] sm:$0xff]  }
  0x8d   : >> { %v867_v15 = vrot.slane %v865_v51, 5  ;;  %v2283_v55 = vshrl.u32 %v5295_v11, 16  ;;  %4045 = vmatmul.mubr.bf16.vlgmr.msra.gmra.mrb[0].mxu1 %v3498_v28  ;;  %v853_v16 = vrot.slane %v852_v18, 4  ;;  %v2286_v30 = vshll.u32 %v5295_v11, 16 }
  0x8e   : >> { %4173 = vmatmul.mubr.bf16.vlgmr.msra.gmra.mrb[0].mxu0 %v3698_v62  ;;  %v863_v24 = vrot.slane %v862_v34, 4  ;;  %v2292_v36 = vshrl.u32 %v5304_v6, 16  ;;  %4061 = vmatpush3.bf16.msra.mxu1 %v5228_v37  ;;  %v3678_v59 = vrot.slane %v2278_v13, 11  ;;  %v2295_v47 = vshll.u32 %v5304_v6, 16 }
  0x8f   : >> { %4189 = vmatpush3.bf16.msra.mxu0 %v5259_v44  ;;  %v2285_v33 = vrot.slane %v2283_v55, 7  ;;  %v871_v17 = vrot.slane %v869_v53, 4  ;;  %4062 = vmatprep.subr.bf16.mxu1 %v4482_v4  ;;  %v858_v8 = vsel %vm5088_vm5, %v853_v16, %v857_v9  ;;  %v875_v19 = vshll.u32 %v786_v52, 16  ;;  %v5331_v44 = vld [vmem:[%s4618_s21 + $0x58] sm:$0xf] }
  0x90   : >> { %4190 = vmatprep.subr.bf16.mxu0 %v4483_v46  ;;  %v868_v56 = vsel %vm5088_vm5, %v863_v24, %v867_v15  ;;  %v2294_v37 = vrot.slane %v2292_v36, 7  ;;  %v879_v61 = vshrl.u32 %v786_v52, 16  ;;  %v885_v38 = vshll.u32 %v787_v29, 16 }
  0x91   : >> { %v3499_v45 = vcombine.low %v858_v8, %v868_v56  ;;  %v2288_v31 = vor.u32 %v2286_v30, %v2285_v33  ;;  %v2290_v35 = vrot.slane %v2285_v33, 4  ;;  %v872_v21 = vor.u32 %v871_v17, %v867_v15  ;;  %v3667_v56 = vld [vmem:[%s4618_s21 + $0x60] sm:$0x8] }
  0x92   : >> { %v2297_v42 = vor.u32 %v2295_v47, %v2294_v37  ;;  %v877_v60 = vrot.slane %v875_v19, 5  ;;  %4063 = vmatpush3.bf16.msra.mxu1 %v4482_v4  ;;  %v2299_v7 = vrot.slane %v2294_v37, 4  ;;  %v2301_v50 = vshrl.u32 %v5324_v43, 16  ;;  %v4487_v4 = vld [vmem:[%s5778_s1 + $0x1d8] sm:$0xff]  }
  0x93   : >> { %4191 = vmatpush3.bf16.msra.mxu0 %v4483_v46  ;;  %v2289_v10 = vsel %vm5039_vm3, %v3678_v59, %v2288_v31  ;;  %v873_v9 = vrot.slane %v872_v21, 4  ;;  %4048 = vmatprep.mubr.bf16.mxu1 %v3499_v45  ;;  %v881_v51 = vrot.slane %v879_v61, 4  ;;  %v887_v28 = vrot.slane %v885_v38, 5  ;;  %v790_v46 = vld [vmem:[%s4618_s21 + $0x3c] sm:$0xf]  ;;  %v4488_v59 = vld [vmem:[%s5778_s1 + $0xe0] sm:$0xff]  }
  0x94   : >> { %v2298_v14 = vsel %vm5039_vm3, %v2290_v35, %v2297_v42  ;;  %4064 = vmatprep.subr.bf16.mxu1 %v4484_v27  ;;  %v2304_v62 = vshll.u32 %v5324_v43, 16  ;;  %v2303_v15 = vrot.slane %v2301_v50, 7  ;;  %v2310_v53 = vshrl.u32 %v5331_v44, 16  ;;  %4192 = vmatprep.subr.bf16.mxu0 %v4485_v57  ;;  %v5362_v31 = vld [vmem:[%s4618_s21 + $0x64] sm:$0xf] }
  0x95   : >> { %v3699_v18 = vcombine.low %v2289_v10, %v2298_v14  ;;  %v878_v34 = vsel %vm5088_vm5, %v873_v9, %v877_v60  ;;  %v882_v13 = vor.u32 %v881_v51, %v877_v60  ;;  %v2313_v55 = vshll.u32 %v5331_v44, 16  ;;  %v4489_v35 = vld [vmem:[%s5778_s1 + $0x1e0] sm:$0xff]   ;;  %v5370_v60 = vld [vmem:[%s4618_s21 + $0x68] sm:$0xf] }
  0x96   : >> { %v890_v52 = vshrl.u32 %v788_v54, 16  ;;  %v893_v16 = vshll.u32 %v788_v54, 16  ;;  %v2306_v24 = vor.u32 %v2304_v62, %v2303_v15  ;;  %v2308_v30 = vrot.slane %v2303_v15, 4  ;;  %4065 = vmatpush3.bf16.msra.mxu1 %v4484_v27  ;;  %v791_v9 = vld [vmem:[%s4618_s21 + $0x40] sm:$0xf]  ;;  %v4490_v62 = vld [vmem:[%s5778_s1 + $0xe8] sm:$0xff]  }
  0x97   : >> { %4176 = vmatprep.mubr.bf16.mxu0 %v3699_v18  ;;  %v2312_v36 = vrot.slane %v2310_v53, 7  ;;  %v899_v29 = vshll.u32 %v789_v40, 16  ;;  %v883_v33 = vrot.slane %v882_v13, 4  ;;  %4193 = vmatpush3.bf16.msra.mxu0 %v4485_v57  ;;  %v903_v8 = vshrl.u32 %v789_v40, 16 }
  0x98   : >> { %4066 = vmatprep.subr.bf16.mxu1 %v4486_v48  ;;  %v892_v47 = vrot.slane %v890_v52, 4  ;;  %v895_v17 = vrot.slane %v893_v16, 5  ;;  %v2307_v37 = vsel %vm5039_vm3, %v2299_v7, %v2306_v24  ;;  %4194 = vmatprep.subr.bf16.mxu0 %v4487_v4  ;;  %v909_v45 = vshll.u32 %v790_v46, 16  ;;  %v792_v7 = vld [vmem:[%s4618_s21 + $0x44] sm:$0x1] }
  0x99   : >> { %v2315_v19 = vor.u32 %v2313_v55, %v2312_v36  ;;  %v901_v27 = vrot.slane %v899_v29, 5  ;;  %v888_v21 = vsel %vm5088_vm5, %v883_v33, %v887_v28  ;;  %v905_v54 = vrot.slane %v903_v8, 4  ;;  %v5389_v52 = vld [vmem:[%s4618_s21 + $0x6c] sm:$0xf]  ;;  %v5394_v29 = vld [vmem:[%s4618_s21 + $0x70] sm:$0xf] }
  0x9a   : >> { %v896_v57 = vor.u32 %v895_v17, %v892_v47  ;;  %v913_v42 = vshrl.u32 %v790_v46, 16  ;;  %v3500_v61 = vcombine.low %v878_v34, %v888_v21  ;;  %4067 = vmatpush3.bf16.msra.mxu1 %v4486_v48  ;;  %v911_v40 = vrot.slane %v909_v45, 5  ;;  %v4491_v48 = vld [vmem:[%s5778_s1 + $0x1e8] sm:$0xff]   ;;  %v4492_v33 = vld [vmem:[%s5778_s1 + $0xf0] sm:$0xff]  }
  0x9b   : >> { %v2316_v38 = vsel %vm5039_vm3, %v2308_v30, %v2315_v19  ;;  %v2318_v10 = vshrl.u32 %v3667_v56, 16  ;;  %4195 = vmatpush3.bf16.msra.mxu0 %v4487_v4  ;;  %v906_v51 = vor.u32 %v905_v54, %v901_v27  ;;  %v2323_v28 = vshrl.u32 %v5362_v31, 16  ;;  %4068 = vmatprep.subr.bf16.mxu1 %v4488_v59  ;;  %v4493_v19 = vld [vmem:[%s5778_s1 + $0x1f0] sm:$0xff]  }
  0x9c   : >> { %v3700_v50 = vcombine.low %v2307_v37, %v2316_v38  ;;  %v897_v14 = vrot.slane %v896_v57, 4  ;;  %4049 = vmatmul.mubr.bf16.gmra.mrb[4].mxu1 %v3500_v61  ;;  %v2326_v18 = vshll.u32 %v5362_v31, 16  ;;  %v2332_v4 = vshrl.u32 %v5370_v60, 16  ;;  %4196 = vmatprep.subr.bf16.mxu0 %v4489_v35  ;;  %v793_v37 = vld [vmem:[%s4618_s21 + $0x4c] sm:$0xf] }
  0x9d   : >> { %v3679_v46 = vrot.slane %v2318_v10, 11  ;;  %v2335_v34 = vshll.u32 %v5370_v60, 16  ;;  %v907_v53 = vrot.slane %v906_v51, 4  ;;  %v2325_v13 = vrot.slane %v2323_v28, 7  ;;  %v794_v57 = vld [vmem:[%s4618_s21 + $0x50] sm:$0xf] }
  0x9e   : >> { %4177 = vmatmul.mubr.bf16.gmra.mrb[4].mxu0 %v3700_v50  ;;  %v902_v15 = vsel %vm5088_vm5, %v897_v14, %v901_v27  ;;  %v915_v55 = vrot.slane %v913_v42, 4  ;;  %v5391_v16 = vrot.slane %v2332_v4, 7  ;;  %v919_v24 = vshll.u32 %v791_v9, 16  ;;  %4069 = vmatpush3.bf16.msra.mxu1 %v4488_v59  ;;  %v5408_v54 = vld [vmem:[%s4618_s21 + $0x54] sm:$0xf]  ;;  %v4494_v50 = vld [vmem:[%s5778_s1 + $0xf8] sm:$0xff]  }
  0x9f   : >> { %v923_v30 = vshrl.u32 %v791_v9, 16  ;;  %v929_v36 = vshll.u32 %v792_v7, 16  ;;  %v912_v47 = vsel %vm5088_vm5, %v907_v53, %v911_v40  ;;  %v2328_v17 = vor.u32 %v2326_v18, %v2325_v13  ;;  %4197 = vmatpush3.bf16.msra.mxu0 %v4489_v35  ;;  %4070 = vmatprep.subr.bf16.mxu1 %v4490_v62  ;;  %v4495_v14 = vld [vmem:[%s5778_s1 + $0x1f8] sm:$0xff]  }
  0xa0   : >> { %v2330_v8 = vrot.slane %v2325_v13, 4  ;;  %v916_v56 = vor.u32 %v915_v55, %v911_v40  ;;  %v3501_v27 = vcombine.low %v902_v15, %v912_v47  ;;  %v2337_v59 = vor.u32 %v2335_v34, %v5391_v16  ;;  %4198 = vmatprep.subr.bf16.mxu0 %v4491_v48  ;;  %v3672_v53 = vld [vmem:[%s4618_s21 + $0x78] sm:$0x8]  ;;  %v5429_v13 = vld [vmem:[%s4618_s21 + $0x7c] sm:$0xf] }
  0xa1   : >> { %v921_v45 = vrot.slane %v919_v24, 5  ;;  %v925_v21 = vrot.slane %v923_v30, 4  ;;  %v2329_v42 = vsel %vm5039_vm3, %v3679_v46, %v2328_v17  ;;  %v931_v35 = vrot.slane %v929_v36, 5 }
  0xa2   : >> { %v917_v61 = vrot.slane %v916_v56, 4  ;;  %v2339_v38 = vrot.slane %v5391_v16, 4  ;;  %4052 = vmatprep.mubr.bf16.mxu1 %v3501_v27  ;;  %v2338_v40 = vsel %vm5039_vm3, %v2330_v8, %v2337_v59  ;;  %v2341_v9 = vshrl.u32 %v5389_v52, 16  ;;  %4071 = vmatpush3.bf16.msra.mxu1 %v4490_v62  ;;  %v5435_v8 = vld [vmem:[%s4618_s21 + $0x80] sm:$0xf] }
  0xa3   : >> { %v926_v10 = vor.u32 %v925_v21, %v921_v45  ;;  %v2344_v7 = vshll.u32 %v5389_v52, 16  ;;  %v3701_v51 = vcombine.low %v2329_v42, %v2338_v40  ;;  %v2350_v46 = vshrl.u32 %v5394_v29, 16  ;;  %4199 = vmatpush3.bf16.msra.mxu0 %v4491_v48  ;;  %4072 = vmatprep.subr.bf16.mxu1 %v4492_v33 }
  0xa4   : >> { %v922_v28 = vsel %vm5088_vm5, %v917_v61, %v921_v45  ;;  %v2353_v18 = vshll.u32 %v5394_v29, 16  ;;  %v2343_v62 = vrot.slane %v2341_v9, 7  ;;  %v934_v34 = vshrl.u32 %v793_v37, 16  ;;  %4200 = vmatprep.subr.bf16.mxu0 %v4493_v19  ;;  %v5440_v45 = vld [vmem:[%s5778_s1 + $0x200] sm:$0xff]  }
  0xa5   : >> { %v927_v4 = vrot.slane %v926_v10, 4  ;;  %v937_v15 = vshll.u32 %v793_v37, 16  ;;  %4180 = vmatprep.mubr.bf16.mxu0 %v3701_v51  ;;  %v2352_v55 = vrot.slane %v2350_v46, 7  ;;  %v943_v16 = vshll.u32 %v794_v57, 16  ;;  %v796_v10 = vld [vmem:[%s4618_s21 + $0x58] sm:$0xf] }
  0xa6   : >> { %v947_v24 = vshrl.u32 %v794_v57, 16  ;;  %v953_v30 = vshll.u32 %v5408_v54, 16  ;;  %v2346_v48 = vor.u32 %v2344_v7, %v2343_v62  ;;  %v2348_v47 = vrot.slane %v2343_v62, 4  ;;  %4073 = vmatpush3.bf16.msra.mxu1 %v4492_v33 }
  0xa7   : >> { %v932_v36 = vsel %vm5088_vm5, %v927_v4, %v931_v35  ;;  %v936_v17 = vrot.slane %v934_v34, 4  ;;  %v2355_v37 = vor.u32 %v2353_v18, %v2352_v55  ;;  %v939_v27 = vrot.slane %v937_v15, 5  ;;  %4201 = vmatpush3.bf16.msra.mxu0 %v4493_v19  ;;  %4074 = vmatprep.subr.bf16.mxu1 %v4494_v50 }
  0xa8   : >> { %v3502_v56 = vcombine.low %v922_v28, %v932_v36  ;;  %v945_v59 = vrot.slane %v943_v16, 5  ;;  %v2347_v21 = vsel %vm5039_vm3, %v2339_v38, %v2346_v48  ;;  %v949_v57 = vrot.slane %v947_v24, 4  ;;  %4202 = vmatprep.subr.bf16.mxu0 %v4495_v14  ;;  %v797_v28 = vld [vmem:[%s4618_s21 + $0x5c] sm:$0x1]  ;;  %v5461_v36 = vld [vmem:[%s4618_s21 + $0x88] sm:$0xf] }
  0xa9   : >> { %v955_v42 = vrot.slane %v953_v30, 5  ;;  %v957_v33 = vshrl.u32 %v5408_v54, 16  ;;  %v2356_v61 = vsel %vm5039_vm3, %v2348_v47, %v2355_v37  ;;  %v940_v19 = vor.u32 %v939_v27, %v936_v17  ;;  %v5458_v30 = vld [vmem:[%s4618_s21 + $0x84] sm:$0xf] }
  0xaa   : >> { %4053 = vmatmul.mubr.bf16.gmra.mrb[8].mxu1 %v3502_v56  ;;  %v2358_v35 = vshrl.u32 %v3672_v53, 16  ;;  %v2363_v40 = vshrl.u32 %v5429_v13, 16  ;;  %v3702_v9 = vcombine.low %v2347_v21, %v2356_v61  ;;  %v950_v7 = vor.u32 %v949_v57, %v945_v59  ;;  %v3515_v61 = vld [vmem:[%s4618_s21 + $0x18] sm:$0x8] }
  0xab   : >> { %v2366_v51 = vshll.u32 %v5429_v13, 16  ;;  %v2372_v38 = vshrl.u32 %v5435_v8, 16  ;;  %4075 = vmatpush3.bf16.msra.mxu1 %v4494_v50  ;;  %v941_v46 = vrot.slane %v940_v19, 4  ;;  %v2375_v4 = vshll.u32 %v5435_v8, 16  ;;  %4203 = vmatpush3.bf16.msra.mxu0 %v4495_v14  ;;  %v5832_v19 = vld [vmem:[#allocation6_spill] sm:$0xff] }
  0xac   : >> { %v3680_v54 = vrot.slane %v2358_v35, 11  ;;  %v2365_v18 = vrot.slane %v2363_v40, 7  ;;  %4252 = vmatprep.subr.bf16.mxu1 %v5440_v45  ;;  %4181 = vmatmul.mubr.bf16.gmra.mrb[8].mxu0 %v3702_v9  ;;  %v951_v62 = vrot.slane %v950_v7, 4  ;;  %v959_v15 = vrot.slane %v957_v33, 4 }
  0xad   : >> { %v2374_v34 = vrot.slane %v2372_v38, 7  ;;  %v963_v53 = vshll.u32 %v796_v10, 16  ;;  %4220 = vmatprep.subr.bf16.mxu0 %v5440_v45  ;;  %v946_v50 = vsel %vm5088_vm5, %v941_v46, %v945_v59  ;;  %v967_v24 = vshrl.u32 %v796_v10, 16 }
  0xae   : >> { %v2368_v55 = vor.u32 %v2366_v51, %v2365_v18  ;;  %v2370_v16 = vrot.slane %v2365_v18, 4  ;;  %v956_v14 = vsel %vm5088_vm5, %v951_v62, %v955_v42  ;;  %v960_v47 = vor.u32 %v959_v15, %v955_v42  ;;  %v5834_v15 = vld [vmem:[#allocation9_spill] sm:$0xff] }
  0xaf   : >> { %v2377_v48 = vor.u32 %v2375_v4, %v2374_v34  ;;  %v965_v17 = vrot.slane %v963_v53, 5  ;;  %v3503_v56 = vcombine.low %v946_v50, %v956_v14  ;;  %v969_v27 = vrot.slane %v967_v24, 4  ;;  %v5835_v53 = vld [vmem:[#allocation4_spill] sm:$0xff] }
  0xb0   : >> { %v2369_v37 = vsel %vm5039_vm3, %v3680_v54, %v2368_v55  ;;  %v973_v59 = vshll.u32 %v797_v28, 16  ;;  %v961_v57 = vrot.slane %v960_v47, 4  ;;  %v2381_v33 = vshrl.u32 %v5458_v30, 16  ;;  %v3520_v54 = vld [vmem:[%s4618_s21 + $0x30] sm:$0x8] }
  0xb1   : >> { %v2378_v21 = vsel %vm5039_vm3, %v2370_v16, %v2377_v48  ;;  %v5833_v35 = vshll.u32 %v5832_v19, 16  ;;  %4056 = vmatprep.mubr.bf16.mxu1 %v3503_v56  ;;  %v970_v10 = vor.u32 %v969_v27, %v965_v17  ;;  %v2384_v7 = vshll.u32 %v5458_v30, 16  ;;  %v5840_v19 = vld [vmem:[#allocation5_spill] sm:$0xff] }
  0xb2   : >> { %v3703_v42 = vcombine.low %v2369_v37, %v2378_v21  ;;  %v975_v9 = vrot.slane %v973_v59, 5  ;;  %v2379_v51 = vrot.slane %v2374_v34, 4  ;;  %v2383_v38 = vrot.slane %v2381_v33, 7  ;;  %v5838_v37 = vld [vmem:[#allocation7_spill] sm:$0xff] }
  0xb3   : >> { %v1311_v40 = vor.u32 %v5833_v35, %v4861_v49  ;;  %v2390_v28 = vshrl.u32 %v5461_v36, 16  ;;  %v2393_v46 = vshll.u32 %v5461_v36, 16  ;;  %v966_v18 = vsel %vm5088_vm5, %v961_v57, %v965_v17  ;;  %v5837_v17 = vld [vmem:[#allocation10_spill] sm:$0xff] }
  0xb4   : >> { %4184 = vmatprep.mubr.bf16.mxu0 %v3703_v42  ;;  %v971_v4 = vrot.slane %v970_v10, 4  ;;  %v1212_v62 = vshrl.u32 %v3515_v61, 16  ;;  %v5836_v50 = vrot.slane %v5835_v53, 4  ;;  %v2386_v16 = vor.u32 %v2384_v7, %v2383_v38 }
  0xb5   : >> { %v2388_v34 = vrot.slane %v2383_v38, 4  ;;  %v2392_v24 = vrot.slane %v2390_v28, 7  ;;  %v1252_v56 = vshrl.u32 %v3520_v54, 16  ;;  %v5839_v27 = vshll.u32 %v5838_v37, 16  ;;  %v5849_v37 = vld [vmem:[#allocation13_spill] sm:$0xff] }
  0xb6   : >> { %v1250_v55 = vsel %vm5039_vm3, %v5836_v50, %v5834_v15  ;;  %v976_v48 = vsel %vm5088_vm5, %v971_v4, %v975_v9  ;;  %v3535_v47 = vrot.slane %v1212_v62, 11  ;;  %v2387_v57 = vsel %vm5039_vm3, %v2379_v51, %v2386_v16  ;;  %v3525_v9 = vld [vmem:[%s4618_s21 + $0x48] sm:$0x8]  ;;  %v5845_v16 = vld [vmem:[#allocation11_spill] sm:$0xff] }
  0xb7   : >> { %v3556_v14 = vcombine.low %v5111_v3, %v1250_v55  ;;  %v1320_v59 = vor.u32 %v5839_v27, %v5837_v17  ;;  %v3504_v21 = vcombine.low %v966_v18, %v976_v48  ;;  %v2395_v33 = vor.u32 %v2393_v46, %v2392_v24  ;;  %v5842_v46 = vld [vmem:[#allocation8_spill] sm:$0xff]  ;;  %v3530_v18 = vld [vmem:[%s4618_s21 + $0x60] sm:$0x8] }
  0xb8   : >> { %v1264_v61 = vrot.slane %v4753_v23, 4  ;;  %v1223_v3 = vsel %vm5039_vm3, %v3535_v47, %v5840_v19  ;;  %v3729_v35 = vcombine.low %v5249_v20, %v5254_v39  ;;  %v3536_v42 = vrot.slane %v1252_v56, 11  ;;  %v5841_v39 = vld [vmem:[#allocation12_spill] sm:$0xff]  ;;  %v5851_v19 = vld [vmem:[#allocation18_spill] sm:$0xff] }
  0xb9   : >> { %v1273_v10 = vrot.slane %v4755_v25, 4  ;;  %4057 = vmatmul.mubr.bf16.gmra.mrb[12].mxu1 %v3504_v21  ;;  %v2396_v7 = vsel %vm5039_vm3, %v2388_v34, %v2395_v33  ;;  %v3555_v51 = vcombine.low %v1223_v3, %v5098_v22  ;;  %v1282_v38 = vrot.slane %v4817_v12, 4  ;;  %v3745_v21 = vld [vmem:[%s4618_s21 + $0x34] sm:$0xf]  ;;  %v5852_v3 = vld [vmem:[#allocation16_spill] sm:$0xff] }
  0xba   : >> { %v1272_v23 = vsel %vm5039_vm3, %v1264_v61, %v5027_v0  ;;  %v3704_v28 = vcombine.low %v2387_v57, %v2396_v7  ;;  %v1263_v20 = vsel %vm5039_vm3, %v3536_v42, %v5009_v63  ;;  %v5843_v54 = vshll.u32 %v5842_v46, 16 }
  0xbb   : >> { %v5514_v25 = vsel %vm5039_vm3, %v1273_v10, %v5032_v58  ;;  %4076 = vmatprep.mubr.bf16.mxu1 %v3555_v51  ;;  %v3557_v4 = vcombine.low %v1263_v20, %v1272_v23  ;;  %v5523_v12 = vsel %vm5039_vm3, %v1282_v38, %v5050_v26  ;;  %v1292_v0 = vshrl.u32 %v3525_v9, 16  ;;  %v3746_v10 = vld [vmem:[%s4618_s21 + $0x38] sm:$0xf]  ;;  %v5854_v23 = vld [vmem:[#allocation19_spill] sm:$0xff]  ;;  %v5855_v38 = vld [vmem:[#allocation17_spill] sm:$0xff] }
  0xbc   : >> { %v1329_v22 = vor.u32 %v5843_v54, %v5841_v39  ;;  %v1304_v63 = vrot.slane %v4859_v5, 4  ;;  %4185 = vmatmul.mubr.bf16.gmra.mrb[12].mxu0 %v3704_v28  ;;  %v3730_v58 = vcombine.low %v5275_v1, %v5278_v41  ;;  %v3558_v62 = vcombine.low %v5514_v25, %v5523_v12  ;;  %v5844_v41 = vld [vmem:[#allocation14_spill] sm:$0xff]  ;;  %v4506_v12 = vld [vmem:[%s5778_s1 + $0x220] sm:$0xff]  }
  0xbd   : >> { %v1313_v15 = vrot.slane %v4861_v49, 4  ;;  %v1322_v53 = vrot.slane %v5837_v17, 4  ;;  %4204 = vmatprep.mubr.bf16.mxu0 %v3729_v35  ;;  %v3731_v26 = vcombine.low %v5295_v11, %v5304_v6  ;;  %v3537_v50 = vrot.slane %v1292_v0, 11  ;;  %v4499_v6 = vld [vmem:[%s5778_s1 + $0x208] sm:$0xff]   ;;  %v5848_v17 = vld [vmem:[#allocation15_spill] sm:$0xff]  ;;  %v4502_v0 = vld [vmem:[%s5778_s1 + $0x210] sm:$0xff]  }
  0xbe   : >> { %v1312_v5 = vsel %vm5039_vm3, %v1304_v63, %v1311_v40  ;;  %v1332_v55 = vshrl.u32 %v3530_v18, 16  ;;  %v5846_v34 = vshll.u32 %v5845_v16, 16  ;;  %v1344_v11 = vrot.slane %v5844_v41, 4  ;;  %v5847_v40 = vld [vmem:[#allocation20_spill] sm:$0xff]  ;;  %v3747_v39 = vld [vmem:[%s4618_s21 + $0x3c] sm:$0xf] }
  0xbf   : >> { %v5538_v1 = vsel %vm5039_vm3, %v1313_v15, %v1320_v59  ;;  %v5542_v49 = vsel %vm5039_vm3, %v1322_v53, %v1329_v22  ;;  %v1303_v48 = vsel %vm5039_vm3, %v3537_v50, %v5847_v40  ;;  %v5850_v27 = vshll.u32 %v5849_v37, 16  ;;  %v3755_v18 = vld [vmem:[%s4618_s21 + $0x64] sm:$0xf]  ;;  %v3756_v50 = vld [vmem:[%s4618_s21 + $0x68] sm:$0xf]  ;;  %v4503_v37 = vld [vmem:[%s5778_s1 + $0x218] sm:$0xff]  }
  0xc0   : >> { %v1342_v24 = vor.u32 %v5846_v34, %v5844_v41  ;;  %v3560_v47 = vcombine.low %v5538_v1, %v5542_v49  ;;  %v3538_v56 = vrot.slane %v1332_v55, 11  ;;  %v3732_v57 = vcombine.low %v5324_v43, %v5331_v44  ;;  %v3760_v49 = vld [vmem:[%s4618_s21 + $0x7c] sm:$0xf] }
  0xc1   : >> { %v1351_v59 = vor.u32 %v5850_v27, %v5848_v17  ;;  %v5562_v33 = vcombine.low %v1303_v48, %v1312_v5  ;;  %v1353_v61 = vrot.slane %v5848_v17, 4  ;;  %v5853_v35 = vshll.u32 %v5852_v3, 16  ;;  %4077 = vmatmul.mubr.bf16.vlgmr.msra.gmra.mrb[0].mxu1 %v3556_v14 }
  0xc2   : >> { %v1343_v9 = vsel %vm5039_vm3, %v3538_v56, %v1342_v24  ;;  %v1362_v51 = vrot.slane %v5851_v19, 4  ;;  %v5856_v28 = vshll.u32 %v5855_v38, 16  ;;  %4260 = vmatpush3.bf16.msra.mxu1 %v5440_v45  ;;  %4080 = vmatprep.mubr.bf16.mxu1 %v3557_v4  ;;  %v3733_v14 = vcombine.low %v5362_v31, %v5370_v60  ;;  %v4507_v31 = vld [vmem:[%s5778_s1 + $0x228] sm:$0xff]  }
  0xc3   : >> { %v1360_v42 = vor.u32 %v5853_v35, %v5851_v19  ;;  %v1352_v7 = vsel %vm5039_vm3, %v1344_v11, %v1351_v59  ;;  %v2854_v22 = vshrl.u32 %v3745_v21, 16  ;;  %4253 = vmatprep.subr.bf16.mxu1 %v4499_v6  ;;  %v2857_v63 = vshll.u32 %v3745_v21, 16  ;;  %v3757_v11 = vld [vmem:[%s4618_s21 + $0x6c] sm:$0xf]  ;;  %v3748_v21 = vld [vmem:[%s4618_s21 + $0x40] sm:$0xf] }
  0xc4   : >> { %v1369_v20 = vor.u32 %v5856_v28, %v5854_v23  ;;  %v5581_v46 = vcombine.low %v1343_v9, %v1352_v7  ;;  %v2863_v15 = vshll.u32 %v3746_v10, 16  ;;  %v2867_v53 = vshrl.u32 %v3746_v10, 16  ;;  %4205 = vmatmul.mubr.bf16.vlgmr.msra.gmra.mrb[0].mxu0 %v3730_v58  ;;  %v3758_v28 = vld [vmem:[%s4618_s21 + $0x70] sm:$0xf] }
  0xc5   : >> { %v5585_v54 = vsel %vm5039_vm3, %v1353_v61, %v1360_v42  ;;  %v2856_v55 = vrot.slane %v2854_v22, 4  ;;  %v2873_v41 = vshll.u32 %v3747_v39, 16  ;;  %v2877_v16 = vshrl.u32 %v3747_v39, 16  ;;  %4221 = vmatpush3.bf16.msra.mxu0 %v5440_v45  ;;  %4208 = vmatprep.mubr.bf16.mxu0 %v3731_v26  ;;  %v3749_v39 = vld [vmem:[%s4618_s21 + $0x44] sm:$0x1] }
  0xc6   : >> { %v5593_v4 = vsel %vm5039_vm3, %v1362_v51, %v1369_v20  ;;  %v2859_v34 = vrot.slane %v2857_v63, 5  ;;  %v5599_v24 = vrot.slane %v2863_v15, 5  ;;  %v2869_v2 = vrot.slane %v2867_v53, 4  ;;  %4222 = vmatprep.subr.bf16.mxu0 %v4499_v6  ;;  %4261 = vmatpush3.bf16.msra.mxu1 %v4499_v6  ;;  %v3750_v15 = vld [vmem:[%s4618_s21 + $0x4c] sm:$0xf] }
  0xc7   : >> { %v3562_v5 = vcombine.low %v5585_v54, %v5593_v4  ;;  %v2942_v40 = vshrl.u32 %v3755_v18, 16  ;;  %v2875_v48 = vrot.slane %v2873_v41, 5  ;;  %v2879_v58 = vrot.slane %v2877_v16, 4  ;;  %4254 = vmatprep.subr.bf16.mxu1 %v4502_v0  ;;  %v3751_v41 = vld [vmem:[%s4618_s21 + $0x50] sm:$0xf] }
  0xc8   : >> { %v2945_v56 = vshll.u32 %v3755_v18, 16  ;;  %v2951_v17 = vshll.u32 %v3756_v50, 16  ;;  %v2860_v45 = vor.u32 %v2859_v34, %v2856_v55  ;;  %v2870_v26 = vor.u32 %v2869_v2, %v5599_v24  ;;  %v3759_v18 = vld [vmem:[%s4618_s21 + $0x74] sm:$0x1] }
  0xc9   : >> { %v2944_v27 = vrot.slane %v2942_v40, 4  ;;  %v2955_v59 = vshrl.u32 %v3756_v50, 16  ;;  %v2880_v61 = vor.u32 %v2879_v58, %v2875_v48  ;;  %v2961_v35 = vshll.u32 %v3757_v11, 16  ;;  %4223 = vmatpush3.bf16.msra.mxu0 %v4499_v6  ;;  %4081 = vmatmul.mubr.bf16.gmra.mrb[4].mxu1 %v3558_v62 }
  0xca   : >> { %v2947_v19 = vrot.slane %v2945_v56, 5  ;;  %v5607_v3 = vrot.slane %v2951_v17, 5  ;;  %v2861_v42 = vrot.slane %v2860_v45, 4  ;;  %v2871_v10 = vrot.slane %v2870_v26, 4  ;;  %4224 = vmatprep.subr.bf16.mxu0 %v4502_v0  ;;  %4262 = vmatpush3.bf16.msra.mxu1 %v4502_v0  ;;  %v5671_v17 = vld [vmem:[%s5778_s1 + $0x230] sm:$0xff]  }
  0xcb   : >> { %v2957_v9 = vrot.slane %v2955_v59, 4  ;;  %v2965_v7 = vshrl.u32 %v3757_v11, 16  ;;  %v5612_v23 = vrot.slane %v2961_v35, 5  ;;  %v2883_v38 = vshll.u32 %v3748_v21, 16  ;;  %4255 = vmatprep.subr.bf16.mxu1 %v4503_v37  ;;  %4084 = vmatprep.mubr.bf16.mxu1 %v5562_v33  ;;  %v3752_v11 = vld [vmem:[%s4618_s21 + $0x54] sm:$0xf] }
  0xcc   : >> { %v2948_v51 = vor.u32 %v2947_v19, %v2944_v27  ;;  %v3734_v25 = vcombine.low %v5389_v52, %v5394_v29  ;;  %v5621_v62 = vrot.slane %v2880_v61, 4  ;;  %4209 = vmatmul.mubr.bf16.gmra.mrb[4].mxu0 %v3732_v57  ;;  %v2866_v33 = vsel %vm5088_vm5, %v2861_v42, %v5599_v24  ;;  %v3761_v61 = vld [vmem:[%s4618_s21 + $0x80] sm:$0xf] }
  0xcd   : >> { %v2958_v6 = vor.u32 %v2957_v9, %v5607_v3  ;;  %v2967_v20 = vrot.slane %v2965_v7, 4  ;;  %v2876_v52 = vsel %vm5088_vm5, %v2871_v10, %v2875_v48  ;;  %v2887_v22 = vshrl.u32 %v3748_v21, 16  ;;  %4225 = vmatpush3.bf16.msra.mxu0 %v4502_v0  ;;  %4212 = vmatprep.mubr.bf16.mxu0 %v3733_v14 }
  0xce   : >> { %v2949_v29 = vrot.slane %v2948_v51, 4  ;;  %v3735_v43 = vcombine.low %v5429_v13, %v5435_v8  ;;  %v5639_v57 = vrot.slane %v2883_v38, 5  ;;  %v2971_v63 = vshll.u32 %v3758_v28, 16  ;;  %4226 = vmatprep.subr.bf16.mxu0 %v4503_v37  ;;  %4263 = vmatpush3.bf16.msra.mxu1 %v4503_v37  ;;  %v3762_v51 = vld [vmem:[%s4618_s21 + $0x84] sm:$0xf] }
  0xcf   : >> { %v2959_v44 = vrot.slane %v2958_v6, 4  ;;  %v2968_v53 = vor.u32 %v2967_v20, %v5612_v23  ;;  %v2889_v50 = vrot.slane %v2887_v22, 4  ;;  %v2893_v55 = vshll.u32 %v3749_v39, 16  ;;  %4256 = vmatprep.subr.bf16.mxu1 %v4506_v12 }
  0xd0   : >> { %v2975_v0 = vshrl.u32 %v3758_v28, 16  ;;  %v3736_v60 = vcombine.low %v5458_v30, %v5461_v36  ;;  %v5649_v13 = vcombine.low %v2866_v33, %v2876_v52  ;;  %v2954_v8 = vsel %vm5088_vm5, %v2949_v29, %v5607_v3  ;;  %v3753_v52 = vld [vmem:[%s4618_s21 + $0x58] sm:$0xf] }
  0xd1   : >> { %v5654_v14 = vrot.slane %v2971_v63, 5  ;;  %v2964_v16 = vsel %vm5088_vm5, %v2959_v44, %v5612_v23  ;;  %v2886_v34 = vsel %vm5088_vm5, %v5621_v62, %v5639_v57  ;;  %v2981_v2 = vshll.u32 %v3759_v18, 16  ;;  %4227 = vmatpush3.bf16.msra.mxu0 %v4503_v37  ;;  %4085 = vmatmul.mubr.bf16.gmra.mrb[8].mxu1 %v3560_v47  ;;  %v4511_v23 = vld [vmem:[%s5778_s1 + $0x238] sm:$0xff]  }
  0xd2   : >> { %v2977_v24 = vrot.slane %v2975_v0, 4  ;;  %v2890_v40 = vor.u32 %v2889_v50, %v5639_v57  ;;  %v2898_v48 = vshrl.u32 %v3750_v15, 16  ;;  %v2901_v58 = vshll.u32 %v3750_v15, 16  ;;  %4228 = vmatprep.subr.bf16.mxu0 %v4506_v12  ;;  %4264 = vmatpush3.bf16.msra.mxu1 %v4506_v12 }
  0xd3   : >> { %v2907_v56 = vshll.u32 %v3751_v41, 16  ;;  %v2969_v45 = vrot.slane %v2968_v53, 4  ;;  %v5673_v26 = vrot.slane %v2893_v55, 5  ;;  %v2911_v1 = vshrl.u32 %v3751_v41, 16  ;;  %4257 = vmatprep.subr.bf16.mxu1 %v4507_v31  ;;  %4088 = vmatprep.mubr.bf16.mxu1 %v5581_v46  ;;  %v3754_v53 = vld [vmem:[%s4618_s21 + $0x5c] sm:$0x1] }
  0xd4   : >> { %v2978_v37 = vor.u32 %v2977_v24, %v5654_v14  ;;  %v2900_v47 = vrot.slane %v2898_v48, 4  ;;  %v2903_v27 = vrot.slane %v2901_v58, 5  ;;  %v2917_v21 = vshll.u32 %v3752_v11, 16  ;;  %4213 = vmatmul.mubr.bf16.gmra.mrb[8].mxu0 %v3734_v25 }
  0xd5   : >> { %v5678_v59 = vrot.slane %v2907_v56, 5  ;;  %v3785_v19 = vcombine.low %v2954_v8, %v2964_v16  ;;  %v2983_v35 = vrot.slane %v2981_v2, 5  ;;  %v2913_v42 = vrot.slane %v2911_v1, 4  ;;  %4229 = vmatpush3.bf16.msra.mxu0 %v4506_v12  ;;  %4216 = vmatprep.mubr.bf16.mxu0 %v3735_v43  ;;  %v3763_v8 = vld [vmem:[%s4618_s21 + $0x88] sm:$0xf] }
  0xd6   : >> { %v2979_v3 = vrot.slane %v2978_v37, 4  ;;  %v2891_v10 = vrot.slane %v2890_v40, 4  ;;  %v2904_v9 = vor.u32 %v2903_v27, %v2900_v47  ;;  %v2921_v7 = vshrl.u32 %v3752_v11, 16  ;;  %4230 = vmatprep.subr.bf16.mxu0 %v4507_v31  ;;  %4265 = vmatpush3.bf16.msra.mxu1 %v4507_v31  ;;  %v3764_v56 = vld [vmem:[%s4618_s21 + $0x8c] sm:$0x1]  ;;  %s3819_s21 = sshll.u32 %s4526_s24, 5 }
  0xd7   : >> { %v2986_v46 = vshrl.u32 %v3760_v49, 16  ;;  %v2974_v38 = vsel %vm5088_vm5, %v2969_v45, %v5654_v14  ;;  %v2914_v28 = vor.u32 %v2913_v42, %v5678_v59  ;;  %v2989_v25 = vshll.u32 %v3760_v49, 16  ;;  %4258 = vmatprep.subr.bf16.mxu1 %v5671_v17  ;;  %s5733_s11 = scalar_lea.vmem %s4571_s23, %s3819_s21  ;;  %s187_s24 = sadd.s32 1, %s4526_s24  }
  0xd8   : >> { %v2995_v12 = vshll.u32 %v3761_v61, 16  ;;  %v2905_v6 = vrot.slane %v2904_v9, 4  ;;  %v2919_v20 = vrot.slane %v2917_v21, 5  ;;  %v2999_v33 = vshrl.u32 %v3761_v61, 16  ;;  %p184_p4 = scmp.ge.s32.totalorder %s187_s24, 8  }
  0xd9   : >> { %v2988_v39 = vrot.slane %v2986_v46, 4  ;;  %v2984_v29 = vsel %vm5088_vm5, %v2979_v3, %v2983_v35  ;;  %v2991_v22 = vrot.slane %v2989_v25, 5  ;;  %v3005_v43 = vshll.u32 %v3762_v51, 16  ;;  %4231 = vmatpush3.bf16.msra.mxu0 %v4507_v31  ;;  %4089 = vmatmul.mubr.bf16.gmra.mrb[12].mxu1 %v3562_v5 }
  0xda   : >> { %v2997_v18 = vrot.slane %v2995_v12, 5  ;;  %v2896_v44 = vsel %vm5088_vm5, %v2891_v10, %v5673_v26  ;;  %v3001_v63 = vrot.slane %v2999_v33, 4  ;;  %v3009_v15 = vshrl.u32 %v3762_v51, 16  ;;  %4232 = vmatprep.subr.bf16.mxu0 %v5671_v17  ;;  %4266 = vmatpush3.bf16.msra.mxu1 %v5671_v17 }
  0xdb   : >> { %v2923_v50 = vrot.slane %v2921_v7, 4  ;;  %v2915_v55 = vrot.slane %v2914_v28, 4  ;;  %v2992_v0 = vor.u32 %v2991_v22, %v2988_v39  ;;  %v3007_v41 = vrot.slane %v3005_v43, 5  ;;  %4259 = vmatprep.subr.bf16.mxu1 %v4511_v23  ;;  %4244 = vmatprep.mubr.bf16.mxu1 %v3785_v19 }
  0xdc   : >> { %v2927_v31 = vshll.u32 %v3753_v52, 16  ;;  %v3786_v54 = vcombine.low %v2974_v38, %v2984_v29  ;;  %v2910_v4 = vsel %vm5088_vm5, %v2905_v6, %v5678_v59  ;;  %v3002_v5 = vor.u32 %v3001_v63, %v2997_v18  ;;  %4217 = vmatmul.mubr.bf16.gmra.mrb[12].mxu0 %v3736_v60 }
  0xdd   : >> { %v2931_v14 = vshrl.u32 %v3753_v52, 16  ;;  %v2993_v16 = vrot.slane %v2992_v0, 4  ;;  %v2924_v24 = vor.u32 %v2923_v50, %v2919_v20  ;;  %v3011_v11 = vrot.slane %v3009_v15, 4  ;;  %4233 = vmatpush3.bf16.msra.mxu0 %v5671_v17  ;;  %4236 = vmatprep.mubr.bf16.mxu0 %v5649_v13 }
  0xde   : >> { %v2929_v2 = vrot.slane %v2927_v31, 5  ;;  %v3003_v40 = vrot.slane %v3002_v5, 4  ;;  %v2937_v58 = vshll.u32 %v3754_v53, 16  ;;  %v3015_v45 = vshll.u32 %v3763_v8, 16  ;;  %4234 = vmatprep.subr.bf16.mxu0 %v4511_v23  ;;  %4267 = vmatpush3.bf16.msra.mxu1 %v4511_v23 }
  0xdf   : >> { %v2933_v48 = vrot.slane %v2931_v14, 4  ;;  %v2920_v26 = vsel %vm5088_vm5, %v2915_v55, %v2919_v20  ;;  %v2998_v30 = vsel %vm5088_vm5, %v2993_v16, %v2997_v18  ;;  %v3012_v36 = vor.u32 %v3011_v11, %v3007_v41 }
  0xe0   : >> { %v3019_v60 = vshrl.u32 %v3763_v8, 16  ;;  %v3782_v13 = vcombine.low %v2886_v34, %v2896_v44  ;;  %v3008_v17 = vsel %vm5088_vm5, %v3003_v40, %v3007_v41  ;;  %v3017_v1 = vrot.slane %v3015_v45, 5 }
  0xe1   : >> { %v2934_v37 = vor.u32 %v2933_v48, %v2929_v2  ;;  %v3787_v49 = vcombine.low %v2998_v30, %v3008_v17  ;;  %v3013_v47 = vrot.slane %v3012_v36, 4  ;;  %v3025_v59 = vshll.u32 %v3764_v56, 16  ;;  %4235 = vmatpush3.bf16.msra.mxu0 %v4511_v23  ;;  %4245 = vmatmul.mubr.bf16.vlgmr.msra.gmra.mrb[16].mxu1 %v3786_v54  ;;  %v5857_v17 = vld [vmem:[#allocation3_spill] sm:$0xff] }
  0xe2   : >> { %v3021_v27 = vrot.slane %v3019_v60, 4  ;;  %v3783_v21 = vcombine.low %v2910_v4, %v2920_v26  ;;  %v2925_v61 = vrot.slane %v2924_v24, 4  ;;  %v2939_v3 = vrot.slane %v2937_v58, 5 }
  0xe3   : >> { %v2935_v19 = vrot.slane %v2934_v37, 4  ;;  %4248 = vmatprep.mubr.bf16.mxu1 %v3787_v49  ;;  %v3027_v57 = vrot.slane %v3025_v59, 5  ;;  %v3018_v34 = vsel %vm5088_vm5, %v3013_v47, %v3017_v1  ;;  %v4529_v46 = vmov 0  }
  0xe4   : >> { %v3022_v62 = vor.u32 %v3021_v27, %v3017_v1  ;;  %4237 = vmatmul.mubr.bf16.vlgmr.msra.gmra.mrb[0].mxu0 %v3782_v13  ;;  %v2930_v42 = vsel %vm5088_vm5, %v2925_v61, %v2929_v2  ;;  %3808 = vst [vmem:[%s5733_s11 + $0x10] sm:$0xf] %v4529_v46  ;;  %3809 = vst [vmem:[%s5733_s11 + $0x20] sm:$0xf] %v4529_v46 }
  0xe5   : >> { %4240 = vmatprep.mubr.bf16.mxu0 %v3783_v21  ;;  %v2940_v10 = vsel %vm5088_vm5, %v2935_v19, %v2939_v3  ;;  %3810 = vst [vmem:[%s5733_s11 + $0x1c] sm:$0xf] %v4529_v46  ;;  %3811 = vst [vmem:[%s5733_s11 + $0x2c] sm:$0xf] %v4529_v46 }
  0xe6   : >> { %v3023_v35 = vrot.slane %v3022_v62, 4  ;;  %v3784_v51 = vcombine.low %v2930_v42, %v2940_v10 }
  0xe8   : >> { %v3028_v9 = vsel %vm5088_vm5, %v3023_v35, %v3027_v57 }
  0xe9   : >> { %v3788_v7 = vcombine.low %v3018_v34, %v3028_v9 }
  0xeb   : >> { %4249 = vmatmul.mubr.bf16.gmra.mrb[20].mxu1 %v3788_v7 }
  0xec   : >> { %4241 = vmatmul.mubr.bf16.gmra.mrb[4].mxu0 %v3784_v51 }
 0x194   : >> { %v4078_v23 = vpop.f32.mrb[0].mxu1 }
 0x195   : >> { %v1502_v38 = vpop.f32.mrb[1].mxu1 }
 0x196   : >> { %v4079_v32 = vpop.f32.mrb[2].mxu1 }
 0x197   : >> { %v1505_v28 = vpop.f32.mrb[3].mxu1 }
 0x19c   : >> { %v5739_v25 = vpop.f32.mrb[4].mxu1 }
 0x19d   : >> { %v5741_v12 = vpop.f32.mrb[5].mxu1 }
 0x19e   : >> { %v5743_v6 = vpop.f32.mrb[6].mxu1 }
 0x19f   : >> { %v5745_v20 = vpop.f32.mrb[7].mxu1 }
 0x1a4   : >> { %v4086_v39 = vpop.f32.mrb[8].mxu1 }
 0x1a5   : >> { %v1534_v33 = vpop.f32.mrb[9].mxu1 }
 0x1a6   : >> { %v4087_v52 = vpop.f32.mrb[10].mxu1 }
 0x1a7   : >> { %v4214_v29 = vpop.f32.mrb[8].mxu0  ;;  %v1537_v22 = vpop.f32.mrb[11].mxu1 }
 0x1a8   : >> { %v4276_v18 = vadd.f32 %v4214_v29, %v4086_v39  ;;  %v2786_v43 = vpop.f32.mrb[9].mxu0 }
 0x1a9   : >> { %v4278_v44 = vadd.f32 %v2786_v43, %v1534_v33  ;;  %v4215_v63 = vpop.f32.mrb[10].mxu0 }
 0x1aa   : >> { %v4280_v15 = vadd.f32 %v4215_v63, %v4087_v52  ;;  %v2789_v53 = vpop.f32.mrb[11].mxu0 }
 0x1ab   : >> { %v4282_v50 = vadd.f32 %v2789_v53, %v1537_v22 }
 0x1ac   : >> { %v4090_v55 = vpop.f32.mrb[12].mxu1 }
 0x1ad   : >> { %v1550_v0 = vpop.f32.mrb[13].mxu1 }
 0x1ae   : >> { %v4091_v41 = vpop.f32.mrb[14].mxu1 }
 0x1af   : >> { %v4218_v31 = vpop.f32.mrb[12].mxu0  ;;  %v1553_v8 = vpop.f32.mrb[15].mxu1 }
 0x1b0   : >> { %v4284_v54 = vadd.f32 %v4218_v31, %v4090_v55  ;;  %v2802_v4 = vpop.f32.mrb[13].mxu0 }
 0x1b1   : >> { %v4286_v5 = vadd.f32 %v2802_v4, %v1550_v0  ;;  %v4219_v14 = vpop.f32.mrb[14].mxu0 }
 0x1b2   : >> { %v4288_v16 = vadd.f32 %v4219_v14, %v4091_v41  ;;  %v2805_v24 = vpop.f32.mrb[15].mxu0 }
 0x1b3   : >> { %v4290_v2 = vadd.f32 %v2805_v24, %v1553_v8 }
 0x1b4   : >> { %v4246_v11 = vpop.f32.mrb[16].mxu1 }
 0x1b5   : >> { %v4277_v40 = vadd.f32 %v4276_v18, %v4246_v11  ;;  %v3192_v48 = vpop.f32.mrb[17].mxu1 }
 0x1b6   : >> { %v4279_v58 = vadd.f32 %v4278_v44, %v3192_v48  ;;  %v4247_v56 = vpop.f32.mrb[18].mxu1 }
 0x1b7   : >> { %v4238_v45 = vpop.f32.mrb[0].mxu0  ;;  %v4281_v26 = vadd.f32 %v4280_v15, %v4247_v56  ;;  %v3195_v30 = vpop.f32.mrb[19].mxu1  ;;  %v3255_v37 = vadd.f32 %v4277_v40, %v5857_v17 }
 0x1b8   : >> { %v4268_v36 = vadd.f32 %v4238_v45, %v4078_v23  ;;  %v3160_v60 = vpop.f32.mrb[1].mxu0  ;;  %v4283_v13 = vadd.f32 %v4282_v50, %v3195_v30  ;;  %v3253_v47 = vadd.f32 %v4279_v58, %v5857_v17 }
 0x1b9   : >> { %v4269_v1 = vadd.f32 %v3160_v60, %v1502_v38  ;;  %v4239_v49 = vpop.f32.mrb[2].mxu0  ;;  %v3256_v59 = vadd.f32 %v4281_v26, %v5857_v17  ;;  %v3271_v57 = vmax.f32 %v3255_v37, 0.0 }
 0x1ba   : >> { %v4270_v27 = vadd.f32 %v4239_v49, %v4079_v32  ;;  %v3163_v21 = vpop.f32.mrb[3].mxu0  ;;  %v3247_v61 = vadd.f32 %v4268_v36, %v5857_v17  ;;  %v3254_v3 = vadd.f32 %v4283_v13, %v5857_v17  ;;  %v3269_v10 = vmax.f32 %v3253_v47, 0.0 }
 0x1bb   : >> { %v4271_v19 = vadd.f32 %v3163_v21, %v1505_v28  ;;  %v3245_v42 = vadd.f32 %v4269_v1, %v5857_v17  ;;  %v3272_v9 = vmax.f32 %v3256_v59, 0.0 }
 0x1bc   : >> { %v3263_v46 = vmax.f32 %v3247_v61, 0.0  ;;  %v3248_v23 = vadd.f32 %v4270_v27, %v5857_v17  ;;  %v3270_v33 = vmax.f32 %v3254_v3, 0.0 }
 0x1bd   : >> { %v3246_v43 = vadd.f32 %v4271_v19, %v5857_v17  ;;  %v3261_v24 = vmax.f32 %v3245_v42, 0.0 }
 0x1be   : >> { %v4250_v62 = vpop.f32.mrb[20].mxu1  ;;  %v3264_v40 = vmax.f32 %v3248_v23, 0.0 }
 0x1bf   : >> { %v4285_v34 = vadd.f32 %v4284_v54, %v4250_v62  ;;  %v3208_v35 = vpop.f32.mrb[21].mxu1  ;;  %v4242_v38 = vpop.f32.mrb[4].mxu0  ;;  %v3262_v45 = vmax.f32 %v3246_v43, 0.0 }
 0x1c0   : >> { %v4287_v7 = vadd.f32 %v4286_v5, %v3208_v35  ;;  %v4251_v51 = vpop.f32.mrb[22].mxu1  ;;  %v4272_v52 = vadd.f32 %v4242_v38, %v5739_v25  ;;  %v3176_v29 = vpop.f32.mrb[5].mxu0 }
 0x1c1   : >> { %v3259_v32 = vadd.f32 %v4285_v34, %v5857_v17  ;;  %v4289_v39 = vadd.f32 %v4288_v16, %v4251_v51  ;;  %v3211_v28 = vpop.f32.mrb[23].mxu1  ;;  %v4273_v63 = vadd.f32 %v3176_v29, %v5741_v12  ;;  %v4243_v15 = vpop.f32.mrb[6].mxu0 }
 0x1c2   : >> { %v3257_v22 = vadd.f32 %v4287_v7, %v5857_v17  ;;  %v4291_v18 = vadd.f32 %v4290_v2, %v3211_v28  ;;  %v3251_v50 = vadd.f32 %v4272_v52, %v5857_v17  ;;  %v4274_v0 = vadd.f32 %v4243_v15, %v5743_v6  ;;  %v3179_v41 = vpop.f32.mrb[7].mxu0 }
 0x1c3   : >> { %v3275_v44 = vmax.f32 %v3259_v32, 0.0  ;;  %v3260_v53 = vadd.f32 %v4289_v39, %v5857_v17  ;;  %v3249_v8 = vadd.f32 %v4273_v63, %v5857_v17  ;;  %v4275_v4 = vadd.f32 %v3179_v41, %v5745_v20 }
 0x1c4   : >> { %v3273_v55 = vmax.f32 %v3257_v22, 0.0  ;;  %v3258_v25 = vadd.f32 %v4291_v18, %v5857_v17  ;;  %v3267_v5 = vmax.f32 %v3251_v50, 0.0  ;;  %v3252_v12 = vadd.f32 %v4274_v0, %v5857_v17 }
 0x1c5   : >> { %v3287_v31 = vmax.f32 %v3271_v57, %v3275_v44  ;;  %v3276_v54 = vmax.f32 %v3260_v53, 0.0  ;;  %v3265_v2 = vmax.f32 %v3249_v8, 0.0  ;;  %v3250_v6 = vadd.f32 %v4275_v4, %v5857_v17 }
 0x1c6   : >> { %v3285_v14 = vmax.f32 %v3269_v10, %v3273_v55  ;;  %v3274_v16 = vmax.f32 %v3258_v25, 0.0  ;;  %v3279_v48 = vmax.f32 %v3263_v46, %v3267_v5  ;;  %v3268_v58 = vmax.f32 %v3252_v12, 0.0 }
 0x1c7   : >> { %3291 = vst [vmem:[#allocation2 + $0x30] sm:$0xff] %v3287_v31  ;;  %v3288_v11 = vmax.f32 %v3272_v9, %v3276_v54  ;;  %v3277_v26 = vmax.f32 %v3261_v24, %v3265_v2  ;;  %v3266_v20 = vmax.f32 %v3250_v6, 0.0 }
 0x1c8   : >> { %3289 = vst [vmem:[#allocation2 + $0x20] sm:$0xff] %v3285_v14  ;;  %v3286_v56 = vmax.f32 %v3270_v33, %v3274_v16  ;;  %3283 = vst [vmem:[#allocation2 + $0x10] sm:$0xff] %v3279_v48  ;;  %v3280_v30 = vmax.f32 %v3264_v40, %v3268_v58 }
 0x1c9   : >> { %3292 = vst [vmem:[#allocation2 + $0x38] sm:$0xff] %v3288_v11  ;;  %3281 = vst [vmem:[#allocation2] sm:$0xff] %v3277_v26  ;;  %v3278_v36 = vmax.f32 %v3262_v45, %v3266_v20 }
 0x1ca   : >> { %3290 = vst [vmem:[#allocation2 + $0x28] sm:$0xff] %v3286_v56  ;;  %3284 = vst [vmem:[#allocation2 + $0x18] sm:$0xff] %v3280_v30 }
 0x1cb   : >> { %3282 = vst [vmem:[#allocation2 + $0x8] sm:$0xff] %v3278_v36 }
 0x1d0   : >> { %v3299_v60 = vld [vmem:[#allocation2 + $0x30] ss:$2 sm:$0xff]  ;;  %v3307_v13 = vld [vmem:[#allocation2 + $0x31] ss:$2 sm:$0xff] }
 0x1d1   : >> { %v3311_v37 = vmax.f32 %v3299_v60, %v3307_v13  ;;  %v3297_v1 = vld [vmem:[#allocation2 + $0x20] ss:$2 sm:$0xff]  ;;  %v3305_v49 = vld [vmem:[#allocation2 + $0x21] ss:$2 sm:$0xff]  ;;  %v3295_v27 = vld [vmem:[#allocation2 + $0x10] ss:$2 sm:$0xff] }
 0x1d2   : >> { %v3310_v47 = vmax.f32 %v3297_v1, %v3305_v49  ;;  %v3303_v59 = vld [vmem:[#allocation2 + $0x11] ss:$2 sm:$0xff]  ;;  %v3293_v19 = vld [vmem:[#allocation2] ss:$2 sm:$0xff]  ;;  %v3301_v3 = vld [vmem:[#allocation2 + $0x1] ss:$2 sm:$0xff] }
 0x1d3   : >> { %v3818_v21 = vpack.c.bf16 %v3311_v37, %v3311_v37  ;;  %v3309_v61 = vmax.f32 %v3295_v27, %v3303_v59  ;;  %v3308_v57 = vmax.f32 %v3293_v19, %v3301_v3  ;;  %186 = sbr.rel (!%p184_p4) target bundleno = 22 (0x16), region = 89 }
 0x1d4   : >> { %v3817_v62 = vpack.c.bf16 %v3310_v47, %v3310_v47 }
 0x1d5   : >> { %3807 = vst [vmem:[%s5733_s11 + $0x28] sm:$0xf] %v3818_v21  ;;  %v3816_v34 = vpack.c.bf16 %v3309_v61, %v3309_v61  ;;  %v3815_v35 = vpack.c.bf16 %v3308_v57, %v3308_v57 }
 0x1d6   : >> { %3806 = vst [vmem:[%s5733_s11 + $0x24] sm:$0xf] %v3817_v62 }
 0x1d7   : >> { %3805 = vst [vmem:[%s5733_s11 + $0x18] sm:$0xf] %v3816_v34  ;;  %3804 = vst [vmem:[%s5733_s11 + $0x14] sm:$0xf] %v3815_v35 }
 0x1da PF: > { %s13_s12 = sadd.s32 1, %s4522_s12  }
 0x1db   : > { %p10_p5 = scmp.ge.s32.totalorder %s13_s12, 4  }
 0x1dd   :  { %12 = sbr.rel (!%p10_p5) target bundleno = 1 (0x1), region = 100 }

// kernel: improved_cnn_forward.7
= control target key start
LH: loop header
LB: loop body
LE: loop exit
PB: predicated region body
PF: predicated region fallthrough
CT: control target
= control target key end

     0   :  { %10 = vsyncpa [#allocation4], 0  ;;  %s3335_s18 = smov 0   ;;  %s3752_s0 = inlined_call_operand.vmem [shape: bf16[2,8192], index: 0, kind: input, shape index: {}]   ;;  %s3753_s1 = inlined_call_operand.vmem [shape: bf16[8192,256], index: 1, kind: input, shape index: {}]   ;;  %s3754_s2 = inlined_call_operand.vmem [shape: f32[1,256], index: 2, kind: input, shape index: {}]   ;;  %s3755_s3 = inlined_call_operand.vmem [shape: bf16[256,128], index: 3, kind: input, shape index: {}]   ;;  %s3756_s4 = inlined_call_operand.vmem [shape: f32[1,128], index: 4, kind: input, shape index: {}]   ;;  %s3757_s5 = inlined_call_operand.hbm [shape: f32[2,128], index: 5, kind: output, shape index: {}]  }
   0x1 LB: > { %s3341_s19 = sadd.s32 4294967295, %s3299_s18   ;;  %p2510_p0 = scmp.ge.s32.totalorder %s3299_s18, 1  ;;  %s3299_s18 = sphi %s3335_s18, %s16_s18  }
   0x2   : > { %p195_p1 = scmp.lt.s32.totalorder %s3299_s18, 5 }
   0x4   : > { %p196_p2 = pnand %p2510_p0, %p195_p1 }
   0x5   : > { %s2511_s20 = sshll.u32 (!%p196_p2), %s3341_s19, 4  ;;  %s2512_s21 = sshll.u32 (!%p196_p2), %s3341_s19, 8 }
   0x6   : > { %199 = sbr.rel (%p196_p2) target bundleno = 763 (0x2fb), region = 40  ;;  %p224_p3 = scmp.lt.s32.totalorder (!%p196_p2), %s2511_s20, 63 }
   0x7   : > { %p229_p4 = scmp.lt.s32.totalorder (!%p196_p2), %s2512_s21, 1023  ;;  %p2515_p5 = scmp.ne.s32.totalorder (!%p196_p2), %s3341_s19, 0 }
   0xd   : > { %s3759_s20 = smov (!%p224_p3, %s2511_s20), 63  ;;  %s3761_s21 = smov (!%p229_p4, %s2512_s21), 1023 }
   0xe   : > { %s3350_s24 = scalar_lea.vmem %s3752_s0, %s3759_s20  ;;  %s2794_s25 = sshll.u32 %s3761_s21, 3  ;;  %v3301_v0 = vmov (!%p2515_p5), 0.0  }
   0xf   : > { %s3355_s28 = scalar_lea.vmem %s3753_s1, %s2794_s25  ;;  %239 = sbr.rel (%p2515_p5) target bundleno = 22 (0x16), region = 44  ;;  %240 = vst [vmem:[#allocation2] sm:$0xf] (!%p2515_p5), %v3301_v0 }
  0x16 PF: > { %v2861_v1 = vld [vmem:[%s3355_s28 + $0x4] ss:$8 sps:$4 sm:$0xff]   ;;  %v2865_v3 = vld [vmem:[%s3355_s28] ss:$8 sps:$4 sm:$0xff]   ;;  %v2867_v5 = vld [vmem:[%s3355_s28 + $0x14] ss:$8 sps:$4 sm:$0xff]   ;;  %v506_v39 = vlaneseq }
  0x17   : > { %v2863_v2 = vld [vmem:[%s3355_s28 + $0x404] ss:$8 sps:$4 sm:$0xff]   ;;  %1896 = vmatprep.subr.bf16.mxu1 %v2861_v1  ;;  %v2866_v4 = vld [vmem:[%s3355_s28 + $0x400] ss:$8 sps:$4 sm:$0xff]   ;;  %v2869_v6 = vld [vmem:[%s3355_s28 + $0x414] ss:$8 sps:$4 sm:$0xff]  }
  0x18   : > { %2060 = vmatprep.subr.bf16.mxu0 %v2863_v2  ;;  %1897 = vmatpush1.bf16.msra.mxu1 %v2865_v3  ;;  %v2871_v7 = vld [vmem:[%s3355_s28 + $0x10] ss:$8 sps:$4 sm:$0xff]   ;;  %v2873_v9 = vld [vmem:[%s3355_s28 + $0x24] ss:$8 sps:$4 sm:$0xff]   ;;  %v2877_v11 = vld [vmem:[%s3355_s28 + $0x20] ss:$8 sps:$4 sm:$0xff]  }
  0x19   : > { %2061 = vmatpush1.bf16.msra.mxu0 %v2866_v4  ;;  %1898 = vmatprep.subr.bf16.mxu1 %v2867_v5  ;;  %v2872_v8 = vld [vmem:[%s3355_s28 + $0x410] ss:$8 sps:$4 sm:$0xff]   ;;  %v2875_v10 = vld [vmem:[%s3355_s28 + $0x424] ss:$8 sps:$4 sm:$0xff]   ;;  %v2878_v12 = vld [vmem:[%s3355_s28 + $0x420] ss:$8 sps:$4 sm:$0xff]  }
  0x1a   : > { %2062 = vmatprep.subr.bf16.mxu0 %v2869_v6  ;;  %v2879_v13 = vld [vmem:[%s3355_s28 + $0x34] ss:$8 sps:$4 sm:$0xff]   ;;  %v2883_v15 = vld [vmem:[%s3355_s28 + $0x30] ss:$8 sps:$4 sm:$0xff]   ;;  %v2885_v17 = vld [vmem:[%s3355_s28 + $0x44] ss:$8 sps:$4 sm:$0xff]  }
  0x1b   : > { %v2881_v14 = vld [vmem:[%s3355_s28 + $0x434] ss:$8 sps:$4 sm:$0xff]   ;;  %v2884_v16 = vld [vmem:[%s3355_s28 + $0x430] ss:$8 sps:$4 sm:$0xff]   ;;  %v2887_v18 = vld [vmem:[%s3355_s28 + $0x444] ss:$8 sps:$4 sm:$0xff]  }
  0x1c   : > { %1899 = vmatpush1.bf16.msra.mxu1 %v2871_v7  ;;  %v2889_v19 = vld [vmem:[%s3355_s28 + $0x40] ss:$8 sps:$4 sm:$0xff]   ;;  %v2891_v21 = vld [vmem:[%s3355_s28 + $0x54] ss:$8 sps:$4 sm:$0xff]   ;;  %v2895_v23 = vld [vmem:[%s3355_s28 + $0x50] ss:$8 sps:$4 sm:$0xff]  }
  0x1d   : > { %2063 = vmatpush1.bf16.msra.mxu0 %v2872_v8  ;;  %1900 = vmatprep.subr.bf16.mxu1 %v2873_v9  ;;  %v2890_v20 = vld [vmem:[%s3355_s28 + $0x440] ss:$8 sps:$4 sm:$0xff]   ;;  %v2893_v22 = vld [vmem:[%s3355_s28 + $0x454] ss:$8 sps:$4 sm:$0xff]   ;;  %v2896_v24 = vld [vmem:[%s3355_s28 + $0x450] ss:$8 sps:$4 sm:$0xff]  }
  0x1e   : > { %2064 = vmatprep.subr.bf16.mxu0 %v2875_v10  ;;  %v2897_v25 = vld [vmem:[%s3355_s28 + $0x64] ss:$8 sps:$4 sm:$0xff]   ;;  %v2901_v27 = vld [vmem:[%s3355_s28 + $0x60] ss:$8 sps:$4 sm:$0xff]   ;;  %v2903_v29 = vld [vmem:[%s3355_s28 + $0x74] ss:$8 sps:$4 sm:$0xff]  }
  0x1f   : > { %v2899_v26 = vld [vmem:[%s3355_s28 + $0x464] ss:$8 sps:$4 sm:$0xff]   ;;  %v2902_v28 = vld [vmem:[%s3355_s28 + $0x460] ss:$8 sps:$4 sm:$0xff]   ;;  %v2905_v30 = vld [vmem:[%s3355_s28 + $0x474] ss:$8 sps:$4 sm:$0xff]  }
  0x20   : > { %1901 = vmatpush1.bf16.msra.mxu1 %v2877_v11  ;;  %v2907_v31 = vld [vmem:[%s3355_s28 + $0x70] ss:$8 sps:$4 sm:$0xff]   ;;  %v2909_v33 = vld [vmem:[%s3355_s28 + $0x84] ss:$8 sps:$4 sm:$0xff]   ;;  %v2913_v35 = vld [vmem:[%s3355_s28 + $0x80] ss:$8 sps:$4 sm:$0xff]  }
  0x21   : > { %2065 = vmatpush1.bf16.msra.mxu0 %v2878_v12  ;;  %1902 = vmatprep.subr.bf16.mxu1 %v2879_v13  ;;  %v2908_v32 = vld [vmem:[%s3355_s28 + $0x470] ss:$8 sps:$4 sm:$0xff]   ;;  %v2911_v34 = vld [vmem:[%s3355_s28 + $0x484] ss:$8 sps:$4 sm:$0xff]   ;;  %v2914_v36 = vld [vmem:[%s3355_s28 + $0x480] ss:$8 sps:$4 sm:$0xff]  }
  0x22   : > { %2066 = vmatprep.subr.bf16.mxu0 %v2881_v14  ;;  %v3302_v37 = vmov 1966171168   ;;  %v2915_v40 = vld [vmem:[%s3355_s28 + $0x94] ss:$8 sps:$4 sm:$0xff]   ;;  %v2919_v42 = vld [vmem:[%s3355_s28 + $0x90] ss:$8 sps:$4 sm:$0xff]  }
  0x23   : > { %v504_v38 = vunpack.c.l.s4 %v3302_v37  ;;  %v2917_v41 = vld [vmem:[%s3355_s28 + $0x494] ss:$8 sps:$4 sm:$0xff]   ;;  %v3397_v44 = vshrl.u32 %v506_v39, 7  ;;  %v2920_v45 = vld [vmem:[%s3355_s28 + $0x490] ss:$8 sps:$4 sm:$0xff]   ;;  %v242_v53 = vld [vmem:[%s3350_s24] sm:$0xff] }
  0x24   : > { %1903 = vmatpush1.bf16.msra.mxu1 %v2883_v15  ;;  %v2921_v46 = vld [vmem:[%s3355_s28 + $0xa4] ss:$8 sps:$4 sm:$0xff]   ;;  %v2925_v48 = vld [vmem:[%s3355_s28 + $0xa0] ss:$8 sps:$4 sm:$0xff]   ;;  %v2927_v51 = vld [vmem:[%s3355_s28 + $0xb4] ss:$8 sps:$4 sm:$0xff]   ;;  %v502_v13 = vcombine.high %v242_v53, %v242_v53 }
  0x25   : > { %2067 = vmatpush1.bf16.msra.mxu0 %v2884_v16  ;;  %1904 = vmatprep.subr.bf16.mxu1 %v2885_v17  ;;  %v505_v43 = vunpack.c.0.s8 %v504_v38  ;;  %v2923_v47 = vld [vmem:[%s3355_s28 + $0x4a4] ss:$8 sps:$4 sm:$0xff]   ;;  %v2926_v49 = vld [vmem:[%s3355_s28 + $0x4a0] ss:$8 sps:$4 sm:$0xff]   ;;  %v2929_v52 = vld [vmem:[%s3355_s28 + $0x4b4] ss:$8 sps:$4 sm:$0xff]  }
  0x26   : > { %2068 = vmatprep.subr.bf16.mxu0 %v2887_v18  ;;  %v2931_v54 = vld [vmem:[%s3355_s28 + $0xb0] ss:$8 sps:$4 sm:$0xff]   ;;  %v243_v57 = vld [vmem:[%s3350_s24 + $0x8] sm:$0xff]  ;;  %v2939_v2 = vld [vmem:[%s3355_s28 + $0xd4] ss:$8 sps:$4 sm:$0xff]   ;;  %p2772_p6 = scmp.ne.s32.totalorder %s3341_s19, 3 }
  0x27   : > { %v3405_v50 = vsub.s32 %v505_v43, %v3397_v44  ;;  %v2932_v56 = vld [vmem:[%s3355_s28 + $0x4b0] ss:$8 sps:$4 sm:$0xff]   ;;  %v2933_v58 = vld [vmem:[%s3355_s28 + $0xc4] ss:$8 sps:$4 sm:$0xff]   ;;  %v2937_v0 = vld [vmem:[%s3355_s28 + $0xc0] ss:$8 sps:$4 sm:$0xff]   ;;  %v551_v14 = vcombine.high %v243_v57, %v243_v57 }
  0x28   : > { %1905 = vmatpush1.bf16.msra.mxu1 %v2889_v19  ;;  %v2935_v59 = vld [vmem:[%s3355_s28 + $0x4c4] ss:$8 sps:$4 sm:$0xff]   ;;  %v2938_v1 = vld [vmem:[%s3355_s28 + $0x4c0] ss:$8 sps:$4 sm:$0xff]   ;;  %v2941_v3 = vld [vmem:[%s3355_s28 + $0x4d4] ss:$8 sps:$4 sm:$0xff]  }
  0x29   : > { %2069 = vmatpush1.bf16.msra.mxu0 %v2890_v20  ;;  %1906 = vmatprep.subr.bf16.mxu1 %v2891_v21  ;;  %v509_v55 = vrot.slane %v242_v53, %v3405_v50  ;;  %v558_v61 = vrot.slane %v243_v57, %v3405_v50  ;;  %v2943_v5 = vld [vmem:[%s3355_s28 + $0xd0] ss:$8 sps:$4 sm:$0xff]   ;;  %v2945_v7 = vld [vmem:[%s3355_s28 + $0xe4] ss:$8 sps:$4 sm:$0xff]   ;;  %v2949_v9 = vld [vmem:[%s3355_s28 + $0xe0] ss:$8 sps:$4 sm:$0xff]   ;;  %v516_v19 = vrot.slane %v502_v13, %v3405_v50 }
  0x2a   : > { %2070 = vmatprep.subr.bf16.mxu0 %v2893_v22  ;;  %v2944_v6 = vld [vmem:[%s3355_s28 + $0x4d0] ss:$8 sps:$4 sm:$0xff]   ;;  %v2947_v8 = vld [vmem:[%s3355_s28 + $0x4e4] ss:$8 sps:$4 sm:$0xff]   ;;  %v2950_v10 = vld [vmem:[%s3355_s28 + $0x4e0] ss:$8 sps:$4 sm:$0xff]   ;;  %v565_v20 = vrot.slane %v551_v14, %v3405_v50 }
  0x2b   : > { %v517_v60 = vcombine.high %v509_v55, %v509_v55  ;;  %v566_v63 = vcombine.high %v558_v61, %v558_v61  ;;  %v2951_v11 = vld [vmem:[%s3355_s28 + $0xf4] ss:$8 sps:$4 sm:$0xff]   ;;  %v2955_v15 = vld [vmem:[%s3355_s28 + $0xf0] ss:$8 sps:$4 sm:$0xff]   ;;  %v2960_v17 = vld [vmem:[%s3355_s28 + $0x104] ss:$8 sps:$4 sm:$0xff]   ;;  %v3441_v21 = vrot.slane %v509_v55, %v3405_v50  ;;  %v3444_v22 = vrot.slane %v558_v61, %v3405_v50 }
  0x2c   : > { %1907 = vmatpush1.bf16.msra.mxu1 %v2895_v23  ;;  %v2953_v12 = vld [vmem:[%s3355_s28 + $0x4f4] ss:$8 sps:$4 sm:$0xff]   ;;  %v2956_v16 = vld [vmem:[%s3355_s28 + $0x4f0] ss:$8 sps:$4 sm:$0xff]   ;;  %v2964_v18 = vld [vmem:[%s3355_s28 + $0x504] ss:$8 sps:$4 sm:$0xff]   ;;  %v518_v23 = vcombine.high %v516_v19, %v516_v19 }
  0x2d   : > { %2071 = vmatpush1.bf16.msra.mxu0 %v2896_v24  ;;  %1908 = vmatprep.subr.bf16.mxu1 %v2897_v25  ;;  %v3418_v62 = vrot.slane %v517_v60, %v3405_v50  ;;  %v588_v4 = vrot.slane %v566_v63, %v3405_v50  ;;  %v567_v24 = vcombine.high %v565_v20, %v565_v20  ;;  %v2958_v25 = vld [vmem:[%s3355_s28 + $0x100] ss:$8 sps:$4 sm:$0xff]   ;;  %v2973_v37 = vld [vmem:[%s3355_s28 + $0x124] ss:$8 sps:$4 sm:$0xff]   ;;  %v2977_v43 = vld [vmem:[%s3355_s28 + $0x130] ss:$8 sps:$4 sm:$0xff]  }
  0x2e   : > { %2072 = vmatprep.subr.bf16.mxu0 %v2899_v26  ;;  %v2962_v26 = vld [vmem:[%s3355_s28 + $0x500] ss:$8 sps:$4 sm:$0xff]   ;;  %v2976_v38 = vld [vmem:[%s3355_s28 + $0x524] ss:$8 sps:$4 sm:$0xff]   ;;  %v2992_v53 = vld [vmem:[%s3355_s28 + $0x550] ss:$8 sps:$4 sm:$0xff]  }
  0x2f   : > { %1928 = vmatprep.mubr.bf16.mxu1 %v3418_v62  ;;  %2092 = vmatprep.mubr.bf16.mxu0 %v588_v4  ;;  %v2971_v39 = vld [vmem:[%s3355_s28 + $0x120] ss:$8 sps:$4 sm:$0xff]   ;;  %v3000_v55 = vld [vmem:[%s3355_s28 + $0x564] ss:$8 sps:$4 sm:$0xff]   ;;  %v3001_v60 = vld [vmem:[%s3355_s28 + $0x170] ss:$8 sps:$4 sm:$0xff]  }
  0x30   : > { %1909 = vmatpush1.bf16.msra.mxu1 %v2901_v27  ;;  %v2967_v27 = vld [vmem:[%s3355_s28 + $0x114] ss:$8 sps:$4 sm:$0xff]   ;;  %v2998_v57 = vld [vmem:[%s3355_s28 + $0x560] ss:$8 sps:$4 sm:$0xff]   ;;  %v3004_v61 = vld [vmem:[%s3355_s28 + $0x570] ss:$8 sps:$4 sm:$0xff]  }
  0x31   : > { %2073 = vmatpush1.bf16.msra.mxu0 %v2902_v28  ;;  %1910 = vmatprep.subr.bf16.mxu1 %v2903_v29  ;;  %v2970_v28 = vld [vmem:[%s3355_s28 + $0x514] ss:$8 sps:$4 sm:$0xff]   ;;  %v3451_v29 = vrot.slane %v518_v23, %v3405_v50  ;;  %v3012_v63 = vld [vmem:[%s3355_s28 + $0x584] ss:$8 sps:$4 sm:$0xff]   ;;  %v3028_v13 = vld [vmem:[%s3355_s28 + $0x5b0] ss:$8 sps:$4 sm:$0xff]  }
  0x32   : > { %2074 = vmatprep.subr.bf16.mxu0 %v2905_v30  ;;  %v3454_v30 = vrot.slane %v567_v24, %v3405_v50  ;;  %v3033_v14 = vld [vmem:[%s3355_s28 + $0x1c4] ss:$8 sps:$4 sm:$0xff]   ;;  %v3040_v23 = vld [vmem:[%s3355_s28 + $0x5d0] ss:$8 sps:$4 sm:$0xff]  }
  0x33   : > { %v3045_v24 = vld [vmem:[%s3355_s28 + $0x1e4] ss:$8 sps:$4 sm:$0xff]  }
  0x34   : > { %1911 = vmatpush1.bf16.msra.mxu1 %v2907_v31  ;;  %v3457_v31 = vrot.slane %v516_v19, %v3405_v50  ;;  %v3042_v19 = vld [vmem:[%s3355_s28 + $0x5d4] ss:$8 sps:$4 sm:$0xff]  }
  0x35   : > { %2075 = vmatpush1.bf16.msra.mxu0 %v2908_v32  ;;  %1912 = vmatprep.subr.bf16.mxu1 %v2909_v33  ;;  %v549_v32 = vcombine.high %v3418_v62, %v3418_v62  ;;  %v598_v33 = vcombine.high %v588_v4, %v588_v4  ;;  %v3009_v62 = vld [vmem:[%s3355_s28 + $0x184] ss:$8 sps:$4 sm:$0xff]   ;;  %v3013_v4 = vld [vmem:[%s3355_s28 + $0x190] ss:$8 sps:$4 sm:$0xff]  }
  0x36   : > { %2076 = vmatprep.subr.bf16.mxu0 %v2911_v34  ;;  %v3462_v34 = vrot.slane %v565_v20, %v3405_v50  ;;  %v2991_v50 = vld [vmem:[%s3355_s28 + $0x154] ss:$8 sps:$4 sm:$0xff]   ;;  %v3037_v20 = vld [vmem:[%s3355_s28 + $0x1d0] ss:$8 sps:$4 sm:$0xff]  }
  0x38   : > { %1913 = vmatpush1.bf16.msra.mxu1 %v2913_v35  ;;  %v2965_v35 = vld [vmem:[%s3355_s28 + $0x110] ss:$8 sps:$4 sm:$0xff]  }
  0x39   : > { %2077 = vmatpush1.bf16.msra.mxu0 %v2914_v36  ;;  %1914 = vmatprep.subr.bf16.mxu1 %v2915_v40  ;;  %v2968_v36 = vld [vmem:[%s3355_s28 + $0x510] ss:$8 sps:$4 sm:$0xff]   ;;  %v2974_v40 = vld [vmem:[%s3355_s28 + $0x520] ss:$8 sps:$4 sm:$0xff]  }
  0x3a   : > { %2078 = vmatprep.subr.bf16.mxu0 %v2917_v41  ;;  %v2979_v41 = vld [vmem:[%s3355_s28 + $0x134] ss:$8 sps:$4 sm:$0xff]  }
  0x3c   : > { %1915 = vmatpush1.bf16.msra.mxu1 %v2919_v42  ;;  %v2982_v42 = vld [vmem:[%s3355_s28 + $0x534] ss:$8 sps:$4 sm:$0xff]  }
  0x3d   : > { %2079 = vmatpush1.bf16.msra.mxu0 %v2920_v45  ;;  %1916 = vmatprep.subr.bf16.mxu1 %v2921_v46  ;;  %v2980_v45 = vld [vmem:[%s3355_s28 + $0x530] ss:$8 sps:$4 sm:$0xff]   ;;  %v2985_v46 = vld [vmem:[%s3355_s28 + $0x144] ss:$8 sps:$4 sm:$0xff]  }
  0x3e   : > { %2080 = vmatprep.subr.bf16.mxu0 %v2923_v47  ;;  %v2988_v47 = vld [vmem:[%s3355_s28 + $0x544] ss:$8 sps:$4 sm:$0xff]  }
  0x40   : > { %1917 = vmatpush1.bf16.msra.mxu1 %v2925_v48  ;;  %v2983_v48 = vld [vmem:[%s3355_s28 + $0x140] ss:$8 sps:$4 sm:$0xff]  }
  0x41   : > { %2081 = vmatpush1.bf16.msra.mxu0 %v2926_v49  ;;  %1918 = vmatprep.subr.bf16.mxu1 %v2927_v51  ;;  %v2986_v49 = vld [vmem:[%s3355_s28 + $0x540] ss:$8 sps:$4 sm:$0xff]   ;;  %v2994_v51 = vld [vmem:[%s3355_s28 + $0x554] ss:$8 sps:$4 sm:$0xff]  }
  0x42   : > { %2082 = vmatprep.subr.bf16.mxu0 %v2929_v52  ;;  %v2989_v52 = vld [vmem:[%s3355_s28 + $0x150] ss:$8 sps:$4 sm:$0xff]  }
  0x44   : > { %1919 = vmatpush1.bf16.msra.mxu1 %v2931_v54  ;;  %v2997_v54 = vld [vmem:[%s3355_s28 + $0x164] ss:$8 sps:$4 sm:$0xff]  }
  0x45   : > { %2083 = vmatpush1.bf16.msra.mxu0 %v2932_v56  ;;  %1920 = vmatprep.subr.bf16.mxu1 %v2933_v58  ;;  %v2995_v56 = vld [vmem:[%s3355_s28 + $0x160] ss:$8 sps:$4 sm:$0xff]   ;;  %v3003_v58 = vld [vmem:[%s3355_s28 + $0x174] ss:$8 sps:$4 sm:$0xff]  }
  0x46   : > { %2084 = vmatprep.subr.bf16.mxu0 %v2935_v59  ;;  %v3006_v59 = vld [vmem:[%s3355_s28 + $0x574] ss:$8 sps:$4 sm:$0xff]  }
  0x48   : > { %1921 = vmatpush1.bf16.msra.mxu1 %v2937_v0  ;;  %v3007_v0 = vld [vmem:[%s3355_s28 + $0x180] ss:$8 sps:$4 sm:$0xff]  }
  0x49   : > { %2085 = vmatpush1.bf16.msra.mxu0 %v2938_v1  ;;  %1922 = vmatprep.subr.bf16.mxu1 %v2939_v2  ;;  %v3010_v1 = vld [vmem:[%s3355_s28 + $0x580] ss:$8 sps:$4 sm:$0xff]   ;;  %v3015_v2 = vld [vmem:[%s3355_s28 + $0x194] ss:$8 sps:$4 sm:$0xff]  }
  0x4a   : > { %2086 = vmatprep.subr.bf16.mxu0 %v2941_v3  ;;  %v3018_v3 = vld [vmem:[%s3355_s28 + $0x594] ss:$8 sps:$4 sm:$0xff]  }
  0x4c   : > { %1923 = vmatpush1.bf16.msra.mxu1 %v2943_v5  ;;  %v3016_v5 = vld [vmem:[%s3355_s28 + $0x590] ss:$8 sps:$4 sm:$0xff]  }
  0x4d   : > { %2087 = vmatpush1.bf16.msra.mxu0 %v2944_v6  ;;  %1924 = vmatprep.subr.bf16.mxu1 %v2945_v7  ;;  %v3021_v6 = vld [vmem:[%s3355_s28 + $0x1a4] ss:$8 sps:$4 sm:$0xff]  }
  0x4e   : > { %2088 = vmatprep.subr.bf16.mxu0 %v2947_v8  ;;  %v3024_v7 = vld [vmem:[%s3355_s28 + $0x5a4] ss:$8 sps:$4 sm:$0xff]   ;;  %v3019_v8 = vld [vmem:[%s3355_s28 + $0x1a0] ss:$8 sps:$4 sm:$0xff]  }
  0x50   : > { %1925 = vmatpush1.bf16.msra.mxu1 %v2949_v9  ;;  %v3022_v9 = vld [vmem:[%s3355_s28 + $0x5a0] ss:$8 sps:$4 sm:$0xff]  }
  0x51   : > { %2089 = vmatpush1.bf16.msra.mxu0 %v2950_v10  ;;  %1926 = vmatprep.subr.bf16.mxu1 %v2951_v11  ;;  %v3027_v10 = vld [vmem:[%s3355_s28 + $0x1b4] ss:$8 sps:$4 sm:$0xff]  }
  0x52   : > { %2090 = vmatprep.subr.bf16.mxu0 %v2953_v12  ;;  %v3030_v11 = vld [vmem:[%s3355_s28 + $0x5b4] ss:$8 sps:$4 sm:$0xff]   ;;  %v3025_v12 = vld [vmem:[%s3355_s28 + $0x1b0] ss:$8 sps:$4 sm:$0xff]  }
  0x54   : > { %1927 = vmatpush1.bf16.msra.mxu1 %v2955_v15  ;;  %v3036_v15 = vld [vmem:[%s3355_s28 + $0x5c4] ss:$8 sps:$4 sm:$0xff]  }
  0x55   : > { %2091 = vmatpush1.bf16.msra.mxu0 %v2956_v16  ;;  %1937 = vmatprep.subr.bf16.mxu1 %v2960_v17  ;;  %v3031_v16 = vld [vmem:[%s3355_s28 + $0x1c0] ss:$8 sps:$4 sm:$0xff]  }
  0x56   : > { %2101 = vmatprep.subr.bf16.mxu0 %v2964_v18  ;;  %v3034_v17 = vld [vmem:[%s3355_s28 + $0x5c0] ss:$8 sps:$4 sm:$0xff]   ;;  %v3039_v18 = vld [vmem:[%s3355_s28 + $0x1d4] ss:$8 sps:$4 sm:$0xff]  }
  0x57   : > { %1929 = vmatmul.mubr.bf16.vlgmr.msra.gmra.mrb[0].mxu1 %v3441_v21 }
  0x58   : > { %2093 = vmatmul.mubr.bf16.vlgmr.msra.gmra.mrb[0].mxu0 %v3444_v22  ;;  %1938 = vmatpush1.bf16.msra.mxu1 %v2958_v25  ;;  %v3048_v25 = vld [vmem:[%s3355_s28 + $0x5e4] ss:$8 sps:$4 sm:$0xff]  }
  0x59   : > { %2102 = vmatpush1.bf16.msra.mxu0 %v2962_v26  ;;  %1939 = vmatprep.subr.bf16.mxu1 %v2967_v27  ;;  %v3043_v26 = vld [vmem:[%s3355_s28 + $0x1e0] ss:$8 sps:$4 sm:$0xff]  }
  0x5a   : > { %2103 = vmatprep.subr.bf16.mxu0 %v2970_v28  ;;  %1969 = vmatprep.mubr.bf16.mxu1 %v549_v32  ;;  %v3046_v27 = vld [vmem:[%s3355_s28 + $0x5e0] ss:$8 sps:$4 sm:$0xff]   ;;  %v3051_v28 = vld [vmem:[%s3355_s28 + $0x1f4] ss:$8 sps:$4 sm:$0xff]  }
  0x5b   : > { %2133 = vmatprep.mubr.bf16.mxu0 %v598_v33  ;;  %v3054_v32 = vld [vmem:[%s3355_s28 + $0x5f4] ss:$8 sps:$4 sm:$0xff]   ;;  %v3049_v33 = vld [vmem:[%s3355_s28 + $0x1f0] ss:$8 sps:$4 sm:$0xff]  }
  0x5c   : > { %1940 = vmatpush1.bf16.msra.mxu1 %v2965_v35  ;;  %v3052_v35 = vld [vmem:[%s3355_s28 + $0x5f0] ss:$8 sps:$4 sm:$0xff]  }
  0x5d   : > { %2104 = vmatpush1.bf16.msra.mxu0 %v2968_v36  ;;  %1941 = vmatprep.subr.bf16.mxu1 %v2973_v37  ;;  %v3057_v36 = vld [vmem:[%s3355_s28 + $0x204] ss:$8 sps:$4 sm:$0xff]  }
  0x5e   : > { %2105 = vmatprep.subr.bf16.mxu0 %v2976_v38  ;;  %v3060_v37 = vld [vmem:[%s3355_s28 + $0x604] ss:$8 sps:$4 sm:$0xff]   ;;  %v547_v38 = vcombine.high %v3441_v21, %v3441_v21  ;;  %v3061_v21 = vld [vmem:[%s3355_s28 + $0x210] ss:$8 sps:$4 sm:$0xff]  }
  0x60   : > { %1942 = vmatpush1.bf16.msra.mxu1 %v2971_v39  ;;  %v596_v39 = vcombine.high %v3444_v22, %v3444_v22  ;;  %v3064_v22 = vld [vmem:[%s3355_s28 + $0x610] ss:$8 sps:$4 sm:$0xff]  }
  0x61   : > { %2106 = vmatpush1.bf16.msra.mxu0 %v2974_v40  ;;  %1943 = vmatprep.subr.bf16.mxu1 %v2979_v41  ;;  %v3055_v40 = vld [vmem:[%s3355_s28 + $0x200] ss:$8 sps:$4 sm:$0xff]  }
  0x62   : > { %2107 = vmatprep.subr.bf16.mxu0 %v2982_v42  ;;  %v3058_v41 = vld [vmem:[%s3355_s28 + $0x600] ss:$8 sps:$4 sm:$0xff]   ;;  %v3063_v42 = vld [vmem:[%s3355_s28 + $0x214] ss:$8 sps:$4 sm:$0xff]  }
  0x64   : > { %1944 = vmatpush1.bf16.msra.mxu1 %v2977_v43  ;;  %v3066_v43 = vld [vmem:[%s3355_s28 + $0x614] ss:$8 sps:$4 sm:$0xff]  }
  0x65   : > { %2108 = vmatpush1.bf16.msra.mxu0 %v2980_v45  ;;  %1945 = vmatprep.subr.bf16.mxu1 %v2985_v46  ;;  %v3069_v45 = vld [vmem:[%s3355_s28 + $0x224] ss:$8 sps:$4 sm:$0xff]  }
  0x66   : > { %2109 = vmatprep.subr.bf16.mxu0 %v2988_v47  ;;  %v3072_v46 = vld [vmem:[%s3355_s28 + $0x624] ss:$8 sps:$4 sm:$0xff]   ;;  %v3067_v47 = vld [vmem:[%s3355_s28 + $0x220] ss:$8 sps:$4 sm:$0xff]  }
  0x68   : > { %1946 = vmatpush1.bf16.msra.mxu1 %v2983_v48  ;;  %v3070_v48 = vld [vmem:[%s3355_s28 + $0x620] ss:$8 sps:$4 sm:$0xff]  }
  0x69   : > { %2110 = vmatpush1.bf16.msra.mxu0 %v2986_v49  ;;  %1947 = vmatprep.subr.bf16.mxu1 %v2991_v50  ;;  %v3075_v49 = vld [vmem:[%s3355_s28 + $0x234] ss:$8 sps:$4 sm:$0xff]  }
  0x6a   : > { %2111 = vmatprep.subr.bf16.mxu0 %v2994_v51  ;;  %v3078_v50 = vld [vmem:[%s3355_s28 + $0x634] ss:$8 sps:$4 sm:$0xff]   ;;  %v3073_v51 = vld [vmem:[%s3355_s28 + $0x230] ss:$8 sps:$4 sm:$0xff]  }
  0x6c   : > { %1948 = vmatpush1.bf16.msra.mxu1 %v2989_v52  ;;  %v3076_v52 = vld [vmem:[%s3355_s28 + $0x630] ss:$8 sps:$4 sm:$0xff]  }
  0x6d   : > { %2112 = vmatpush1.bf16.msra.mxu0 %v2992_v53  ;;  %1949 = vmatprep.subr.bf16.mxu1 %v2997_v54  ;;  %v3081_v53 = vld [vmem:[%s3355_s28 + $0x244] ss:$8 sps:$4 sm:$0xff]  }
  0x6e   : > { %2113 = vmatprep.subr.bf16.mxu0 %v3000_v55  ;;  %v3084_v54 = vld [vmem:[%s3355_s28 + $0x644] ss:$8 sps:$4 sm:$0xff]   ;;  %v3079_v55 = vld [vmem:[%s3355_s28 + $0x240] ss:$8 sps:$4 sm:$0xff]  }
  0x70   : > { %1950 = vmatpush1.bf16.msra.mxu1 %v2995_v56  ;;  %v3082_v56 = vld [vmem:[%s3355_s28 + $0x640] ss:$8 sps:$4 sm:$0xff]  }
  0x71   : > { %2114 = vmatpush1.bf16.msra.mxu0 %v2998_v57  ;;  %1951 = vmatprep.subr.bf16.mxu1 %v3003_v58  ;;  %v3087_v57 = vld [vmem:[%s3355_s28 + $0x254] ss:$8 sps:$4 sm:$0xff]  }
  0x72   : > { %2115 = vmatprep.subr.bf16.mxu0 %v3006_v59  ;;  %v3090_v58 = vld [vmem:[%s3355_s28 + $0x654] ss:$8 sps:$4 sm:$0xff]   ;;  %v3085_v59 = vld [vmem:[%s3355_s28 + $0x250] ss:$8 sps:$4 sm:$0xff]  }
  0x74   : > { %1952 = vmatpush1.bf16.msra.mxu1 %v3001_v60  ;;  %v3088_v60 = vld [vmem:[%s3355_s28 + $0x650] ss:$8 sps:$4 sm:$0xff]  }
  0x75   : > { %2116 = vmatpush1.bf16.msra.mxu0 %v3004_v61  ;;  %1953 = vmatprep.subr.bf16.mxu1 %v3009_v62  ;;  %v3093_v61 = vld [vmem:[%s3355_s28 + $0x264] ss:$8 sps:$4 sm:$0xff]  }
  0x76   : > { %2117 = vmatprep.subr.bf16.mxu0 %v3012_v63  ;;  %v3096_v62 = vld [vmem:[%s3355_s28 + $0x664] ss:$8 sps:$4 sm:$0xff]   ;;  %v3091_v63 = vld [vmem:[%s3355_s28 + $0x260] ss:$8 sps:$4 sm:$0xff]  }
  0x78   : > { %1954 = vmatpush1.bf16.msra.mxu1 %v3007_v0  ;;  %v3094_v0 = vld [vmem:[%s3355_s28 + $0x660] ss:$8 sps:$4 sm:$0xff]  }
  0x79   : > { %2118 = vmatpush1.bf16.msra.mxu0 %v3010_v1  ;;  %1955 = vmatprep.subr.bf16.mxu1 %v3015_v2  ;;  %v3099_v1 = vld [vmem:[%s3355_s28 + $0x274] ss:$8 sps:$4 sm:$0xff]  }
  0x7a   : > { %2119 = vmatprep.subr.bf16.mxu0 %v3018_v3  ;;  %v3102_v2 = vld [vmem:[%s3355_s28 + $0x674] ss:$8 sps:$4 sm:$0xff]   ;;  %v3097_v3 = vld [vmem:[%s3355_s28 + $0x270] ss:$8 sps:$4 sm:$0xff]  }
  0x7c   : > { %1956 = vmatpush1.bf16.msra.mxu1 %v3013_v4  ;;  %v3100_v4 = vld [vmem:[%s3355_s28 + $0x670] ss:$8 sps:$4 sm:$0xff]  }
  0x7d   : > { %2120 = vmatpush1.bf16.msra.mxu0 %v3016_v5  ;;  %1957 = vmatprep.subr.bf16.mxu1 %v3021_v6  ;;  %v3105_v5 = vld [vmem:[%s3355_s28 + $0x284] ss:$8 sps:$4 sm:$0xff]  }
  0x7e   : > { %2121 = vmatprep.subr.bf16.mxu0 %v3024_v7  ;;  %v3108_v6 = vld [vmem:[%s3355_s28 + $0x684] ss:$8 sps:$4 sm:$0xff]   ;;  %v3103_v7 = vld [vmem:[%s3355_s28 + $0x280] ss:$8 sps:$4 sm:$0xff]  }
  0x80   : > { %1958 = vmatpush1.bf16.msra.mxu1 %v3019_v8  ;;  %v3106_v8 = vld [vmem:[%s3355_s28 + $0x680] ss:$8 sps:$4 sm:$0xff]  }
  0x81   : > { %2122 = vmatpush1.bf16.msra.mxu0 %v3022_v9  ;;  %1959 = vmatprep.subr.bf16.mxu1 %v3027_v10  ;;  %v3111_v9 = vld [vmem:[%s3355_s28 + $0x294] ss:$8 sps:$4 sm:$0xff]  }
  0x82   : > { %2123 = vmatprep.subr.bf16.mxu0 %v3030_v11  ;;  %v3114_v10 = vld [vmem:[%s3355_s28 + $0x694] ss:$8 sps:$4 sm:$0xff]   ;;  %v3109_v11 = vld [vmem:[%s3355_s28 + $0x290] ss:$8 sps:$4 sm:$0xff]  }
  0x84   : > { %1960 = vmatpush1.bf16.msra.mxu1 %v3025_v12  ;;  %v3112_v12 = vld [vmem:[%s3355_s28 + $0x690] ss:$8 sps:$4 sm:$0xff]  }
  0x85   : > { %2124 = vmatpush1.bf16.msra.mxu0 %v3028_v13  ;;  %1961 = vmatprep.subr.bf16.mxu1 %v3033_v14  ;;  %v3117_v13 = vld [vmem:[%s3355_s28 + $0x2a4] ss:$8 sps:$4 sm:$0xff]  }
  0x86   : > { %2125 = vmatprep.subr.bf16.mxu0 %v3036_v15  ;;  %v3120_v14 = vld [vmem:[%s3355_s28 + $0x6a4] ss:$8 sps:$4 sm:$0xff]   ;;  %v3115_v15 = vld [vmem:[%s3355_s28 + $0x2a0] ss:$8 sps:$4 sm:$0xff]  }
  0x88   : > { %1962 = vmatpush1.bf16.msra.mxu1 %v3031_v16  ;;  %v3118_v16 = vld [vmem:[%s3355_s28 + $0x6a0] ss:$8 sps:$4 sm:$0xff]  }
  0x89   : > { %2126 = vmatpush1.bf16.msra.mxu0 %v3034_v17  ;;  %1963 = vmatprep.subr.bf16.mxu1 %v3039_v18  ;;  %v3123_v17 = vld [vmem:[%s3355_s28 + $0x2b4] ss:$8 sps:$4 sm:$0xff]  }
  0x8a   : > { %2127 = vmatprep.subr.bf16.mxu0 %v3042_v19  ;;  %v3126_v18 = vld [vmem:[%s3355_s28 + $0x6b4] ss:$8 sps:$4 sm:$0xff]   ;;  %v3121_v19 = vld [vmem:[%s3355_s28 + $0x2b0] ss:$8 sps:$4 sm:$0xff]  }
  0x8c   : > { %1964 = vmatpush1.bf16.msra.mxu1 %v3037_v20  ;;  %v3124_v20 = vld [vmem:[%s3355_s28 + $0x6b0] ss:$8 sps:$4 sm:$0xff]  }
  0x8d   : > { %2128 = vmatpush1.bf16.msra.mxu0 %v3040_v23  ;;  %1965 = vmatprep.subr.bf16.mxu1 %v3045_v24  ;;  %v3129_v23 = vld [vmem:[%s3355_s28 + $0x2c4] ss:$8 sps:$4 sm:$0xff]  }
  0x8e   : > { %2129 = vmatprep.subr.bf16.mxu0 %v3048_v25  ;;  %v3132_v24 = vld [vmem:[%s3355_s28 + $0x6c4] ss:$8 sps:$4 sm:$0xff]   ;;  %v3127_v25 = vld [vmem:[%s3355_s28 + $0x2c0] ss:$8 sps:$4 sm:$0xff]  }
  0x90   : > { %1966 = vmatpush1.bf16.msra.mxu1 %v3043_v26  ;;  %v3130_v26 = vld [vmem:[%s3355_s28 + $0x6c0] ss:$8 sps:$4 sm:$0xff]  }
  0x91   : > { %2130 = vmatpush1.bf16.msra.mxu0 %v3046_v27  ;;  %1967 = vmatprep.subr.bf16.mxu1 %v3051_v28  ;;  %v3135_v27 = vld [vmem:[%s3355_s28 + $0x2d4] ss:$8 sps:$4 sm:$0xff]  }
  0x92   : > { %2131 = vmatprep.subr.bf16.mxu0 %v3054_v32  ;;  %v3138_v28 = vld [vmem:[%s3355_s28 + $0x6d4] ss:$8 sps:$4 sm:$0xff]   ;;  %v3133_v32 = vld [vmem:[%s3355_s28 + $0x2d0] ss:$8 sps:$4 sm:$0xff]  }
  0x94   : > { %1968 = vmatpush1.bf16.msra.mxu1 %v3049_v33  ;;  %v3136_v33 = vld [vmem:[%s3355_s28 + $0x6d0] ss:$8 sps:$4 sm:$0xff]  }
  0x95   : > { %2132 = vmatpush1.bf16.msra.mxu0 %v3052_v35  ;;  %1978 = vmatprep.subr.bf16.mxu1 %v3057_v36  ;;  %v3141_v35 = vld [vmem:[%s3355_s28 + $0x2e4] ss:$8 sps:$4 sm:$0xff]  }
  0x96   : > { %2142 = vmatprep.subr.bf16.mxu0 %v3060_v37  ;;  %v3144_v36 = vld [vmem:[%s3355_s28 + $0x6e4] ss:$8 sps:$4 sm:$0xff]   ;;  %v3139_v37 = vld [vmem:[%s3355_s28 + $0x2e0] ss:$8 sps:$4 sm:$0xff]  }
  0x97   : > { %1970 = vmatmul.mubr.bf16.vlgmr.msra.gmra.mrb[0].mxu1 %v547_v38  ;;  %v3142_v38 = vld [vmem:[%s3355_s28 + $0x6e0] ss:$8 sps:$4 sm:$0xff]  }
  0x98   : > { %2134 = vmatmul.mubr.bf16.vlgmr.msra.gmra.mrb[0].mxu0 %v596_v39  ;;  %1979 = vmatpush1.bf16.msra.mxu1 %v3055_v40  ;;  %v3147_v39 = vld [vmem:[%s3355_s28 + $0x2f4] ss:$8 sps:$4 sm:$0xff]  }
  0x99   : > { %2143 = vmatpush1.bf16.msra.mxu0 %v3058_v41  ;;  %1980 = vmatprep.subr.bf16.mxu1 %v3063_v42  ;;  %v3150_v40 = vld [vmem:[%s3355_s28 + $0x6f4] ss:$8 sps:$4 sm:$0xff]   ;;  %v3145_v41 = vld [vmem:[%s3355_s28 + $0x2f0] ss:$8 sps:$4 sm:$0xff]  }
  0x9a   : > { %2144 = vmatprep.subr.bf16.mxu0 %v3066_v43  ;;  %2010 = vmatprep.mubr.bf16.mxu1 %v3451_v29  ;;  %v3148_v42 = vld [vmem:[%s3355_s28 + $0x6f0] ss:$8 sps:$4 sm:$0xff]   ;;  %v3153_v43 = vld [vmem:[%s3355_s28 + $0x304] ss:$8 sps:$4 sm:$0xff]  }
  0x9b   : > { %2174 = vmatprep.mubr.bf16.mxu0 %v3454_v30 }
  0x9c   : > { %1981 = vmatpush1.bf16.msra.mxu1 %v3061_v21  ;;  %v3156_v21 = vld [vmem:[%s3355_s28 + $0x704] ss:$8 sps:$4 sm:$0xff]  }
  0x9d   : > { %2145 = vmatpush1.bf16.msra.mxu0 %v3064_v22  ;;  %1982 = vmatprep.subr.bf16.mxu1 %v3069_v45  ;;  %v3151_v22 = vld [vmem:[%s3355_s28 + $0x300] ss:$8 sps:$4 sm:$0xff]  }
  0x9e   : > { %2146 = vmatprep.subr.bf16.mxu0 %v3072_v46  ;;  %v3154_v45 = vld [vmem:[%s3355_s28 + $0x700] ss:$8 sps:$4 sm:$0xff]   ;;  %v3159_v46 = vld [vmem:[%s3355_s28 + $0x314] ss:$8 sps:$4 sm:$0xff]  }
  0xa0   : > { %1983 = vmatpush1.bf16.msra.mxu1 %v3067_v47  ;;  %v3162_v47 = vld [vmem:[%s3355_s28 + $0x714] ss:$8 sps:$4 sm:$0xff]  }
  0xa1   : > { %2147 = vmatpush1.bf16.msra.mxu0 %v3070_v48  ;;  %1984 = vmatprep.subr.bf16.mxu1 %v3075_v49  ;;  %v550_v48 = vcombine.high %v3451_v29, %v3451_v29  ;;  %v599_v49 = vcombine.high %v3454_v30, %v3454_v30  ;;  %v3165_v29 = vld [vmem:[%s3355_s28 + $0x324] ss:$8 sps:$4 sm:$0xff]   ;;  %v3163_v30 = vld [vmem:[%s3355_s28 + $0x320] ss:$8 sps:$4 sm:$0xff]  }
  0xa2   : > { %2148 = vmatprep.subr.bf16.mxu0 %v3078_v50  ;;  %v3157_v50 = vld [vmem:[%s3355_s28 + $0x310] ss:$8 sps:$4 sm:$0xff]  }
  0xa4   : > { %1985 = vmatpush1.bf16.msra.mxu1 %v3073_v51  ;;  %v3160_v51 = vld [vmem:[%s3355_s28 + $0x710] ss:$8 sps:$4 sm:$0xff]  }
  0xa5   : > { %2149 = vmatpush1.bf16.msra.mxu0 %v3076_v52  ;;  %1986 = vmatprep.subr.bf16.mxu1 %v3081_v53  ;;  %v3168_v52 = vld [vmem:[%s3355_s28 + $0x724] ss:$8 sps:$4 sm:$0xff]   ;;  %v3166_v53 = vld [vmem:[%s3355_s28 + $0x720] ss:$8 sps:$4 sm:$0xff]  }
  0xa6   : > { %2150 = vmatprep.subr.bf16.mxu0 %v3084_v54  ;;  %v3171_v54 = vld [vmem:[%s3355_s28 + $0x334] ss:$8 sps:$4 sm:$0xff]  }
  0xa8   : > { %1987 = vmatpush1.bf16.msra.mxu1 %v3079_v55  ;;  %v3174_v55 = vld [vmem:[%s3355_s28 + $0x734] ss:$8 sps:$4 sm:$0xff]  }
  0xa9   : > { %2151 = vmatpush1.bf16.msra.mxu0 %v3082_v56  ;;  %1988 = vmatprep.subr.bf16.mxu1 %v3087_v57  ;;  %v3169_v56 = vld [vmem:[%s3355_s28 + $0x330] ss:$8 sps:$4 sm:$0xff]  }
  0xaa   : > { %2152 = vmatprep.subr.bf16.mxu0 %v3090_v58  ;;  %v3172_v57 = vld [vmem:[%s3355_s28 + $0x730] ss:$8 sps:$4 sm:$0xff]   ;;  %v3177_v58 = vld [vmem:[%s3355_s28 + $0x344] ss:$8 sps:$4 sm:$0xff]  }
  0xac   : > { %1989 = vmatpush1.bf16.msra.mxu1 %v3085_v59  ;;  %v3180_v59 = vld [vmem:[%s3355_s28 + $0x744] ss:$8 sps:$4 sm:$0xff]  }
  0xad   : > { %2153 = vmatpush1.bf16.msra.mxu0 %v3088_v60  ;;  %1990 = vmatprep.subr.bf16.mxu1 %v3093_v61  ;;  %v3175_v60 = vld [vmem:[%s3355_s28 + $0x340] ss:$8 sps:$4 sm:$0xff]  }
  0xae   : > { %2154 = vmatprep.subr.bf16.mxu0 %v3096_v62  ;;  %v3178_v61 = vld [vmem:[%s3355_s28 + $0x740] ss:$8 sps:$4 sm:$0xff]   ;;  %v3183_v62 = vld [vmem:[%s3355_s28 + $0x354] ss:$8 sps:$4 sm:$0xff]  }
  0xb0   : > { %1991 = vmatpush1.bf16.msra.mxu1 %v3091_v63  ;;  %v3186_v63 = vld [vmem:[%s3355_s28 + $0x754] ss:$8 sps:$4 sm:$0xff]  }
  0xb1   : > { %2155 = vmatpush1.bf16.msra.mxu0 %v3094_v0  ;;  %1992 = vmatprep.subr.bf16.mxu1 %v3099_v1  ;;  %v3181_v0 = vld [vmem:[%s3355_s28 + $0x350] ss:$8 sps:$4 sm:$0xff]  }
  0xb2   : > { %2156 = vmatprep.subr.bf16.mxu0 %v3102_v2  ;;  %v3184_v1 = vld [vmem:[%s3355_s28 + $0x750] ss:$8 sps:$4 sm:$0xff]   ;;  %v3189_v2 = vld [vmem:[%s3355_s28 + $0x364] ss:$8 sps:$4 sm:$0xff]  }
  0xb4   : > { %1993 = vmatpush1.bf16.msra.mxu1 %v3097_v3  ;;  %v3192_v3 = vld [vmem:[%s3355_s28 + $0x764] ss:$8 sps:$4 sm:$0xff]  }
  0xb5   : > { %2157 = vmatpush1.bf16.msra.mxu0 %v3100_v4  ;;  %1994 = vmatprep.subr.bf16.mxu1 %v3105_v5  ;;  %v3187_v4 = vld [vmem:[%s3355_s28 + $0x360] ss:$8 sps:$4 sm:$0xff]  }
  0xb6   : > { %2158 = vmatprep.subr.bf16.mxu0 %v3108_v6  ;;  %v3190_v5 = vld [vmem:[%s3355_s28 + $0x760] ss:$8 sps:$4 sm:$0xff]   ;;  %v3195_v6 = vld [vmem:[%s3355_s28 + $0x374] ss:$8 sps:$4 sm:$0xff]  }
  0xb8   : > { %1995 = vmatpush1.bf16.msra.mxu1 %v3103_v7  ;;  %v3198_v7 = vld [vmem:[%s3355_s28 + $0x774] ss:$8 sps:$4 sm:$0xff]  }
  0xb9   : > { %2159 = vmatpush1.bf16.msra.mxu0 %v3106_v8  ;;  %1996 = vmatprep.subr.bf16.mxu1 %v3111_v9  ;;  %v3193_v8 = vld [vmem:[%s3355_s28 + $0x370] ss:$8 sps:$4 sm:$0xff]  }
  0xba   : > { %2160 = vmatprep.subr.bf16.mxu0 %v3114_v10  ;;  %v3196_v9 = vld [vmem:[%s3355_s28 + $0x770] ss:$8 sps:$4 sm:$0xff]   ;;  %v3201_v10 = vld [vmem:[%s3355_s28 + $0x384] ss:$8 sps:$4 sm:$0xff]  }
  0xbc   : > { %1997 = vmatpush1.bf16.msra.mxu1 %v3109_v11  ;;  %v3204_v11 = vld [vmem:[%s3355_s28 + $0x784] ss:$8 sps:$4 sm:$0xff]  }
  0xbd   : > { %2161 = vmatpush1.bf16.msra.mxu0 %v3112_v12  ;;  %1998 = vmatprep.subr.bf16.mxu1 %v3117_v13  ;;  %v3199_v12 = vld [vmem:[%s3355_s28 + $0x380] ss:$8 sps:$4 sm:$0xff]  }
  0xbe   : > { %2162 = vmatprep.subr.bf16.mxu0 %v3120_v14  ;;  %v3202_v13 = vld [vmem:[%s3355_s28 + $0x780] ss:$8 sps:$4 sm:$0xff]   ;;  %v3207_v14 = vld [vmem:[%s3355_s28 + $0x394] ss:$8 sps:$4 sm:$0xff]  }
  0xc0   : > { %1999 = vmatpush1.bf16.msra.mxu1 %v3115_v15  ;;  %v3210_v15 = vld [vmem:[%s3355_s28 + $0x794] ss:$8 sps:$4 sm:$0xff]  }
  0xc1   : > { %2163 = vmatpush1.bf16.msra.mxu0 %v3118_v16  ;;  %2000 = vmatprep.subr.bf16.mxu1 %v3123_v17  ;;  %v3205_v16 = vld [vmem:[%s3355_s28 + $0x390] ss:$8 sps:$4 sm:$0xff]  }
  0xc2   : > { %2164 = vmatprep.subr.bf16.mxu0 %v3126_v18  ;;  %v3208_v17 = vld [vmem:[%s3355_s28 + $0x790] ss:$8 sps:$4 sm:$0xff]   ;;  %v3213_v18 = vld [vmem:[%s3355_s28 + $0x3a4] ss:$8 sps:$4 sm:$0xff]  }
  0xc4   : > { %2001 = vmatpush1.bf16.msra.mxu1 %v3121_v19  ;;  %v3216_v19 = vld [vmem:[%s3355_s28 + $0x7a4] ss:$8 sps:$4 sm:$0xff]  }
  0xc5   : > { %2165 = vmatpush1.bf16.msra.mxu0 %v3124_v20  ;;  %2002 = vmatprep.subr.bf16.mxu1 %v3129_v23  ;;  %v3211_v20 = vld [vmem:[%s3355_s28 + $0x3a0] ss:$8 sps:$4 sm:$0xff]  }
  0xc6   : > { %2166 = vmatprep.subr.bf16.mxu0 %v3132_v24  ;;  %v3214_v23 = vld [vmem:[%s3355_s28 + $0x7a0] ss:$8 sps:$4 sm:$0xff]   ;;  %v3219_v24 = vld [vmem:[%s3355_s28 + $0x3b4] ss:$8 sps:$4 sm:$0xff]  }
  0xc8   : > { %2003 = vmatpush1.bf16.msra.mxu1 %v3127_v25  ;;  %v3222_v25 = vld [vmem:[%s3355_s28 + $0x7b4] ss:$8 sps:$4 sm:$0xff]  }
  0xc9   : > { %2167 = vmatpush1.bf16.msra.mxu0 %v3130_v26  ;;  %2004 = vmatprep.subr.bf16.mxu1 %v3135_v27  ;;  %v3217_v26 = vld [vmem:[%s3355_s28 + $0x3b0] ss:$8 sps:$4 sm:$0xff]  }
  0xca   : > { %2168 = vmatprep.subr.bf16.mxu0 %v3138_v28  ;;  %v3220_v27 = vld [vmem:[%s3355_s28 + $0x7b0] ss:$8 sps:$4 sm:$0xff]   ;;  %v3225_v28 = vld [vmem:[%s3355_s28 + $0x3c4] ss:$8 sps:$4 sm:$0xff]  }
  0xcc   : > { %2005 = vmatpush1.bf16.msra.mxu1 %v3133_v32  ;;  %v3228_v32 = vld [vmem:[%s3355_s28 + $0x7c4] ss:$8 sps:$4 sm:$0xff]  }
  0xcd   : > { %2169 = vmatpush1.bf16.msra.mxu0 %v3136_v33  ;;  %2006 = vmatprep.subr.bf16.mxu1 %v3141_v35  ;;  %v3223_v33 = vld [vmem:[%s3355_s28 + $0x3c0] ss:$8 sps:$4 sm:$0xff]  }
  0xce   : > { %2170 = vmatprep.subr.bf16.mxu0 %v3144_v36  ;;  %v3226_v35 = vld [vmem:[%s3355_s28 + $0x7c0] ss:$8 sps:$4 sm:$0xff]   ;;  %v3231_v36 = vld [vmem:[%s3355_s28 + $0x3d4] ss:$8 sps:$4 sm:$0xff]  }
  0xd0   : > { %2007 = vmatpush1.bf16.msra.mxu1 %v3139_v37  ;;  %v3234_v37 = vld [vmem:[%s3355_s28 + $0x7d4] ss:$8 sps:$4 sm:$0xff]  }
  0xd1   : > { %2171 = vmatpush1.bf16.msra.mxu0 %v3142_v38  ;;  %2008 = vmatprep.subr.bf16.mxu1 %v3147_v39  ;;  %v3229_v38 = vld [vmem:[%s3355_s28 + $0x3d0] ss:$8 sps:$4 sm:$0xff]  }
  0xd2   : > { %2172 = vmatprep.subr.bf16.mxu0 %v3150_v40  ;;  %v3232_v39 = vld [vmem:[%s3355_s28 + $0x7d0] ss:$8 sps:$4 sm:$0xff]   ;;  %v3237_v40 = vld [vmem:[%s3355_s28 + $0x3e4] ss:$8 sps:$4 sm:$0xff]  }
  0xd4   : > { %2009 = vmatpush1.bf16.msra.mxu1 %v3145_v41  ;;  %v3240_v41 = vld [vmem:[%s3355_s28 + $0x7e4] ss:$8 sps:$4 sm:$0xff]  }
  0xd5   : > { %2173 = vmatpush1.bf16.msra.mxu0 %v3148_v42  ;;  %2019 = vmatprep.subr.bf16.mxu1 %v3153_v43  ;;  %v3235_v42 = vld [vmem:[%s3355_s28 + $0x3e0] ss:$8 sps:$4 sm:$0xff]  }
  0xd6   : > { %2183 = vmatprep.subr.bf16.mxu0 %v3156_v21  ;;  %v3238_v43 = vld [vmem:[%s3355_s28 + $0x7e0] ss:$8 sps:$4 sm:$0xff]   ;;  %v3243_v21 = vld [vmem:[%s3355_s28 + $0x3f4] ss:$8 sps:$4 sm:$0xff]  }
  0xd7   : > { %2011 = vmatmul.mubr.bf16.vlgmr.msra.gmra.mrb[0].mxu1 %v3457_v31 }
  0xd8   : > { %2175 = vmatmul.mubr.bf16.vlgmr.msra.gmra.mrb[0].mxu0 %v3462_v34  ;;  %2020 = vmatpush1.bf16.msra.mxu1 %v3151_v22  ;;  %v3246_v22 = vld [vmem:[%s3355_s28 + $0x7f4] ss:$8 sps:$4 sm:$0xff]  }
  0xd9   : > { %2184 = vmatpush1.bf16.msra.mxu0 %v3154_v45  ;;  %2021 = vmatprep.subr.bf16.mxu1 %v3159_v46  ;;  %v3241_v45 = vld [vmem:[%s3355_s28 + $0x3f0] ss:$8 sps:$4 sm:$0xff]  }
  0xda   : > { %2185 = vmatprep.subr.bf16.mxu0 %v3162_v47  ;;  %2051 = vmatprep.mubr.bf16.mxu1 %v550_v48  ;;  %v3244_v46 = vld [vmem:[%s3355_s28 + $0x7f0] ss:$8 sps:$4 sm:$0xff]   ;;  %v548_v47 = vcombine.high %v3457_v31, %v3457_v31  ;;  %v597_v48 = vcombine.high %v3462_v34, %v3462_v34 }
  0xdb   : > { %2215 = vmatprep.mubr.bf16.mxu0 %v599_v49  ;;  %v3303_v49 = vmov 1983009808  }
  0xdc   : > { %2022 = vmatpush1.bf16.msra.mxu1 %v3157_v50  ;;  %v2228_v50 = vunpack.c.l.s4 %v3303_v49 }
  0xdd   : > { %2186 = vmatpush1.bf16.msra.mxu0 %v3160_v51  ;;  %2023 = vmatprep.subr.bf16.mxu1 %v3165_v29 }
  0xde   : > { %2187 = vmatprep.subr.bf16.mxu0 %v3168_v52  ;;  %v2229_v51 = vunpack.c.0.s8 %v2228_v50 }
  0xe0   : > { %2024 = vmatpush1.bf16.msra.mxu1 %v3163_v30 }
  0xe1   : > { %2188 = vmatpush1.bf16.msra.mxu0 %v3166_v53  ;;  %2025 = vmatprep.subr.bf16.mxu1 %v3171_v54 }
  0xe2   : > { %2189 = vmatprep.subr.bf16.mxu0 %v3174_v55 }
  0xe4   : > { %2026 = vmatpush1.bf16.msra.mxu1 %v3169_v56  ;;  %v2232_v56 = vsub.s32 %v2229_v51, %v3397_v44 }
  0xe5   : > { %2190 = vmatpush1.bf16.msra.mxu0 %v3172_v57  ;;  %2027 = vmatprep.subr.bf16.mxu1 %v3177_v58 }
  0xe6   : > { %2191 = vmatprep.subr.bf16.mxu0 %v3180_v59 }
  0xe8   : > { %2028 = vmatpush1.bf16.msra.mxu1 %v3175_v60  ;;  %v241_v60 = vld [vmem:[#allocation2] sm:$0xf] }
  0xe9   : > { %2192 = vmatpush1.bf16.msra.mxu0 %v3178_v61  ;;  %2029 = vmatprep.subr.bf16.mxu1 %v3183_v62 }
  0xea   : > { %2193 = vmatprep.subr.bf16.mxu0 %v3186_v63  ;;  %v3247_v63 = vld [vmem:[%s3755_s3 + $0x40] sm:$0xff] (!%p2772_p6)  }
  0xec   : > { %2030 = vmatpush1.bf16.msra.mxu1 %v3181_v0  ;;  %v3248_v0 = vld [vmem:[%s3755_s3] sm:$0xff] (!%p2772_p6)  }
  0xed   : > { %2194 = vmatpush1.bf16.msra.mxu0 %v3184_v1  ;;  %2031 = vmatprep.subr.bf16.mxu1 %v3189_v2  ;;  %v3249_v1 = vld [vmem:[%s3755_s3 + $0x48] sm:$0xff] (!%p2772_p6)  }
  0xee   : > { %2195 = vmatprep.subr.bf16.mxu0 %v3192_v3  ;;  %v3250_v2 = vld [vmem:[%s3755_s3 + $0x8] sm:$0xff] (!%p2772_p6)   ;;  %v3251_v3 = vld [vmem:[%s3755_s3 + $0x50] sm:$0xff] (!%p2772_p6)  }
  0xf0   : > { %2032 = vmatpush1.bf16.msra.mxu1 %v3187_v4  ;;  %v3252_v4 = vld [vmem:[%s3755_s3 + $0x10] sm:$0xff] (!%p2772_p6)  }
  0xf1   : > { %2196 = vmatpush1.bf16.msra.mxu0 %v3190_v5  ;;  %2033 = vmatprep.subr.bf16.mxu1 %v3195_v6  ;;  %v3253_v5 = vld [vmem:[%s3755_s3 + $0x58] sm:$0xff] (!%p2772_p6)  }
  0xf2   : > { %2197 = vmatprep.subr.bf16.mxu0 %v3198_v7  ;;  %v3254_v6 = vld [vmem:[%s3755_s3 + $0x18] sm:$0xff] (!%p2772_p6)   ;;  %v3255_v7 = vld [vmem:[%s3755_s3 + $0x60] sm:$0xff] (!%p2772_p6)  }
  0xf4   : > { %2034 = vmatpush1.bf16.msra.mxu1 %v3193_v8  ;;  %v2246_v8 = vsub.s32 (!%p2772_p6), 0, %v3397_v44 }
  0xf5   : > { %2198 = vmatpush1.bf16.msra.mxu0 %v3196_v9  ;;  %2035 = vmatprep.subr.bf16.mxu1 %v3201_v10  ;;  %v2250_v9 = vsub.s32 (!%p2772_p6), 1, %v3397_v44  ;;  %v3256_v10 = vld [vmem:[%s3755_s3 + $0x20] sm:$0xff] (!%p2772_p6)   ;;  %v3258_v44 = vld [vmem:[%s3755_s3 + $0x28] sm:$0xff] (!%p2772_p6)  }
  0xf6   : > { %2199 = vmatprep.subr.bf16.mxu0 %v3204_v11  ;;  %v3257_v11 = vld [vmem:[%s3755_s3 + $0x68] sm:$0xff] (!%p2772_p6)  }
  0xf8   : > { %2036 = vmatpush1.bf16.msra.mxu1 %v3199_v12  ;;  %v2242_v12 = vld [vmem:[%s3754_s2] sm:$0x3] (!%p2772_p6) }
  0xf9   : > { %2200 = vmatpush1.bf16.msra.mxu0 %v3202_v13  ;;  %2037 = vmatprep.subr.bf16.mxu1 %v3207_v14  ;;  %v2247_v13 = vrot.slane (!%p2772_p6), %v2242_v12, %v2246_v8  ;;  %v2251_v14 = vrot.slane (!%p2772_p6), %v2242_v12, %v2250_v9 }
  0xfa   : > { %2201 = vmatprep.subr.bf16.mxu0 %v3210_v15 }
  0xfb   : > { %v2252_v15 = vcombine.low (!%p2772_p6), %v2247_v13, %v2251_v14 }
  0xfc   : > { %2038 = vmatpush1.bf16.msra.mxu1 %v3205_v16  ;;  %v3259_v16 = vld [vmem:[%s3755_s3 + $0x70] sm:$0xff] (!%p2772_p6)  }
  0xfd   : > { %2202 = vmatpush1.bf16.msra.mxu0 %v3208_v17  ;;  %2039 = vmatprep.subr.bf16.mxu1 %v3213_v18  ;;  %v2259_v18 = vrot.slane (!%p2772_p6), %v2252_v15, %v2232_v56 }
  0xfe   : > { %2203 = vmatprep.subr.bf16.mxu0 %v3216_v19  ;;  %v3260_v19 = vld [vmem:[%s3755_s3 + $0x30] sm:$0xff] (!%p2772_p6)  }
 0x100   : > { %2040 = vmatpush1.bf16.msra.mxu1 %v3211_v20 }
 0x101   : > { %2204 = vmatpush1.bf16.msra.mxu0 %v3214_v23  ;;  %2041 = vmatprep.subr.bf16.mxu1 %v3219_v24  ;;  %v3261_v23 = vld [vmem:[%s3755_s3 + $0x78] sm:$0xff] (!%p2772_p6)  }
 0x102   : > { %2205 = vmatprep.subr.bf16.mxu0 %v3222_v25  ;;  %v3262_v25 = vld [vmem:[%s3755_s3 + $0x38] sm:$0xff] (!%p2772_p6)  }
 0x104   : > { %2042 = vmatpush1.bf16.msra.mxu1 %v3217_v26 }
 0x105   : > { %2206 = vmatpush1.bf16.msra.mxu0 %v3220_v27  ;;  %2043 = vmatprep.subr.bf16.mxu1 %v3225_v28 }
 0x106   : > { %2207 = vmatprep.subr.bf16.mxu0 %v3228_v32 }
 0x108   : > { %2044 = vmatpush1.bf16.msra.mxu1 %v3223_v33 }
 0x109   : > { %2208 = vmatpush1.bf16.msra.mxu0 %v3226_v35  ;;  %2045 = vmatprep.subr.bf16.mxu1 %v3231_v36  ;;  %v2773_v35 = vld [vmem:[%s3756_s4] ss:$0 sm:$0xff] (!%p2772_p6) }
 0x10a   : > { %2209 = vmatprep.subr.bf16.mxu0 %v3234_v37 }
 0x10c   : > { %2046 = vmatpush1.bf16.msra.mxu1 %v3229_v38 }
 0x10d   : > { %2210 = vmatpush1.bf16.msra.mxu0 %v3232_v39  ;;  %2047 = vmatprep.subr.bf16.mxu1 %v3237_v40 }
 0x10e   : > { %2211 = vmatprep.subr.bf16.mxu0 %v3240_v41 }
 0x110   : > { %2048 = vmatpush1.bf16.msra.mxu1 %v3235_v42 }
 0x111   : > { %2212 = vmatpush1.bf16.msra.mxu0 %v3238_v43  ;;  %2049 = vmatprep.subr.bf16.mxu1 %v3243_v21 }
 0x112   : > { %2213 = vmatprep.subr.bf16.mxu0 %v3246_v22 }
 0x114   : > { %2050 = vmatpush1.bf16.msra.mxu1 %v3241_v45 }
 0x115   : > { %2214 = vmatpush1.bf16.msra.mxu0 %v3244_v46 }
 0x116   : > { %2795 = vmatprep.subr.bf16.mxu0 (!%p2772_p6), %v3247_v63 }
 0x117   : > { %2052 = vmatmul.mubr.bf16.vlgmr.msra.gmra.mrb[0].mxu1 %v548_v47 }
 0x118   : > { %2216 = vmatmul.mubr.bf16.vlgmr.msra.gmra.mrb[0].mxu0 %v597_v48 }
 0x119   : > { %2796 = vmatpush3.bf16.msra.mxu0 (!%p2772_p6), %v3248_v0 }
 0x11a   : > { %2797 = vmatprep.subr.bf16.mxu0 (!%p2772_p6), %v3249_v1 }
 0x11d   : > { %2798 = vmatpush3.bf16.msra.mxu0 (!%p2772_p6), %v3250_v2 }
 0x11e   : > { %2799 = vmatprep.subr.bf16.mxu0 (!%p2772_p6), %v3251_v3 }
 0x121   : > { %2800 = vmatpush3.bf16.msra.mxu0 (!%p2772_p6), %v3252_v4 }
 0x122   : > { %2801 = vmatprep.subr.bf16.mxu0 (!%p2772_p6), %v3253_v5 }
 0x125   : > { %2802 = vmatpush3.bf16.msra.mxu0 (!%p2772_p6), %v3254_v6 }
 0x126   : > { %2803 = vmatprep.subr.bf16.mxu0 (!%p2772_p6), %v3255_v7 }
 0x129   : > { %2804 = vmatpush3.bf16.msra.mxu0 (!%p2772_p6), %v3256_v10 }
 0x12a   : > { %2805 = vmatprep.subr.bf16.mxu0 (!%p2772_p6), %v3257_v11 }
 0x12d   : > { %2806 = vmatpush3.bf16.msra.mxu0 (!%p2772_p6), %v3258_v44 }
 0x12e   : > { %2807 = vmatprep.subr.bf16.mxu0 (!%p2772_p6), %v3259_v16 }
 0x131   : > { %2808 = vmatpush3.bf16.msra.mxu0 (!%p2772_p6), %v3260_v19 }
 0x132   : > { %2809 = vmatprep.subr.bf16.mxu0 (!%p2772_p6), %v3261_v23 }
 0x135   : > { %2810 = vmatpush3.bf16.msra.mxu0 (!%p2772_p6), %v3262_v25 }
 0x1ea   : > { %v2053_v29 = vpop.f32.mrb[0].mxu1 }
 0x1eb   : > { %v2217_v52 = vpop.f32.mrb[0].mxu0  ;;  %v2055_v53 = vpop.f32.mrb[1].mxu1 }
 0x1ec   : > { %v2817_v30 = vadd.f32 %v2217_v52, %v2053_v29  ;;  %v2219_v54 = vpop.f32.mrb[1].mxu0  ;;  %v2057_v57 = vpop.f32.mrb[2].mxu1 }
 0x1ed   : > { %v2818_v55 = vadd.f32 %v2219_v54, %v2055_v53  ;;  %v2221_v31 = vpop.f32.mrb[2].mxu0  ;;  %v2058_v58 = vpop.f32.mrb[3].mxu1 }
 0x1ee   : > { %v2222_v59 = vpop.f32.mrb[3].mxu0 }
 0x1ef   : > { %v2226_v34 = vcombine.low %v2817_v30, %v2818_v55  ;;  %2240 = sbr.rel (%p2772_p6) target bundleno = 738 (0x2e2), region = 48 }
 0x1f1   : > { %v2233_v61 = vrot.slane %v2226_v34, %v2232_v56 }
 0x1f3   : > { %v2235_v62 = vadd.f32 %v2233_v61, %v241_v60 }
 0x1f5   : > { %2236 = vst [vmem:[#allocation2] sm:$0xf] %v2235_v62 }
 0x1fc   : > { %v2241_v17 = vld [vmem:[#allocation2] sm:$0xf] }
 0x1fd   : > { %v2261_v20 = vadd.f32 %v2259_v18, %v2241_v17 }
 0x1ff   : > { %v2262_v24 = vmax.f32 %v2261_v20, 0.0 }
 0x201   : > { %v2270_v26 = vrot.slane %v2262_v24, %v2232_v56 }
 0x203   : > { %v2271_v27 = vcombine.high %v2270_v26, %v2270_v26  ;;  %v2274_v28 = vpack.c.bf16 %v2270_v26, %v2270_v26 }
 0x205   : > { %v2275_v32 = vpack.c.bf16 %v2271_v27, %v2271_v27 }
 0x207   : > { %2443 = vmatprep.mubr.bf16.mxu0 %v2275_v32 }
 0x208   : > { %2444 = vmatmul.mubr.bf16.vlgmr.msra.gmra.mrb[0].mxu0 %v2274_v28 }
 0x2db   : > { %v2811_v33 = vpop.f32.mrb[0].mxu0 }
 0x2dc   : > { %v2812_v36 = vpop.f32.mrb[1].mxu0 }
 0x2dd   : > { %v2813_v37 = vadd.f32 %v2812_v36, %v2811_v33  ;;  %v2814_v38 = vpop.f32.mrb[2].mxu0 }
 0x2de   : > { %v2815_v39 = vpop.f32.mrb[3].mxu0 }
 0x2df   : > { %v2446_v40 = vadd.f32 %v2813_v37, %v2773_v35 }
 0x2e1   : > { %2451 = vst [vmem:[#allocation3] sm:$0x3] %v2446_v40 }
 0x2e2 PF: > { %p2847_p7 = scmp.eq.s32.totalorder %s3341_s19, 3  ;;  %s3304_s17 = smov [#allocation3]  }
 0x2e3   : > { %s2459_s20 = sshll.u32 %s3304_s17, 4  ;;  %s2460_s20 = int_to_ptr.vmem [resolvable:$true] %s2459_s20 }
 0x2e4   : > { %s3263_s21 = scalar_lea.vmem %s2460_s20, 32  ;;  %p3270_p11 = scmp.lt.s32.totalorder %s2460_s20, %s2460_s20 }
 0x2e5   : > { %p3264_p8 = scmp.ne.s32.totalorder %s2460_s20, %s3263_s21  ;;  %p3271_p12 = scmp.lt.s32.totalorder %s3263_s21, %s3263_s21 }
 0x2e7   : > { %p3265_p9 = pnand %p3264_p8, %p2847_p7  ;;  %p3272_p13 = por %p3271_p12, %p3270_p11 }
 0x2e9   : > { %p3266_p10 = pneg %p3265_p9 }
 0x2eb   : > { %p3273_p0 = pnand %p3272_p13, %p3266_p10 }
 0x2ed   : > { %3276 = shalt.err (!%p3273_p0)
}
 0x2ee   : > { %s3277_s24 = scalar_lea.hbm %s3757_s5, 32 }
 0x2ef   : > { %p3278_p1 = scmp.ne.s32.totalorder %s3757_s5, %s3277_s24  ;;  %p3283_p4 = scmp.lt.u32.totalorder %s3277_s24, %s3757_s5 }
 0x2f1   : > { %p3279_p2 = pnand %p3278_p1, %p2847_p7 }
 0x2f3   : > { %p3280_p3 = pneg %p3279_p2 }
 0x2f5   : > { %p3285_p5 = pnand %p3283_p4, %p3280_p3 }
 0x2f7   : > { %3288 = shalt.err (!%p3285_p5)
}
 0x2f8   : > { %2844 = dma.vmem_to_hbm [thread:$0]  (%p2847_p7), %s2460_s20, 32, %s3757_s5, [#allocation4]  }
 0x2f9   : > { %3294 = dma.done.wait (%p2847_p7), [#allocation4], 32  }
 0x2fa   : > { %3296 = vsyncadd (%p2847_p7), [#allocation4], 4294967264 }
 0x2fb PF: > { %s16_s18 = sadd.s32 1, %s3299_s18  }
 0x2fc   : > { %p13_p6 = scmp.ge.s32.totalorder %s16_s18, 6  }
 0x2fe   :  { %15 = sbr.rel (!%p13_p6) target bundleno = 1 (0x1), region = 78 }
 0x305   :  { %2472 = vsyncpa [#allocation4], 1 }
 0x306   :  { %2474 = vsyncpa [#allocation4 + $0x1], 1 }

// kernel: improved_cnn_forward.6
= control target key start
LH: loop header
LB: loop body
LE: loop exit
PB: predicated region body
PF: predicated region fallthrough
CT: control target
= control target key end

     0   :  { %s4660_s12 = smov 0   ;;  %s5849_s0 = inlined_call_operand.vmem [shape: bf16[2,18,32,128], index: 0, kind: input, shape index: {}]   ;;  %s5850_s1 = inlined_call_operand.vmem [shape: bf16[9,128,128], index: 1, kind: input, shape index: {}]   ;;  %s5851_s2 = inlined_call_operand.vmem [shape: f32[1,128], index: 2, kind: input, shape index: {}]   ;;  %s5852_s3 = inlined_call_operand.vmem [shape: bf16[2,8,8,128], index: 3, kind: output, shape index: {}]  }
   0x1 LB: > { %s3506_s13 = sadd.s32 4294967295, %s4634_s12   ;;  %p3510_p0 = scmp.ge.s32.totalorder %s4634_s12, 1  ;;  %s4634_s12 = sphi %s4660_s12, %s13_s12  }
   0x2   : > { %p137_p1 = scmp.lt.s32.totalorder %s4634_s12, 3 }
   0x4   : > { %p138_p2 = pnand %p3510_p0, %p137_p1 }
   0x5   : > { %p161_p3 = scmp.lt.s32.totalorder (!%p138_p2), %s3506_s13, 1  ;;  %v4671_v0 = vld [vmem:[%s5851_s2] ss:$0 sm:$0xff] (!%p138_p2)  ;;  %s4683_s24 = smov (!%p138_p2), 0  }
   0x6   : > { %141 = sbr.rel (%p138_p2) target bundleno = 476 (0x1dc), region = 32  ;;  %5862 = vst [vmem:[#allocation3_spill] sm:$0xff] (!%p138_p2), %v4671_v0 }
   0xd   : > { %s5912_s13 = smov (!%p161_p3, %s3506_s13), 1 }
   0xe   : > { %s4511_s16 = smul.u32 288, %s5912_s13  ;;  %s3918_s17 = sshll.u32 %s5912_s13, 5 }
   0xf   : > { %s4676_s20 = scalar_lea.vmem %s5852_s3, %s3918_s17 }
  0x10   : > { %s4681_s23 = scalar_lea.vmem %s5849_s0, %s4511_s16 }
  0x11 LB: >> { %v4528_v1 = vld [vmem:[%s5850_s1 + $0x40] sm:$0xff]   ;;  %v4530_v3 = vld [vmem:[%s5850_s1 + $0x48] sm:$0xff]   ;;  %v4532_v5 = vld [vmem:[%s5850_s1 + $0x50] sm:$0xff]   ;;  %s3920_s15 = sshll.u32 %s4638_s24, 7  ;;  %vm207_vm0 = vsmask.f32 256  ;;  %s4638_s24 = sphi %s4683_s24, %s178_s24  }
  0x12   : >> { %v4529_v2 = vld [vmem:[%s5850_s1 + $0x100] sm:$0xff]   ;;  %4079 = vmatprep.subr.bf16.mxu1 %v4528_v1  ;;  %v4531_v4 = vld [vmem:[%s5850_s1 + $0x108] sm:$0xff]   ;;  %v4533_v6 = vld [vmem:[%s5850_s1 + $0x110] sm:$0xff]   ;;  %s4720_s21 = scalar_lea.vmem %s4681_s23, %s3920_s15  ;;  %vm208_vm1 = vsmask.f32 4368 }
  0x13   : >> { %4207 = vmatprep.subr.bf16.mxu0 %v4529_v2  ;;  %4080 = vmatpush3.bf16.msra.mxu1 %v4528_v1  ;;  %v4534_v7 = vld [vmem:[%s5850_s1 + $0x58] sm:$0xff]   ;;  %v4536_v9 = vld [vmem:[%s5850_s1 + $0x60] sm:$0xff]   ;;  %v4538_v11 = vld [vmem:[%s5850_s1 + $0x68] sm:$0xff]   ;;  %vm813_vm2 = vsmask.f32 3328 }
  0x14   : >> { %4208 = vmatpush3.bf16.msra.mxu0 %v4529_v2  ;;  %4081 = vmatprep.subr.bf16.mxu1 %v4530_v3  ;;  %v4535_v8 = vld [vmem:[%s5850_s1 + $0x118] sm:$0xff]   ;;  %v4537_v10 = vld [vmem:[%s5850_s1 + $0x120] sm:$0xff]   ;;  %v4729_v13 = vld [vmem:[%s4720_s21 + $0x8] sm:$0xf]  ;;  %vm814_vm4 = vsmask.f32 7440 }
  0x15   : >> { %4209 = vmatprep.subr.bf16.mxu0 %v4531_v4  ;;  %v4726_v12 = vld [vmem:[%s4720_s21 + $0x4] sm:$0xf]  ;;  %v4732_v14 = vld [vmem:[%s4720_s21 + $0x14] sm:$0xf]  ;;  %v4539_v15 = vld [vmem:[%s5850_s1 + $0x128] sm:$0xff]   ;;  %v225_v17 = vshrl.u32 %v4729_v13, 16 }
  0x16   : >> { %v216_v16 = vshrl.u32 %v4726_v12, 16  ;;  %v4740_v18 = vld [vmem:[%s4720_s21 + $0x18] sm:$0xf]  ;;  %v3541_v19 = vcombine.low %v4726_v12, %v4729_v13  ;;  %v4540_v20 = vld [vmem:[%s5850_s1 + $0x70] sm:$0xff]   ;;  %v1252_v21 = vshrl.u32 %v4732_v14, 16  ;;  %v219_v28 = vshll.u32 %v4726_v12, 16  ;;  %vm5131_vm3 = vmor %vm207_vm0, %vm208_vm1 }
  0x17   : >> { %4082 = vmatpush3.bf16.msra.mxu1 %v4530_v3  ;;  %v3687_v22 = vcombine.low %v4732_v14, %v4740_v18  ;;  %v4751_v23 = vld [vmem:[%s4720_s21 + $0x14] sm:$0xf]  ;;  %v1261_v26 = vshrl.u32 %v4740_v18, 16  ;;  %v4761_v29 = vrot.slane %v225_v17, 7  ;;  %v228_v30 = vshll.u32 %v4729_v13, 16  ;;  %v4542_v32 = vld [vmem:[%s5850_s1 + $0x78] sm:$0xff]   ;;  %vm5185_vm5 = vmor %vm813_vm2, %vm814_vm4 }
  0x18   : >> { %4210 = vmatpush3.bf16.msra.mxu0 %v4531_v4  ;;  %4083 = vmatprep.subr.bf16.mxu1 %v4532_v5  ;;  %v4541_v24 = vld [vmem:[%s5850_s1 + $0x130] sm:$0xff]   ;;  %v4756_v25 = vrot.slane %v216_v16, 7  ;;  %v238_v27 = vshrl.u32 %v4751_v23, 16  ;;  %v1255_v31 = vshll.u32 %v4732_v14, 16  ;;  %v4769_v33 = vld [vmem:[%s4720_s21 + $0x18] sm:$0xf] }
  0x19   : >> { %4211 = vmatprep.subr.bf16.mxu0 %v4533_v6  ;;  %4095 = vmatprep.mubr.bf16.mxu1 %v3541_v19  ;;  %v4772_v34 = vld [vmem:[%s4720_s21 + $0x24] sm:$0xf]  ;;  %v4543_v35 = vld [vmem:[%s5850_s1 + $0x138] sm:$0xff]   ;;  %v4777_v36 = vrot.slane %v1252_v21, 7  ;;  %v1264_v37 = vshll.u32 %v4740_v18, 16  ;;  %v247_v38 = vshrl.u32 %v4769_v33, 16  ;;  %v3542_v56 = vcombine.low %v4751_v23, %v4769_v33 }
  0x1a   : >> { %4223 = vmatprep.mubr.bf16.mxu0 %v3687_v22  ;;  %v1274_v39 = vshrl.u32 %v4772_v34, 16  ;;  %v4783_v41 = vrot.slane %v1261_v26, 7  ;;  %v4785_v42 = vrot.slane %v238_v27, 7  ;;  %v241_v43 = vshll.u32 %v4751_v23, 16  ;;  %v4789_v44 = vld [vmem:[%s4720_s21 + $0x28] sm:$0xf] }
  0x1b   : >> { %4084 = vmatpush3.bf16.msra.mxu1 %v4532_v5  ;;  %v4547_v45 = vld [vmem:[%s5850_s1] sm:$0xff]   ;;  %v1283_v47 = vshrl.u32 %v4789_v44, 16  ;;  %v4801_v50 = vrot.slane %v247_v38, 7  ;;  %v250_v51 = vshll.u32 %v4769_v33, 16  ;;  %v4808_v53 = vld [vmem:[%s4720_s21 + $0x28] sm:$0xf]  ;;  %v4901_v12 = vor.u32 %v1255_v31, %v4777_v36 }
  0x1c   : >> { %4212 = vmatpush3.bf16.msra.mxu0 %v4533_v6  ;;  %4085 = vmatprep.subr.bf16.mxu1 %v4534_v7  ;;  %v4794_v46 = vrot.slane %v1274_v39, 7  ;;  %v4798_v48 = vld [vmem:[%s4720_s21 + $0x24] sm:$0xf]  ;;  %v269_v57 = vshrl.u32 %v4808_v53, 16  ;;  %v4816_v58 = vld [vmem:[%s4720_s21 + $0x34] sm:$0xf] }
  0x1d   : >> { %4213 = vmatprep.subr.bf16.mxu0 %v4535_v8  ;;  %v4549_v52 = vld [vmem:[%s5850_s1 + $0x140] sm:$0xff]   ;;  %v260_v54 = vshrl.u32 %v4798_v48, 16  ;;  %v4819_v59 = vld [vmem:[%s4720_s21 + $0x38] sm:$0xf]  ;;  %v1277_v60 = vshll.u32 %v4772_v34, 16  ;;  %v1286_v61 = vshll.u32 %v4789_v44, 16 }
  0x1e   : >> { %v1296_v62 = vshrl.u32 %v4816_v58, 16  ;;  %v1305_v63 = vshrl.u32 %v4819_v59, 16  ;;  %v4826_v1 = vld [vmem:[%s4720_s21 + $0x34] sm:$0xf]  ;;  %v4829_v3 = vrot.slane %v1283_v47, 7  ;;  %v4550_v4 = vld [vmem:[%s5850_s1 + $0x8] sm:$0xff]  }
  0x1f   : >> { %4086 = vmatpush3.bf16.msra.mxu1 %v4534_v7  ;;  %v263_v5 = vshll.u32 %v4798_v48, 16  ;;  %v282_v6 = vshrl.u32 %v4826_v1, 16  ;;  %v3688_v7 = vcombine.low %v4772_v34, %v4789_v44  ;;  %v4849_v16 = vrot.slane %v269_v57, 7  ;;  %v4862_v27 = vld [vmem:[%s4720_s21 + $0x44] sm:$0xf]  ;;  %v4558_v31 = vld [vmem:[%s5850_s1 + $0x18] sm:$0xff]  }
  0x20   : >> { %4214 = vmatpush3.bf16.msra.mxu0 %v4535_v8  ;;  %4087 = vmatprep.subr.bf16.mxu1 %v4536_v9  ;;  %v4551_v8 = vld [vmem:[%s5850_s1 + $0x148] sm:$0xff]   ;;  %v4854_v21 = vrot.slane %v1296_v62, 7  ;;  %v4856_v22 = vrot.slane %v1305_v63, 7  ;;  %v285_v26 = vshll.u32 %v4826_v1, 16  ;;  %v1318_v47 = vshrl.u32 %v4862_v27, 16  ;;  %v4565_v23 = vld [vmem:[%s5850_s1 + $0x160] sm:$0xff]  }
  0x21   : >> { %4215 = vmatprep.subr.bf16.mxu0 %v4537_v10  ;;  %v4870_v38 = vld [vmem:[%s4720_s21 + $0x48] sm:$0xf]  ;;  %v4888_v62 = vor.u32 %v228_v30, %v4761_v29  ;;  %v4908_v30 = vld [vmem:[%s4720_s21 + $0x54] sm:$0xf] }
  0x22   : >> { %v1327_v57 = vshrl.u32 %v4870_v38, 16  ;;  %v3690_v14 = vcombine.low %v4862_v27, %v4870_v38  ;;  %v1340_v2 = vshrl.u32 %v4908_v30, 16  ;;  %v4931_v63 = vld [vmem:[%s4720_s21 + $0x54] sm:$0xf]  ;;  %v4973_v39 = vld [vmem:[%s4720_s21 + $0x68] sm:$0xf] }
  0x23   : >> { %4088 = vmatpush3.bf16.msra.mxu1 %v4536_v9  ;;  %v4841_v9 = vrot.slane %v260_v54, 7  ;;  %v4557_v54 = vld [vmem:[%s5850_s1 + $0x150] sm:$0xff]   ;;  %v326_v17 = vshrl.u32 %v4931_v63, 16  ;;  %5864 = vst [vmem:[#allocation5_spill] sm:$0xff] %v4973_v39  ;;  %v4566_v44 = vld [vmem:[%s5850_s1 + $0x28] sm:$0xff]  }
  0x24   : >> { %4216 = vmatpush3.bf16.msra.mxu0 %v4537_v10  ;;  %4089 = vmatprep.subr.bf16.mxu1 %v4538_v11  ;;  %v272_v10 = vshll.u32 %v4808_v53, 16  ;;  %v205_v33 = vld [vmem:[%s4720_s21 + $0x74] sm:$0xf] }
  0x25   : >> { %4217 = vmatprep.subr.bf16.mxu0 %v4539_v15  ;;  %v4571_v0 = vld [vmem:[%s5850_s1 + $0x30] sm:$0xff]  }
  0x27   : >> { %4090 = vmatpush3.bf16.msra.mxu1 %v4538_v11  ;;  %v3543_v11 = vcombine.low %v4798_v48, %v4808_v53 }
  0x28   : >> { %4218 = vmatpush3.bf16.msra.mxu0 %v4539_v15  ;;  %4091 = vmatprep.subr.bf16.mxu1 %v4540_v20  ;;  %v4847_v15 = vld [vmem:[%s4720_s21 + $0x38] sm:$0xf] }
  0x29   : >> { %4219 = vmatprep.subr.bf16.mxu0 %v4541_v24  ;;  %v3544_v13 = vcombine.low %v4826_v1, %v4847_v15  ;;  %v4567_v1 = vld [vmem:[%s5850_s1 + $0x168] sm:$0xff]  }
  0x2b   : >> { %4092 = vmatpush3.bf16.msra.mxu1 %v4540_v20  ;;  %v291_v20 = vshrl.u32 %v4847_v15, 16 }
  0x2c   : >> { %4220 = vmatpush3.bf16.msra.mxu0 %v4541_v24  ;;  %4093 = vmatprep.subr.bf16.mxu1 %v4542_v32  ;;  %v4858_v24 = vrot.slane %v282_v6, 7  ;;  %v4893_v6 = vld [vmem:[%s4720_s21 + $0x44] sm:$0xf] }
  0x2d   : >> { %4221 = vmatprep.subr.bf16.mxu0 %v4543_v35 }
  0x2e   : >> { %v5024_v48 = vor.u32 %v285_v26, %v4858_v24 }
  0x2f   : >> { %4094 = vmatpush3.bf16.msra.mxu1 %v4542_v32  ;;  %v3689_v32 = vcombine.low %v4816_v58, %v4819_v59 }
  0x30   : >> { %4222 = vmatpush3.bf16.msra.mxu0 %v4543_v35  ;;  %4111 = vmatprep.subr.bf16.mxu1 %v4547_v45  ;;  %v4555_v35 = vld [vmem:[%s5850_s1 + $0x10] sm:$0xff]  }
  0x31   : >> { %4239 = vmatprep.subr.bf16.mxu0 %v4549_v52 }
  0x32   : >> { %4096 = vmatmul.mubr.bf16.vlgmr.msra.gmra.mrb[0].mxu1 %v3542_v56  ;;  %v4877_v56 = vrot.slane %v291_v20, 7  ;;  %v4913_v20 = vrot.slane %v1318_v47, 7  ;;  %v4970_v47 = vld [vmem:[%s4720_s21 + $0x64] sm:$0xf] }
  0x33   : >> { %4224 = vmatmul.mubr.bf16.vlgmr.msra.gmra.mrb[0].mxu0 %v3688_v7  ;;  %4112 = vmatpush3.bf16.msra.mxu1 %v4547_v45  ;;  %v4883_v45 = vor.u32 %v219_v28, %v4756_v25  ;;  %v4896_v7 = vld [vmem:[%s4720_s21 + $0x48] sm:$0xf]  ;;  %v304_v28 = vshrl.u32 %v4893_v6, 16  ;;  %5863 = vst [vmem:[#allocation4_spill] sm:$0xff] %v4970_v47 }
  0x34   : >> { %4240 = vmatpush3.bf16.msra.mxu0 %v4549_v52  ;;  %4113 = vmatprep.subr.bf16.mxu1 %v4550_v4  ;;  %v313_v29 = vshrl.u32 %v4896_v7, 16  ;;  %v4936_v52 = vor.u32 %v1264_v37, %v4783_v41  ;;  %v4563_v41 = vld [vmem:[%s5850_s1 + $0x20] sm:$0xff]  }
  0x35   : >> { %4241 = vmatprep.subr.bf16.mxu0 %v4551_v8  ;;  %4099 = vmatprep.mubr.bf16.mxu1 %v3543_v11  ;;  %v4911_v11 = vld [vmem:[%s4720_s21 + $0x58] sm:$0xf]  ;;  %v4938_v19 = vrot.slane %v304_v28, 7  ;;  %v4958_v28 = vor.u32 %v241_v43, %v4785_v42 }
  0x36   : >> { %4227 = vmatprep.mubr.bf16.mxu0 %v3689_v32  ;;  %v4559_v32 = vld [vmem:[%s5850_s1 + $0x158] sm:$0xff]   ;;  %v1349_v49 = vshrl.u32 %v4911_v11, 16  ;;  %v4946_v40 = vrot.slane %v313_v29, 7  ;;  %v3691_v18 = vcombine.low %v4908_v30, %v4911_v11  ;;  %v4965_v29 = vrot.slane %v1340_v2, 7 }
  0x37   : >> { %4114 = vmatpush3.bf16.msra.mxu1 %v4550_v4  ;;  %v4925_v4 = vrot.slane %v1327_v57, 7  ;;  %v4943_v57 = vld [vmem:[%s4720_s21 + $0x58] sm:$0xf]  ;;  %v4990_v2 = vor.u32 %v1286_v61, %v4829_v3  ;;  %v5006_v61 = vor.u32 %v263_v5, %v4841_v9  ;;  %v3692_v3 = vcombine.low %v4970_v47, %v4973_v39 }
  0x38   : >> { %4242 = vmatpush3.bf16.msra.mxu0 %v4551_v8  ;;  %4115 = vmatprep.subr.bf16.mxu1 %v4555_v35  ;;  %v3545_v8 = vcombine.low %v4893_v6, %v4896_v7  ;;  %v335_v37 = vshrl.u32 %v4943_v57, 16  ;;  %v4967_v55 = vrot.slane %v1349_v49, 7  ;;  %v1371_v49 = vshrl.u32 %v4973_v39, 16 }
  0x39   : >> { %4243 = vmatprep.subr.bf16.mxu0 %v4557_v54  ;;  %v3546_v34 = vcombine.low %v4931_v63, %v4943_v57  ;;  %v5865_v5 = vshll.u32 %v4847_v15, 16 }
  0x3a   : >> { %4100 = vmatmul.mubr.bf16.gmra.mrb[4].mxu1 %v3544_v13  ;;  %v4963_v13 = vor.u32 %v250_v51, %v4801_v50  ;;  %v1362_v50 = vshrl.u32 %v4970_v47, 16  ;;  %v4985_v51 = vor.u32 %v1277_v60, %v4794_v46  ;;  %v5033_v60 = vrot.slane %v1371_v49, 7  ;;  %v5078_v47 = vld [vmem:[%s4720_s21 + $0x84] sm:$0xf] }
  0x3b   : >> { %4228 = vmatmul.mubr.bf16.gmra.mrb[4].mxu0 %v3690_v14  ;;  %4116 = vmatpush3.bf16.msra.mxu1 %v4555_v35  ;;  %v4992_v35 = vrot.slane %v326_v17, 7  ;;  %v4995_v14 = vrot.slane %v335_v37, 7  ;;  %v5011_v17 = vld [vmem:[%s4720_s21 + $0x64] sm:$0xf]  ;;  %5873 = vst [vmem:[#allocation12_spill] sm:$0xff] %v5078_v47 }
  0x3c   : >> { %4244 = vmatpush3.bf16.msra.mxu0 %v4557_v54  ;;  %4117 = vmatprep.subr.bf16.mxu1 %v4558_v31  ;;  %v5031_v37 = vrot.slane %v1362_v50, 7  ;;  %5867 = vst [vmem:[#allocation7_spill] sm:$0xff] %v5033_v60  ;;  %v348_v53 = vshrl.u32 %v5011_v17, 16  ;;  %v351_v15 = vshll.u32 %v5011_v17, 16  ;;  %v5870_v54 = vshll.u32 %v4893_v6, 16 }
  0x3d   : >> { %4245 = vmatprep.subr.bf16.mxu0 %v4559_v32  ;;  %4103 = vmatprep.mubr.bf16.mxu1 %v3545_v8  ;;  %v5014_v8 = vld [vmem:[%s4720_s21 + $0x68] sm:$0xf]  ;;  %v5875_v6 = vshll.u32 %v4896_v7, 16  ;;  %v183_v7 = vld [vmem:[%s4720_s21] sm:$0x8] }
  0x3e   : >> { %4231 = vmatprep.mubr.bf16.mxu0 %v3691_v18  ;;  %v5019_v18 = vor.u32 %v272_v10, %v4849_v16  ;;  %5866 = vst [vmem:[#allocation6_spill] sm:$0xff] %v5031_v37  ;;  %v357_v10 = vshrl.u32 %v5014_v8, 16  ;;  %v5038_v16 = vld [vmem:[%s4720_s21 + $0x74] sm:$0xf]  ;;  %v360_v26 = vshll.u32 %v5014_v8, 16  ;;  %v5051_v49 = vrot.slane %v348_v53, 7 }
  0x3f   : >> { %4118 = vmatpush3.bf16.msra.mxu1 %v4558_v31  ;;  %v5029_v31 = vor.u32 %v5865_v5, %v4877_v56  ;;  %5868 = vst [vmem:[#allocation8_spill] sm:$0xff] %v5038_v16  ;;  %v3547_v56 = vcombine.low %v5011_v17, %v5014_v8  ;;  %v1384_v50 = vshrl.u32 %v5038_v16, 16  ;;  %v206_v8 = vld [vmem:[%s4720_s21 + $0x78] sm:$0xf]  ;;  %v370_v53 = vshrl.u32 %v205_v33, 16 }
  0x40   : >> { %4246 = vmatpush3.bf16.msra.mxu0 %v4559_v32  ;;  %4119 = vmatprep.subr.bf16.mxu1 %v4563_v41  ;;  %v5048_v32 = vld [vmem:[%s4720_s21 + $0x78] sm:$0xf]  ;;  %v359_v5 = vrot.slane %v357_v10, 7  ;;  %v4573_v10 = vld [vmem:[%s5850_s1 + $0x170] sm:$0xff]   ;;  %v5069_v39 = vor.u32 %v5870_v54, %v4938_v19  ;;  %v373_v17 = vshll.u32 %v205_v33, 16  ;;  %v382_v60 = vshll.u32 %v206_v8, 16 }
  0x41   : >> { %4247 = vmatprep.subr.bf16.mxu0 %v4565_v23  ;;  %5869 = vst [vmem:[#allocation9_spill] sm:$0xff] %v5048_v32  ;;  %v1393_v43 = vshrl.u32 %v5048_v32, 16  ;;  %v5081_v37 = vld [vmem:[%s4720_s21 + $0x88] sm:$0xf] }
  0x42   : >> { %4104 = vmatmul.mubr.bf16.gmra.mrb[8].mxu1 %v3546_v34  ;;  %v3693_v34 = vcombine.low %v5038_v16, %v5048_v32  ;;  %v379_v32 = vshrl.u32 %v206_v8, 16  ;;  %v5075_v16 = vrot.slane %v370_v53, 7  ;;  %5874 = vst [vmem:[#allocation13_spill] sm:$0xff] %v5081_v37  ;;  %v1406_v53 = vshrl.u32 %v5078_v47, 16 }
  0x43   : >> { %4232 = vmatmul.mubr.bf16.gmra.mrb[8].mxu0 %v3692_v3  ;;  %4120 = vmatpush3.bf16.msra.mxu1 %v4563_v41  ;;  %v5071_v41 = vrot.slane %v1384_v50, 7  ;;  %v5073_v3 = vrot.slane %v1393_v43, 7  ;;  %v5876_v43 = vshll.u32 %v4931_v63, 16  ;;  %v3694_v63 = vcombine.low %v5078_v47, %v5081_v37 }
  0x44   : >> { %4248 = vmatpush3.bf16.msra.mxu0 %v4565_v23  ;;  %4121 = vmatprep.subr.bf16.mxu1 %v4566_v44  ;;  %v5086_v23 = vor.u32 %v5875_v6, %v4946_v40  ;;  %v381_v50 = vrot.slane %v379_v32, 7  ;;  %v5877_v32 = vshll.u32 %v4943_v57, 16  ;;  %v5115_v6 = vor.u32 %v351_v15, %v5051_v49 }
  0x45   : >> { %5871 = vst [vmem:[#allocation10_spill] sm:$0xff] %v5071_v41  ;;  %5872 = vst [vmem:[#allocation11_spill] sm:$0xff] %v5073_v3  ;;  %4249 = vmatprep.subr.bf16.mxu0 %v4567_v1  ;;  %4107 = vmatprep.mubr.bf16.mxu1 %v3547_v56  ;;  %v5091_v54 = vor.u32 %v5876_v43, %v4992_v35  ;;  %v3548_v56 = vcombine.low %v205_v33, %v206_v8  ;;  %v1415_v3 = vshrl.u32 %v5081_v37, 16  ;;  %v4574_v41 = vld [vmem:[%s5850_s1 + $0x38] sm:$0xff]   ;;  %v3706_v37 = vld [vmem:[%s4720_s21 + $0x24] sm:$0xf] }
  0x46   : >> { %4235 = vmatprep.mubr.bf16.mxu0 %v3693_v34  ;;  %v4575_v33 = vld [vmem:[%s5850_s1 + $0x178] sm:$0xff]   ;;  %v5108_v34 = vor.u32 %v5877_v32, %v4995_v14  ;;  %v5110_v8 = vrot.slane %v1406_v53, 7  ;;  %v5117_v43 = vor.u32 %v360_v26, %v359_v5  ;;  %v5121_v57 = vor.u32 %v373_v17, %v5075_v16 }
  0x47   : >> { %4122 = vmatpush3.bf16.msra.mxu1 %v4566_v44  ;;  %v5112_v44 = vrot.slane %v1415_v3, 7  ;;  %v5123_v14 = vor.u32 %v382_v60, %v381_v50  ;;  %v211_v15 = vshrl.u32 %v183_v7, 16  ;;  %v267_v26 = vrot.slane %v4841_v9, 4  ;;  %v3703_v60 = vld [vmem:[%s4720_s21 + $0x14] sm:$0xf] }
  0x48   : >> { %4250 = vmatpush3.bf16.msra.mxu0 %v4567_v1  ;;  %4123 = vmatprep.subr.bf16.mxu1 %v4571_v0  ;;  %v5879_v1 = vshll.u32 %v4816_v58, 16  ;;  %v3704_v17 = vld [vmem:[%s4720_s21 + $0x18] sm:$0xf]  ;;  %v5882_v58 = vshll.u32 %v4819_v59, 16  ;;  %v1883_v32 = vshrl.u32 %v3703_v60, 16 }
  0x49   : >> { %5878 = vst [vmem:[#allocation14_spill] sm:$0xff] %v5112_v44  ;;  %4251 = vmatprep.subr.bf16.mxu0 %v4573_v10  ;;  %v3517_v7 = vrot.slane %v211_v15, 11  ;;  %v5886_v15 = vrot.slane %v4785_v42, 4  ;;  %v3707_v44 = vld [vmem:[%s4720_s21 + $0x28] sm:$0xf]  ;;  %v5180_v47 = vsel %vm5131_vm3, %v267_v26, %v5019_v18 }
  0x4a   : >> { %v5128_v3 = vor.u32 %v5879_v1, %v4854_v21  ;;  %4108 = vmatmul.mubr.bf16.gmra.mrb[12].mxu1 %v3548_v56  ;;  %v5140_v50 = vor.u32 %v5882_v58, %v4856_v22  ;;  %v5883_v56 = vshll.u32 %v4862_v27, 16  ;;  %v3705_v22 = vld [vmem:[%s4720_s21 + $0x1c] sm:$0x1]  ;;  %v1886_v1 = vshll.u32 %v3703_v60, 16  ;;  %v4576_v27 = vld [vmem:[%s5850_s1 + $0x80] sm:$0xff]  }
  0x4b   : >> { %4236 = vmatmul.mubr.bf16.gmra.mrb[12].mxu0 %v3694_v63  ;;  %4124 = vmatpush3.bf16.msra.mxu1 %v4571_v0  ;;  %v5884_v0 = vshll.u32 %v4870_v38, 16  ;;  %v5885_v63 = vrot.slane %v4756_v25, 4  ;;  %v1892_v38 = vshll.u32 %v3704_v17, 16  ;;  %v1902_v58 = vshll.u32 %v3705_v22, 16 }
  0x4c   : >> { %v5145_v53 = vor.u32 %v5883_v56, %v4913_v20  ;;  %4252 = vmatpush3.bf16.msra.mxu0 %v4573_v10  ;;  %4125 = vmatprep.subr.bf16.mxu1 %v4574_v41  ;;  %v186_v10 = vld [vmem:[%s4720_s21 + $0x10] sm:$0x8]  ;;  %v253_v25 = vsel %vm5131_vm3, %v5886_v15, %v4963_v13  ;;  %v222_v60 = vsel %vm5131_vm3, %v3517_v7, %v4883_v45  ;;  %v1888_v56 = vrot.slane %v1886_v1, 5  ;;  %v3708_v7 = vld [vmem:[%s4720_s21 + $0x2c] sm:$0x1] }
  0x4d   : >> { %v5150_v9 = vor.u32 %v5884_v0, %v4925_v4  ;;  %v231_v59 = vsel %vm5131_vm3, %v5885_v63, %v4888_v62  ;;  %4253 = vmatprep.subr.bf16.mxu0 %v4575_v33  ;;  %v1896_v4 = vshrl.u32 %v3704_v17, 16  ;;  %v5170_v62 = vld [vmem:[%s5850_s1 + $0x180] sm:$0xff]   ;;  %v1885_v17 = vrot.slane %v1883_v32, 4 }
  0x4e   : >> { %v233_v0 = vshrl.u32 %v186_v10, 16  ;;  %v3557_v42 = vcombine.low %v222_v60, %v231_v59  ;;  %v1894_v63 = vrot.slane %v1892_v38, 5  ;;  %v1904_v40 = vrot.slane %v1902_v58, 5 }
  0x4f   : >> { %4126 = vmatpush3.bf16.msra.mxu1 %v4574_v41  ;;  %v1898_v22 = vrot.slane %v1896_v4, 4  ;;  %v1889_v13 = vor.u32 %v1888_v56, %v1885_v17  ;;  %v289_v45 = vrot.slane %v4858_v24, 4  ;;  %v1907_v59 = vshrl.u32 %v3706_v37, 16 }
  0x50   : >> { %4254 = vmatpush3.bf16.msra.mxu0 %v4575_v33  ;;  %v3518_v15 = vrot.slane %v233_v0, 11  ;;  %4143 = vmatprep.subr.bf16.mxu1 %v4576_v27  ;;  %v1910_v32 = vshll.u32 %v3706_v37, 16  ;;  %v1916_v1 = vshll.u32 %v3707_v44, 16  ;;  %v1920_v24 = vshrl.u32 %v3707_v44, 16  ;;  %v4578_v37 = vld [vmem:[%s5850_s1 + $0x88] sm:$0xff]  }
  0x51   : >> { %4127 = vmatprep.mubr.bf16.mxu1 %v3557_v42  ;;  %v1899_v33 = vor.u32 %v1898_v22, %v1894_v63  ;;  %4271 = vmatprep.subr.bf16.mxu0 %v5170_v62  ;;  %v1890_v38 = vrot.slane %v1889_v13, 4  ;;  %v1926_v26 = vshll.u32 %v3708_v7, 16  ;;  %v1909_v10 = vrot.slane %v1907_v59, 4  ;;  %v4580_v22 = vld [vmem:[%s5850_s1 + $0x90] sm:$0xff]   ;;  %v3710_v59 = vld [vmem:[%s4720_s21 + $0x38] sm:$0xf] }
  0x52   : >> { %v244_v18 = vsel %vm5131_vm3, %v3518_v15, %v4958_v28  ;;  %v1912_v60 = vrot.slane %v1910_v32, 5  ;;  %v1918_v56 = vrot.slane %v1916_v1, 5  ;;  %v1922_v0 = vrot.slane %v1920_v24, 4  ;;  %v3709_v7 = vld [vmem:[%s4720_s21 + $0x34] sm:$0xf] }
  0x53   : >> { %v1900_v4 = vrot.slane %v1899_v33, 4  ;;  %v3558_v58 = vcombine.low %v244_v18, %v253_v25  ;;  %v1895_v17 = vsel %vm5185_vm5, %v1890_v38, %v1894_v63  ;;  %v1928_v42 = vrot.slane %v1926_v26, 5  ;;  %v189_v33 = vld [vmem:[%s4720_s21 + $0x20] sm:$0x8] }
  0x54   : >> { %v1913_v44 = vor.u32 %v1912_v60, %v1909_v10  ;;  %v5204_v25 = vsel %vm5131_vm3, %v289_v45, %v5029_v31  ;;  %v5889_v63 = vrot.slane %v4777_v36, 4  ;;  %v1923_v15 = vor.u32 %v1922_v0, %v1918_v56  ;;  %v4579_v0 = vld [vmem:[%s5850_s1 + $0x188] sm:$0xff]  }
  0x55   : >> { %v1905_v28 = vsel %vm5185_vm5, %v1900_v4, %v1904_v40  ;;  %4128 = vmatmul.mubr.bf16.vlgmr.msra.gmra.mrb[0].mxu1 %v3558_v58  ;;  %v5890_v31 = vrot.slane %v4794_v46, 4  ;;  %v5891_v36 = vshll.u32 %v4908_v30, 16  ;;  %v255_v1 = vshrl.u32 %v189_v33, 16  ;;  %v192_v58 = vld [vmem:[%s4720_s21 + $0x30] sm:$0x8] }
  0x56   : >> { %v5214_v13 = vsel %vm5131_vm3, %v5889_v63, %v4936_v52  ;;  %v3743_v40 = vcombine.low %v1895_v17, %v1905_v28  ;;  %4144 = vmatpush3.bf16.msra.mxu1 %v4576_v27  ;;  %v1914_v52 = vrot.slane %v1913_v44, 4  ;;  %v3711_v27 = vld [vmem:[%s4720_s21 + $0x3c] sm:$0x1]  ;;  %v1931_v38 = vshrl.u32 %v3709_v7, 16 }
  0x57   : >> { %v5224_v45 = vsel %vm5131_vm3, %v5890_v31, %v4990_v2  ;;  %v5229_v32 = vor.u32 %v5891_v36, %v4965_v29  ;;  %4145 = vmatprep.subr.bf16.mxu1 %v4578_v37  ;;  %v1934_v18 = vshll.u32 %v3709_v7, 16  ;;  %v1924_v24 = vrot.slane %v1923_v15, 4  ;;  %v3712_v7 = vld [vmem:[%s4720_s21 + $0x44] sm:$0xf]  ;;  %v3714_v36 = vld [vmem:[%s4720_s21 + $0x4c] sm:$0x1] }
  0x58   : >> { %4255 = vmatprep.mubr.bf16.mxu0 %v3743_v40  ;;  %v1940_v26 = vshll.u32 %v3710_v59, 16  ;;  %v1944_v4 = vshrl.u32 %v3710_v59, 16  ;;  %v1950_v46 = vshll.u32 %v3711_v27, 16  ;;  %v1919_v2 = vsel %vm5185_vm5, %v1914_v52, %v1918_v56  ;;  %v3713_v59 = vld [vmem:[%s4720_s21 + $0x48] sm:$0xf] }
  0x59   : >> { %v3519_v30 = vrot.slane %v255_v1, 11  ;;  %v1933_v10 = vrot.slane %v1931_v38, 4  ;;  %v1936_v60 = vrot.slane %v1934_v18, 5  ;;  %v1929_v17 = vsel %vm5185_vm5, %v1924_v24, %v1928_v42  ;;  %v4582_v42 = vld [vmem:[%s5850_s1 + $0x98] sm:$0xff]   ;;  %v4581_v24 = vld [vmem:[%s5850_s1 + $0x190] sm:$0xff]  }
  0x5a   : >> { %4146 = vmatpush3.bf16.msra.mxu1 %v4578_v37  ;;  %v1942_v28 = vrot.slane %v1940_v26, 5  ;;  %v1946_v44 = vrot.slane %v1944_v4, 4  ;;  %v1952_v63 = vrot.slane %v1950_v46, 5  ;;  %v3744_v40 = vcombine.low %v1919_v2, %v1929_v17 }
  0x5b   : >> { %v266_v56 = vsel %vm5131_vm3, %v3519_v30, %v5006_v61  ;;  %v1937_v15 = vor.u32 %v1936_v60, %v1933_v10  ;;  %v277_v33 = vshrl.u32 %v192_v58, 16  ;;  %4147 = vmatprep.subr.bf16.mxu1 %v4580_v22  ;;  %v1955_v52 = vshrl.u32 %v3712_v7, 16 }
  0x5c   : >> { %v3559_v31 = vcombine.low %v266_v56, %v5180_v47  ;;  %v1947_v37 = vor.u32 %v1946_v44, %v1942_v28  ;;  %v1958_v1 = vshll.u32 %v3712_v7, 16  ;;  %4256 = vmatmul.mubr.bf16.vlgmr.msra.gmra.mrb[0].mxu0 %v3744_v40  ;;  %v1964_v18 = vshll.u32 %v3713_v59, 16  ;;  %v195_v40 = vld [vmem:[%s4720_s21 + $0x40] sm:$0x8]  ;;  %v3716_v7 = vld [vmem:[%s4720_s21 + $0x58] sm:$0xf] }
  0x5d   : >> { %v1938_v27 = vrot.slane %v1937_v15, 4  ;;  %v3520_v38 = vrot.slane %v277_v33, 11  ;;  %v1968_v61 = vshrl.u32 %v3713_v59, 16  ;;  %4272 = vmatpush3.bf16.msra.mxu0 %v5170_v62  ;;  %v1957_v4 = vrot.slane %v1955_v52, 4  ;;  %v4583_v52 = vld [vmem:[%s5850_s1 + $0x198] sm:$0xff]  }
  0x5e   : >> { %4131 = vmatprep.mubr.bf16.mxu1 %v3559_v31  ;;  %v1948_v26 = vrot.slane %v1947_v37, 4  ;;  %v1960_v47 = vrot.slane %v1958_v1, 5  ;;  %v1974_v46 = vshll.u32 %v3714_v36, 16  ;;  %4273 = vmatprep.subr.bf16.mxu0 %v4579_v0  ;;  %v1966_v30 = vrot.slane %v1964_v18, 5 }
  0x5f   : >> { %v1943_v58 = vsel %vm5185_vm5, %v1938_v27, %v1942_v28  ;;  %v288_v2 = vsel %vm5131_vm3, %v3520_v38, %v5024_v48  ;;  %v1970_v10 = vrot.slane %v1968_v61, 4  ;;  %4148 = vmatpush3.bf16.msra.mxu1 %v4580_v22  ;;  %v4584_v28 = vld [vmem:[%s5850_s1 + $0xa0] sm:$0xff]   ;;  %v299_v15 = vshrl.u32 %v195_v40, 16  ;;  %v3715_v22 = vld [vmem:[%s4720_s21 + $0x54] sm:$0xf] }
  0x60   : >> { %v1953_v62 = vsel %vm5185_vm5, %v1948_v26, %v1952_v63  ;;  %v3560_v60 = vcombine.low %v288_v2, %v5204_v25  ;;  %v1961_v17 = vor.u32 %v1960_v47, %v1957_v4  ;;  %v1976_v44 = vrot.slane %v1974_v46, 5  ;;  %4149 = vmatprep.subr.bf16.mxu1 %v4582_v42  ;;  %v3717_v25 = vld [vmem:[%s4720_s21 + $0x5c] sm:$0x1]  ;;  %v198_v27 = vld [vmem:[%s4720_s21 + $0x50] sm:$0x8] }
  0x61   : >> { %v3745_v56 = vcombine.low %v1943_v58, %v1953_v62  ;;  %v1971_v48 = vor.u32 %v1970_v10, %v1966_v30  ;;  %v311_v33 = vrot.slane %v4938_v19, 4  ;;  %4274 = vmatpush3.bf16.msra.mxu0 %v4579_v0  ;;  %v1979_v59 = vshrl.u32 %v3715_v22, 16  ;;  %v3718_v58 = vld [vmem:[%s4720_s21 + $0x64] sm:$0xf]  ;;  %v3719_v62 = vld [vmem:[%s4720_s21 + $0x68] sm:$0xf] }
  0x62   : >> { %4132 = vmatmul.mubr.bf16.gmra.mrb[4].mxu1 %v3560_v60  ;;  %v1962_v63 = vrot.slane %v1961_v17, 4  ;;  %v1982_v31 = vshll.u32 %v3715_v22, 16  ;;  %v1988_v37 = vshll.u32 %v3716_v7, 16  ;;  %4275 = vmatprep.subr.bf16.mxu0 %v4581_v24  ;;  %v3521_v1 = vrot.slane %v299_v15, 11  ;;  %v3720_v60 = vld [vmem:[%s4720_s21 + $0x6c] sm:$0x1] }
  0x63   : >> { %4259 = vmatprep.mubr.bf16.mxu0 %v3745_v56  ;;  %v1972_v36 = vrot.slane %v1971_v48, 4  ;;  %v319_v19 = vsel %vm5131_vm3, %v311_v33, %v5086_v23  ;;  %v1992_v0 = vshrl.u32 %v3716_v7, 16  ;;  %4150 = vmatpush3.bf16.msra.mxu1 %v4582_v42  ;;  %v1981_v18 = vrot.slane %v1979_v59, 4  ;;  %v4586_v17 = vld [vmem:[%s5850_s1 + $0xa8] sm:$0xff]   ;;  %v4585_v48 = vld [vmem:[%s5850_s1 + $0x1a0] sm:$0xff]  }
  0x64   : >> { %v1967_v38 = vsel %vm5185_vm5, %v1962_v63, %v1966_v30  ;;  %v1984_v61 = vrot.slane %v1982_v31, 5  ;;  %v1990_v26 = vrot.slane %v1988_v37, 5  ;;  %v310_v47 = vsel %vm5131_vm3, %v3521_v1, %v5069_v39  ;;  %4151 = vmatprep.subr.bf16.mxu1 %v4584_v28 }
  0x65   : >> { %v1977_v4 = vsel %vm5185_vm5, %v1972_v36, %v1976_v44  ;;  %v1994_v46 = vrot.slane %v1992_v0, 4  ;;  %v1998_v23 = vshll.u32 %v3717_v25, 16  ;;  %4276 = vmatpush3.bf16.msra.mxu0 %v4581_v24  ;;  %v3561_v30 = vcombine.low %v310_v47, %v319_v19 }
  0x66   : >> { %v3746_v2 = vcombine.low %v1967_v38, %v1977_v4  ;;  %v1985_v10 = vor.u32 %v1984_v61, %v1981_v18  ;;  %v321_v42 = vshrl.u32 %v198_v27, 16  ;;  %4277 = vmatprep.subr.bf16.mxu0 %v4583_v52  ;;  %v333_v39 = vrot.slane %v4992_v35, 4  ;;  %v4587_v35 = vld [vmem:[%s5850_s1 + $0x1a8] sm:$0xff]   ;;  %v201_v27 = vld [vmem:[%s4720_s21 + $0x60] sm:$0x8] }
  0x67   : >> { %v1995_v44 = vor.u32 %v1994_v46, %v1990_v26  ;;  %v2000_v40 = vrot.slane %v1998_v23, 5  ;;  %v2003_v56 = vshrl.u32 %v3718_v58, 16  ;;  %4135 = vmatprep.mubr.bf16.mxu1 %v3561_v30  ;;  %v2006_v33 = vshll.u32 %v3718_v58, 16  ;;  %4152 = vmatpush3.bf16.msra.mxu1 %v4584_v28  ;;  %v4588_v28 = vld [vmem:[%s5850_s1 + $0xb0] sm:$0xff]   ;;  %v3722_v4 = vld [vmem:[%s4720_s21 + $0x78] sm:$0xf] }
  0x68   : >> { %4260 = vmatmul.mubr.bf16.gmra.mrb[4].mxu0 %v3746_v2  ;;  %v1986_v24 = vrot.slane %v1985_v10, 4  ;;  %v3522_v15 = vrot.slane %v321_v42, 11  ;;  %v2012_v22 = vshll.u32 %v3719_v62, 16  ;;  %v341_v63 = vsel %vm5131_vm3, %v333_v39, %v5108_v34  ;;  %4153 = vmatprep.subr.bf16.mxu1 %v4586_v17  ;;  %v3723_v23 = vld [vmem:[%s4720_s21 + $0x7c] sm:$0x1] }
  0x69   : >> { %v1996_v7 = vrot.slane %v1995_v44, 4  ;;  %v2005_v25 = vrot.slane %v2003_v56, 4  ;;  %v2016_v59 = vshrl.u32 %v3719_v62, 16  ;;  %4278 = vmatpush3.bf16.msra.mxu0 %v4583_v52  ;;  %v2008_v36 = vrot.slane %v2006_v33, 5  ;;  %v3724_v33 = vld [vmem:[%s4720_s21 + $0x84] sm:$0xf] }
  0x6a   : >> { %v1991_v31 = vsel %vm5185_vm5, %v1986_v24, %v1990_v26  ;;  %v332_v37 = vsel %vm5131_vm3, %v3522_v15, %v5091_v54  ;;  %v2014_v34 = vrot.slane %v2012_v22, 5  ;;  %v2022_v0 = vshll.u32 %v3720_v60, 16  ;;  %4279 = vmatprep.subr.bf16.mxu0 %v4585_v48  ;;  %v3721_v26 = vld [vmem:[%s4720_s21 + $0x74] sm:$0xf]  ;;  %v204_v60 = vld [vmem:[%s4720_s21 + $0x70] sm:$0x8] }
  0x6b   : >> { %v2001_v52 = vsel %vm5185_vm5, %v1996_v7, %v2000_v40  ;;  %v3562_v1 = vcombine.low %v332_v37, %v341_v63  ;;  %v2018_v19 = vrot.slane %v2016_v59, 4  ;;  %v2009_v18 = vor.u32 %v2008_v36, %v2005_v25  ;;  %4154 = vmatpush3.bf16.msra.mxu1 %v4586_v17  ;;  %v3725_v25 = vld [vmem:[%s4720_s21 + $0x88] sm:$0xf]  ;;  %v3726_v59 = vld [vmem:[%s4720_s21 + $0x8c] sm:$0x1] }
  0x6c   : >> { %v3747_v38 = vcombine.low %v1991_v31, %v2001_v52  ;;  %v343_v54 = vshrl.u32 %v201_v27, 16  ;;  %v355_v61 = vrot.slane %v5051_v49, 4  ;;  %v2024_v46 = vrot.slane %v2022_v0, 5  ;;  %v4589_v49 = vld [vmem:[%s5850_s1 + $0x1b0] sm:$0xff]   ;;  %4155 = vmatprep.subr.bf16.mxu1 %v4588_v28  ;;  %v4590_v31 = vld [vmem:[%s5850_s1 + $0xb8] sm:$0xff]  }
  0x6d   : >> { %4136 = vmatmul.mubr.bf16.gmra.mrb[8].mxu1 %v3562_v1  ;;  %v2019_v47 = vor.u32 %v2018_v19, %v2014_v34  ;;  %v2027_v58 = vshrl.u32 %v3721_v26, 16  ;;  %v2030_v2 = vshll.u32 %v3721_v26, 16  ;;  %v2010_v30 = vrot.slane %v2009_v18, 4  ;;  %4280 = vmatpush3.bf16.msra.mxu0 %v4585_v48  ;;  %v4591_v27 = vld [vmem:[%s5850_s1 + $0x1b8] sm:$0xff]  }
  0x6e   : >> { %4263 = vmatprep.mubr.bf16.mxu0 %v3747_v38  ;;  %v3523_v10 = vrot.slane %v343_v54, 11  ;;  %v363_v42 = vsel %vm5131_vm3, %v355_v61, %v5117_v43  ;;  %v2036_v62 = vshll.u32 %v3722_v4, 16  ;;  %4281 = vmatprep.subr.bf16.mxu0 %v4587_v35  ;;  %v2040_v56 = vshrl.u32 %v3722_v4, 16 }
  0x6f   : >> { %v2020_v44 = vrot.slane %v2019_v47, 4  ;;  %v2029_v40 = vrot.slane %v2027_v58, 4  ;;  %v2032_v39 = vrot.slane %v2030_v2, 5  ;;  %v2015_v48 = vsel %vm5185_vm5, %v2010_v30, %v2014_v34  ;;  %4156 = vmatpush3.bf16.msra.mxu1 %v4588_v28  ;;  %v5347_v47 = vld [vmem:[%s5850_s1 + $0xc0] sm:$0xff]  }
  0x70   : >> { %v354_v43 = vsel %vm5131_vm3, %v3523_v10, %v5115_v6  ;;  %v2038_v24 = vrot.slane %v2036_v62, 5  ;;  %v2046_v15 = vshll.u32 %v3723_v23, 16  ;;  %v2042_v17 = vrot.slane %v2040_v56, 4  ;;  %4157 = vmatprep.subr.bf16.mxu1 %v4590_v31  ;;  %v5355_v58 = vld [vmem:[%s5850_s1 + $0x1c0] sm:$0xff]  }
  0x71   : >> { %v2025_v22 = vsel %vm5185_vm5, %v2020_v44, %v2024_v46  ;;  %v3563_v7 = vcombine.low %v354_v43, %v363_v42  ;;  %v2033_v63 = vor.u32 %v2032_v39, %v2029_v40  ;;  %4282 = vmatpush3.bf16.msra.mxu0 %v4587_v35  ;;  %v365_v6 = vshrl.u32 %v204_v60, 16  ;;  %v789_v42 = vld [vmem:[%s4720_s21 + $0x4] sm:$0xf]  ;;  %v791_v39 = vld [vmem:[%s4720_s21 + $0xc] sm:$0x1] }
  0x72   : >> { %v3748_v37 = vcombine.low %v2015_v48, %v2025_v22  ;;  %v2048_v36 = vrot.slane %v2046_v15, 5  ;;  %v377_v34 = vrot.slane %v5075_v16, 4  ;;  %v2043_v1 = vor.u32 %v2042_v17, %v2038_v24  ;;  %4283 = vmatprep.subr.bf16.mxu0 %v4589_v49  ;;  %v3761_v48 = vld [vmem:[%s4720_s21 + $0x20] sm:$0x8]  ;;  %v5369_v22 = vld [vmem:[%s4720_s21 + $0x24] sm:$0xf] }
  0x73   : >> { %4139 = vmatprep.mubr.bf16.mxu1 %v3563_v7  ;;  %v2034_v52 = vrot.slane %v2033_v63, 4  ;;  %v2051_v19 = vshrl.u32 %v3724_v33, 16  ;;  %v2054_v0 = vshll.u32 %v3724_v33, 16  ;;  %v3524_v38 = vrot.slane %v365_v6, 11  ;;  %4158 = vmatpush3.bf16.msra.mxu1 %v4590_v31  ;;  %v5373_v63 = vld [vmem:[%s4720_s21 + $0x28] sm:$0xf] }
  0x74   : >> { %4264 = vmatmul.mubr.bf16.gmra.mrb[8].mxu0 %v3748_v37  ;;  %v385_v35 = vsel %vm5131_vm3, %v377_v34, %v5123_v14  ;;  %v2060_v18 = vshll.u32 %v3725_v25, 16  ;;  %v2064_v54 = vshrl.u32 %v3725_v25, 16  ;;  %v2044_v61 = vrot.slane %v2043_v1, 4  ;;  %4175 = vmatprep.subr.bf16.mxu1 %v5347_v47 }
  0x75   : >> { %v2039_v16 = vsel %vm5185_vm5, %v2034_v52, %v2038_v24  ;;  %v2053_v26 = vrot.slane %v2051_v19, 4  ;;  %v2056_v4 = vrot.slane %v2054_v0, 5  ;;  %v376_v14 = vsel %vm5131_vm3, %v3524_v38, %v5121_v57  ;;  %4284 = vmatpush3.bf16.msra.mxu0 %v4589_v49  ;;  %v790_v57 = vld [vmem:[%s4720_s21 + $0x8] sm:$0xf]  ;;  %v793_v19 = vld [vmem:[%s4720_s21 + $0x18] sm:$0xf] }
  0x76   : >> { %v2062_v46 = vrot.slane %v2060_v18, 5  ;;  %v2066_v28 = vrot.slane %v2064_v54, 4  ;;  %v2070_v23 = vshll.u32 %v3726_v59, 16  ;;  %v2049_v2 = vsel %vm5185_vm5, %v2044_v61, %v2048_v36  ;;  %4285 = vmatprep.subr.bf16.mxu0 %v4591_v27  ;;  %v792_v36 = vld [vmem:[%s4720_s21 + $0x14] sm:$0xf] }
  0x77   : >> { %v3564_v30 = vcombine.low %v376_v14, %v385_v35  ;;  %v2057_v10 = vor.u32 %v2056_v4, %v2053_v26  ;;  %v5892_v62 = vshll.u32 %v4911_v11, 16  ;;  %v3749_v49 = vcombine.low %v2039_v16, %v2049_v2  ;;  %v794_v61 = vld [vmem:[%s4720_s21 + $0x1c] sm:$0x1] }
  0x78   : >> { %v2067_v44 = vor.u32 %v2066_v28, %v2062_v46  ;;  %v2072_v40 = vrot.slane %v2070_v23, 5  ;;  %v817_v56 = vshrl.u32 %v789_v42, 16  ;;  %v820_v24 = vshll.u32 %v789_v42, 16  ;;  %v3764_v23 = vld [vmem:[%s4720_s21 + $0x30] sm:$0x8] }
  0x79   : >> { %v5364_v60 = vor.u32 %v5892_v62, %v4967_v55  ;;  %4140 = vmatmul.mubr.bf16.gmra.mrb[12].mxu1 %v3564_v30  ;;  %v2058_v43 = vrot.slane %v2057_v10, 4  ;;  %v826_v15 = vshll.u32 %v790_v57, 16  ;;  %v830_v33 = vshrl.u32 %v790_v57, 16  ;;  %4267 = vmatprep.mubr.bf16.mxu0 %v3749_v49  ;;  %v5389_v57 = vld [vmem:[%s4720_s21 + $0x34] sm:$0xf] }
  0x7a   : >> { %v2068_v55 = vrot.slane %v2067_v44, 4  ;;  %4286 = vmatpush3.bf16.msra.mxu0 %v4591_v27  ;;  %v819_v11 = vrot.slane %v817_v56, 4  ;;  %v836_v7 = vshll.u32 %v791_v39, 16  ;;  %v2313_v17 = vshrl.u32 %v3761_v48, 16  ;;  %v5396_v39 = vld [vmem:[%s4720_s21 + $0x38] sm:$0xf] }
  0x7b   : >> { %v2063_v25 = vsel %vm5185_vm5, %v2058_v43, %v2062_v46  ;;  %v822_v59 = vrot.slane %v820_v24, 5  ;;  %v828_v31 = vrot.slane %v826_v15, 5  ;;  %v832_v37 = vrot.slane %v830_v33, 4  ;;  %4303 = vmatprep.subr.bf16.mxu0 %v5355_v58 }
  0x7c   : >> { %v2073_v6 = vsel %vm5185_vm5, %v2068_v55, %v2072_v40  ;;  %v838_v34 = vrot.slane %v836_v7, 5  ;;  %v3785_v52 = vrot.slane %v2313_v17, 11  ;;  %v2318_v1 = vshrl.u32 %v5369_v22, 16 }
  0x7d   : >> { %v3750_v0 = vcombine.low %v2063_v25, %v2073_v6  ;;  %v823_v27 = vor.u32 %v822_v59, %v819_v11  ;;  %v833_v38 = vor.u32 %v832_v37, %v828_v31  ;;  %v2321_v35 = vshll.u32 %v5369_v22, 16 }
  0x7e   : >> { %v2320_v18 = vrot.slane %v2318_v1, 7  ;;  %v2327_v54 = vshrl.u32 %v5373_v63, 16  ;;  %v2330_v16 = vshll.u32 %v5373_v63, 16  ;;  %v841_v26 = vshrl.u32 %v792_v36, 16 }
  0x7f   : >> { %4268 = vmatmul.mubr.bf16.gmra.mrb[12].mxu0 %v3750_v0  ;;  %v824_v4 = vrot.slane %v823_v27, 4  ;;  %v834_v14 = vrot.slane %v833_v38, 4  ;;  %v844_v46 = vshll.u32 %v792_v36, 16  ;;  %v850_v28 = vshll.u32 %v793_v19, 16  ;;  %v795_v0 = vld [vmem:[%s4720_s21 + $0x24] sm:$0xf] }
  0x80   : >> { %v2323_v2 = vor.u32 %v2321_v35, %v2320_v18  ;;  %v2325_v30 = vrot.slane %v2320_v18, 4  ;;  %v2329_v10 = vrot.slane %v2327_v54, 7  ;;  %v843_v42 = vrot.slane %v841_v26, 4  ;;  %v796_v38 = vld [vmem:[%s4720_s21 + $0x28] sm:$0xf] }
  0x81   : >> { %v829_v62 = vsel %vm5185_vm5, %v824_v4, %v828_v31  ;;  %v839_v49 = vsel %vm5185_vm5, %v834_v14, %v838_v34  ;;  %v846_v44 = vrot.slane %v844_v46, 5  ;;  %v852_v40 = vrot.slane %v850_v28, 5  ;;  %v797_v35 = vld [vmem:[%s4720_s21 + $0x2c] sm:$0x1]  ;;  %v3767_v46 = vld [vmem:[%s4720_s21 + $0x40] sm:$0x8] }
  0x82   : >> { %v3589_v56 = vcombine.low %v829_v62, %v839_v49  ;;  %v2324_v48 = vsel %vm5131_vm3, %v3785_v52, %v2323_v2  ;;  %v2332_v43 = vor.u32 %v2330_v16, %v2329_v10  ;;  %v854_v24 = vshrl.u32 %v793_v19, 16  ;;  %v5415_v10 = vld [vmem:[%s4720_s21 + $0x44] sm:$0xf] }
  0x83   : >> { %v847_v15 = vor.u32 %v846_v44, %v843_v42  ;;  %v860_v33 = vshll.u32 %v794_v61, 16  ;;  %v2335_v55 = vshrl.u32 %v3764_v23, 16  ;;  %v2340_v11 = vshrl.u32 %v5389_v57, 16  ;;  %v4594_v44 = vld [vmem:[%s5850_s1 + $0xc8] sm:$0xff]  }
  0x84   : >> { %4159 = vmatprep.mubr.bf16.mxu1 %v3589_v56  ;;  %v2333_v7 = vsel %vm5131_vm3, %v2325_v30, %v2332_v43  ;;  %v856_v17 = vrot.slane %v854_v24, 4  ;;  %v2343_v25 = vshll.u32 %v5389_v57, 16  ;;  %v2349_v59 = vshrl.u32 %v5396_v39, 16  ;;  %v5427_v56 = vld [vmem:[%s4720_s21 + $0x48] sm:$0xf] }
  0x85   : >> { %v3809_v31 = vcombine.low %v2324_v48, %v2333_v7  ;;  %v848_v37 = vrot.slane %v847_v15, 4  ;;  %v862_v36 = vrot.slane %v860_v33, 5  ;;  %v3786_v6 = vrot.slane %v2335_v55, 11  ;;  %v798_v48 = vld [vmem:[%s4720_s21 + $0x34] sm:$0xf]  ;;  %v4595_v15 = vld [vmem:[%s5850_s1 + $0x1c8] sm:$0xff]  }
  0x86   : >> { %v857_v34 = vor.u32 %v856_v17, %v852_v40  ;;  %v2342_v52 = vrot.slane %v2340_v11, 7  ;;  %v2351_v1 = vrot.slane %v2349_v59, 7  ;;  %v2352_v19 = vshll.u32 %v5396_v39, 16  ;;  %v799_v11 = vld [vmem:[%s4720_s21 + $0x38] sm:$0xf] }
  0x87   : >> { %4287 = vmatprep.mubr.bf16.mxu0 %v3809_v31  ;;  %v853_v27 = vsel %vm5185_vm5, %v848_v37, %v852_v40  ;;  %v865_v18 = vshrl.u32 %v795_v0, 16  ;;  %v868_v54 = vshll.u32 %v795_v0, 16  ;;  %v3841_v16 = vcombine.low %v5369_v22, %v5373_v63 }
  0x88   : >> { %v858_v61 = vrot.slane %v857_v34, 4  ;;  %v2345_v26 = vor.u32 %v2343_v25, %v2342_v52  ;;  %v2347_v4 = vrot.slane %v2342_v52, 4  ;;  %v2354_v14 = vor.u32 %v2352_v19, %v2351_v1  ;;  %v800_v34 = vld [vmem:[%s4720_s21 + $0x3c] sm:$0x1] }
  0x89   : >> { %v867_v28 = vrot.slane %v865_v18, 4  ;;  %v870_v23 = vrot.slane %v868_v54, 5  ;;  %v874_v2 = vshll.u32 %v796_v38, 16  ;;  %v878_v30 = vshrl.u32 %v796_v38, 16  ;;  %v3770_v38 = vld [vmem:[%s4720_s21 + $0x50] sm:$0x8] }
  0x8a   : >> { %v863_v42 = vsel %vm5185_vm5, %v858_v61, %v862_v36  ;;  %v2346_v62 = vsel %vm5131_vm3, %v3786_v6, %v2345_v26  ;;  %v2355_v49 = vsel %vm5131_vm3, %v2347_v4, %v2354_v14  ;;  %v884_v40 = vshll.u32 %v797_v35, 16  ;;  %v5448_v61 = vld [vmem:[%s4720_s21 + $0x54] sm:$0xf] }
  0x8b   : >> { %v3590_v43 = vcombine.low %v853_v27, %v863_v42  ;;  %v3810_v24 = vcombine.low %v2346_v62, %v2355_v49  ;;  %v871_v33 = vor.u32 %v870_v23, %v867_v28  ;;  %v876_v55 = vrot.slane %v874_v2, 5  ;;  %v4596_v27 = vld [vmem:[%s5850_s1 + $0xd0] sm:$0xff]   ;;  %v5454_v28 = vld [vmem:[%s4720_s21 + $0x58] sm:$0xf] }
  0x8c   : >> { %v880_v7 = vrot.slane %v878_v30, 4  ;;  %v886_v17 = vrot.slane %v884_v40, 5  ;;  %v2357_v25 = vshrl.u32 %v3767_v46, 16  ;;  %v2362_v59 = vshrl.u32 %v5415_v10, 16 }
  0x8d   : >> { %4160 = vmatmul.mubr.bf16.vlgmr.msra.gmra.mrb[0].mxu1 %v3590_v43  ;;  %4288 = vmatmul.mubr.bf16.vlgmr.msra.gmra.mrb[0].mxu0 %v3810_v24  ;;  %v872_v31 = vrot.slane %v871_v33, 4  ;;  %v2365_v37 = vshll.u32 %v5415_v10, 16  ;;  %v2371_v36 = vshrl.u32 %v5427_v56, 16  ;;  %v2374_v6 = vshll.u32 %v5427_v56, 16 }
  0x8e   : >> { %4176 = vmatpush3.bf16.msra.mxu1 %v5347_v47  ;;  %4304 = vmatpush3.bf16.msra.mxu0 %v5355_v58  ;;  %v881_v52 = vor.u32 %v880_v7, %v876_v55  ;;  %v3787_v1 = vrot.slane %v2357_v25, 11  ;;  %v2364_v19 = vrot.slane %v2362_v59, 7  ;;  %v889_v0 = vshrl.u32 %v798_v48, 16  ;;  %v4597_v58 = vld [vmem:[%s5850_s1 + $0x1d0] sm:$0xff]   ;;  %v4599_v25 = vld [vmem:[%s5850_s1 + $0x1d8] sm:$0xff]  }
  0x8f   : >> { %4177 = vmatprep.subr.bf16.mxu1 %v4594_v44  ;;  %4305 = vmatprep.subr.bf16.mxu0 %v4595_v15  ;;  %v877_v35 = vsel %vm5185_vm5, %v872_v31, %v876_v55  ;;  %v2373_v18 = vrot.slane %v2371_v36, 7  ;;  %v892_v54 = vshll.u32 %v798_v48, 16  ;;  %v898_v47 = vshll.u32 %v799_v11, 16  ;;  %v801_v59 = vld [vmem:[%s4720_s21 + $0x44] sm:$0xf] }
  0x90   : >> { %v882_v26 = vrot.slane %v881_v52, 4  ;;  %v2367_v4 = vor.u32 %v2365_v37, %v2364_v19  ;;  %v2369_v14 = vrot.slane %v2364_v19, 4  ;;  %v891_v46 = vrot.slane %v889_v0, 4  ;;  %v803_v19 = vld [vmem:[%s4720_s21 + $0x4c] sm:$0x1] }
  0x91   : >> { %v2376_v23 = vor.u32 %v2374_v6, %v2373_v18  ;;  %v894_v2 = vrot.slane %v892_v54, 5  ;;  %v900_v30 = vrot.slane %v898_v47, 5  ;;  %v902_v42 = vshrl.u32 %v799_v11, 16 }
  0x92   : >> { %4178 = vmatpush3.bf16.msra.mxu1 %v4594_v44  ;;  %4306 = vmatpush3.bf16.msra.mxu0 %v4595_v15  ;;  %v887_v62 = vsel %vm5185_vm5, %v882_v26, %v886_v17  ;;  %v2368_v49 = vsel %vm5131_vm3, %v3787_v1, %v2367_v4  ;;  %v908_v40 = vshll.u32 %v800_v34, 16  ;;  %v2379_v48 = vshrl.u32 %v3770_v38, 16  ;;  %v4598_v44 = vld [vmem:[%s5850_s1 + $0xd8] sm:$0xff]   ;;  %v802_v34 = vld [vmem:[%s4720_s21 + $0x48] sm:$0xf]  ;;  %v4600_v4 = vld [vmem:[%s5850_s1 + $0xe0] sm:$0xff]  }
  0x93   : >> { %v3591_v43 = vcombine.low %v877_v35, %v887_v62  ;;  %v2377_v24 = vsel %vm5131_vm3, %v2369_v14, %v2376_v23  ;;  %v895_v33 = vor.u32 %v894_v2, %v891_v46  ;;  %v904_v55 = vrot.slane %v902_v42, 4  ;;  %4179 = vmatprep.subr.bf16.mxu1 %v4596_v27  ;;  %4307 = vmatprep.subr.bf16.mxu0 %v4597_v58  ;;  %v3773_v26 = vld [vmem:[%s4720_s21 + $0x60] sm:$0x8]  ;;  %v5482_v2 = vld [vmem:[%s4720_s21 + $0x64] sm:$0xf] }
  0x94   : >> { %v3811_v15 = vcombine.low %v2368_v49, %v2377_v24  ;;  %v910_v11 = vrot.slane %v908_v40, 5  ;;  %v3788_v7 = vrot.slane %v2379_v48, 11  ;;  %v2384_v17 = vshrl.u32 %v5448_v61, 16 }
  0x95   : >> { %4163 = vmatprep.mubr.bf16.mxu1 %v3591_v43  ;;  %v896_v31 = vrot.slane %v895_v33, 4  ;;  %v905_v37 = vor.u32 %v904_v55, %v900_v30  ;;  %v2387_v36 = vshll.u32 %v5448_v61, 16  ;;  %v2393_v6 = vshrl.u32 %v5454_v28, 16  ;;  %v5492_v33 = vld [vmem:[%s4720_s21 + $0x68] sm:$0xf] }
  0x96   : >> { %4291 = vmatprep.mubr.bf16.mxu0 %v3811_v15  ;;  %v2386_v52 = vrot.slane %v2384_v17, 7  ;;  %v2396_v1 = vshll.u32 %v5454_v28, 16  ;;  %4180 = vmatpush3.bf16.msra.mxu1 %v4596_v27  ;;  %v913_v0 = vshrl.u32 %v801_v59, 16  ;;  %v916_v38 = vshll.u32 %v801_v59, 16  ;;  %v804_v55 = vld [vmem:[%s4720_s21 + $0x54] sm:$0xf] }
  0x97   : >> { %v901_v35 = vsel %vm5185_vm5, %v896_v31, %v900_v30  ;;  %v906_v18 = vrot.slane %v905_v37, 4  ;;  %v2395_v54 = vrot.slane %v2393_v6, 7  ;;  %4308 = vmatpush3.bf16.msra.mxu0 %v4597_v58  ;;  %4181 = vmatprep.subr.bf16.mxu1 %v4598_v44  ;;  %v922_v47 = vshll.u32 %v802_v34, 16  ;;  %v4601_v58 = vld [vmem:[%s5850_s1 + $0x1e0] sm:$0xff]   ;;  %v805_v31 = vld [vmem:[%s4720_s21 + $0x58] sm:$0xf] }
  0x98   : >> { %v2389_v14 = vor.u32 %v2387_v36, %v2386_v52  ;;  %v2391_v27 = vrot.slane %v2386_v52, 4  ;;  %4309 = vmatprep.subr.bf16.mxu0 %v4599_v25  ;;  %v915_v46 = vrot.slane %v913_v0, 4  ;;  %v918_v23 = vrot.slane %v916_v38, 5  ;;  %v806_v0 = vld [vmem:[%s4720_s21 + $0x5c] sm:$0x1] }
  0x99   : >> { %v911_v30 = vsel %vm5185_vm5, %v906_v18, %v910_v11  ;;  %v2398_v42 = vor.u32 %v2396_v1, %v2395_v54  ;;  %v924_v62 = vrot.slane %v922_v47, 5  ;;  %v926_v49 = vshrl.u32 %v802_v34, 16  ;;  %v3776_v47 = vld [vmem:[%s4720_s21 + $0x70] sm:$0x8] }
  0x9a   : >> { %v3592_v40 = vcombine.low %v901_v35, %v911_v30  ;;  %v2390_v48 = vsel %vm5131_vm3, %v3788_v7, %v2389_v14  ;;  %4182 = vmatpush3.bf16.msra.mxu1 %v4598_v44  ;;  %v919_v43 = vor.u32 %v918_v23, %v915_v46  ;;  %v932_v24 = vshll.u32 %v803_v19, 16  ;;  %v4602_v44 = vld [vmem:[%s5850_s1 + $0xe8] sm:$0xff]   ;;  %v5516_v30 = vld [vmem:[%s4720_s21 + $0x74] sm:$0xf] }
  0x9b   : >> { %v2399_v15 = vsel %vm5131_vm3, %v2391_v27, %v2398_v42  ;;  %4310 = vmatpush3.bf16.msra.mxu0 %v4599_v25  ;;  %v928_v17 = vrot.slane %v926_v49, 4  ;;  %v2401_v11 = vshrl.u32 %v3773_v26, 16  ;;  %v2406_v59 = vshrl.u32 %v5482_v2, 16  ;;  %4183 = vmatprep.subr.bf16.mxu1 %v4600_v4  ;;  %v4603_v25 = vld [vmem:[%s5850_s1 + $0x1e8] sm:$0xff]   ;;  %v4604_v26 = vld [vmem:[%s5850_s1 + $0xf0] sm:$0xff]  }
  0x9c   : >> { %4164 = vmatmul.mubr.bf16.gmra.mrb[4].mxu1 %v3592_v40  ;;  %v3812_v7 = vcombine.low %v2390_v48, %v2399_v15  ;;  %v920_v37 = vrot.slane %v919_v43, 4  ;;  %v934_v36 = vrot.slane %v932_v24, 5  ;;  %v2409_v6 = vshll.u32 %v5482_v2, 16  ;;  %4311 = vmatprep.subr.bf16.mxu0 %v4601_v58  ;;  %v4605_v42 = vld [vmem:[%s5850_s1 + $0x1f0] sm:$0xff]   ;;  %v5522_v48 = vld [vmem:[%s4720_s21 + $0x78] sm:$0xf] }
  0x9d   : >> { %v929_v34 = vor.u32 %v928_v17, %v924_v62  ;;  %v3789_v52 = vrot.slane %v2401_v11, 11  ;;  %v2408_v1 = vrot.slane %v2406_v59, 7  ;;  %v2415_v19 = vshrl.u32 %v5492_v33, 16  ;;  %v4606_v15 = vld [vmem:[%s5850_s1 + $0xf8] sm:$0xff]  }
  0x9e   : >> { %4292 = vmatmul.mubr.bf16.gmra.mrb[4].mxu0 %v3812_v7  ;;  %v925_v38 = vsel %vm5185_vm5, %v920_v37, %v924_v62  ;;  %v2418_v35 = vshll.u32 %v5492_v33, 16  ;;  %v937_v18 = vshrl.u32 %v804_v55, 16  ;;  %v940_v54 = vshll.u32 %v804_v55, 16  ;;  %4184 = vmatpush3.bf16.msra.mxu1 %v4600_v4 }
  0x9f   : >> { %v930_v14 = vrot.slane %v929_v34, 4  ;;  %v2411_v27 = vor.u32 %v2409_v6, %v2408_v1  ;;  %v2413_v46 = vrot.slane %v2408_v1, 4  ;;  %v2417_v23 = vrot.slane %v2415_v19, 7  ;;  %4312 = vmatpush3.bf16.msra.mxu0 %v4601_v58  ;;  %4185 = vmatprep.subr.bf16.mxu1 %v4602_v44  ;;  %v4607_v34 = vld [vmem:[%s5850_s1 + $0x1f8] sm:$0xff]  }
  0xa0   : >> { %v939_v62 = vrot.slane %v937_v18, 4  ;;  %v942_v49 = vrot.slane %v940_v54, 5  ;;  %v946_v40 = vshll.u32 %v805_v31, 16  ;;  %v950_v4 = vshrl.u32 %v805_v31, 16  ;;  %4313 = vmatprep.subr.bf16.mxu0 %v4603_v25 }
  0xa1   : >> { %v935_v43 = vsel %vm5185_vm5, %v930_v14, %v934_v36  ;;  %v2412_v24 = vsel %vm5131_vm3, %v3789_v52, %v2411_v27  ;;  %v2420_v55 = vor.u32 %v2418_v35, %v2417_v23  ;;  %v956_v58 = vshll.u32 %v806_v0, 16  ;;  %v807_v0 = vld [vmem:[%s4720_s21 + $0x64] sm:$0xf] }
  0xa2   : >> { %v3593_v17 = vcombine.low %v925_v38, %v935_v43  ;;  %v943_v11 = vor.u32 %v942_v49, %v939_v62  ;;  %v948_v59 = vrot.slane %v946_v40, 5  ;;  %v952_v31 = vrot.slane %v950_v4, 4  ;;  %4186 = vmatpush3.bf16.msra.mxu1 %v4602_v44  ;;  %v808_v38 = vld [vmem:[%s4720_s21 + $0x68] sm:$0xf]  ;;  %v3779_v62 = vld [vmem:[%s4720_s21 + $0x80] sm:$0x8] }
  0xa3   : >> { %v2421_v7 = vsel %vm5131_vm3, %v2413_v46, %v2420_v55  ;;  %v958_v37 = vrot.slane %v956_v58, 5  ;;  %v2423_v36 = vshrl.u32 %v3776_v47, 16  ;;  %v2428_v6 = vshrl.u32 %v5516_v30, 16  ;;  %4314 = vmatpush3.bf16.msra.mxu0 %v4603_v25  ;;  %4187 = vmatprep.subr.bf16.mxu1 %v4604_v26  ;;  %v809_v47 = vld [vmem:[%s4720_s21 + $0x6c] sm:$0x1] }
  0xa4   : >> { %4167 = vmatprep.mubr.bf16.mxu1 %v3593_v17  ;;  %v3813_v52 = vcombine.low %v2412_v24, %v2421_v7  ;;  %v944_v1 = vrot.slane %v943_v11, 4  ;;  %v953_v19 = vor.u32 %v952_v31, %v948_v59  ;;  %v2431_v44 = vshll.u32 %v5516_v30, 16  ;;  %4315 = vmatprep.subr.bf16.mxu0 %v4605_v42  ;;  %v5547_v24 = vld [vmem:[%s4720_s21 + $0x84] sm:$0xf] }
  0xa5   : >> { %v3790_v35 = vrot.slane %v2423_v36, 11  ;;  %v2430_v18 = vrot.slane %v2428_v6, 7  ;;  %v2437_v25 = vshrl.u32 %v5522_v48, 16  ;;  %v2440_v54 = vshll.u32 %v5522_v48, 16 }
  0xa6   : >> { %4295 = vmatprep.mubr.bf16.mxu0 %v3813_v52  ;;  %v949_v14 = vsel %vm5185_vm5, %v944_v1, %v948_v59  ;;  %v954_v27 = vrot.slane %v953_v19, 4  ;;  %v961_v46 = vshrl.u32 %v807_v0, 16  ;;  %v964_v23 = vshll.u32 %v807_v0, 16  ;;  %4188 = vmatpush3.bf16.msra.mxu1 %v4604_v26  ;;  %v5552_v59 = vld [vmem:[%s4720_s21 + $0x88] sm:$0xf]  ;;  %v5557_v26 = vld [vmem:[%s5850_s1 + $0x200] sm:$0xff]  }
  0xa7   : >> { %v2433_v49 = vor.u32 %v2431_v44, %v2430_v18  ;;  %v2435_v40 = vrot.slane %v2430_v18, 4  ;;  %v2439_v4 = vrot.slane %v2437_v25, 7  ;;  %v970_v43 = vshll.u32 %v808_v38, 16  ;;  %4316 = vmatpush3.bf16.msra.mxu0 %v4605_v42  ;;  %4189 = vmatprep.subr.bf16.mxu1 %v4606_v15  ;;  %v810_v19 = vld [vmem:[%s4720_s21 + $0x74] sm:$0xf] }
  0xa8   : >> { %v959_v55 = vsel %vm5185_vm5, %v954_v27, %v958_v37  ;;  %v963_v58 = vrot.slane %v961_v46, 4  ;;  %v966_v17 = vrot.slane %v964_v23, 5  ;;  %v974_v11 = vshrl.u32 %v808_v38, 16  ;;  %4317 = vmatprep.subr.bf16.mxu0 %v4607_v34 }
  0xa9   : >> { %v3594_v31 = vcombine.low %v949_v14, %v959_v55  ;;  %v2434_v42 = vsel %vm5131_vm3, %v3790_v35, %v2433_v49  ;;  %v2442_v7 = vor.u32 %v2440_v54, %v2439_v4  ;;  %v972_v36 = vrot.slane %v970_v43, 5  ;;  %v3782_v43 = vld [vmem:[%s4720_s21 + $0x90] sm:$0x8]  ;;  %v5576_v55 = vld [vmem:[%s4720_s21 + $0x94] sm:$0xf] }
  0xaa   : >> { %v967_v6 = vor.u32 %v966_v17, %v963_v58  ;;  %v976_v37 = vrot.slane %v974_v11, 4  ;;  %v980_v52 = vshll.u32 %v809_v47, 16  ;;  %v2445_v1 = vshrl.u32 %v3779_v62, 16  ;;  %4190 = vmatpush3.bf16.msra.mxu1 %v4606_v15  ;;  %v811_v15 = vld [vmem:[%s4720_s21 + $0x78] sm:$0xf] }
  0xab   : >> { %4168 = vmatmul.mubr.bf16.gmra.mrb[8].mxu1 %v3594_v31  ;;  %v2443_v44 = vsel %vm5131_vm3, %v2435_v40, %v2442_v7  ;;  %v2450_v0 = vshrl.u32 %v5547_v24, 16  ;;  %v2453_v38 = vshll.u32 %v5547_v24, 16  ;;  %v2459_v35 = vshrl.u32 %v5552_v59, 16  ;;  %4318 = vmatpush3.bf16.msra.mxu0 %v4607_v34  ;;  %v812_v62 = vld [vmem:[%s4720_s21 + $0x7c] sm:$0x1] }
  0xac   : >> { %v3814_v18 = vcombine.low %v2434_v42, %v2443_v44  ;;  %v968_v25 = vrot.slane %v967_v6, 4  ;;  %v977_v54 = vor.u32 %v976_v37, %v972_v36  ;;  %v982_v47 = vrot.slane %v980_v52, 5  ;;  %4335 = vmatprep.subr.bf16.mxu0 %v5557_v26  ;;  %4367 = vmatprep.subr.bf16.mxu1 %v5557_v26  ;;  %v5579_v58 = vld [vmem:[%s4720_s21 + $0x98] sm:$0xf] }
  0xad   : >> { %v3791_v14 = vrot.slane %v2445_v1, 11  ;;  %v2452_v27 = vrot.slane %v2450_v0, 7  ;;  %v2461_v46 = vrot.slane %v2459_v35, 7  ;;  %v2462_v23 = vshll.u32 %v5552_v59, 16 }
  0xae   : >> { %4296 = vmatmul.mubr.bf16.gmra.mrb[8].mxu0 %v3814_v18  ;;  %v973_v34 = vsel %vm5185_vm5, %v968_v25, %v972_v36  ;;  %v978_v49 = vrot.slane %v977_v54, 4  ;;  %v985_v40 = vshrl.u32 %v810_v19, 16  ;;  %v988_v4 = vshll.u32 %v810_v19, 16  ;;  %v3607_v25 = vld [vmem:[%s4720_s21 + $0x10] sm:$0x8] }
  0xaf   : >> { %v2455_v17 = vor.u32 %v2453_v38, %v2452_v27  ;;  %v2457_v11 = vrot.slane %v2452_v27, 4  ;;  %v2464_v31 = vor.u32 %v2462_v23, %v2461_v46  ;;  %v994_v42 = vshll.u32 %v811_v15, 16  ;;  %v3610_v46 = vld [vmem:[%s4720_s21 + $0x20] sm:$0x8] }
  0xb0   : >> { %v983_v7 = vsel %vm5185_vm5, %v978_v49, %v982_v47  ;;  %v987_v6 = vrot.slane %v985_v40, 4  ;;  %v990_v37 = vrot.slane %v988_v4, 5  ;;  %v998_v36 = vshrl.u32 %v811_v15, 16 }
  0xb1   : >> { %v3595_v52 = vcombine.low %v973_v34, %v983_v7  ;;  %v2456_v1 = vsel %vm5131_vm3, %v3791_v14, %v2455_v17  ;;  %v2465_v19 = vsel %vm5131_vm3, %v2457_v11, %v2464_v31  ;;  %v996_v44 = vrot.slane %v994_v42, 5 }
  0xb2   : >> { %v3815_v0 = vcombine.low %v2456_v1, %v2465_v19  ;;  %v991_v38 = vor.u32 %v990_v37, %v987_v6  ;;  %v1000_v35 = vrot.slane %v998_v36, 4  ;;  %v1004_v18 = vshll.u32 %v812_v62, 16  ;;  %v3616_v1 = vld [vmem:[%s4720_s21 + $0x40] sm:$0x8] }
  0xb3   : >> { %4171 = vmatprep.mubr.bf16.mxu1 %v3595_v52  ;;  %v2467_v54 = vshrl.u32 %v3782_v43, 16  ;;  %v2472_v47 = vshrl.u32 %v5576_v55, 16  ;;  %v2475_v27 = vshll.u32 %v5576_v55, 16  ;;  %v2481_v15 = vshrl.u32 %v5579_v58, 16  ;;  %v3613_v52 = vld [vmem:[%s4720_s21 + $0x30] sm:$0x8] }
  0xb4   : >> { %4299 = vmatprep.mubr.bf16.mxu0 %v3815_v0  ;;  %v992_v14 = vrot.slane %v991_v38, 4  ;;  %v1001_v23 = vor.u32 %v1000_v35, %v996_v44  ;;  %v1006_v34 = vrot.slane %v1004_v18, 5  ;;  %v2484_v49 = vshll.u32 %v5579_v58, 16 }
  0xb5   : >> { %v3792_v40 = vrot.slane %v2467_v54, 11  ;;  %v2474_v62 = vrot.slane %v2472_v47, 7  ;;  %v2483_v4 = vrot.slane %v2481_v15, 7  ;;  %v1247_v17 = vshrl.u32 %v3607_v25, 16 }
  0xb6   : >> { %v997_v43 = vsel %vm5185_vm5, %v992_v14, %v996_v44  ;;  %v1002_v11 = vrot.slane %v1001_v23, 4  ;;  %v1269_v31 = vshrl.u32 %v3610_v46, 16  ;;  %v3842_v42 = vcombine.low %v5389_v57, %v5396_v39  ;;  %v3622_v14 = vld [vmem:[%s4720_s21 + $0x60] sm:$0x8]  ;;  %v4614_v57 = vld [vmem:[%s5850_s1 + $0x210] sm:$0xff]  }
  0xb7   : >> { %v2477_v7 = vor.u32 %v2475_v27, %v2474_v62  ;;  %v2479_v6 = vrot.slane %v2474_v62, 4  ;;  %v2486_v37 = vor.u32 %v2484_v49, %v2483_v4  ;;  %v3631_v36 = vrot.slane %v1247_v17, 11 }
  0xb8   : >> { %v1007_v19 = vsel %vm5185_vm5, %v1002_v11, %v1006_v34  ;;  %v3632_v0 = vrot.slane %v1269_v31, 11  ;;  %v1291_v38 = vshrl.u32 %v3613_v52, 16  ;;  %v1303_v44 = vrot.slane %v4854_v21, 4  ;;  %v3619_v21 = vld [vmem:[%s4720_s21 + $0x50] sm:$0x8]  ;;  %v5893_v31 = vld [vmem:[#allocation6_spill] sm:$0xff] }
  0xb9   : >> { %v3596_v35 = vcombine.low %v997_v43, %v1007_v19  ;;  %v2478_v18 = vsel %vm5131_vm3, %v3792_v40, %v2477_v7  ;;  %v2487_v25 = vsel %vm5131_vm3, %v2479_v6, %v2486_v37  ;;  %v1258_v54 = vsel %vm5131_vm3, %v3631_v36, %v4901_v12  ;;  %v3625_v43 = vld [vmem:[%s4720_s21 + $0x70] sm:$0x8]  ;;  %v5894_v7 = vld [vmem:[#allocation4_spill] sm:$0xff]  ;;  %v5896_v37 = vld [vmem:[#allocation7_spill] sm:$0xff] }
  0xba   : >> { %v3816_v47 = vcombine.low %v2478_v18, %v2487_v25  ;;  %v3655_v27 = vcombine.low %v1258_v54, %v5214_v13  ;;  %v1280_v15 = vsel %vm5131_vm3, %v3632_v0, %v4985_v51  ;;  %v3633_v46 = vrot.slane %v1291_v38, 11  ;;  %v5897_v36 = vld [vmem:[#allocation5_spill] sm:$0xff]  ;;  %v3628_v38 = vld [vmem:[%s4720_s21 + $0x80] sm:$0x8]  ;;  %v5899_v25 = vld [vmem:[#allocation10_spill] sm:$0xff] }
  0xbb   : >> { %4172 = vmatmul.mubr.bf16.gmra.mrb[12].mxu1 %v3596_v35  ;;  %v3656_v23 = vcombine.low %v1280_v15, %v5224_v45  ;;  %v1311_v34 = vsel %vm5131_vm3, %v1303_v44, %v5140_v50  ;;  %v3843_v12 = vcombine.low %v5415_v10, %v5427_v56  ;;  %v1313_v49 = vshrl.u32 %v3616_v1, 16  ;;  %v5900_v54 = vld [vmem:[#allocation8_spill] sm:$0xff]  ;;  %v4615_v10 = vld [vmem:[%s5850_s1 + $0x218] sm:$0xff]  }
  0xbc   : >> { %4300 = vmatmul.mubr.bf16.gmra.mrb[12].mxu0 %v3816_v47  ;;  %4191 = vmatprep.mubr.bf16.mxu1 %v3655_v27  ;;  %v1302_v51 = vsel %vm5131_vm3, %v3633_v46, %v5128_v3  ;;  %v1325_v13 = vrot.slane %v4913_v20, 4  ;;  %v3844_v40 = vcombine.low %v5448_v61, %v5454_v28  ;;  %v1335_v45 = vshrl.u32 %v3619_v21, 16  ;;  %v5902_v46 = vld [vmem:[#allocation11_spill] sm:$0xff]  ;;  %v5903_v21 = vld [vmem:[#allocation9_spill] sm:$0xff] }
  0xbd   : >> { %4319 = vmatprep.mubr.bf16.mxu0 %v3841_v16  ;;  %v3657_v50 = vcombine.low %v1302_v51, %v1311_v34  ;;  %v3634_v62 = vrot.slane %v1313_v49, 11  ;;  %v1347_v4 = vrot.slane %v4965_v29, 4  ;;  %v3845_v17 = vcombine.low %v5482_v2, %v5492_v33  ;;  %v3857_v51 = vld [vmem:[%s4720_s21 + $0x24] sm:$0xf]  ;;  %v3872_v28 = vld [vmem:[%s4720_s21 + $0x74] sm:$0xf] }
  0xbe   : >> { %v1333_v20 = vsel %vm5131_vm3, %v1325_v13, %v5150_v9  ;;  %v3635_v3 = vrot.slane %v1335_v45, 11  ;;  %v1357_v11 = vshrl.u32 %v3622_v14, 16  ;;  %v5895_v6 = vshll.u32 %v5894_v7, 16  ;;  %v5908_v7 = vld [vmem:[#allocation13_spill] sm:$0xff]  ;;  %v4619_v2 = vld [vmem:[%s5850_s1 + $0x228] sm:$0xff]  }
  0xbf   : >> { %v1324_v63 = vsel %vm5131_vm3, %v3634_v62, %v5145_v53  ;;  %v1355_v29 = vsel %vm5131_vm3, %v1347_v4, %v5364_v60  ;;  %v1369_v16 = vrot.slane %v5893_v31, 4  ;;  %v5898_v52 = vshll.u32 %v5897_v36, 16  ;;  %v4611_v60 = vld [vmem:[%s5850_s1 + $0x208] sm:$0xff]  }
  0xc0   : >> { %v1367_v22 = vor.u32 %v5895_v6, %v5893_v31  ;;  %v5650_v1 = vcombine.low %v1324_v63, %v1333_v20  ;;  %v1346_v19 = vsel %vm5131_vm3, %v3635_v3, %v5229_v32  ;;  %v3636_v0 = vrot.slane %v1357_v11, 11  ;;  %v5905_v4 = vld [vmem:[#allocation12_spill] sm:$0xff]  ;;  %v5907_v31 = vld [vmem:[#allocation14_spill] sm:$0xff] }
  0xc1   : >> { %v1376_v9 = vor.u32 %v5898_v52, %v5896_v37  ;;  %v3846_v53 = vcombine.low %v5516_v30, %v5522_v48  ;;  %v5661_v44 = vcombine.low %v1346_v19, %v1355_v29  ;;  %v1379_v18 = vshrl.u32 %v3625_v43, 16  ;;  %v3858_v3 = vld [vmem:[%s4720_s21 + $0x28] sm:$0xf]  ;;  %v3859_v29 = vld [vmem:[%s4720_s21 + $0x2c] sm:$0x1] }
  0xc2   : >> { %v5901_v47 = vshll.u32 %v5900_v54, 16  ;;  %v1368_v27 = vsel %vm5131_vm3, %v3636_v0, %v1367_v22  ;;  %v1391_v15 = vrot.slane %v5899_v25, 4  ;;  %v5904_v14 = vshll.u32 %v5903_v21, 16  ;;  %v3869_v37 = vld [vmem:[%s4720_s21 + $0x64] sm:$0xf] }
  0xc3   : >> { %v1377_v35 = vsel %vm5131_vm3, %v1369_v16, %v1376_v9  ;;  %v3847_v49 = vcombine.low %v5547_v24, %v5552_v59  ;;  %4192 = vmatmul.mubr.bf16.vlgmr.msra.gmra.mrb[0].mxu1 %v3656_v23  ;;  %v3637_v45 = vrot.slane %v1379_v18, 11  ;;  %v1401_v62 = vshrl.u32 %v3628_v38, 16  ;;  %v3870_v19 = vld [vmem:[%s4720_s21 + $0x68] sm:$0xf]  ;;  %v3875_v48 = vld [vmem:[%s4720_s21 + $0x84] sm:$0xf] }
  0xc4   : >> { %v1389_v32 = vor.u32 %v5901_v47, %v5899_v25  ;;  %v1398_v34 = vor.u32 %v5904_v14, %v5902_v46  ;;  %v5677_v13 = vcombine.low %v1368_v27, %v1377_v35  ;;  %v5906_v43 = vshll.u32 %v5905_v4, 16  ;;  %4320 = vmatmul.mubr.bf16.vlgmr.msra.gmra.mrb[0].mxu0 %v3842_v42  ;;  %4375 = vmatpush3.bf16.msra.mxu1 %v5557_v26  ;;  %v3860_v27 = vld [vmem:[%s4720_s21 + $0x34] sm:$0xf]  ;;  %v4623_v24 = vld [vmem:[%s5850_s1 + $0x238] sm:$0xff]  }
  0xc5   : >> { %v1413_v23 = vrot.slane %v5110_v8, 4  ;;  %v5909_v6 = vshll.u32 %v5908_v7, 16  ;;  %v3848_v63 = vcombine.low %v5576_v55, %v5579_v58  ;;  %4336 = vmatpush3.bf16.msra.mxu0 %v5557_v26  ;;  %4368 = vmatprep.subr.bf16.mxu1 %v4611_v60  ;;  %v2949_v42 = vshrl.u32 %v3857_v51, 16 }
  0xc6   : >> { %v1411_v20 = vor.u32 %v5906_v43, %v5110_v8  ;;  %v1399_v11 = vsel %vm5131_vm3, %v1391_v15, %v1398_v34  ;;  %v1390_v39 = vsel %vm5131_vm3, %v3637_v45, %v1389_v32  ;;  %v3638_v8 = vrot.slane %v1401_v62, 11  ;;  %4337 = vmatprep.subr.bf16.mxu0 %v4611_v60  ;;  %4195 = vmatprep.mubr.bf16.mxu1 %v3657_v50  ;;  %v3871_v50 = vld [vmem:[%s4720_s21 + $0x6c] sm:$0x1] }
  0xc7   : >> { %v1420_v22 = vor.u32 %v5909_v6, %v5907_v31  ;;  %v2952_v16 = vshll.u32 %v3857_v51, 16  ;;  %v5703_v36 = vcombine.low %v1390_v39, %v1399_v11  ;;  %v2958_v52 = vshll.u32 %v3858_v3, 16  ;;  %4323 = vmatprep.mubr.bf16.mxu0 %v3843_v12  ;;  %v3861_v51 = vld [vmem:[%s4720_s21 + $0x38] sm:$0xf]  ;;  %v3862_v11 = vld [vmem:[%s4720_s21 + $0x3c] sm:$0x1] }
  0xc8   : >> { %v2962_v9 = vshrl.u32 %v3858_v3, 16  ;;  %v1412_v0 = vsel %vm5131_vm3, %v3638_v8, %v1411_v20  ;;  %v2951_v38 = vrot.slane %v2949_v42, 4  ;;  %v2968_v18 = vshll.u32 %v3859_v29, 16  ;;  %4376 = vmatpush3.bf16.msra.mxu1 %v4611_v60  ;;  %v3873_v39 = vld [vmem:[%s4720_s21 + $0x78] sm:$0xf] }
  0xc9   : >> { %v1421_v26 = vsel %vm5131_vm3, %v1413_v23, %v1420_v22  ;;  %v2954_v35 = vrot.slane %v2952_v16, 5  ;;  %v2960_v54 = vrot.slane %v2958_v52, 5  ;;  %v3045_v32 = vshrl.u32 %v3869_v37, 16  ;;  %4338 = vmatpush3.bf16.msra.mxu0 %v4611_v60  ;;  %4369 = vmatprep.subr.bf16.mxu1 %v4614_v57 }
  0xca   : >> { %v5714_v25 = vcombine.low %v1412_v0, %v1421_v26  ;;  %v2964_v47 = vrot.slane %v2962_v9, 4  ;;  %v2970_v56 = vrot.slane %v2968_v18, 5  ;;  %v3048_v12 = vshll.u32 %v3869_v37, 16  ;;  %4339 = vmatprep.subr.bf16.mxu0 %v4614_v57  ;;  %v3874_v9 = vld [vmem:[%s4720_s21 + $0x7c] sm:$0x1] }
  0xcb   : >> { %v2955_v5 = vor.u32 %v2954_v35, %v2951_v38  ;;  %v3054_v15 = vshll.u32 %v3870_v19, 16  ;;  %v3047_v21 = vrot.slane %v3045_v32, 4  ;;  %v3058_v14 = vshrl.u32 %v3870_v19, 16  ;;  %4196 = vmatmul.mubr.bf16.gmra.mrb[4].mxu1 %v5650_v1  ;;  %v4618_v1 = vld [vmem:[%s5850_s1 + $0x220] sm:$0xff]   ;;  %v3864_v32 = vld [vmem:[%s4720_s21 + $0x48] sm:$0xf] }
  0xcc   : >> { %v2965_v46 = vor.u32 %v2964_v47, %v2960_v54  ;;  %v3064_v34 = vshll.u32 %v3871_v50, 16  ;;  %v3050_v60 = vrot.slane %v3048_v12, 5  ;;  %v2973_v4 = vshrl.u32 %v3860_v27, 16  ;;  %4324 = vmatmul.mubr.bf16.gmra.mrb[4].mxu0 %v3844_v40  ;;  %4377 = vmatpush3.bf16.msra.mxu1 %v4614_v57  ;;  %v3863_v35 = vld [vmem:[%s4720_s21 + $0x44] sm:$0xf] }
  0xcd   : >> { %v2956_v45 = vrot.slane %v2955_v5, 4  ;;  %v3056_v62 = vrot.slane %v3054_v15, 5  ;;  %v3060_v20 = vrot.slane %v3058_v14, 4  ;;  %v2976_v23 = vshll.u32 %v3860_v27, 16  ;;  %4340 = vmatpush3.bf16.msra.mxu0 %v4614_v57  ;;  %4370 = vmatprep.subr.bf16.mxu1 %v4615_v10 }
  0xce   : >> { %v2966_v43 = vrot.slane %v2965_v46, 4  ;;  %v3066_v3 = vrot.slane %v3064_v34, 5  ;;  %v3051_v7 = vor.u32 %v3050_v60, %v3047_v21  ;;  %v2975_v6 = vrot.slane %v2973_v4, 4  ;;  %4341 = vmatprep.subr.bf16.mxu0 %v4615_v10  ;;  %4199 = vmatprep.mubr.bf16.mxu1 %v5661_v44  ;;  %v3865_v21 = vld [vmem:[%s4720_s21 + $0x4c] sm:$0x1] }
  0xcf   : >> { %v2961_v31 = vsel %vm5185_vm5, %v2956_v45, %v2960_v54  ;;  %v2982_v61 = vshll.u32 %v3861_v51, 16  ;;  %v3061_v22 = vor.u32 %v3060_v20, %v3056_v62  ;;  %v2978_v29 = vrot.slane %v2976_v23, 5  ;;  %4327 = vmatprep.mubr.bf16.mxu0 %v3845_v17  ;;  %v3876_v23 = vld [vmem:[%s4720_s21 + $0x88] sm:$0xf] }
  0xd0   : >> { %v2971_v40 = vsel %vm5185_vm5, %v2966_v43, %v2970_v56  ;;  %v2986_v57 = vshrl.u32 %v3861_v51, 16  ;;  %v3052_v42 = vrot.slane %v3051_v7, 4  ;;  %v2992_v37 = vshll.u32 %v3862_v11, 16  ;;  %4378 = vmatpush3.bf16.msra.mxu1 %v4615_v10 }
  0xd1   : >> { %v5739_v8 = vcombine.low %v2961_v31, %v2971_v40  ;;  %v2984_v16 = vrot.slane %v2982_v61, 5  ;;  %v3062_v26 = vrot.slane %v3061_v22, 4  ;;  %v2979_v44 = vor.u32 %v2978_v29, %v2975_v6  ;;  %4342 = vmatpush3.bf16.msra.mxu0 %v4615_v10  ;;  %4371 = vmatprep.subr.bf16.mxu1 %v4618_v1  ;;  %v3877_v61 = vld [vmem:[%s4720_s21 + $0x8c] sm:$0x1] }
  0xd2   : >> { %v2988_v52 = vrot.slane %v2986_v57, 4  ;;  %v3069_v19 = vshrl.u32 %v3872_v28, 16  ;;  %v3057_v33 = vsel %vm5185_vm5, %v3052_v42, %v3056_v62  ;;  %v2994_v17 = vrot.slane %v2992_v37, 5  ;;  %4343 = vmatprep.subr.bf16.mxu0 %v4618_v1 }
  0xd3   : >> { %v3072_v0 = vshll.u32 %v3872_v28, 16  ;;  %v3078_v38 = vshll.u32 %v3873_v39, 16  ;;  %v3067_v18 = vsel %vm5185_vm5, %v3062_v26, %v3066_v3  ;;  %v2980_v50 = vrot.slane %v2979_v44, 4  ;;  %4200 = vmatmul.mubr.bf16.gmra.mrb[8].mxu1 %v5677_v13  ;;  %v4622_v13 = vld [vmem:[%s5850_s1 + $0x230] sm:$0xff]   ;;  %v3867_v44 = vld [vmem:[%s4720_s21 + $0x58] sm:$0xf] }
  0xd4   : >> { %v2989_v54 = vor.u32 %v2988_v52, %v2984_v16  ;;  %v3071_v47 = vrot.slane %v3069_v19, 4  ;;  %v5752_v27 = vcombine.low %v3057_v33, %v3067_v18  ;;  %v3082_v56 = vshrl.u32 %v3873_v39, 16  ;;  %4328 = vmatmul.mubr.bf16.gmra.mrb[8].mxu0 %v3846_v53  ;;  %4379 = vmatpush3.bf16.msra.mxu1 %v4618_v1  ;;  %v3866_v39 = vld [vmem:[%s4720_s21 + $0x54] sm:$0xf] }
  0xd5   : >> { %v3074_v10 = vrot.slane %v3072_v0, 5  ;;  %v3080_v5 = vrot.slane %v3078_v38, 5  ;;  %v2985_v12 = vsel %vm5185_vm5, %v2980_v50, %v2984_v16  ;;  %v3088_v46 = vshll.u32 %v3874_v9, 16  ;;  %4344 = vmatpush3.bf16.msra.mxu0 %v4618_v1  ;;  %4372 = vmatprep.subr.bf16.mxu1 %v4619_v2  ;;  %v3868_v0 = vld [vmem:[%s4720_s21 + $0x5c] sm:$0x1] }
  0xd6   : >> { %v2990_v15 = vrot.slane %v2989_v54, 4  ;;  %v2997_v14 = vshrl.u32 %v3863_v35, 16  ;;  %v3084_v51 = vrot.slane %v3082_v56, 4  ;;  %v3000_v45 = vshll.u32 %v3863_v35, 16  ;;  %4345 = vmatprep.subr.bf16.mxu0 %v4619_v2  ;;  %4203 = vmatprep.mubr.bf16.mxu1 %v5703_v36  ;;  %v3878_v18 = vld [vmem:[%s4720_s21 + $0x94] sm:$0xf] }
  0xd7   : >> { %v3075_v34 = vor.u32 %v3074_v10, %v3071_v47  ;;  %v3006_v30 = vshll.u32 %v3864_v32, 16  ;;  %v3090_v60 = vrot.slane %v3088_v46, 5  ;;  %v3010_v4 = vshrl.u32 %v3864_v32, 16  ;;  %4331 = vmatprep.mubr.bf16.mxu0 %v3847_v49  ;;  %v3879_v10 = vld [vmem:[%s4720_s21 + $0x98] sm:$0xf] }
  0xd8   : >> { %v2995_v53 = vsel %vm5185_vm5, %v2990_v15, %v2994_v17  ;;  %v2999_v62 = vrot.slane %v2997_v14, 4  ;;  %v3085_v3 = vor.u32 %v3084_v51, %v3080_v5  ;;  %v3002_v11 = vrot.slane %v3000_v45, 5  ;;  %4380 = vmatpush3.bf16.msra.mxu1 %v4619_v2  ;;  %v3880_v51 = vld [vmem:[%s4720_s21 + $0x9c] sm:$0x1]  ;;  %s3923_s21 = sshll.u32 %s4638_s24, 4  ;;  %s178_s24 = sadd.s32 1, %s4638_s24  }
  0xd9   : >> { %v5770_v43 = vcombine.low %v2985_v12, %v2995_v53  ;;  %v3076_v20 = vrot.slane %v3075_v34, 4  ;;  %v3008_v1 = vrot.slane %v3006_v30, 5  ;;  %v3012_v36 = vrot.slane %v3010_v4, 4  ;;  %4346 = vmatpush3.bf16.msra.mxu0 %v4619_v2  ;;  %4373 = vmatprep.subr.bf16.mxu1 %v4622_v13  ;;  %s3429_s11 = scalar_lea.vmem %s4676_s20, %s3923_s21  ;;  %p175_p4 = scmp.ge.s32.totalorder %s178_s24, 2  }
  0xda   : >> { %v3016_v31 = vshll.u32 %v3865_v21, 16  ;;  %v3093_v7 = vshrl.u32 %v3875_v48, 16  ;;  %v3086_v49 = vrot.slane %v3085_v3, 4  ;;  %v3003_v6 = vor.u32 %v3002_v11, %v2999_v62  ;;  %4347 = vmatprep.subr.bf16.mxu0 %v4622_v13 }
  0xdb   : >> { %v3081_v59 = vsel %vm5185_vm5, %v3076_v20, %v3080_v5  ;;  %v3096_v28 = vshll.u32 %v3875_v48, 16  ;;  %v3013_v40 = vor.u32 %v3012_v36, %v3008_v1  ;;  %v3102_v57 = vshll.u32 %v3876_v23, 16  ;;  %4204 = vmatmul.mubr.bf16.gmra.mrb[12].mxu1 %v5714_v25 }
  0xdc   : >> { %v3018_v22 = vrot.slane %v3016_v31, 5  ;;  %v3095_v29 = vrot.slane %v3093_v7, 4  ;;  %v3091_v42 = vsel %vm5185_vm5, %v3086_v49, %v3090_v60  ;;  %v3004_v16 = vrot.slane %v3003_v6, 4  ;;  %4332 = vmatmul.mubr.bf16.gmra.mrb[12].mxu0 %v3848_v63  ;;  %4381 = vmatpush3.bf16.msra.mxu1 %v4622_v13 }
  0xdd   : >> { %v3098_v37 = vrot.slane %v3096_v28, 5  ;;  %v3106_v26 = vshrl.u32 %v3876_v23, 16  ;;  %v3902_v52 = vcombine.low %v3081_v59, %v3091_v42  ;;  %v3014_v9 = vrot.slane %v3013_v40, 4  ;;  %4348 = vmatpush3.bf16.msra.mxu0 %v4622_v13  ;;  %4374 = vmatprep.subr.bf16.mxu1 %v4623_v24 }
  0xde   : >> { %v3104_v19 = vrot.slane %v3102_v57, 5  ;;  %v3112_v2 = vshll.u32 %v3877_v61, 16  ;;  %v3009_v25 = vsel %vm5185_vm5, %v3004_v16, %v3008_v1  ;;  %v3021_v38 = vshrl.u32 %v3866_v39, 16  ;;  %4349 = vmatprep.subr.bf16.mxu0 %v4623_v24  ;;  %4351 = vmatprep.mubr.bf16.mxu0 %v5739_v8 }
  0xdf   : >> { %v3099_v33 = vor.u32 %v3098_v37, %v3095_v29  ;;  %v3108_v17 = vrot.slane %v3106_v26, 4  ;;  %v3019_v55 = vsel %vm5185_vm5, %v3014_v9, %v3018_v22  ;;  %v3024_v63 = vshll.u32 %v3866_v39, 16  ;;  %4359 = vmatprep.mubr.bf16.mxu1 %v5752_v27 }
  0xe0   : >> { %v3114_v58 = vrot.slane %v3112_v2, 5  ;;  %v3030_v35 = vshll.u32 %v3867_v44, 16  ;;  %v3899_v50 = vcombine.low %v3009_v25, %v3019_v55  ;;  %v3023_v32 = vrot.slane %v3021_v38, 4  ;;  %4382 = vmatpush3.bf16.msra.mxu1 %v4623_v24 }
  0xe1   : >> { %v3100_v54 = vrot.slane %v3099_v33, 4  ;;  %v3109_v47 = vor.u32 %v3108_v17, %v3104_v19  ;;  %v3026_v5 = vrot.slane %v3024_v63, 5  ;;  %v3034_v12 = vshrl.u32 %v3867_v44, 16  ;;  %4350 = vmatpush3.bf16.msra.mxu0 %v4623_v24 }
  0xe2   : >> { %v3032_v56 = vrot.slane %v3030_v35, 5  ;;  %v3040_v8 = vshll.u32 %v3868_v0, 16  ;;  %v3117_v21 = vshrl.u32 %v3878_v18, 16  ;;  %v3120_v14 = vshll.u32 %v3878_v18, 16 }
  0xe3   : >> { %v3105_v15 = vsel %vm5185_vm5, %v3100_v54, %v3104_v19  ;;  %v3110_v46 = vrot.slane %v3109_v47, 4  ;;  %v3027_v13 = vor.u32 %v3026_v5, %v3023_v32  ;;  %v3036_v27 = vrot.slane %v3034_v12, 4  ;;  %4360 = vmatmul.mubr.bf16.vlgmr.msra.gmra.mrb[16].mxu1 %v3902_v52 }
  0xe4   : >> { %v3042_v34 = vrot.slane %v3040_v8, 5  ;;  %v3126_v45 = vshll.u32 %v3879_v10, 16  ;;  %v3119_v48 = vrot.slane %v3117_v21, 4  ;;  %v3122_v53 = vrot.slane %v3120_v14, 5  ;;  %4352 = vmatmul.mubr.bf16.vlgmr.msra.gmra.mrb[0].mxu0 %v5770_v43 }
  0xe5   : >> { %v3115_v30 = vsel %vm5185_vm5, %v3110_v46, %v3114_v58  ;;  %v3130_v60 = vshrl.u32 %v3879_v10, 16  ;;  %v3028_v4 = vrot.slane %v3027_v13, 4  ;;  %v3037_v20 = vor.u32 %v3036_v27, %v3032_v56  ;;  %4355 = vmatprep.mubr.bf16.mxu0 %v3899_v50 }
  0xe6   : >> { %v3903_v62 = vcombine.low %v3105_v15, %v3115_v30  ;;  %v3128_v3 = vrot.slane %v3126_v45, 5  ;;  %v3123_v11 = vor.u32 %v3122_v53, %v3119_v48  ;;  %v3136_v1 = vshll.u32 %v3880_v51, 16  ;;  %v5910_v51 = vld [vmem:[#allocation3_spill] sm:$0xff] }
  0xe7   : >> { %v3132_v23 = vrot.slane %v3130_v60, 4  ;;  %v3033_v36 = vsel %vm5185_vm5, %v3028_v4, %v3032_v56  ;;  %v3038_v31 = vrot.slane %v3037_v20, 4 }
  0xe8   : >> { %4363 = vmatprep.mubr.bf16.mxu1 %v3903_v62  ;;  %v3124_v7 = vrot.slane %v3123_v11, 4  ;;  %v3138_v59 = vrot.slane %v3136_v1, 5 }
  0xe9   : >> { %v3133_v24 = vor.u32 %v3132_v23, %v3128_v3  ;;  %v3043_v49 = vsel %vm5185_vm5, %v3038_v31, %v3042_v34 }
  0xea   : >> { %v3900_v43 = vcombine.low %v3033_v36, %v3043_v49  ;;  %v3129_v6 = vsel %vm5185_vm5, %v3124_v7, %v3128_v3 }
  0xeb   : >> { %v3134_v61 = vrot.slane %v3133_v24, 4 }
  0xec   : >> { %4356 = vmatmul.mubr.bf16.gmra.mrb[4].mxu0 %v3900_v43 }
  0xed   : >> { %v3139_v28 = vsel %vm5185_vm5, %v3134_v61, %v3138_v59 }
  0xee   : >> { %v3904_v40 = vcombine.low %v3129_v6, %v3139_v28 }
  0xf0   : >> { %4364 = vmatmul.mubr.bf16.gmra.mrb[20].mxu1 %v3904_v40 }
 0x196   : >> { %v4193_v22 = vpop.f32.mrb[0].mxu1 }
 0x197   : >> { %v1553_v29 = vpop.f32.mrb[1].mxu1 }
 0x198   : >> { %v4194_v57 = vpop.f32.mrb[2].mxu1 }
 0x199   : >> { %v1556_v39 = vpop.f32.mrb[3].mxu1 }
 0x19e   : >> { %v5810_v42 = vpop.f32.mrb[4].mxu1 }
 0x19f   : >> { %v5812_v16 = vpop.f32.mrb[5].mxu1 }
 0x1a0   : >> { %v5814_v37 = vpop.f32.mrb[6].mxu1 }
 0x1a1   : >> { %v5816_v26 = vpop.f32.mrb[7].mxu1 }
 0x1a6   : >> { %v4201_v44 = vpop.f32.mrb[8].mxu1 }
 0x1a7   : >> { %v4329_v52 = vpop.f32.mrb[8].mxu0  ;;  %v1585_v9 = vpop.f32.mrb[9].mxu1 }
 0x1a8   : >> { %v4391_v41 = vadd.f32 %v4329_v52, %v4201_v44  ;;  %v2877_v19 = vpop.f32.mrb[9].mxu0  ;;  %v4202_v2 = vpop.f32.mrb[10].mxu1 }
 0x1a9   : >> { %v4393_v25 = vadd.f32 %v2877_v19, %v1585_v9  ;;  %v4330_v33 = vpop.f32.mrb[10].mxu0  ;;  %v1588_v17 = vpop.f32.mrb[11].mxu1 }
 0x1aa   : >> { %v4395_v0 = vadd.f32 %v4330_v33, %v4202_v2  ;;  %v2880_v38 = vpop.f32.mrb[11].mxu0 }
 0x1ab   : >> { %v4397_v55 = vadd.f32 %v2880_v38, %v1588_v17 }
 0x1ae   : >> { %v4205_v58 = vpop.f32.mrb[12].mxu1 }
 0x1af   : >> { %v4333_v63 = vpop.f32.mrb[12].mxu0  ;;  %v1601_v35 = vpop.f32.mrb[13].mxu1 }
 0x1b0   : >> { %v4399_v18 = vadd.f32 %v4333_v63, %v4205_v58  ;;  %v2893_v50 = vpop.f32.mrb[13].mxu0  ;;  %v4206_v54 = vpop.f32.mrb[14].mxu1 }
 0x1b1   : >> { %v4401_v47 = vadd.f32 %v2893_v50, %v1601_v35  ;;  %v4334_v32 = vpop.f32.mrb[14].mxu0  ;;  %v1604_v10 = vpop.f32.mrb[15].mxu1 }
 0x1b2   : >> { %v4403_v5 = vadd.f32 %v4334_v32, %v4206_v54  ;;  %v2896_v56 = vpop.f32.mrb[15].mxu0 }
 0x1b3   : >> { %v5818_v12 = vadd.f32 %v2896_v56, %v1604_v10 }
 0x1b6   : >> { %v4361_v8 = vpop.f32.mrb[16].mxu1 }
 0x1b7   : >> { %v4353_v15 = vpop.f32.mrb[0].mxu0  ;;  %v4392_v46 = vadd.f32 %v4391_v41, %v4361_v8  ;;  %v3303_v21 = vpop.f32.mrb[17].mxu1 }
 0x1b8   : >> { %v4383_v14 = vadd.f32 %v4353_v15, %v4193_v22  ;;  %v3271_v13 = vpop.f32.mrb[1].mxu0  ;;  %v4394_v27 = vadd.f32 %v4393_v25, %v3303_v21  ;;  %v4362_v34 = vpop.f32.mrb[18].mxu1 }
 0x1b9   : >> { %v3366_v45 = vadd.f32 %v4392_v46, %v5910_v51  ;;  %v4384_v30 = vadd.f32 %v3271_v13, %v1553_v29  ;;  %v4354_v48 = vpop.f32.mrb[2].mxu0  ;;  %v4396_v53 = vadd.f32 %v4395_v0, %v4362_v34  ;;  %v3306_v60 = vpop.f32.mrb[19].mxu1 }
 0x1ba   : >> { %v3358_v62 = vadd.f32 %v4383_v14, %v5910_v51  ;;  %v3364_v4 = vadd.f32 %v4394_v27, %v5910_v51  ;;  %v4385_v20 = vadd.f32 %v4354_v48, %v4194_v57  ;;  %v3274_v3 = vpop.f32.mrb[3].mxu0  ;;  %v4398_v11 = vadd.f32 %v4397_v55, %v3306_v60 }
 0x1bb   : >> { %v3382_v23 = vmax.f32 %v3366_v45, 0.0  ;;  %v3356_v1 = vadd.f32 %v4384_v30, %v5910_v51  ;;  %v3367_v36 = vadd.f32 %v4396_v53, %v5910_v51  ;;  %v4386_v31 = vadd.f32 %v3274_v3, %v1556_v39 }
 0x1bc   : >> { %v3374_v7 = vmax.f32 %v3358_v62, 0.0  ;;  %v3380_v24 = vmax.f32 %v3364_v4, 0.0  ;;  %v3359_v59 = vadd.f32 %v4385_v20, %v5910_v51  ;;  %v3365_v49 = vadd.f32 %v4398_v11, %v5910_v51 }
 0x1bd   : >> { %v3372_v43 = vmax.f32 %v3356_v1, 0.0  ;;  %v3383_v6 = vmax.f32 %v3367_v36, 0.0  ;;  %v3357_v61 = vadd.f32 %v4386_v31, %v5910_v51 }
 0x1be   : >> { %v3396_v28 = vmax.f32 %v3380_v24, %v3382_v23  ;;  %v3375_v40 = vmax.f32 %v3359_v59, 0.0  ;;  %v3381_v22 = vmax.f32 %v3365_v49, 0.0 }
 0x1bf   : >> { %v3388_v29 = vmax.f32 %v3372_v43, %v3374_v7  ;;  %v3373_v57 = vmax.f32 %v3357_v61, 0.0  ;;  %v4357_v44 = vpop.f32.mrb[4].mxu0 }
 0x1c0   : >> { %3398 = vst [vmem:[#allocation2 + $0x20] sm:$0xff] %v3396_v28  ;;  %v3397_v52 = vmax.f32 %v3381_v22, %v3383_v6  ;;  %v4387_v39 = vadd.f32 %v4357_v44, %v5810_v42  ;;  %v3287_v9 = vpop.f32.mrb[5].mxu0 }
 0x1c1   : >> { %3390 = vst [vmem:[#allocation2] sm:$0xff] %v3388_v29  ;;  %v3389_v41 = vmax.f32 %v3373_v57, %v3375_v40  ;;  %v4388_v2 = vadd.f32 %v3287_v9, %v5812_v16  ;;  %v4358_v25 = vpop.f32.mrb[6].mxu0 }
 0x1c2   : >> { %3399 = vst [vmem:[#allocation2 + $0x28] sm:$0xff] %v3397_v52  ;;  %v3362_v33 = vadd.f32 %v4387_v39, %v5910_v51  ;;  %v4389_v38 = vadd.f32 %v4358_v25, %v5814_v37  ;;  %v3290_v55 = vpop.f32.mrb[7].mxu0 }
 0x1c3   : >> { %v4365_v19 = vpop.f32.mrb[20].mxu1  ;;  %3391 = vst [vmem:[#allocation2 + $0x8] sm:$0xff] %v3389_v41  ;;  %v3360_v58 = vadd.f32 %v4388_v2, %v5910_v51  ;;  %v4390_v35 = vadd.f32 %v3290_v55, %v5816_v26 }
 0x1c4   : >> { %v4400_v17 = vadd.f32 %v4399_v18, %v4365_v19  ;;  %v3319_v0 = vpop.f32.mrb[21].mxu1  ;;  %v3378_v50 = vmax.f32 %v3362_v33, 0.0  ;;  %v3363_v16 = vadd.f32 %v4389_v38, %v5910_v51 }
 0x1c5   : >> { %v4402_v63 = vadd.f32 %v4401_v47, %v3319_v0  ;;  %v4366_v42 = vpop.f32.mrb[22].mxu1  ;;  %v3376_v56 = vmax.f32 %v3360_v58, 0.0  ;;  %v3361_v37 = vadd.f32 %v4390_v35, %v5910_v51 }
 0x1c6   : >> { %v3370_v54 = vadd.f32 %v4400_v17, %v5910_v51  ;;  %v4404_v32 = vadd.f32 %v4403_v5, %v4366_v42  ;;  %v3322_v10 = vpop.f32.mrb[23].mxu1  ;;  %v3379_v46 = vmax.f32 %v3363_v16, 0.0 }
 0x1c7   : >> { %v3368_v18 = vadd.f32 %v4402_v63, %v5910_v51  ;;  %v4406_v8 = vadd.f32 %v5818_v12, %v3322_v10  ;;  %v3392_v21 = vmax.f32 %v3376_v56, %v3378_v50  ;;  %v3377_v14 = vmax.f32 %v3361_v37, 0.0 }
 0x1c8   : >> { %v3386_v15 = vmax.f32 %v3370_v54, 0.0  ;;  %v3371_v47 = vadd.f32 %v4404_v32, %v5910_v51 }
 0x1c9   : >> { %v3384_v26 = vmax.f32 %v3368_v18, 0.0  ;;  %v3369_v13 = vadd.f32 %v4406_v8, %v5910_v51  ;;  %3394 = vst [vmem:[#allocation2 + $0x10] sm:$0xff] %v3392_v21  ;;  %v3393_v34 = vmax.f32 %v3377_v14, %v3379_v46  ;;  %v3408_v53 = vld [vmem:[#allocation2 + $0x20] ss:$2 sm:$0xff]  ;;  %v3416_v60 = vld [vmem:[#allocation2 + $0x21] ss:$2 sm:$0xff] }
 0x1ca   : >> { %v3387_v27 = vmax.f32 %v3371_v47, 0.0  ;;  %v3404_v12 = vld [vmem:[#allocation2] ss:$2 sm:$0xff]  ;;  %v3412_v48 = vld [vmem:[#allocation2 + $0x1] ss:$2 sm:$0xff]  ;;  %v3421_v1 = vmax.f32 %v3408_v53, %v3416_v60 }
 0x1cb   : >> { %v3400_v5 = vmax.f32 %v3384_v26, %v3386_v15  ;;  %v3385_v45 = vmax.f32 %v3369_v13, 0.0  ;;  %3395 = vst [vmem:[#allocation2 + $0x18] sm:$0xff] %v3393_v34  ;;  %v3419_v20 = vmax.f32 %v3404_v12, %v3412_v48 }
 0x1cd   : >> { %3402 = vst [vmem:[#allocation2 + $0x30] sm:$0xff] %v3400_v5  ;;  %v3401_v30 = vmax.f32 %v3385_v45, %v3387_v27 }
 0x1cf   : >> { %3403 = vst [vmem:[#allocation2 + $0x38] sm:$0xff] %v3401_v30 }
 0x1d2   : >> { %v3406_v62 = vld [vmem:[#allocation2 + $0x10] ss:$2 sm:$0xff]  ;;  %v3414_v4 = vld [vmem:[#allocation2 + $0x11] ss:$2 sm:$0xff] }
 0x1d3   : >> { %v3420_v3 = vmax.f32 %v3406_v62, %v3414_v4 }
 0x1d5   : >> { %v3927_v36 = vpack.c.bf16 %v3420_v3, %v3419_v20  ;;  %177 = sbr.rel (!%p175_p4) target bundleno = 17 (0x11), region = 88 }
 0x1d6   : >> { %v3410_v11 = vld [vmem:[#allocation2 + $0x30] ss:$2 sm:$0xff]  ;;  %v3418_v23 = vld [vmem:[#allocation2 + $0x31] ss:$2 sm:$0xff] }
 0x1d7   : >> { %v3422_v31 = vmax.f32 %v3410_v11, %v3418_v23  ;;  %3928 = vst [vmem:[%s3429_s11] sm:$0xff] %v3927_v36  }
 0x1d9   : >> { %v3932_v7 = vpack.c.bf16 %v3422_v31, %v3421_v1 }
 0x1db   : >> { %3934 = vst [vmem:[%s3429_s11 + $0x8] sm:$0xff] %v3932_v7  }
 0x1dc PF: > { %s13_s12 = sadd.s32 1, %s4634_s12  }
 0x1dd   : > { %p10_p5 = scmp.ge.s32.totalorder %s13_s12, 4  }
 0x1df   :  { %12 = sbr.rel (!%p10_p5) target bundleno = 1 (0x1), region = 99 }

</bundles_post_ra>
